<compile_context>
chip_gen: v7x
topology: tpu7x:2x2x1
jax: 0.10.0
libtpu: 0.0.40
codegen_flags: <defaults>
</compile_context>

<pallas_src>
import numpy as np
import jax
import jax.numpy as jnp
from jax.experimental import pallas as pl
from jax.experimental.pallas import tpu as pltpu

NEG_SLOPE = 0.01  # F.leaky_relu default

# Static geometry implied by fc(1024 -> 512): input must be 3x64x64.
H0, W0, C0 = 64, 64, 3
OH1, OW1, C1 = 15, 15, 32   # conv1: k=8 s=4
OH2, OW2, C2 = 6, 6, 64     # conv2: k=4 s=2
OH3, OW3, C3 = 4, 4, 64     # conv3: k=3 s=1
FC_IN, FC_OUT = 1024, 512

BT = 8          # images per grid step (batch tile); keeps all row slices 8-aligned
A1P = 512       # conv1 output lane width, padded 480 -> 512


def _leaky(y):
    return jnp.where(y >= 0, y, NEG_SLOPE * y)


# ----------------------------------------------------------------------------
# The single fused kernel (BT images per grid step).
#
# Row layouts (b = image index within the tile, channels are lane-minor):
#   x_ref : [64*BT, 192]  row = p*(8*BT) + j*BT + b     (input h = 8*j + p)
#   a1_ref: [15*BT, 512]  rows [0:8*BT]   -> oh1 = 2*j   (row =          j*BT + b)
#                         rows [8*BT: ]   -> oh1 = 2*j+1 (row = 8*BT +   j*BT + b)
#   a2_ref: [ 6*BT, 384]  row = oh2*BT + b
#   y3    : [ 4*BT, 256]  row = oh3*BT + b
#   out   : [   BT, 512]  row = b
# ----------------------------------------------------------------------------
def _fused_kernel(x_ref, g1_ref, g2_ref, g3_ref, wfc_ref,
                  b1_ref, b2_ref, b3_ref, bfc_ref,
                  out_ref, a1_ref, a2_ref):
    f32 = jnp.float32
    bf16 = jnp.bfloat16
    nE, nO = 8 * BT, 7 * BT   # even / odd conv1 output row counts (oh1 = 0..14)

    # ---- conv1 (k=8, s=4): even output rows oh1 = 2j  (input h = 8j + kh) ----
    for kh in range(8):
        lhs = x_ref[kh * 8 * BT: kh * 8 * BT + nE, :]             # [8*BT, 192] bf16
        prod = jnp.dot(lhs, g1_ref[kh], preferred_element_type=f32)
        if kh == 0:
            a1_ref[0:nE, :] = prod
        elif kh < 7:
            a1_ref[0:nE, :] += prod
        else:
            a1_ref[0:nE, :] = _leaky(a1_ref[0:nE, :] + prod + b1_ref[...])

    # ---- conv1: odd output rows oh1 = 2j+1  (input h = 8j + 4 + kh) ----
    for kh in range(8):
        ph, base = (kh + 4, 0) if kh < 4 else (kh - 4, BT)
        start = ph * 8 * BT + base
        lhs = x_ref[start: start + nO, :]                         # [7*BT, 192] bf16
        prod = jnp.dot(lhs, g1_ref[kh], preferred_element_type=f32)
        if kh == 0:
            a1_ref[nE:nE + nO, :] = prod
        elif kh < 7:
            a1_ref[nE:nE + nO, :] += prod
        else:
            a1_ref[nE:nE + nO, :] = _leaky(
                a1_ref[nE:nE + nO, :] + prod + b1_ref[...])

    # ---- conv2 (k=4, s=2): parity-deinterleaved a1 -> contiguous tap slices ----
    for kh in range(4):
        start = (kh % 2) * nE + (kh // 2) * BT
        lhs = a1_ref[start: start + 6 * BT, :].astype(bf16)       # [6*BT, 512]
        prod = jnp.dot(lhs, g2_ref[kh], preferred_element_type=f32)
        if kh == 0:
            a2_ref[...] = prod
        elif kh < 3:
            a2_ref[...] += prod
        else:
            a2_ref[...] = _leaky(a2_ref[...] + prod + b2_ref[...])

    # ---- conv3 (k=3, s=1): contiguous tap slices of a2 ----
    acc3 = jnp.dot(a2_ref[0:4 * BT, :].astype(bf16), g3_ref[0],
                   preferred_element_type=f32)
    for kh in range(1, 3):
        acc3 += jnp.dot(a2_ref[kh * BT: kh * BT + 4 * BT, :].astype(bf16),
                        g3_ref[kh], preferred_element_type=f32)
    y3 = _leaky(acc3 + b3_ref[...])                               # [4*BT, 256] f32

    # ---- fc: single [BT, 1024] x [1024, 512] matmul ----
    fc_lhs = jnp.concatenate([y3[r * BT:(r + 1) * BT, :] for r in range(OH3)],
                             axis=1).astype(bf16)                 # [BT, 1024]
    out = jnp.dot(fc_lhs, wfc_ref[...], preferred_element_type=f32) + bfc_ref[...]
    out_ref[...] = out


# ----------------------------------------------------------------------------
# Host-side, init-time weight preparation (numpy; done once, outside jit).
# ----------------------------------------------------------------------------
def _conv_tap_matrices(w_oihw, w_in, stride, k_pad=None, n_pad=None):
    """Banded per-kh matrices G[kh] : [k_pad or W_in*Cin, n_pad or OW*Cout].

    Input row layout: lane = w*Cin + cin.  Output layout: lane = ow*Cout + cout.
    Padding rows / columns (if requested) are zero.
    """
    cout, cin, kh_sz, kw_sz = w_oihw.shape
    ow_out = (w_in - kw_sz) // stride + 1
    K = k_pad if k_pad is not None else w_in * cin
    N = n_pad if n_pad is not None else ow_out * cout
    g = np.zeros((kh_sz, K, N), np.float32)
    wt = np.transpose(w_oihw, (2, 3, 1, 0))  # [kh, kw, cin, cout]
    for kh in range(kh_sz):
        for ow in range(ow_out):
            for kw in range(kw_sz):
                col = ow * stride + kw
                g[kh, col * cin:(col + 1) * cin,
                      ow * cout:(ow + 1) * cout] = wt[kh, kw]
    return g


def prep_params(raw):
    w1 = np.asarray(raw["w1"], np.float32)
    w2 = np.asarray(raw["w2"], np.float32)
    w3 = np.asarray(raw["w3"], np.float32)
    wfc = np.asarray(raw["wfc"], np.float32)
    b1 = np.asarray(raw["b1"], np.float32)
    b2 = np.asarray(raw["b2"], np.float32)
    b3 = np.asarray(raw["b3"], np.float32)
    bfc = np.asarray(raw["bfc"], np.float32)

    g1 = _conv_tap_matrices(w1, W0, 4, n_pad=A1P)    # [8, 192, 512] (cols 480: pad)
    g2 = _conv_tap_matrices(w2, OW1, 2, k_pad=A1P)   # [4, 512, 384] (rows 480: pad)
    g3 = _conv_tap_matrices(w3, OW2, 1)              # [3, 384, 256]

    # Fold PyTorch's (C,H,W) flatten + fc transpose into ONE [1024, 512] matrix:
    #   wfc_cat[oh*256 + ow*64 + c, o] = wfc[o, c*16 + oh*4 + ow]
    wfc_r = wfc.reshape(FC_OUT, C3, OH3, OW3)                      # [o, c, oh, ow]
    wfc_cat = np.ascontiguousarray(
        np.transpose(wfc_r, (2, 3, 1, 0))).reshape(FC_IN, FC_OUT)  # [1024, 512]

    b1p = np.zeros((1, A1P), np.float32)
    b1p[0, :OW1 * C1] = np.tile(b1, OW1)                           # pad lanes stay 0

    return {
        "g1": jnp.asarray(g1, jnp.bfloat16),
        "g2": jnp.asarray(g2, jnp.bfloat16),
        "g3": jnp.asarray(g3, jnp.bfloat16),
        "wfc": jnp.asarray(wfc_cat, jnp.bfloat16),
        "b1": jnp.asarray(b1p, jnp.float32),                       # [1, 512]
        "b2": jnp.asarray(np.tile(b2, OW2)[None, :], jnp.float32), # [1, 384]
        "b3": jnp.asarray(np.tile(b3, OW3)[None, :], jnp.float32), # [1, 256]
        "bfc": jnp.asarray(bfc[None, :], jnp.float32),             # [1, 512]
    }


# ----------------------------------------------------------------------------
# Forward pass (matches PovEncoder.forward).
# ----------------------------------------------------------------------------
def _forward_impl(prep, x):
    B = x.shape[0]
    assert x.shape[1:] == (C0, H0, W0), x.shape

    # Pad batch to a multiple of BT (padded images are computed and sliced away).
    Bp = ((B + BT - 1) // BT) * BT
    if Bp != B:
        x = jnp.concatenate(
            [x, jnp.zeros((Bp - B,) + x.shape[1:], x.dtype)], axis=0)
    G = Bp // BT

    # NCHW -> per-image NHWC rows [h, w*C]; de-interleave rows by h mod 8 and group
    # the batch:  row = g*(64*BT) + p*(8*BT) + j*BT + b   with  h = 8*j + p.
    # Also pre-cast to bf16 (halves input DMA; accumulation stays f32 in-kernel).
    xr = jnp.transpose(x, (0, 2, 3, 1)).reshape(Bp, H0, W0 * C0)
    xr = xr.reshape(G, BT, 8, 8, W0 * C0)               # [G, b, j, p, 192]
    xr = jnp.transpose(xr, (0, 3, 2, 1, 4))             # [G, p, j, b, 192]
    xr = xr.reshape(G * 64 * BT, W0 * C0).astype(jnp.bfloat16)

    out = pl.pallas_call(
        _fused_kernel,
        out_shape=jax.ShapeDtypeStruct((Bp, FC_OUT), jnp.float32),
        grid=(G,),
        in_specs=[
            pl.BlockSpec((64 * BT, W0 * C0), lambda g: (g, 0)),
            pl.BlockSpec((8, W0 * C0, A1P), lambda g: (0, 0, 0)),
            pl.BlockSpec((4, A1P, OW2 * C2), lambda g: (0, 0, 0)),
            pl.BlockSpec((3, OW2 * C2, OW3 * C3), lambda g: (0, 0, 0)),
            pl.BlockSpec((FC_IN, FC_OUT), lambda g: (0, 0)),
            pl.BlockSpec((1, A1P), lambda g: (0, 0)),
            pl.BlockSpec((1, OW2 * C2), lambda g: (0, 0)),
            pl.BlockSpec((1, OW3 * C3), lambda g: (0, 0)),
            pl.BlockSpec((1, FC_OUT), lambda g: (0, 0)),
        ],
        out_specs=pl.BlockSpec((BT, FC_OUT), lambda g: (g, 0)),
        scratch_shapes=[
            pltpu.VMEM((OH1 * BT, A1P), jnp.float32),        # conv1 out (deinterleaved)
            pltpu.VMEM((OH2 * BT, OW2 * C2), jnp.float32),   # conv2 out
        ],
        compiler_params=pltpu.CompilerParams(
            dimension_semantics=("parallel",),
            vmem_limit_bytes=32 * 1024 * 1024,
        ),
    )(xr, prep["g1"], prep["g2"], prep["g3"], prep["wfc"],
      prep["b1"], prep["b2"], prep["b3"], prep["bfc"])
    return out[:B]


pov_encoder_forward = jax.jit(_forward_impl)


# ----------------------------------------------------------------------------
# Raw (PyTorch-layout) parameter init + pure-JAX reference.
# ----------------------------------------------------------------------------
def _uniform(key, shape, fan_in):
    bound = 1.0 / float(np.sqrt(fan_in))
    return jax.random.uniform(key, shape, jnp.float32, -bound, bound)


def init_raw_params(key):
    ks = jax.random.split(key, 8)
    return {
        "w1": _uniform(ks[0], (32, 3, 8, 8), 3 * 8 * 8),
        "b1": _uniform(ks[1], (32,), 3 * 8 * 8),
        "w2": _uniform(ks[2], (64, 32, 4, 4), 32 * 4 * 4),
        "b2": _uniform(ks[3], (64,), 32 * 4 * 4),
        "w3": _uniform(ks[4], (64, 64, 3, 3), 64 * 3 * 3),
        "b3": _uniform(ks[5], (64,), 64 * 3 * 3),
        "wfc": _uniform(ks[6], (512, 1024), 1024),  # PyTorch Linear: [out, in]
        "bfc": _uniform(ks[7], (512,), 1024),
    }


@jax.jit
def pov_encoder_reference(raw, x):
    def conv(h, w, b, s):
        y = jax.lax.conv_general_dilated(
            h, w, window_strides=(s, s), padding="VALID",
            dimension_numbers=("NCHW", "OIHW", "NCHW"))
        return _leaky(y + b.reshape(1, -1, 1, 1))

    h = conv(x, raw["w1"], raw["b1"], 4)
    h = conv(h, raw["w2"], raw["b2"], 2)
    h = conv(h, raw["w3"], raw["b3"], 1)
    flat = h.reshape(h.shape[0], -1)
    return flat @ raw["wfc"].T + raw["bfc"]


if __name__ == "__main__":
    key = jax.random.PRNGKey(0)
    k_param, k_x = jax.random.split(key)

    raw = init_raw_params(k_param)
    prepped = prep_params(raw)
    # fc expects 1024 = 64*4*4 features, which pins the spatial input to 64x64.
    # B=10 exercises both the batch-tiled grid (2 steps of BT=8) and batch padding.
    x = jax.random.normal(k_x, (10, 3, 64, 64), jnp.float32)

    out = jax.block_until_ready(pov_encoder_forward(prepped, x))
    assert out.shape == (10, 512), out.shape
    assert out.dtype == jnp.float32

    ref = jax.block_until_ready(pov_encoder_reference(raw, x))
    max_err = float(jnp.max(jnp.abs(out - ref)))
    assert jnp.allclose(out, ref, rtol=2e-2, atol=2e-2), max_err

    print("KERNEL_OK")
</pallas_src>

<mosaic_0001>
module attributes {stable_mosaic.version = 11 : i64} {
  func.func @_fused_kernel(%arg0: i32, %arg1: memref<512x192xbf16, #tpu.memory_space<vmem>>, %arg2: memref<8x192x512xbf16, #tpu.memory_space<vmem>>, %arg3: memref<4x512x384xbf16, #tpu.memory_space<vmem>>, %arg4: memref<3x384x256xbf16, #tpu.memory_space<vmem>>, %arg5: memref<1024x512xbf16, #tpu.memory_space<vmem>>, %arg6: memref<1x512xf32, #tpu.memory_space<vmem>>, %arg7: memref<1x384xf32, #tpu.memory_space<vmem>>, %arg8: memref<1x256xf32, #tpu.memory_space<vmem>>, %arg9: memref<1x512xf32, #tpu.memory_space<vmem>>, %arg10: memref<8x512xf32, #tpu.memory_space<vmem>>, %arg11: memref<120x512xf32, #tpu.memory_space<vmem>>, %arg12: memref<48x384xf32, #tpu.memory_space<vmem>>) attributes {dimension_semantics = [#tpu.dimension_semantics<parallel>], iteration_bounds = array<i64: 2>, scalar_prefetch = 0 : i64, scratch_operands = 2 : i64, tpu.core_type = #tpu.core_type<tc>, window_params = [{transform_indices = @transform_0, window_bounds = array<i64: 512, 192>}, {pipeline_mode = #tpu.pipeline_mode<synchronous>, transform_indices = @transform_1, window_bounds = array<i64: 8, 192, 512>}, {pipeline_mode = #tpu.pipeline_mode<synchronous>, transform_indices = @transform_2, window_bounds = array<i64: 4, 512, 384>}, {pipeline_mode = #tpu.pipeline_mode<synchronous>, transform_indices = @transform_3, window_bounds = array<i64: 3, 384, 256>}, {pipeline_mode = #tpu.pipeline_mode<synchronous>, transform_indices = @transform_4, window_bounds = array<i64: 1024, 512>}, {pipeline_mode = #tpu.pipeline_mode<synchronous>, transform_indices = @transform_5, window_bounds = array<i64: 1, 512>}, {pipeline_mode = #tpu.pipeline_mode<synchronous>, transform_indices = @transform_6, window_bounds = array<i64: 1, 384>}, {pipeline_mode = #tpu.pipeline_mode<synchronous>, transform_indices = @transform_7, window_bounds = array<i64: 1, 256>}, {pipeline_mode = #tpu.pipeline_mode<synchronous>, transform_indices = @transform_8, window_bounds = array<i64: 1, 512>}, {transform_indices = @transform_9, window_bounds = array<i64: 8, 512>}]} {
    %c0 = arith.constant 0 : index
    %c0_0 = arith.constant 0 : index
    %0 = vector.load %arg1[%c0, %c0_0] : memref<512x192xbf16, #tpu.memory_space<vmem>>, vector<64x192xbf16>
    %c0_1 = arith.constant 0 : index
    %c0_2 = arith.constant 0 : index
    %c0_3 = arith.constant 0 : index
    %1 = vector.load %arg2[%c0_1, %c0_2, %c0_3] : memref<8x192x512xbf16, #tpu.memory_space<vmem>>, vector<1x192x512xbf16>
    %2 = vector.shape_cast %1 : vector<1x192x512xbf16> to vector<192x512xbf16>
    %cst = arith.constant dense<0.000000e+00> : vector<64x512xf32>
    %3 = tpu.matmul %0, %2, %cst {dimension_numbers = #tpu.dot_dimension_numbers<[1], [0], [0], [1], [0, 0, 1, 1], [], []>} : vector<64x192xbf16>, vector<192x512xbf16>, vector<64x512xf32> -> vector<64x512xf32>
    %c0_4 = arith.constant 0 : index
    %c0_5 = arith.constant 0 : index
    %4 = vector.load %arg11[%c0_4, %c0_5] : memref<120x512xf32, #tpu.memory_space<vmem>>, vector<64x512xf32>
    tpu.vector_store %arg11[%c0_4, %c0_5], %3 {strides = array<i32>} : memref<120x512xf32, #tpu.memory_space<vmem>>, vector<64x512xf32>,
    %c64 = arith.constant 64 : index
    %c0_6 = arith.constant 0 : index
    %5 = vector.load %arg1[%c64, %c0_6] : memref<512x192xbf16, #tpu.memory_space<vmem>>, vector<64x192xbf16>
    %c1 = arith.constant 1 : index
    %c0_7 = arith.constant 0 : index
    %c0_8 = arith.constant 0 : index
    %6 = vector.load %arg2[%c1, %c0_7, %c0_8] : memref<8x192x512xbf16, #tpu.memory_space<vmem>>, vector<1x192x512xbf16>
    %7 = vector.shape_cast %6 : vector<1x192x512xbf16> to vector<192x512xbf16>
    %cst_9 = arith.constant dense<0.000000e+00> : vector<64x512xf32>
    %8 = tpu.matmul %5, %7, %cst_9 {dimension_numbers = #tpu.dot_dimension_numbers<[1], [0], [0], [1], [0, 0, 1, 1], [], []>} : vector<64x192xbf16>, vector<192x512xbf16>, vector<64x512xf32> -> vector<64x512xf32>
    %c0_10 = arith.constant 0 : index
    %c0_11 = arith.constant 0 : index
    %9 = vector.load %arg11[%c0_10, %c0_11] : memref<120x512xf32, #tpu.memory_space<vmem>>, vector<64x512xf32>
    %10 = arith.addf %9, %8 : vector<64x512xf32>
    %c0_12 = arith.constant 0 : index
    %c0_13 = arith.constant 0 : index
    %11 = vector.load %arg11[%c0_12, %c0_13] : memref<120x512xf32, #tpu.memory_space<vmem>>, vector<64x512xf32>
    tpu.vector_store %arg11[%c0_12, %c0_13], %10 {strides = array<i32>} : memref<120x512xf32, #tpu.memory_space<vmem>>, vector<64x512xf32>,
    %c128 = arith.constant 128 : index
    %c0_14 = arith.constant 0 : index
    %12 = vector.load %arg1[%c128, %c0_14] : memref<512x192xbf16, #tpu.memory_space<vmem>>, vector<64x192xbf16>
    %c2 = arith.constant 2 : index
    %c0_15 = arith.constant 0 : index
    %c0_16 = arith.constant 0 : index
    %13 = vector.load %arg2[%c2, %c0_15, %c0_16] : memref<8x192x512xbf16, #tpu.memory_space<vmem>>, vector<1x192x512xbf16>
    %14 = vector.shape_cast %13 : vector<1x192x512xbf16> to vector<192x512xbf16>
    %cst_17 = arith.constant dense<0.000000e+00> : vector<64x512xf32>
    %15 = tpu.matmul %12, %14, %cst_17 {dimension_numbers = #tpu.dot_dimension_numbers<[1], [0], [0], [1], [0, 0, 1, 1], [], []>} : vector<64x192xbf16>, vector<192x512xbf16>, vector<64x512xf32> -> vector<64x512xf32>
    %c0_18 = arith.constant 0 : index
    %c0_19 = arith.constant 0 : index
    %16 = vector.load %arg11[%c0_18, %c0_19] : memref<120x512xf32, #tpu.memory_space<vmem>>, vector<64x512xf32>
    %17 = arith.addf %16, %15 : vector<64x512xf32>
    %c0_20 = arith.constant 0 : index
    %c0_21 = arith.constant 0 : index
    %18 = vector.load %arg11[%c0_20, %c0_21] : memref<120x512xf32, #tpu.memory_space<vmem>>, vector<64x512xf32>
    tpu.vector_store %arg11[%c0_20, %c0_21], %17 {strides = array<i32>} : memref<120x512xf32, #tpu.memory_space<vmem>>, vector<64x512xf32>,
    %c192 = arith.constant 192 : index
    %c0_22 = arith.constant 0 : index
    %19 = vector.load %arg1[%c192, %c0_22] : memref<512x192xbf16, #tpu.memory_space<vmem>>, vector<64x192xbf16>
    %c3 = arith.constant 3 : index
    %c0_23 = arith.constant 0 : index
    %c0_24 = arith.constant 0 : index
    %20 = vector.load %arg2[%c3, %c0_23, %c0_24] : memref<8x192x512xbf16, #tpu.memory_space<vmem>>, vector<1x192x512xbf16>
    %21 = vector.shape_cast %20 : vector<1x192x512xbf16> to vector<192x512xbf16>
    %cst_25 = arith.constant dense<0.000000e+00> : vector<64x512xf32>
    %22 = tpu.matmul %19, %21, %cst_25 {dimension_numbers = #tpu.dot_dimension_numbers<[1], [0], [0], [1], [0, 0, 1, 1], [], []>} : vector<64x192xbf16>, vector<192x512xbf16>, vector<64x512xf32> -> vector<64x512xf32>
    %c0_26 = arith.constant 0 : index
    %c0_27 = arith.constant 0 : index
    %23 = vector.load %arg11[%c0_26, %c0_27] : memref<120x512xf32, #tpu.memory_space<vmem>>, vector<64x512xf32>
    %24 = arith.addf %23, %22 : vector<64x512xf32>
    %c0_28 = arith.constant 0 : index
    %c0_29 = arith.constant 0 : index
    %25 = vector.load %arg11[%c0_28, %c0_29] : memref<120x512xf32, #tpu.memory_space<vmem>>, vector<64x512xf32>
    tpu.vector_store %arg11[%c0_28, %c0_29], %24 {strides = array<i32>} : memref<120x512xf32, #tpu.memory_space<vmem>>, vector<64x512xf32>,
    %c256 = arith.constant 256 : index
    %c0_30 = arith.constant 0 : index
    %26 = vector.load %arg1[%c256, %c0_30] : memref<512x192xbf16, #tpu.memory_space<vmem>>, vector<64x192xbf16>
    %c4 = arith.constant 4 : index
    %c0_31 = arith.constant 0 : index
    %c0_32 = arith.constant 0 : index
    %27 = vector.load %arg2[%c4, %c0_31, %c0_32] : memref<8x192x512xbf16, #tpu.memory_space<vmem>>, vector<1x192x512xbf16>
    %28 = vector.shape_cast %27 : vector<1x192x512xbf16> to vector<192x512xbf16>
    %cst_33 = arith.constant dense<0.000000e+00> : vector<64x512xf32>
    %29 = tpu.matmul %26, %28, %cst_33 {dimension_numbers = #tpu.dot_dimension_numbers<[1], [0], [0], [1], [0, 0, 1, 1], [], []>} : vector<64x192xbf16>, vector<192x512xbf16>, vector<64x512xf32> -> vector<64x512xf32>
    %c0_34 = arith.constant 0 : index
    %c0_35 = arith.constant 0 : index
    %30 = vector.load %arg11[%c0_34, %c0_35] : memref<120x512xf32, #tpu.memory_space<vmem>>, vector<64x512xf32>
    %31 = arith.addf %30, %29 : vector<64x512xf32>
    %c0_36 = arith.constant 0 : index
    %c0_37 = arith.constant 0 : index
    %32 = vector.load %arg11[%c0_36, %c0_37] : memref<120x512xf32, #tpu.memory_space<vmem>>, vector<64x512xf32>
    tpu.vector_store %arg11[%c0_36, %c0_37], %31 {strides = array<i32>} : memref<120x512xf32, #tpu.memory_space<vmem>>, vector<64x512xf32>,
    %c320 = arith.constant 320 : index
    %c0_38 = arith.constant 0 : index
    %33 = vector.load %arg1[%c320, %c0_38] : memref<512x192xbf16, #tpu.memory_space<vmem>>, vector<64x192xbf16>
    %c5 = arith.constant 5 : index
    %c0_39 = arith.constant 0 : index
    %c0_40 = arith.constant 0 : index
    %34 = vector.load %arg2[%c5, %c0_39, %c0_40] : memref<8x192x512xbf16, #tpu.memory_space<vmem>>, vector<1x192x512xbf16>
    %35 = vector.shape_cast %34 : vector<1x192x512xbf16> to vector<192x512xbf16>
    %cst_41 = arith.constant dense<0.000000e+00> : vector<64x512xf32>
    %36 = tpu.matmul %33, %35, %cst_41 {dimension_numbers = #tpu.dot_dimension_numbers<[1], [0], [0], [1], [0, 0, 1, 1], [], []>} : vector<64x192xbf16>, vector<192x512xbf16>, vector<64x512xf32> -> vector<64x512xf32>
    %c0_42 = arith.constant 0 : index
    %c0_43 = arith.constant 0 : index
    %37 = vector.load %arg11[%c0_42, %c0_43] : memref<120x512xf32, #tpu.memory_space<vmem>>, vector<64x512xf32>
    %38 = arith.addf %37, %36 : vector<64x512xf32>
    %c0_44 = arith.constant 0 : index
    %c0_45 = arith.constant 0 : index
    %39 = vector.load %arg11[%c0_44, %c0_45] : memref<120x512xf32, #tpu.memory_space<vmem>>, vector<64x512xf32>
    tpu.vector_store %arg11[%c0_44, %c0_45], %38 {strides = array<i32>} : memref<120x512xf32, #tpu.memory_space<vmem>>, vector<64x512xf32>,
    %c384 = arith.constant 384 : index
    %c0_46 = arith.constant 0 : index
    %40 = vector.load %arg1[%c384, %c0_46] : memref<512x192xbf16, #tpu.memory_space<vmem>>, vector<64x192xbf16>
    %c6 = arith.constant 6 : index
    %c0_47 = arith.constant 0 : index
    %c0_48 = arith.constant 0 : index
    %41 = vector.load %arg2[%c6, %c0_47, %c0_48] : memref<8x192x512xbf16, #tpu.memory_space<vmem>>, vector<1x192x512xbf16>
    %42 = vector.shape_cast %41 : vector<1x192x512xbf16> to vector<192x512xbf16>
    %cst_49 = arith.constant dense<0.000000e+00> : vector<64x512xf32>
    %43 = tpu.matmul %40, %42, %cst_49 {dimension_numbers = #tpu.dot_dimension_numbers<[1], [0], [0], [1], [0, 0, 1, 1], [], []>} : vector<64x192xbf16>, vector<192x512xbf16>, vector<64x512xf32> -> vector<64x512xf32>
    %c0_50 = arith.constant 0 : index
    %c0_51 = arith.constant 0 : index
    %44 = vector.load %arg11[%c0_50, %c0_51] : memref<120x512xf32, #tpu.memory_space<vmem>>, vector<64x512xf32>
    %45 = arith.addf %44, %43 : vector<64x512xf32>
    %c0_52 = arith.constant 0 : index
    %c0_53 = arith.constant 0 : index
    %46 = vector.load %arg11[%c0_52, %c0_53] : memref<120x512xf32, #tpu.memory_space<vmem>>, vector<64x512xf32>
    tpu.vector_store %arg11[%c0_52, %c0_53], %45 {strides = array<i32>} : memref<120x512xf32, #tpu.memory_space<vmem>>, vector<64x512xf32>,
    %c448 = arith.constant 448 : index
    %c0_54 = arith.constant 0 : index
    %47 = vector.load %arg1[%c448, %c0_54] : memref<512x192xbf16, #tpu.memory_space<vmem>>, vector<64x192xbf16>
    %c7 = arith.constant 7 : index
    %c0_55 = arith.constant 0 : index
    %c0_56 = arith.constant 0 : index
    %48 = vector.load %arg2[%c7, %c0_55, %c0_56] : memref<8x192x512xbf16, #tpu.memory_space<vmem>>, vector<1x192x512xbf16>
    %49 = vector.shape_cast %48 : vector<1x192x512xbf16> to vector<192x512xbf16>
    %cst_57 = arith.constant dense<0.000000e+00> : vector<64x512xf32>
    %50 = tpu.matmul %47, %49, %cst_57 {dimension_numbers = #tpu.dot_dimension_numbers<[1], [0], [0], [1], [0, 0, 1, 1], [], []>} : vector<64x192xbf16>, vector<192x512xbf16>, vector<64x512xf32> -> vector<64x512xf32>
    %c0_58 = arith.constant 0 : index
    %c0_59 = arith.constant 0 : index
    %51 = vector.load %arg11[%c0_58, %c0_59] : memref<120x512xf32, #tpu.memory_space<vmem>>, vector<64x512xf32>
    %52 = arith.addf %51, %50 : vector<64x512xf32>
    %c0_60 = arith.constant 0 : index
    %c0_61 = arith.constant 0 : index
    %53 = vector.load %arg6[%c0_60, %c0_61] : memref<1x512xf32, #tpu.memory_space<vmem>>, vector<1x512xf32>
    %54 = vector.broadcast %53 : vector<1x512xf32> to vector<64x512xf32>
    %55 = arith.addf %52, %54 : vector<64x512xf32>
    %cst_62 = arith.constant 0.000000e+00 : f32
    %56 = vector.broadcast %cst_62 : f32 to vector<64x512xf32>
    %57 = arith.cmpf oge, %55, %56 : vector<64x512xf32>
    %cst_63 = arith.constant 0.00999999977 : f32
    %58 = vector.broadcast %cst_63 : f32 to vector<64x512xf32>
    %59 = arith.mulf %58, %55 : vector<64x512xf32>
    %60 = arith.select %57, %55, %59 : vector<64x512xi1>, vector<64x512xf32>
    %c0_64 = arith.constant 0 : index
    %c0_65 = arith.constant 0 : index
    %61 = vector.load %arg11[%c0_64, %c0_65] : memref<120x512xf32, #tpu.memory_space<vmem>>, vector<64x512xf32>
    tpu.vector_store %arg11[%c0_64, %c0_65], %60 {strides = array<i32>} : memref<120x512xf32, #tpu.memory_space<vmem>>, vector<64x512xf32>,
    %c256_66 = arith.constant 256 : index
    %c0_67 = arith.constant 0 : index
    %62 = vector.load %arg1[%c256_66, %c0_67] : memref<512x192xbf16, #tpu.memory_space<vmem>>, vector<56x192xbf16>
    %c0_68 = arith.constant 0 : index
    %c0_69 = arith.constant 0 : index
    %c0_70 = arith.constant 0 : index
    %63 = vector.load %arg2[%c0_68, %c0_69, %c0_70] : memref<8x192x512xbf16, #tpu.memory_space<vmem>>, vector<1x192x512xbf16>
    %64 = vector.shape_cast %63 : vector<1x192x512xbf16> to vector<192x512xbf16>
    %cst_71 = arith.constant dense<0.000000e+00> : vector<56x512xf32>
    %65 = tpu.matmul %62, %64, %cst_71 {dimension_numbers = #tpu.dot_dimension_numbers<[1], [0], [0], [1], [0, 0, 1, 1], [], []>} : vector<56x192xbf16>, vector<192x512xbf16>, vector<56x512xf32> -> vector<56x512xf32>
    %c64_72 = arith.constant 64 : index
    %c0_73 = arith.constant 0 : index
    %66 = vector.load %arg11[%c64_72, %c0_73] : memref<120x512xf32, #tpu.memory_space<vmem>>, vector<56x512xf32>
    tpu.vector_store %arg11[%c64_72, %c0_73], %65 {strides = array<i32>} : memref<120x512xf32, #tpu.memory_space<vmem>>, vector<56x512xf32>,
    %c320_74 = arith.constant 320 : index
    %c0_75 = arith.constant 0 : index
    %67 = vector.load %arg1[%c320_74, %c0_75] : memref<512x192xbf16, #tpu.memory_space<vmem>>, vector<56x192xbf16>
    %c1_76 = arith.constant 1 : index
    %c0_77 = arith.constant 0 : index
    %c0_78 = arith.constant 0 : index
    %68 = vector.load %arg2[%c1_76, %c0_77, %c0_78] : memref<8x192x512xbf16, #tpu.memory_space<vmem>>, vector<1x192x512xbf16>
    %69 = vector.shape_cast %68 : vector<1x192x512xbf16> to vector<192x512xbf16>
    %cst_79 = arith.constant dense<0.000000e+00> : vector<56x512xf32>
    %70 = tpu.matmul %67, %69, %cst_79 {dimension_numbers = #tpu.dot_dimension_numbers<[1], [0], [0], [1], [0, 0, 1, 1], [], []>} : vector<56x192xbf16>, vector<192x512xbf16>, vector<56x512xf32> -> vector<56x512xf32>
    %c64_80 = arith.constant 64 : index
    %c0_81 = arith.constant 0 : index
    %71 = vector.load %arg11[%c64_80, %c0_81] : memref<120x512xf32, #tpu.memory_space<vmem>>, vector<56x512xf32>
    %72 = arith.addf %71, %70 : vector<56x512xf32>
    %c64_82 = arith.constant 64 : index
    %c0_83 = arith.constant 0 : index
    %73 = vector.load %arg11[%c64_82, %c0_83] : memref<120x512xf32, #tpu.memory_space<vmem>>, vector<56x512xf32>
    tpu.vector_store %arg11[%c64_82, %c0_83], %72 {strides = array<i32>} : memref<120x512xf32, #tpu.memory_space<vmem>>, vector<56x512xf32>,
    %c384_84 = arith.constant 384 : index
    %c0_85 = arith.constant 0 : index
    %74 = vector.load %arg1[%c384_84, %c0_85] : memref<512x192xbf16, #tpu.memory_space<vmem>>, vector<56x192xbf16>
    %c2_86 = arith.constant 2 : index
    %c0_87 = arith.constant 0 : index
    %c0_88 = arith.constant 0 : index
    %75 = vector.load %arg2[%c2_86, %c0_87, %c0_88] : memref<8x192x512xbf16, #tpu.memory_space<vmem>>, vector<1x192x512xbf16>
    %76 = vector.shape_cast %75 : vector<1x192x512xbf16> to vector<192x512xbf16>
    %cst_89 = arith.constant dense<0.000000e+00> : vector<56x512xf32>
    %77 = tpu.matmul %74, %76, %cst_89 {dimension_numbers = #tpu.dot_dimension_numbers<[1], [0], [0], [1], [0, 0, 1, 1], [], []>} : vector<56x192xbf16>, vector<192x512xbf16>, vector<56x512xf32> -> vector<56x512xf32>
    %c64_90 = arith.constant 64 : index
    %c0_91 = arith.constant 0 : index
    %78 = vector.load %arg11[%c64_90, %c0_91] : memref<120x512xf32, #tpu.memory_space<vmem>>, vector<56x512xf32>
    %79 = arith.addf %78, %77 : vector<56x512xf32>
    %c64_92 = arith.constant 64 : index
    %c0_93 = arith.constant 0 : index
    %80 = vector.load %arg11[%c64_92, %c0_93] : memref<120x512xf32, #tpu.memory_space<vmem>>, vector<56x512xf32>
    tpu.vector_store %arg11[%c64_92, %c0_93], %79 {strides = array<i32>} : memref<120x512xf32, #tpu.memory_space<vmem>>, vector<56x512xf32>,
    %c448_94 = arith.constant 448 : index
    %c0_95 = arith.constant 0 : index
    %81 = vector.load %arg1[%c448_94, %c0_95] : memref<512x192xbf16, #tpu.memory_space<vmem>>, vector<56x192xbf16>
    %c3_96 = arith.constant 3 : index
    %c0_97 = arith.constant 0 : index
    %c0_98 = arith.constant 0 : index
    %82 = vector.load %arg2[%c3_96, %c0_97, %c0_98] : memref<8x192x512xbf16, #tpu.memory_space<vmem>>, vector<1x192x512xbf16>
    %83 = vector.shape_cast %82 : vector<1x192x512xbf16> to vector<192x512xbf16>
    %cst_99 = arith.constant dense<0.000000e+00> : vector<56x512xf32>
    %84 = tpu.matmul %81, %83, %cst_99 {dimension_numbers = #tpu.dot_dimension_numbers<[1], [0], [0], [1], [0, 0, 1, 1], [], []>} : vector<56x192xbf16>, vector<192x512xbf16>, vector<56x512xf32> -> vector<56x512xf32>
    %c64_100 = arith.constant 64 : index
    %c0_101 = arith.constant 0 : index
    %85 = vector.load %arg11[%c64_100, %c0_101] : memref<120x512xf32, #tpu.memory_space<vmem>>, vector<56x512xf32>
    %86 = arith.addf %85, %84 : vector<56x512xf32>
    %c64_102 = arith.constant 64 : index
    %c0_103 = arith.constant 0 : index
    %87 = vector.load %arg11[%c64_102, %c0_103] : memref<120x512xf32, #tpu.memory_space<vmem>>, vector<56x512xf32>
    tpu.vector_store %arg11[%c64_102, %c0_103], %86 {strides = array<i32>} : memref<120x512xf32, #tpu.memory_space<vmem>>, vector<56x512xf32>,
    %c8 = arith.constant 8 : index
    %c0_104 = arith.constant 0 : index
    %88 = vector.load %arg1[%c8, %c0_104] : memref<512x192xbf16, #tpu.memory_space<vmem>>, vector<56x192xbf16>
    %c4_105 = arith.constant 4 : index
    %c0_106 = arith.constant 0 : index
    %c0_107 = arith.constant 0 : index
    %89 = vector.load %arg2[%c4_105, %c0_106, %c0_107] : memref<8x192x512xbf16, #tpu.memory_space<vmem>>, vector<1x192x512xbf16>
    %90 = vector.shape_cast %89 : vector<1x192x512xbf16> to vector<192x512xbf16>
    %cst_108 = arith.constant dense<0.000000e+00> : vector<56x512xf32>
    %91 = tpu.matmul %88, %90, %cst_108 {dimension_numbers = #tpu.dot_dimension_numbers<[1], [0], [0], [1], [0, 0, 1, 1], [], []>} : vector<56x192xbf16>, vector<192x512xbf16>, vector<56x512xf32> -> vector<56x512xf32>
    %c64_109 = arith.constant 64 : index
    %c0_110 = arith.constant 0 : index
    %92 = vector.load %arg11[%c64_109, %c0_110] : memref<120x512xf32, #tpu.memory_space<vmem>>, vector<56x512xf32>
    %93 = arith.addf %92, %91 : vector<56x512xf32>
    %c64_111 = arith.constant 64 : index
    %c0_112 = arith.constant 0 : index
    %94 = vector.load %arg11[%c64_111, %c0_112] : memref<120x512xf32, #tpu.memory_space<vmem>>, vector<56x512xf32>
    tpu.vector_store %arg11[%c64_111, %c0_112], %93 {strides = array<i32>} : memref<120x512xf32, #tpu.memory_space<vmem>>, vector<56x512xf32>,
    %c72 = arith.constant 72 : index
    %c0_113 = arith.constant 0 : index
    %95 = vector.load %arg1[%c72, %c0_113] : memref<512x192xbf16, #tpu.memory_space<vmem>>, vector<56x192xbf16>
    %c5_114 = arith.constant 5 : index
    %c0_115 = arith.constant 0 : index
    %c0_116 = arith.constant 0 : index
    %96 = vector.load %arg2[%c5_114, %c0_115, %c0_116] : memref<8x192x512xbf16, #tpu.memory_space<vmem>>, vector<1x192x512xbf16>
    %97 = vector.shape_cast %96 : vector<1x192x512xbf16> to vector<192x512xbf16>
    %cst_117 = arith.constant dense<0.000000e+00> : vector<56x512xf32>
    %98 = tpu.matmul %95, %97, %cst_117 {dimension_numbers = #tpu.dot_dimension_numbers<[1], [0], [0], [1], [0, 0, 1, 1], [], []>} : vector<56x192xbf16>, vector<192x512xbf16>, vector<56x512xf32> -> vector<56x512xf32>
    %c64_118 = arith.constant 64 : index
    %c0_119 = arith.constant 0 : index
    %99 = vector.load %arg11[%c64_118, %c0_119] : memref<120x512xf32, #tpu.memory_space<vmem>>, vector<56x512xf32>
    %100 = arith.addf %99, %98 : vector<56x512xf32>
    %c64_120 = arith.constant 64 : index
    %c0_121 = arith.constant 0 : index
    %101 = vector.load %arg11[%c64_120, %c0_121] : memref<120x512xf32, #tpu.memory_space<vmem>>, vector<56x512xf32>
    tpu.vector_store %arg11[%c64_120, %c0_121], %100 {strides = array<i32>} : memref<120x512xf32, #tpu.memory_space<vmem>>, vector<56x512xf32>,
    %c136 = arith.constant 136 : index
    %c0_122 = arith.constant 0 : index
    %102 = vector.load %arg1[%c136, %c0_122] : memref<512x192xbf16, #tpu.memory_space<vmem>>, vector<56x192xbf16>
    %c6_123 = arith.constant 6 : index
    %c0_124 = arith.constant 0 : index
    %c0_125 = arith.constant 0 : index
    %103 = vector.load %arg2[%c6_123, %c0_124, %c0_125] : memref<8x192x512xbf16, #tpu.memory_space<vmem>>, vector<1x192x512xbf16>
    %104 = vector.shape_cast %103 : vector<1x192x512xbf16> to vector<192x512xbf16>
    %cst_126 = arith.constant dense<0.000000e+00> : vector<56x512xf32>
    %105 = tpu.matmul %102, %104, %cst_126 {dimension_numbers = #tpu.dot_dimension_numbers<[1], [0], [0], [1], [0, 0, 1, 1], [], []>} : vector<56x192xbf16>, vector<192x512xbf16>, vector<56x512xf32> -> vector<56x512xf32>
    %c64_127 = arith.constant 64 : index
    %c0_128 = arith.constant 0 : index
    %106 = vector.load %arg11[%c64_127, %c0_128] : memref<120x512xf32, #tpu.memory_space<vmem>>, vector<56x512xf32>
    %107 = arith.addf %106, %105 : vector<56x512xf32>
    %c64_129 = arith.constant 64 : index
    %c0_130 = arith.constant 0 : index
    %108 = vector.load %arg11[%c64_129, %c0_130] : memref<120x512xf32, #tpu.memory_space<vmem>>, vector<56x512xf32>
    tpu.vector_store %arg11[%c64_129, %c0_130], %107 {strides = array<i32>} : memref<120x512xf32, #tpu.memory_space<vmem>>, vector<56x512xf32>,
    %c200 = arith.constant 200 : index
    %c0_131 = arith.constant 0 : index
    %109 = vector.load %arg1[%c200, %c0_131] : memref<512x192xbf16, #tpu.memory_space<vmem>>, vector<56x192xbf16>
    %c7_132 = arith.constant 7 : index
    %c0_133 = arith.constant 0 : index
    %c0_134 = arith.constant 0 : index
    %110 = vector.load %arg2[%c7_132, %c0_133, %c0_134] : memref<8x192x512xbf16, #tpu.memory_space<vmem>>, vector<1x192x512xbf16>
    %111 = vector.shape_cast %110 : vector<1x192x512xbf16> to vector<192x512xbf16>
    %cst_135 = arith.constant dense<0.000000e+00> : vector<56x512xf32>
    %112 = tpu.matmul %109, %111, %cst_135 {dimension_numbers = #tpu.dot_dimension_numbers<[1], [0], [0], [1], [0, 0, 1, 1], [], []>} : vector<56x192xbf16>, vector<192x512xbf16>, vector<56x512xf32> -> vector<56x512xf32>
    %c64_136 = arith.constant 64 : index
    %c0_137 = arith.constant 0 : index
    %113 = vector.load %arg11[%c64_136, %c0_137] : memref<120x512xf32, #tpu.memory_space<vmem>>, vector<56x512xf32>
    %114 = arith.addf %113, %112 : vector<56x512xf32>
    %c0_138 = arith.constant 0 : index
    %c0_139 = arith.constant 0 : index
    %115 = vector.load %arg6[%c0_138, %c0_139] : memref<1x512xf32, #tpu.memory_space<vmem>>, vector<1x512xf32>
    %116 = vector.broadcast %115 : vector<1x512xf32> to vector<56x512xf32>
    %117 = arith.addf %114, %116 : vector<56x512xf32>
    %cst_140 = arith.constant 0.000000e+00 : f32
    %118 = vector.broadcast %cst_140 : f32 to vector<56x512xf32>
    %119 = arith.cmpf oge, %117, %118 : vector<56x512xf32>
    %cst_141 = arith.constant 0.00999999977 : f32
    %120 = vector.broadcast %cst_141 : f32 to vector<56x512xf32>
    %121 = arith.mulf %120, %117 : vector<56x512xf32>
    %122 = arith.select %119, %117, %121 : vector<56x512xi1>, vector<56x512xf32>
    %c64_142 = arith.constant 64 : index
    %c0_143 = arith.constant 0 : index
    %123 = vector.load %arg11[%c64_142, %c0_143] : memref<120x512xf32, #tpu.memory_space<vmem>>, vector<56x512xf32>
    tpu.vector_store %arg11[%c64_142, %c0_143], %122 {strides = array<i32>} : memref<120x512xf32, #tpu.memory_space<vmem>>, vector<56x512xf32>,
    %c0_144 = arith.constant 0 : index
    %c0_145 = arith.constant 0 : index
    %124 = vector.load %arg11[%c0_144, %c0_145] : memref<120x512xf32, #tpu.memory_space<vmem>>, vector<48x512xf32>
    %125 = arith.truncf %124 : vector<48x512xf32> to vector<48x512xbf16>
    %c0_146 = arith.constant 0 : index
    %c0_147 = arith.constant 0 : index
    %c0_148 = arith.constant 0 : index
    %126 = vector.load %arg3[%c0_146, %c0_147, %c0_148] : memref<4x512x384xbf16, #tpu.memory_space<vmem>>, vector<1x512x384xbf16>
    %127 = vector.shape_cast %126 : vector<1x512x384xbf16> to vector<512x384xbf16>
    %cst_149 = arith.constant dense<0.000000e+00> : vector<48x384xf32>
    %128 = tpu.matmul %125, %127, %cst_149 {dimension_numbers = #tpu.dot_dimension_numbers<[1], [0], [0], [1], [0, 0, 1, 1], [], []>} : vector<48x512xbf16>, vector<512x384xbf16>, vector<48x384xf32> -> vector<48x384xf32>
    %c0_150 = arith.constant 0 : index
    %c0_151 = arith.constant 0 : index
    %129 = vector.load %arg12[%c0_150, %c0_151] : memref<48x384xf32, #tpu.memory_space<vmem>>, vector<48x384xf32>
    tpu.vector_store %arg12[%c0_150, %c0_151], %128 {strides = array<i32>} : memref<48x384xf32, #tpu.memory_space<vmem>>, vector<48x384xf32>,
    %c64_152 = arith.constant 64 : index
    %c0_153 = arith.constant 0 : index
    %130 = vector.load %arg11[%c64_152, %c0_153] : memref<120x512xf32, #tpu.memory_space<vmem>>, vector<48x512xf32>
    %131 = arith.truncf %130 : vector<48x512xf32> to vector<48x512xbf16>
    %c1_154 = arith.constant 1 : index
    %c0_155 = arith.constant 0 : index
    %c0_156 = arith.constant 0 : index
    %132 = vector.load %arg3[%c1_154, %c0_155, %c0_156] : memref<4x512x384xbf16, #tpu.memory_space<vmem>>, vector<1x512x384xbf16>
    %133 = vector.shape_cast %132 : vector<1x512x384xbf16> to vector<512x384xbf16>
    %cst_157 = arith.constant dense<0.000000e+00> : vector<48x384xf32>
    %134 = tpu.matmul %131, %133, %cst_157 {dimension_numbers = #tpu.dot_dimension_numbers<[1], [0], [0], [1], [0, 0, 1, 1], [], []>} : vector<48x512xbf16>, vector<512x384xbf16>, vector<48x384xf32> -> vector<48x384xf32>
    %c0_158 = arith.constant 0 : index
    %c0_159 = arith.constant 0 : index
    %135 = vector.load %arg12[%c0_158, %c0_159] : memref<48x384xf32, #tpu.memory_space<vmem>>, vector<48x384xf32>
    %136 = arith.addf %135, %134 : vector<48x384xf32>
    %c0_160 = arith.constant 0 : index
    %c0_161 = arith.constant 0 : index
    %137 = vector.load %arg12[%c0_160, %c0_161] : memref<48x384xf32, #tpu.memory_space<vmem>>, vector<48x384xf32>
    tpu.vector_store %arg12[%c0_160, %c0_161], %136 {strides = array<i32>} : memref<48x384xf32, #tpu.memory_space<vmem>>, vector<48x384xf32>,
    %c8_162 = arith.constant 8 : index
    %c0_163 = arith.constant 0 : index
    %138 = vector.load %arg11[%c8_162, %c0_163] : memref<120x512xf32, #tpu.memory_space<vmem>>, vector<48x512xf32>
    %139 = arith.truncf %138 : vector<48x512xf32> to vector<48x512xbf16>
    %c2_164 = arith.constant 2 : index
    %c0_165 = arith.constant 0 : index
    %c0_166 = arith.constant 0 : index
    %140 = vector.load %arg3[%c2_164, %c0_165, %c0_166] : memref<4x512x384xbf16, #tpu.memory_space<vmem>>, vector<1x512x384xbf16>
    %141 = vector.shape_cast %140 : vector<1x512x384xbf16> to vector<512x384xbf16>
    %cst_167 = arith.constant dense<0.000000e+00> : vector<48x384xf32>
    %142 = tpu.matmul %139, %141, %cst_167 {dimension_numbers = #tpu.dot_dimension_numbers<[1], [0], [0], [1], [0, 0, 1, 1], [], []>} : vector<48x512xbf16>, vector<512x384xbf16>, vector<48x384xf32> -> vector<48x384xf32>
    %c0_168 = arith.constant 0 : index
    %c0_169 = arith.constant 0 : index
    %143 = vector.load %arg12[%c0_168, %c0_169] : memref<48x384xf32, #tpu.memory_space<vmem>>, vector<48x384xf32>
    %144 = arith.addf %143, %142 : vector<48x384xf32>
    %c0_170 = arith.constant 0 : index
    %c0_171 = arith.constant 0 : index
    %145 = vector.load %arg12[%c0_170, %c0_171] : memref<48x384xf32, #tpu.memory_space<vmem>>, vector<48x384xf32>
    tpu.vector_store %arg12[%c0_170, %c0_171], %144 {strides = array<i32>} : memref<48x384xf32, #tpu.memory_space<vmem>>, vector<48x384xf32>,
    %c72_172 = arith.constant 72 : index
    %c0_173 = arith.constant 0 : index
    %146 = vector.load %arg11[%c72_172, %c0_173] : memref<120x512xf32, #tpu.memory_space<vmem>>, vector<48x512xf32>
    %147 = arith.truncf %146 : vector<48x512xf32> to vector<48x512xbf16>
    %c3_174 = arith.constant 3 : index
    %c0_175 = arith.constant 0 : index
    %c0_176 = arith.constant 0 : index
    %148 = vector.load %arg3[%c3_174, %c0_175, %c0_176] : memref<4x512x384xbf16, #tpu.memory_space<vmem>>, vector<1x512x384xbf16>
    %149 = vector.shape_cast %148 : vector<1x512x384xbf16> to vector<512x384xbf16>
    %cst_177 = arith.constant dense<0.000000e+00> : vector<48x384xf32>
    %150 = tpu.matmul %147, %149, %cst_177 {dimension_numbers = #tpu.dot_dimension_numbers<[1], [0], [0], [1], [0, 0, 1, 1], [], []>} : vector<48x512xbf16>, vector<512x384xbf16>, vector<48x384xf32> -> vector<48x384xf32>
    %c0_178 = arith.constant 0 : index
    %c0_179 = arith.constant 0 : index
    %151 = vector.load %arg12[%c0_178, %c0_179] : memref<48x384xf32, #tpu.memory_space<vmem>>, vector<48x384xf32>
    %152 = arith.addf %151, %150 : vector<48x384xf32>
    %c0_180 = arith.constant 0 : index
    %c0_181 = arith.constant 0 : index
    %153 = vector.load %arg7[%c0_180, %c0_181] : memref<1x384xf32, #tpu.memory_space<vmem>>, vector<1x384xf32>
    %154 = vector.broadcast %153 : vector<1x384xf32> to vector<48x384xf32>
    %155 = arith.addf %152, %154 : vector<48x384xf32>
    %cst_182 = arith.constant 0.000000e+00 : f32
    %156 = vector.broadcast %cst_182 : f32 to vector<48x384xf32>
    %157 = arith.cmpf oge, %155, %156 : vector<48x384xf32>
    %cst_183 = arith.constant 0.00999999977 : f32
    %158 = vector.broadcast %cst_183 : f32 to vector<48x384xf32>
    %159 = arith.mulf %158, %155 : vector<48x384xf32>
    %160 = arith.select %157, %155, %159 : vector<48x384xi1>, vector<48x384xf32>
    %c0_184 = arith.constant 0 : index
    %c0_185 = arith.constant 0 : index
    %161 = vector.load %arg12[%c0_184, %c0_185] : memref<48x384xf32, #tpu.memory_space<vmem>>, vector<48x384xf32>
    tpu.vector_store %arg12[%c0_184, %c0_185], %160 {strides = array<i32>} : memref<48x384xf32, #tpu.memory_space<vmem>>, vector<48x384xf32>,
    %c0_186 = arith.constant 0 : index
    %c0_187 = arith.constant 0 : index
    %162 = vector.load %arg12[%c0_186, %c0_187] : memref<48x384xf32, #tpu.memory_space<vmem>>, vector<32x384xf32>
    %163 = arith.truncf %162 : vector<32x384xf32> to vector<32x384xbf16>
    %c0_188 = arith.constant 0 : index
    %c0_189 = arith.constant 0 : index
    %c0_190 = arith.constant 0 : index
    %164 = vector.load %arg4[%c0_188, %c0_189, %c0_190] : memref<3x384x256xbf16, #tpu.memory_space<vmem>>, vector<1x384x256xbf16>
    %165 = vector.shape_cast %164 : vector<1x384x256xbf16> to vector<384x256xbf16>
    %cst_191 = arith.constant dense<0.000000e+00> : vector<32x256xf32>
    %166 = tpu.matmul %163, %165, %cst_191 {dimension_numbers = #tpu.dot_dimension_numbers<[1], [0], [0], [1], [0, 0, 1, 1], [], []>} : vector<32x384xbf16>, vector<384x256xbf16>, vector<32x256xf32> -> vector<32x256xf32>
    %c8_192 = arith.constant 8 : index
    %c0_193 = arith.constant 0 : index
    %167 = vector.load %arg12[%c8_192, %c0_193] : memref<48x384xf32, #tpu.memory_space<vmem>>, vector<32x384xf32>
    %168 = arith.truncf %167 : vector<32x384xf32> to vector<32x384xbf16>
    %c1_194 = arith.constant 1 : index
    %c0_195 = arith.constant 0 : index
    %c0_196 = arith.constant 0 : index
    %169 = vector.load %arg4[%c1_194, %c0_195, %c0_196] : memref<3x384x256xbf16, #tpu.memory_space<vmem>>, vector<1x384x256xbf16>
    %170 = vector.shape_cast %169 : vector<1x384x256xbf16> to vector<384x256xbf16>
    %cst_197 = arith.constant dense<0.000000e+00> : vector<32x256xf32>
    %171 = tpu.matmul %168, %170, %cst_197 {dimension_numbers = #tpu.dot_dimension_numbers<[1], [0], [0], [1], [0, 0, 1, 1], [], []>} : vector<32x384xbf16>, vector<384x256xbf16>, vector<32x256xf32> -> vector<32x256xf32>
    %172 = arith.addf %166, %171 : vector<32x256xf32>
    %c16 = arith.constant 16 : index
    %c0_198 = arith.constant 0 : index
    %173 = vector.load %arg12[%c16, %c0_198] : memref<48x384xf32, #tpu.memory_space<vmem>>, vector<32x384xf32>
    %174 = arith.truncf %173 : vector<32x384xf32> to vector<32x384xbf16>
    %c2_199 = arith.constant 2 : index
    %c0_200 = arith.constant 0 : index
    %c0_201 = arith.constant 0 : index
    %175 = vector.load %arg4[%c2_199, %c0_200, %c0_201] : memref<3x384x256xbf16, #tpu.memory_space<vmem>>, vector<1x384x256xbf16>
    %176 = vector.shape_cast %175 : vector<1x384x256xbf16> to vector<384x256xbf16>
    %cst_202 = arith.constant dense<0.000000e+00> : vector<32x256xf32>
    %177 = tpu.matmul %174, %176, %cst_202 {dimension_numbers = #tpu.dot_dimension_numbers<[1], [0], [0], [1], [0, 0, 1, 1], [], []>} : vector<32x384xbf16>, vector<384x256xbf16>, vector<32x256xf32> -> vector<32x256xf32>
    %178 = arith.addf %172, %177 : vector<32x256xf32>
    %c0_203 = arith.constant 0 : index
    %c0_204 = arith.constant 0 : index
    %179 = vector.load %arg8[%c0_203, %c0_204] : memref<1x256xf32, #tpu.memory_space<vmem>>, vector<1x256xf32>
    %180 = vector.broadcast %179 : vector<1x256xf32> to vector<32x256xf32>
    %181 = arith.addf %178, %180 : vector<32x256xf32>
    %cst_205 = arith.constant 0.000000e+00 : f32
    %182 = vector.broadcast %cst_205 : f32 to vector<32x256xf32>
    %183 = arith.cmpf oge, %181, %182 : vector<32x256xf32>
    %cst_206 = arith.constant 0.00999999977 : f32
    %184 = vector.broadcast %cst_206 : f32 to vector<32x256xf32>
    %185 = arith.mulf %184, %181 : vector<32x256xf32>
    %186 = arith.select %183, %181, %185 : vector<32x256xi1>, vector<32x256xf32>
    %187 = vector.extract_strided_slice %186 {offsets = [0, 0], sizes = [8, 256], strides = [1, 1]} : vector<32x256xf32> to vector<8x256xf32>
    %188 = vector.extract_strided_slice %186 {offsets = [8, 0], sizes = [8, 256], strides = [1, 1]} : vector<32x256xf32> to vector<8x256xf32>
    %189 = vector.extract_strided_slice %186 {offsets = [16, 0], sizes = [8, 256], strides = [1, 1]} : vector<32x256xf32> to vector<8x256xf32>
    %190 = vector.extract_strided_slice %186 {offsets = [24, 0], sizes = [8, 256], strides = [1, 1]} : vector<32x256xf32> to vector<8x256xf32>
    %191 = tpu.concatenate %187, %188, %189, %190 in 1 : vector<8x256xf32>, vector<8x256xf32>, vector<8x256xf32>, vector<8x256xf32> -> vector<8x1024xf32>
    %192 = arith.truncf %191 : vector<8x1024xf32> to vector<8x1024xbf16>
    %c0_207 = arith.constant 0 : index
    %c0_208 = arith.constant 0 : index
    %193 = vector.load %arg5[%c0_207, %c0_208] : memref<1024x512xbf16, #tpu.memory_space<vmem>>, vector<1024x512xbf16>
    %cst_209 = arith.constant dense<0.000000e+00> : vector<8x512xf32>
    %194 = tpu.matmul %192, %193, %cst_209 {dimension_numbers = #tpu.dot_dimension_numbers<[1], [0], [0], [1], [0, 0, 1, 1], [], []>} : vector<8x1024xbf16>, vector<1024x512xbf16>, vector<8x512xf32> -> vector<8x512xf32>
    %c0_210 = arith.constant 0 : index
    %c0_211 = arith.constant 0 : index
    %195 = vector.load %arg9[%c0_210, %c0_211] : memref<1x512xf32, #tpu.memory_space<vmem>>, vector<1x512xf32>
    %196 = vector.broadcast %195 : vector<1x512xf32> to vector<8x512xf32>
    %197 = arith.addf %194, %196 : vector<8x512xf32>
    %c0_212 = arith.constant 0 : index
    %c0_213 = arith.constant 0 : index
    %198 = vector.load %arg10[%c0_212, %c0_213] : memref<8x512xf32, #tpu.memory_space<vmem>>, vector<8x512xf32>
    tpu.vector_store %arg10[%c0_212, %c0_213], %197 {strides = array<i32>} : memref<8x512xf32, #tpu.memory_space<vmem>>, vector<8x512xf32>,
    return
  }
  func.func @transform_0(%arg0: i32) -> (i32, i32) {
    %c0_i32 = arith.constant 0 : i32
    %c0_i32_0 = arith.constant 0 : i32
    return %arg0, %c0_i32 : i32, i32
  }
  func.func @transform_1(%arg0: i32) -> (i32, i32, i32) {
    %c0_i32 = arith.constant 0 : i32
    %c0_i32_0 = arith.constant 0 : i32
    %c0_i32_1 = arith.constant 0 : i32
    %c0_i32_2 = arith.constant 0 : i32
    return %c0_i32, %c0_i32_0, %c0_i32_1 : i32, i32, i32
  }
  func.func @transform_2(%arg0: i32) -> (i32, i32, i32) {
    %c0_i32 = arith.constant 0 : i32
    %c0_i32_0 = arith.constant 0 : i32
    %c0_i32_1 = arith.constant 0 : i32
    %c0_i32_2 = arith.constant 0 : i32
    return %c0_i32, %c0_i32_0, %c0_i32_1 : i32, i32, i32
  }
  func.func @transform_3(%arg0: i32) -> (i32, i32, i32) {
    %c0_i32 = arith.constant 0 : i32
    %c0_i32_0 = arith.constant 0 : i32
    %c0_i32_1 = arith.constant 0 : i32
    %c0_i32_2 = arith.constant 0 : i32
    return %c0_i32, %c0_i32_0, %c0_i32_1 : i32, i32, i32
  }
  func.func @transform_4(%arg0: i32) -> (i32, i32) {
    %c0_i32 = arith.constant 0 : i32
    %c0_i32_0 = arith.constant 0 : i32
    %c0_i32_1 = arith.constant 0 : i32
    return %c0_i32, %c0_i32_0 : i32, i32
  }
  func.func @transform_5(%arg0: i32) -> (i32, i32) {
    %c0_i32 = arith.constant 0 : i32
    %c0_i32_0 = arith.constant 0 : i32
    %c0_i32_1 = arith.constant 0 : i32
    return %c0_i32, %c0_i32_0 : i32, i32
  }
  func.func @transform_6(%arg0: i32) -> (i32, i32) {
    %c0_i32 = arith.constant 0 : i32
    %c0_i32_0 = arith.constant 0 : i32
    %c0_i32_1 = arith.constant 0 : i32
    return %c0_i32, %c0_i32_0 : i32, i32
  }
  func.func @transform_7(%arg0: i32) -> (i32, i32) {
    %c0_i32 = arith.constant 0 : i32
    %c0_i32_0 = arith.constant 0 : i32
    %c0_i32_1 = arith.constant 0 : i32
    return %c0_i32, %c0_i32_0 : i32, i32
  }
  func.func @transform_8(%arg0: i32) -> (i32, i32) {
    %c0_i32 = arith.constant 0 : i32
    %c0_i32_0 = arith.constant 0 : i32
    %c0_i32_1 = arith.constant 0 : i32
    return %c0_i32, %c0_i32_0 : i32, i32
  }
  func.func @transform_9(%arg0: i32) -> (i32, i32) {
    %c0_i32 = arith.constant 0 : i32
    %c0_i32_0 = arith.constant 0 : i32
    return %arg0, %c0_i32 : i32, i32
  }
}

</mosaic_0001>

<bundles_post_ra>
// kernel: _forward_impl.1
= control target key start
LH: loop header
LB: loop body
LE: loop exit
PB: predicated region body
PF: predicated region fallthrough
CT: control target
= control target key end

     0   :  { %14 = vsyncpa [#allocation5], 0  ;;  %s29242_s0 = inlined_call_operand.vmem [shape: bf16[1024,192], index: 0, kind: input, shape index: {}]   ;;  %s29243_s1 = inlined_call_operand.vmem [shape: bf16[8,192,512], index: 1, kind: input, shape index: {}]   ;;  %s29244_s2 = inlined_call_operand.vmem [shape: bf16[4,512,384], index: 2, kind: input, shape index: {}]   ;;  %s29245_s3 = inlined_call_operand.vmem [shape: bf16[3,384,256], index: 3, kind: input, shape index: {}]   ;;  %s29246_s4 = inlined_call_operand.vmem [shape: bf16[1024,512], index: 4, kind: input, shape index: {}]   ;;  %s29247_s5 = inlined_call_operand.vmem [shape: f32[1,512], index: 5, kind: input, shape index: {}]   ;;  %s29248_s6 = inlined_call_operand.vmem [shape: f32[1,384], index: 6, kind: input, shape index: {}]   ;;  %s29249_s7 = inlined_call_operand.vmem [shape: f32[1,256], index: 7, kind: input, shape index: {}]   ;;  %s29250_s8 = inlined_call_operand.vmem [shape: f32[1,512], index: 8, kind: input, shape index: {}]   ;;  %s29251_s9 = inlined_call_operand.hbm [shape: f32[16,512], index: 9, kind: output, shape index: {}]  }
   0x1   :  { %16 = vsyncpa [#allocation5 + $0x1], 0  ;;  %s23253_s30 = smov 0   ;;  %s23255_s10 = smov 0  }
   0x2   :  { %s23257_s11 = smov 0   ;;  %s23259_s12 = smov 0  }
   0x3 LB: > { %s23274_s13 = sadd.s32 4294967295, %s23199_s12   ;;  %s16914_s14 = sadd.s32 4294967294, %s23199_s12   ;;  %s23199_s12 = sphi %s23259_s12, %s29264_s12   ;;  %s23195_s11 = sphi %s23257_s11, %s29263_s11   ;;  %s23191_s10 = sphi %s23255_s10, %s29262_s10   ;;  %s23187_s30 = sphi %s23253_s30, %s29261_s30  }
   0x4   : > { %s23278_s15 = sadd.s32 1, %s23199_s12   ;;  %s223_s16 = sadd.s32 1, %s23195_s11 }
   0x5   : > { %s220_s17 = ssub.s32 %s23199_s12, %s23278_s15  ;;  %p233_p0 = scmp.ne.s32.totalorder %s23195_s11, %s23191_s10 }
   0x6   : > { %p221_p1 = scmp.eq.s32.totalorder %s220_s17, 0  ;;  %p234_p2 = scmp.eq.s32.totalorder %s23274_s13, 1 }
   0x7   : > { %p239_p3 = scmp.ne.s32.totalorder %s23191_s10, %s23187_s30  ;;  %p240_p4 = scmp.eq.s32.totalorder %s16914_s14, 1 }
   0x8   : > { %s23289_s18 = scalar_select %p221_p1, %s23195_s11, %s223_s16  }
   0x9   : > { %p23291_p5 = por %p234_p2, %p233_p0  ;;  %p23295_p6 = por %p240_p4, %p239_p3 }
   0xa   : > { %p16917_p7 = scmp.ge.s32.totalorder %s23199_s12, 1  ;;  %p292_p8 = scmp.lt.s32.totalorder %s23199_s12, 3 }
   0xc   : > { %p293_p9 = pnand %p16917_p7, %p292_p8 }
   0xe   : > { %296 = sbr.rel (%p293_p9) target bundleno = 2433 (0x981), region = 56 }
  0x15   : > { %v20689_v0 = vld [vmem:[%s29243_s1 + $0x4] ss:$16 sps:$4 sm:$0xff]   ;;  %v20691_v1 = vld [vmem:[%s29243_s1 + $0xc] ss:$16 sps:$4 sm:$0xff]   ;;  %v20693_v2 = vld [vmem:[%s29243_s1] ss:$16 sps:$4 sm:$0xff]  }
  0x16   : > { %682 = vmatprep.subr.bf16.mxu0 %v20689_v0  ;;  %v20694_v3 = vld [vmem:[%s29243_s1 + $0x8] ss:$16 sps:$4 sm:$0xff]   ;;  %755 = vmatprep.subr.bf16.mxu1 %v20691_v1  ;;  %v20695_v4 = vld [vmem:[%s29243_s1 + $0x24] ss:$16 sps:$4 sm:$0xff]   ;;  %v20697_v5 = vld [vmem:[%s29243_s1 + $0x2c] ss:$16 sps:$4 sm:$0xff]  }
  0x17   : > { %683 = vmatpush1.bf16.msra.mxu0 %v20693_v2  ;;  %756 = vmatpush1.bf16.msra.mxu1 %v20694_v3  ;;  %v20699_v6 = vld [vmem:[%s29243_s1 + $0x20] ss:$16 sps:$4 sm:$0xff]   ;;  %v20700_v7 = vld [vmem:[%s29243_s1 + $0x28] ss:$16 sps:$4 sm:$0xff]   ;;  %v20701_v8 = vld [vmem:[%s29243_s1 + $0x44] ss:$16 sps:$4 sm:$0xff]  }
  0x18   : > { %684 = vmatprep.subr.bf16.mxu0 %v20695_v4  ;;  %757 = vmatprep.subr.bf16.mxu1 %v20697_v5  ;;  %v20703_v9 = vld [vmem:[%s29243_s1 + $0x4c] ss:$16 sps:$4 sm:$0xff]   ;;  %v20705_v10 = vld [vmem:[%s29243_s1 + $0x40] ss:$16 sps:$4 sm:$0xff]   ;;  %v20706_v11 = vld [vmem:[%s29243_s1 + $0x48] ss:$16 sps:$4 sm:$0xff]  }
  0x19   : > { %v20707_v12 = vld [vmem:[%s29243_s1 + $0x64] ss:$16 sps:$4 sm:$0xff]   ;;  %v20709_v13 = vld [vmem:[%s29243_s1 + $0x6c] ss:$16 sps:$4 sm:$0xff]   ;;  %v20711_v14 = vld [vmem:[%s29243_s1 + $0x60] ss:$16 sps:$4 sm:$0xff]  }
  0x1a   : > { %v20712_v15 = vld [vmem:[%s29243_s1 + $0x68] ss:$16 sps:$4 sm:$0xff]   ;;  %v20713_v16 = vld [vmem:[%s29243_s1 + $0x84] ss:$16 sps:$4 sm:$0xff]   ;;  %v20715_v17 = vld [vmem:[%s29243_s1 + $0x8c] ss:$16 sps:$4 sm:$0xff]  }
  0x1b   : > { %685 = vmatpush1.bf16.msra.mxu0 %v20699_v6  ;;  %758 = vmatpush1.bf16.msra.mxu1 %v20700_v7  ;;  %v20717_v18 = vld [vmem:[%s29243_s1 + $0x80] ss:$16 sps:$4 sm:$0xff]   ;;  %v20718_v19 = vld [vmem:[%s29243_s1 + $0x88] ss:$16 sps:$4 sm:$0xff]   ;;  %v20719_v20 = vld [vmem:[%s29243_s1 + $0xa4] ss:$16 sps:$4 sm:$0xff]  }
  0x1c   : > { %686 = vmatprep.subr.bf16.mxu0 %v20701_v8  ;;  %759 = vmatprep.subr.bf16.mxu1 %v20703_v9  ;;  %s16919_s27 = sshll.u32 %s23274_s13, 6  ;;  %v20721_v21 = vld [vmem:[%s29243_s1 + $0xac] ss:$16 sps:$4 sm:$0xff]   ;;  %v20723_v22 = vld [vmem:[%s29243_s1 + $0xa0] ss:$16 sps:$4 sm:$0xff]   ;;  %vm669_vm0 = vcmask 523264  }
  0x1d   : > { %p330_p10 = scmp.lt.s32.totalorder %s16919_s27, 127  ;;  %v20724_v23 = vld [vmem:[%s29243_s1 + $0xa8] ss:$16 sps:$4 sm:$0xff]   ;;  %v20725_v24 = vld [vmem:[%s29243_s1 + $0xc4] ss:$16 sps:$4 sm:$0xff]   ;;  %s326_s24 = sand.u32 1, %s23191_s10  }
  0x1e   : > { %v20727_v25 = vld [vmem:[%s29243_s1 + $0xcc] ss:$16 sps:$4 sm:$0xff]   ;;  %v20729_v26 = vld [vmem:[%s29243_s1 + $0xc0] ss:$16 sps:$4 sm:$0xff]   ;;  %v20730_v27 = vld [vmem:[%s29243_s1 + $0xc8] ss:$16 sps:$4 sm:$0xff]  }
  0x1f   : > { %687 = vmatpush1.bf16.msra.mxu0 %v20705_v10  ;;  %760 = vmatpush1.bf16.msra.mxu1 %v20706_v11  ;;  %s29266_s27 = smov (!%p330_p10, %s16919_s27), 127  ;;  %v20731_v28 = vld [vmem:[%s29243_s1 + $0xe4] ss:$16 sps:$4 sm:$0xff]   ;;  %v20733_v29 = vld [vmem:[%s29243_s1 + $0xec] ss:$16 sps:$4 sm:$0xff]   ;;  %s16918_s26 = sshll.u32 %s326_s24, 5 }
  0x20   : > { %688 = vmatprep.subr.bf16.mxu0 %v20707_v12  ;;  %761 = vmatprep.subr.bf16.mxu1 %v20709_v13  ;;  %v20735_v30 = vld [vmem:[%s29243_s1 + $0xe0] ss:$16 sps:$4 sm:$0xff]   ;;  %s19887_s25 = sshll.u32 %s29266_s27, 3  ;;  %v20736_v31 = vld [vmem:[%s29243_s1 + $0xe8] ss:$16 sps:$4 sm:$0xff]   ;;  %s19888_s14 = sshll.u32 %s23274_s13, 9 }
  0x21   : > { %v20737_v32 = vld [vmem:[%s29243_s1 + $0x104] ss:$16 sps:$4 sm:$0xff]   ;;  %v20739_v33 = vld [vmem:[%s29243_s1 + $0x10c] ss:$16 sps:$4 sm:$0xff]   ;;  %s23407_s27 = scalar_lea.vmem %s29242_s0, %s19887_s25  ;;  %v20741_v34 = vld [vmem:[%s29243_s1 + $0x100] ss:$16 sps:$4 sm:$0xff]   ;;  %s29200_s21 = scalar_lea.hbm %s29251_s9, %s19888_s14 }
  0x22   : > { %v20742_v35 = vld [vmem:[%s29243_s1 + $0x108] ss:$16 sps:$4 sm:$0xff]   ;;  %v20743_v36 = vld [vmem:[%s29243_s1 + $0x124] ss:$16 sps:$4 sm:$0xff]   ;;  %v20745_v37 = vld [vmem:[%s29243_s1 + $0x12c] ss:$16 sps:$4 sm:$0xff]  }
  0x23   : > { %689 = vmatpush1.bf16.msra.mxu0 %v20711_v14  ;;  %762 = vmatpush1.bf16.msra.mxu1 %v20712_v15  ;;  %v20763_v38 = vld [vmem:[%s23407_s27 + $0x4] ss:$8 sps:$4 sm:$0xff]   ;;  %v20747_v39 = vld [vmem:[%s29243_s1 + $0x120] ss:$16 sps:$4 sm:$0xff]   ;;  %v20748_v40 = vld [vmem:[%s29243_s1 + $0x128] ss:$16 sps:$4 sm:$0xff]  }
  0x24   : > { %690 = vmatprep.subr.bf16.mxu0 %v20713_v16  ;;  %763 = vmatprep.subr.bf16.mxu1 %v20715_v17  ;;  %v20749_v41 = vld [vmem:[%s29243_s1 + $0x144] ss:$16 sps:$4 sm:$0xff]   ;;  %v20751_v42 = vld [vmem:[%s29243_s1 + $0x14c] ss:$16 sps:$4 sm:$0xff]   ;;  %v20753_v43 = vld [vmem:[%s29243_s1 + $0x140] ss:$16 sps:$4 sm:$0xff]  }
  0x25   : > { %16978 = vmatprep.mubr.msk.bf16.mxu0 %vm669_vm0, %v20763_v38  ;;  %16982 = vmatprep.mubr.msk.bf16.mxu1 %vm669_vm0, %v20763_v38  ;;  %v20754_v44 = vld [vmem:[%s29243_s1 + $0x148] ss:$16 sps:$4 sm:$0xff]   ;;  %v20755_v45 = vld [vmem:[%s29243_s1 + $0x164] ss:$16 sps:$4 sm:$0xff]   ;;  %v20757_v46 = vld [vmem:[%s29243_s1 + $0x16c] ss:$16 sps:$4 sm:$0xff]  }
  0x26   : > { %v20759_v47 = vld [vmem:[%s29243_s1 + $0x160] ss:$16 sps:$4 sm:$0xff]   ;;  %v20760_v48 = vld [vmem:[%s29243_s1 + $0x168] ss:$16 sps:$4 sm:$0xff]   ;;  %v20766_v49 = vld [vmem:[%s29243_s1 + $0x184] ss:$16 sps:$4 sm:$0xff]  }
  0x27   : > { %691 = vmatpush1.bf16.msra.mxu0 %v20717_v18  ;;  %764 = vmatpush1.bf16.msra.mxu1 %v20718_v19  ;;  %v20769_v50 = vld [vmem:[%s29243_s1 + $0x18c] ss:$16 sps:$4 sm:$0xff]   ;;  %v20761_v51 = vld [vmem:[%s23407_s27] ss:$8 sps:$4 sm:$0xff]   ;;  %v20772_v54 = vld [vmem:[%s29243_s1 + $0x1a4] ss:$16 sps:$4 sm:$0xff]  }
  0x28   : > { %692 = vmatprep.subr.bf16.mxu0 %v20719_v20  ;;  %765 = vmatprep.subr.bf16.mxu1 %v20721_v21  ;;  %v20764_v52 = vld [vmem:[%s29243_s1 + $0x180] ss:$16 sps:$4 sm:$0xff]   ;;  %v20767_v53 = vld [vmem:[%s29243_s1 + $0x188] ss:$16 sps:$4 sm:$0xff]   ;;  %v20775_v55 = vld [vmem:[%s29243_s1 + $0x1ac] ss:$16 sps:$4 sm:$0xff]  }
  0x29   : > { %v20800_v56 = vld [vmem:[%s23407_s27 + $0x14] ss:$8 sps:$4 sm:$0xff]   ;;  %v20770_v57 = vld [vmem:[%s29243_s1 + $0x1a0] ss:$16 sps:$4 sm:$0xff]   ;;  %v20773_v58 = vld [vmem:[%s29243_s1 + $0x1a8] ss:$16 sps:$4 sm:$0xff]  }
  0x2a   : > { %v20778_v59 = vld [vmem:[%s29243_s1 + $0x1c4] ss:$16 sps:$4 sm:$0xff]   ;;  %v20781_v60 = vld [vmem:[%s29243_s1 + $0x1cc] ss:$16 sps:$4 sm:$0xff]   ;;  %v20776_v61 = vld [vmem:[%s29243_s1 + $0x1c0] ss:$16 sps:$4 sm:$0xff]  }
  0x2b   : > { %693 = vmatpush1.bf16.msra.mxu0 %v20723_v22  ;;  %766 = vmatpush1.bf16.msra.mxu1 %v20724_v23  ;;  %v20779_v62 = vld [vmem:[%s29243_s1 + $0x1c8] ss:$16 sps:$4 sm:$0xff]   ;;  %v20784_v0 = vld [vmem:[%s29243_s1 + $0x1e4] ss:$16 sps:$4 sm:$0xff]   ;;  %v20787_v1 = vld [vmem:[%s29243_s1 + $0x1ec] ss:$16 sps:$4 sm:$0xff]  }
  0x2c   : > { %694 = vmatprep.subr.bf16.mxu0 %v20725_v24  ;;  %767 = vmatprep.subr.bf16.mxu1 %v20727_v25  ;;  %v20802_v63 = vld [vmem:[%s23407_s27 + $0x10] ss:$8 sps:$4 sm:$0xff]   ;;  %v20815_v2 = vld [vmem:[%s23407_s27 + $0x24] ss:$8 sps:$4 sm:$0xff]   ;;  %v20817_v9 = vld [vmem:[%s23407_s27 + $0x20] ss:$8 sps:$4 sm:$0xff]  }
  0x2d   : > { %v20782_v3 = vld [vmem:[%s29243_s1 + $0x1e0] ss:$16 sps:$4 sm:$0xff]   ;;  %v20785_v4 = vld [vmem:[%s29243_s1 + $0x1e8] ss:$16 sps:$4 sm:$0xff]   ;;  %v20790_v5 = vld [vmem:[%s29243_s1 + $0x204] ss:$16 sps:$4 sm:$0xff]  }
  0x2e   : > { %v20793_v6 = vld [vmem:[%s29243_s1 + $0x20c] ss:$16 sps:$4 sm:$0xff]   ;;  %v20788_v7 = vld [vmem:[%s29243_s1 + $0x200] ss:$16 sps:$4 sm:$0xff]   ;;  %v20791_v8 = vld [vmem:[%s29243_s1 + $0x208] ss:$16 sps:$4 sm:$0xff]  }
  0x2f   : > { %695 = vmatpush1.bf16.msra.mxu0 %v20729_v26  ;;  %768 = vmatpush1.bf16.msra.mxu1 %v20730_v27  ;;  %v20796_v10 = vld [vmem:[%s29243_s1 + $0x224] ss:$16 sps:$4 sm:$0xff]   ;;  %v20799_v11 = vld [vmem:[%s29243_s1 + $0x22c] ss:$16 sps:$4 sm:$0xff]   ;;  %v20794_v13 = vld [vmem:[%s29243_s1 + $0x220] ss:$16 sps:$4 sm:$0xff]  }
  0x30   : > { %696 = vmatprep.subr.bf16.mxu0 %v20731_v28  ;;  %769 = vmatprep.subr.bf16.mxu1 %v20733_v29  ;;  %v20830_v12 = vld [vmem:[%s23407_s27 + $0x34] ss:$8 sps:$4 sm:$0xff]   ;;  %v20797_v14 = vld [vmem:[%s29243_s1 + $0x228] ss:$16 sps:$4 sm:$0xff]   ;;  %v20803_v17 = vld [vmem:[%s29243_s1 + $0x240] ss:$16 sps:$4 sm:$0xff]  }
  0x31   : > { %v20805_v15 = vld [vmem:[%s29243_s1 + $0x244] ss:$16 sps:$4 sm:$0xff]   ;;  %v20808_v16 = vld [vmem:[%s29243_s1 + $0x24c] ss:$16 sps:$4 sm:$0xff]   ;;  %v20806_v18 = vld [vmem:[%s29243_s1 + $0x248] ss:$16 sps:$4 sm:$0xff]  }
  0x32   : > { %v20832_v19 = vld [vmem:[%s23407_s27 + $0x30] ss:$8 sps:$4 sm:$0xff]   ;;  %v20811_v20 = vld [vmem:[%s29243_s1 + $0x264] ss:$16 sps:$4 sm:$0xff]   ;;  %v20814_v21 = vld [vmem:[%s29243_s1 + $0x26c] ss:$16 sps:$4 sm:$0xff]  }
  0x33   : > { %697 = vmatpush1.bf16.msra.mxu0 %v20735_v30  ;;  %770 = vmatpush1.bf16.msra.mxu1 %v20736_v31  ;;  %v20847_v22 = vld [vmem:[%s23407_s27 + $0x44] ss:$8 sps:$4 sm:$0xff]   ;;  %v20809_v23 = vld [vmem:[%s29243_s1 + $0x260] ss:$16 sps:$4 sm:$0xff]   ;;  %v20812_v24 = vld [vmem:[%s29243_s1 + $0x268] ss:$16 sps:$4 sm:$0xff]  }
  0x34   : > { %698 = vmatprep.subr.bf16.mxu0 %v20737_v32  ;;  %771 = vmatprep.subr.bf16.mxu1 %v20739_v33  ;;  %v20820_v25 = vld [vmem:[%s29243_s1 + $0x284] ss:$16 sps:$4 sm:$0xff]   ;;  %v20823_v26 = vld [vmem:[%s29243_s1 + $0x28c] ss:$16 sps:$4 sm:$0xff]   ;;  %v20818_v27 = vld [vmem:[%s29243_s1 + $0x280] ss:$16 sps:$4 sm:$0xff]  }
  0x35   : > { %v20821_v28 = vld [vmem:[%s29243_s1 + $0x288] ss:$16 sps:$4 sm:$0xff]   ;;  %v20826_v29 = vld [vmem:[%s29243_s1 + $0x2a4] ss:$16 sps:$4 sm:$0xff]   ;;  %v20829_v30 = vld [vmem:[%s29243_s1 + $0x2ac] ss:$16 sps:$4 sm:$0xff]  }
  0x36   : > { %v20824_v31 = vld [vmem:[%s29243_s1 + $0x2a0] ss:$16 sps:$4 sm:$0xff]   ;;  %v20827_v32 = vld [vmem:[%s29243_s1 + $0x2a8] ss:$16 sps:$4 sm:$0xff]   ;;  %v20835_v33 = vld [vmem:[%s29243_s1 + $0x2c4] ss:$16 sps:$4 sm:$0xff]  }
  0x37   : > { %699 = vmatpush1.bf16.msra.mxu0 %v20741_v34  ;;  %772 = vmatpush1.bf16.msra.mxu1 %v20742_v35  ;;  %v20838_v34 = vld [vmem:[%s29243_s1 + $0x2cc] ss:$16 sps:$4 sm:$0xff]   ;;  %v20833_v35 = vld [vmem:[%s29243_s1 + $0x2c0] ss:$16 sps:$4 sm:$0xff]   ;;  %s16841_s13 = scalar_lea.sflag [#allocation5], %s326_s24  ;;  %s23202_s23 = smov [#allocation4]  }
  0x38   : > { %700 = vmatprep.subr.bf16.mxu0 %v20743_v36  ;;  %773 = vmatprep.subr.bf16.mxu1 %v20745_v37  ;;  %v20836_v36 = vld [vmem:[%s29243_s1 + $0x2c8] ss:$16 sps:$4 sm:$0xff]   ;;  %v20841_v37 = vld [vmem:[%s29243_s1 + $0x2e4] ss:$16 sps:$4 sm:$0xff]   ;;  %v20844_v38 = vld [vmem:[%s29243_s1 + $0x2ec] ss:$16 sps:$4 sm:$0xff]  }
  0x3b   : > { %701 = vmatpush1.bf16.msra.mxu0 %v20747_v39  ;;  %774 = vmatpush1.bf16.msra.mxu1 %v20748_v40  ;;  %v20839_v39 = vld [vmem:[%s29243_s1 + $0x2e0] ss:$16 sps:$4 sm:$0xff]   ;;  %v20842_v40 = vld [vmem:[%s29243_s1 + $0x2e8] ss:$16 sps:$4 sm:$0xff]  }
  0x3c   : > { %702 = vmatprep.subr.bf16.mxu0 %v20749_v41  ;;  %775 = vmatprep.subr.bf16.mxu1 %v20751_v42  ;;  %v20850_v41 = vld [vmem:[%s29243_s1 + $0x304] ss:$16 sps:$4 sm:$0xff]   ;;  %v20853_v42 = vld [vmem:[%s29243_s1 + $0x30c] ss:$16 sps:$4 sm:$0xff]  }
  0x3f   : > { %703 = vmatpush1.bf16.msra.mxu0 %v20753_v43  ;;  %776 = vmatpush1.bf16.msra.mxu1 %v20754_v44  ;;  %v20845_v43 = vld [vmem:[%s23407_s27 + $0x40] ss:$8 sps:$4 sm:$0xff]  }
  0x40   : > { %704 = vmatprep.subr.bf16.mxu0 %v20755_v45  ;;  %777 = vmatprep.subr.bf16.mxu1 %v20757_v46  ;;  %v20848_v44 = vld [vmem:[%s29243_s1 + $0x300] ss:$16 sps:$4 sm:$0xff]   ;;  %v20851_v45 = vld [vmem:[%s29243_s1 + $0x308] ss:$16 sps:$4 sm:$0xff]   ;;  %v20856_v46 = vld [vmem:[%s29243_s1 + $0x324] ss:$16 sps:$4 sm:$0xff]  }
  0x43   : > { %705 = vmatpush1.bf16.msra.mxu0 %v20759_v47  ;;  %778 = vmatpush1.bf16.msra.mxu1 %v20760_v48  ;;  %v20859_v47 = vld [vmem:[%s29243_s1 + $0x32c] ss:$16 sps:$4 sm:$0xff]  }
  0x44   : > { %1205 = vmatprep.subr.bf16.mxu0 %v20766_v49  ;;  %1278 = vmatprep.subr.bf16.mxu1 %v20769_v50  ;;  %v20860_v48 = vld [vmem:[%s23407_s27 + $0x54] ss:$8 sps:$4 sm:$0xff]   ;;  %v20854_v49 = vld [vmem:[%s29243_s1 + $0x320] ss:$16 sps:$4 sm:$0xff]   ;;  %v20857_v50 = vld [vmem:[%s29243_s1 + $0x328] ss:$16 sps:$4 sm:$0xff]  }
  0x46   : > { %715 = vmatmul.mubr.bf16.vlgmr.msra.gmra.mrb[0].mxu0 %v20761_v51  ;;  %788 = vmatmul.mubr.bf16.vlgmr.msra.gmra.mrb[0].mxu1 %v20761_v51  ;;  %v20865_v51 = vld [vmem:[%s29243_s1 + $0x344] ss:$16 sps:$4 sm:$0xff]  }
  0x47   : > { %1206 = vmatpush1.bf16.msra.mxu0 %v20764_v52  ;;  %1279 = vmatpush1.bf16.msra.mxu1 %v20767_v53  ;;  %v20868_v52 = vld [vmem:[%s29243_s1 + $0x34c] ss:$16 sps:$4 sm:$0xff]   ;;  %v20862_v53 = vld [vmem:[%s23407_s27 + $0x50] ss:$8 sps:$4 sm:$0xff]  }
  0x48   : > { %1207 = vmatprep.subr.bf16.mxu0 %v20772_v54  ;;  %1280 = vmatprep.subr.bf16.mxu1 %v20775_v55  ;;  %v20863_v54 = vld [vmem:[%s29243_s1 + $0x340] ss:$16 sps:$4 sm:$0xff]   ;;  %v20866_v55 = vld [vmem:[%s29243_s1 + $0x348] ss:$16 sps:$4 sm:$0xff]  }
  0x49   : > { %16979 = vmatprep.mubr.msk.bf16.mxu0 %vm669_vm0, %v20800_v56  ;;  %16983 = vmatprep.mubr.msk.bf16.mxu1 %vm669_vm0, %v20800_v56  ;;  %v20871_v56 = vld [vmem:[%s29243_s1 + $0x364] ss:$16 sps:$4 sm:$0xff]  }
  0x4b   : > { %1208 = vmatpush1.bf16.msra.mxu0 %v20770_v57  ;;  %1281 = vmatpush1.bf16.msra.mxu1 %v20773_v58  ;;  %v20874_v57 = vld [vmem:[%s29243_s1 + $0x36c] ss:$16 sps:$4 sm:$0xff]  }
  0x4c   : > { %1209 = vmatprep.subr.bf16.mxu0 %v20778_v59  ;;  %1282 = vmatprep.subr.bf16.mxu1 %v20781_v60  ;;  %v20875_v58 = vld [vmem:[%s23407_s27 + $0x64] ss:$8 sps:$4 sm:$0xff]   ;;  %v20869_v59 = vld [vmem:[%s29243_s1 + $0x360] ss:$16 sps:$4 sm:$0xff]   ;;  %v20872_v60 = vld [vmem:[%s29243_s1 + $0x368] ss:$16 sps:$4 sm:$0xff]  }
  0x4e   : > { %725 = vmatmul.mubr.bf16.gmra.mrb[4].mxu0 %v20802_v63  ;;  %798 = vmatmul.mubr.bf16.gmra.mrb[4].mxu1 %v20802_v63  ;;  %v20877_v63 = vld [vmem:[%s23407_s27 + $0x60] ss:$8 sps:$4 sm:$0xff]  }
  0x4f   : > { %1210 = vmatpush1.bf16.msra.mxu0 %v20776_v61  ;;  %1283 = vmatpush1.bf16.msra.mxu1 %v20779_v62  ;;  %v20880_v61 = vld [vmem:[%s29243_s1 + $0x384] ss:$16 sps:$4 sm:$0xff]   ;;  %v20883_v62 = vld [vmem:[%s29243_s1 + $0x38c] ss:$16 sps:$4 sm:$0xff]  }
  0x50   : > { %1211 = vmatprep.subr.bf16.mxu0 %v20784_v0  ;;  %1284 = vmatprep.subr.bf16.mxu1 %v20787_v1  ;;  %v20878_v0 = vld [vmem:[%s29243_s1 + $0x380] ss:$16 sps:$4 sm:$0xff]   ;;  %v20881_v1 = vld [vmem:[%s29243_s1 + $0x388] ss:$16 sps:$4 sm:$0xff]  }
  0x51   : > { %16980 = vmatprep.mubr.msk.bf16.mxu0 %vm669_vm0, %v20815_v2  ;;  %16984 = vmatprep.mubr.msk.bf16.mxu1 %vm669_vm0, %v20815_v2  ;;  %v20886_v2 = vld [vmem:[%s29243_s1 + $0x3a4] ss:$16 sps:$4 sm:$0xff]  }
  0x53   : > { %1212 = vmatpush1.bf16.msra.mxu0 %v20782_v3  ;;  %1285 = vmatpush1.bf16.msra.mxu1 %v20785_v4  ;;  %v20889_v3 = vld [vmem:[%s29243_s1 + $0x3ac] ss:$16 sps:$4 sm:$0xff]  }
  0x54   : > { %1213 = vmatprep.subr.bf16.mxu0 %v20790_v5  ;;  %1286 = vmatprep.subr.bf16.mxu1 %v20793_v6  ;;  %v20890_v4 = vld [vmem:[%s23407_s27 + $0x74] ss:$8 sps:$4 sm:$0xff]   ;;  %v20884_v5 = vld [vmem:[%s29243_s1 + $0x3a0] ss:$16 sps:$4 sm:$0xff]   ;;  %v20887_v6 = vld [vmem:[%s29243_s1 + $0x3a8] ss:$16 sps:$4 sm:$0xff]  }
  0x56   : > { %735 = vmatmul.mubr.bf16.gmra.mrb[8].mxu0 %v20817_v9  ;;  %808 = vmatmul.mubr.bf16.gmra.mrb[8].mxu1 %v20817_v9  ;;  %v20892_v9 = vld [vmem:[%s23407_s27 + $0x70] ss:$8 sps:$4 sm:$0xff]  }
  0x57   : > { %1214 = vmatpush1.bf16.msra.mxu0 %v20788_v7  ;;  %1287 = vmatpush1.bf16.msra.mxu1 %v20791_v8  ;;  %v20895_v7 = vld [vmem:[%s29243_s1 + $0x3c4] ss:$16 sps:$4 sm:$0xff]   ;;  %v20898_v8 = vld [vmem:[%s29243_s1 + $0x3cc] ss:$16 sps:$4 sm:$0xff]  }
  0x58   : > { %1215 = vmatprep.subr.bf16.mxu0 %v20796_v10  ;;  %1288 = vmatprep.subr.bf16.mxu1 %v20799_v11  ;;  %v20893_v10 = vld [vmem:[%s29243_s1 + $0x3c0] ss:$16 sps:$4 sm:$0xff]   ;;  %v20896_v11 = vld [vmem:[%s29243_s1 + $0x3c8] ss:$16 sps:$4 sm:$0xff]  }
  0x59   : > { %16981 = vmatprep.mubr.msk.bf16.mxu0 %vm669_vm0, %v20830_v12  ;;  %16985 = vmatprep.mubr.msk.bf16.mxu1 %vm669_vm0, %v20830_v12  ;;  %v20901_v12 = vld [vmem:[%s29243_s1 + $0x3e4] ss:$16 sps:$4 sm:$0xff]  }
  0x5b   : > { %1216 = vmatpush1.bf16.msra.mxu0 %v20794_v13  ;;  %1289 = vmatpush1.bf16.msra.mxu1 %v20797_v14  ;;  %v20904_v13 = vld [vmem:[%s29243_s1 + $0x3ec] ss:$16 sps:$4 sm:$0xff]  }
  0x5c   : > { %1217 = vmatprep.subr.bf16.mxu0 %v20805_v15  ;;  %1290 = vmatprep.subr.bf16.mxu1 %v20808_v16  ;;  %v20931_v14 = vld [vmem:[%s23407_s27 + $0x84] ss:$8 sps:$4 sm:$0xff]   ;;  %v20899_v15 = vld [vmem:[%s29243_s1 + $0x3e0] ss:$16 sps:$4 sm:$0xff]   ;;  %v20902_v16 = vld [vmem:[%s29243_s1 + $0x3e8] ss:$16 sps:$4 sm:$0xff]  }
  0x5e   : > { %745 = vmatmul.mubr.bf16.gmra.mrb[12].mxu0 %v20832_v19  ;;  %818 = vmatmul.mubr.bf16.gmra.mrb[12].mxu1 %v20832_v19  ;;  %v20905_v19 = vld [vmem:[%s29243_s1 + $0x400] ss:$16 sps:$4 sm:$0xff]  }
  0x5f   : > { %1218 = vmatpush1.bf16.msra.mxu0 %v20803_v17  ;;  %1291 = vmatpush1.bf16.msra.mxu1 %v20806_v18  ;;  %v20907_v17 = vld [vmem:[%s29243_s1 + $0x404] ss:$16 sps:$4 sm:$0xff]   ;;  %v20910_v18 = vld [vmem:[%s29243_s1 + $0x40c] ss:$16 sps:$4 sm:$0xff]  }
  0x60   : > { %1219 = vmatprep.subr.bf16.mxu0 %v20811_v20  ;;  %1292 = vmatprep.subr.bf16.mxu1 %v20814_v21  ;;  %v20908_v20 = vld [vmem:[%s29243_s1 + $0x408] ss:$16 sps:$4 sm:$0xff]   ;;  %v20913_v21 = vld [vmem:[%s29243_s1 + $0x424] ss:$16 sps:$4 sm:$0xff]  }
  0x61   : > { %17090 = vmatprep.mubr.msk.bf16.mxu0 %vm669_vm0, %v20847_v22  ;;  %17094 = vmatprep.mubr.msk.bf16.mxu1 %vm669_vm0, %v20847_v22  ;;  %v20916_v22 = vld [vmem:[%s29243_s1 + $0x42c] ss:$16 sps:$4 sm:$0xff]  }
  0x63   : > { %1220 = vmatpush1.bf16.msra.mxu0 %v20809_v23  ;;  %1293 = vmatpush1.bf16.msra.mxu1 %v20812_v24  ;;  %v20911_v23 = vld [vmem:[%s29243_s1 + $0x420] ss:$16 sps:$4 sm:$0xff]   ;;  %v20914_v24 = vld [vmem:[%s29243_s1 + $0x428] ss:$16 sps:$4 sm:$0xff]  }
  0x64   : > { %1221 = vmatprep.subr.bf16.mxu0 %v20820_v25  ;;  %1294 = vmatprep.subr.bf16.mxu1 %v20823_v26  ;;  %v20919_v25 = vld [vmem:[%s29243_s1 + $0x444] ss:$16 sps:$4 sm:$0xff]   ;;  %v20922_v26 = vld [vmem:[%s29243_s1 + $0x44c] ss:$16 sps:$4 sm:$0xff]  }
  0x67   : > { %1222 = vmatpush1.bf16.msra.mxu0 %v20818_v27  ;;  %1295 = vmatpush1.bf16.msra.mxu1 %v20821_v28  ;;  %v20917_v27 = vld [vmem:[%s29243_s1 + $0x440] ss:$16 sps:$4 sm:$0xff]   ;;  %v20920_v28 = vld [vmem:[%s29243_s1 + $0x448] ss:$16 sps:$4 sm:$0xff]  }
  0x68   : > { %1223 = vmatprep.subr.bf16.mxu0 %v20826_v29  ;;  %1296 = vmatprep.subr.bf16.mxu1 %v20829_v30  ;;  %v20925_v29 = vld [vmem:[%s29243_s1 + $0x464] ss:$16 sps:$4 sm:$0xff]   ;;  %v20928_v30 = vld [vmem:[%s29243_s1 + $0x46c] ss:$16 sps:$4 sm:$0xff]  }
  0x6b   : > { %1224 = vmatpush1.bf16.msra.mxu0 %v20824_v31  ;;  %1297 = vmatpush1.bf16.msra.mxu1 %v20827_v32  ;;  %v20923_v31 = vld [vmem:[%s29243_s1 + $0x460] ss:$16 sps:$4 sm:$0xff]   ;;  %v20926_v32 = vld [vmem:[%s29243_s1 + $0x468] ss:$16 sps:$4 sm:$0xff]  }
  0x6c   : > { %1225 = vmatprep.subr.bf16.mxu0 %v20835_v33  ;;  %1298 = vmatprep.subr.bf16.mxu1 %v20838_v34  ;;  %v20934_v33 = vld [vmem:[%s29243_s1 + $0x484] ss:$16 sps:$4 sm:$0xff]   ;;  %v20937_v34 = vld [vmem:[%s29243_s1 + $0x48c] ss:$16 sps:$4 sm:$0xff]  }
  0x6f   : > { %1226 = vmatpush1.bf16.msra.mxu0 %v20833_v35  ;;  %1299 = vmatpush1.bf16.msra.mxu1 %v20836_v36  ;;  %v20929_v35 = vld [vmem:[%s23407_s27 + $0x80] ss:$8 sps:$4 sm:$0xff]  }
  0x70   : > { %1227 = vmatprep.subr.bf16.mxu0 %v20841_v37  ;;  %1300 = vmatprep.subr.bf16.mxu1 %v20844_v38  ;;  %v20932_v36 = vld [vmem:[%s29243_s1 + $0x480] ss:$16 sps:$4 sm:$0xff]   ;;  %v20935_v37 = vld [vmem:[%s29243_s1 + $0x488] ss:$16 sps:$4 sm:$0xff]   ;;  %v20940_v38 = vld [vmem:[%s29243_s1 + $0x4a4] ss:$16 sps:$4 sm:$0xff]  }
  0x73   : > { %1228 = vmatpush1.bf16.msra.mxu0 %v20839_v39  ;;  %1301 = vmatpush1.bf16.msra.mxu1 %v20842_v40  ;;  %v20943_v39 = vld [vmem:[%s29243_s1 + $0x4ac] ss:$16 sps:$4 sm:$0xff]  }
  0x74   : > { %1792 = vmatprep.subr.bf16.mxu0 %v20850_v41  ;;  %1865 = vmatprep.subr.bf16.mxu1 %v20853_v42  ;;  %v20944_v40 = vld [vmem:[%s23407_s27 + $0x94] ss:$8 sps:$4 sm:$0xff]   ;;  %v20938_v41 = vld [vmem:[%s29243_s1 + $0x4a0] ss:$16 sps:$4 sm:$0xff]   ;;  %v20941_v42 = vld [vmem:[%s29243_s1 + $0x4a8] ss:$16 sps:$4 sm:$0xff]  }
  0x76   : > { %1238 = vmatmul.mubr.bf16.vlgmr.msra.gmra.mrb[0].mxu0 %v20845_v43  ;;  %1311 = vmatmul.mubr.bf16.vlgmr.msra.gmra.mrb[0].mxu1 %v20845_v43  ;;  %v20949_v43 = vld [vmem:[%s29243_s1 + $0x4c4] ss:$16 sps:$4 sm:$0xff]  }
  0x77   : > { %1793 = vmatpush1.bf16.msra.mxu0 %v20848_v44  ;;  %1866 = vmatpush1.bf16.msra.mxu1 %v20851_v45  ;;  %v20952_v44 = vld [vmem:[%s29243_s1 + $0x4cc] ss:$16 sps:$4 sm:$0xff]   ;;  %v20946_v45 = vld [vmem:[%s23407_s27 + $0x90] ss:$8 sps:$4 sm:$0xff]  }
  0x78   : > { %1794 = vmatprep.subr.bf16.mxu0 %v20856_v46  ;;  %1867 = vmatprep.subr.bf16.mxu1 %v20859_v47  ;;  %v20947_v46 = vld [vmem:[%s29243_s1 + $0x4c0] ss:$16 sps:$4 sm:$0xff]   ;;  %v20950_v47 = vld [vmem:[%s29243_s1 + $0x4c8] ss:$16 sps:$4 sm:$0xff]  }
  0x79   : > { %17091 = vmatprep.mubr.msk.bf16.mxu0 %vm669_vm0, %v20860_v48  ;;  %17095 = vmatprep.mubr.msk.bf16.mxu1 %vm669_vm0, %v20860_v48  ;;  %v20955_v48 = vld [vmem:[%s29243_s1 + $0x4e4] ss:$16 sps:$4 sm:$0xff]  }
  0x7b   : > { %1795 = vmatpush1.bf16.msra.mxu0 %v20854_v49  ;;  %1868 = vmatpush1.bf16.msra.mxu1 %v20857_v50  ;;  %v20958_v49 = vld [vmem:[%s29243_s1 + $0x4ec] ss:$16 sps:$4 sm:$0xff]  }
  0x7c   : > { %1796 = vmatprep.subr.bf16.mxu0 %v20865_v51  ;;  %1869 = vmatprep.subr.bf16.mxu1 %v20868_v52  ;;  %v20959_v50 = vld [vmem:[%s23407_s27 + $0xa4] ss:$8 sps:$4 sm:$0xff]   ;;  %v20953_v51 = vld [vmem:[%s29243_s1 + $0x4e0] ss:$16 sps:$4 sm:$0xff]   ;;  %v20956_v52 = vld [vmem:[%s29243_s1 + $0x4e8] ss:$16 sps:$4 sm:$0xff]  }
  0x7e   : > { %1248 = vmatmul.mubr.bf16.gmra.mrb[4].mxu0 %v20862_v53  ;;  %1321 = vmatmul.mubr.bf16.gmra.mrb[4].mxu1 %v20862_v53  ;;  %v20964_v53 = vld [vmem:[%s29243_s1 + $0x504] ss:$16 sps:$4 sm:$0xff]  }
  0x7f   : > { %1797 = vmatpush1.bf16.msra.mxu0 %v20863_v54  ;;  %1870 = vmatpush1.bf16.msra.mxu1 %v20866_v55  ;;  %v20967_v54 = vld [vmem:[%s29243_s1 + $0x50c] ss:$16 sps:$4 sm:$0xff]   ;;  %v20961_v55 = vld [vmem:[%s23407_s27 + $0xa0] ss:$8 sps:$4 sm:$0xff]  }
  0x80   : > { %1798 = vmatprep.subr.bf16.mxu0 %v20871_v56  ;;  %1871 = vmatprep.subr.bf16.mxu1 %v20874_v57  ;;  %v20962_v56 = vld [vmem:[%s29243_s1 + $0x500] ss:$16 sps:$4 sm:$0xff]   ;;  %v20965_v57 = vld [vmem:[%s29243_s1 + $0x508] ss:$16 sps:$4 sm:$0xff]  }
  0x81   : > { %17092 = vmatprep.mubr.msk.bf16.mxu0 %vm669_vm0, %v20875_v58  ;;  %17096 = vmatprep.mubr.msk.bf16.mxu1 %vm669_vm0, %v20875_v58  ;;  %v20970_v58 = vld [vmem:[%s29243_s1 + $0x524] ss:$16 sps:$4 sm:$0xff]  }
  0x83   : > { %1799 = vmatpush1.bf16.msra.mxu0 %v20869_v59  ;;  %1872 = vmatpush1.bf16.msra.mxu1 %v20872_v60  ;;  %v20973_v59 = vld [vmem:[%s29243_s1 + $0x52c] ss:$16 sps:$4 sm:$0xff]  }
  0x84   : > { %1800 = vmatprep.subr.bf16.mxu0 %v20880_v61  ;;  %1873 = vmatprep.subr.bf16.mxu1 %v20883_v62  ;;  %v20974_v60 = vld [vmem:[%s23407_s27 + $0xb4] ss:$8 sps:$4 sm:$0xff]   ;;  %v20968_v61 = vld [vmem:[%s29243_s1 + $0x520] ss:$16 sps:$4 sm:$0xff]   ;;  %v20971_v62 = vld [vmem:[%s29243_s1 + $0x528] ss:$16 sps:$4 sm:$0xff]  }
  0x86   : > { %1258 = vmatmul.mubr.bf16.gmra.mrb[8].mxu0 %v20877_v63  ;;  %1331 = vmatmul.mubr.bf16.gmra.mrb[8].mxu1 %v20877_v63  ;;  %v20979_v63 = vld [vmem:[%s29243_s1 + $0x544] ss:$16 sps:$4 sm:$0xff]  }
  0x87   : > { %1801 = vmatpush1.bf16.msra.mxu0 %v20878_v0  ;;  %1874 = vmatpush1.bf16.msra.mxu1 %v20881_v1  ;;  %v20982_v0 = vld [vmem:[%s29243_s1 + $0x54c] ss:$16 sps:$4 sm:$0xff]   ;;  %v20976_v1 = vld [vmem:[%s23407_s27 + $0xb0] ss:$8 sps:$4 sm:$0xff]  }
  0x88   : > { %1802 = vmatprep.subr.bf16.mxu0 %v20886_v2  ;;  %1875 = vmatprep.subr.bf16.mxu1 %v20889_v3  ;;  %v20977_v2 = vld [vmem:[%s29243_s1 + $0x540] ss:$16 sps:$4 sm:$0xff]   ;;  %v20980_v3 = vld [vmem:[%s29243_s1 + $0x548] ss:$16 sps:$4 sm:$0xff]  }
  0x89   : > { %17093 = vmatprep.mubr.msk.bf16.mxu0 %vm669_vm0, %v20890_v4  ;;  %17097 = vmatprep.mubr.msk.bf16.mxu1 %vm669_vm0, %v20890_v4  ;;  %v20985_v4 = vld [vmem:[%s29243_s1 + $0x564] ss:$16 sps:$4 sm:$0xff]  }
  0x8b   : > { %1803 = vmatpush1.bf16.msra.mxu0 %v20884_v5  ;;  %1876 = vmatpush1.bf16.msra.mxu1 %v20887_v6  ;;  %v20988_v5 = vld [vmem:[%s29243_s1 + $0x56c] ss:$16 sps:$4 sm:$0xff]  }
  0x8c   : > { %1804 = vmatprep.subr.bf16.mxu0 %v20895_v7  ;;  %1877 = vmatprep.subr.bf16.mxu1 %v20898_v8  ;;  %v21015_v6 = vld [vmem:[%s23407_s27 + $0xc4] ss:$8 sps:$4 sm:$0xff]   ;;  %v20983_v7 = vld [vmem:[%s29243_s1 + $0x560] ss:$16 sps:$4 sm:$0xff]   ;;  %v20986_v8 = vld [vmem:[%s29243_s1 + $0x568] ss:$16 sps:$4 sm:$0xff]  }
  0x8e   : > { %1268 = vmatmul.mubr.bf16.gmra.mrb[16].mxu0 %v20892_v9  ;;  %1341 = vmatmul.mubr.bf16.gmra.mrb[16].mxu1 %v20892_v9  ;;  %v20991_v9 = vld [vmem:[%s29243_s1 + $0x584] ss:$16 sps:$4 sm:$0xff]  }
  0x8f   : > { %1805 = vmatpush1.bf16.msra.mxu0 %v20893_v10  ;;  %1878 = vmatpush1.bf16.msra.mxu1 %v20896_v11  ;;  %v20994_v10 = vld [vmem:[%s29243_s1 + $0x58c] ss:$16 sps:$4 sm:$0xff]   ;;  %v20989_v11 = vld [vmem:[%s29243_s1 + $0x580] ss:$16 sps:$4 sm:$0xff]  }
  0x90   : > { %1806 = vmatprep.subr.bf16.mxu0 %v20901_v12  ;;  %1879 = vmatprep.subr.bf16.mxu1 %v20904_v13  ;;  %v20992_v12 = vld [vmem:[%s29243_s1 + $0x588] ss:$16 sps:$4 sm:$0xff]   ;;  %v20997_v13 = vld [vmem:[%s29243_s1 + $0x5a4] ss:$16 sps:$4 sm:$0xff]  }
  0x91   : > { %17202 = vmatprep.mubr.msk.bf16.mxu0 %vm669_vm0, %v20931_v14  ;;  %17206 = vmatprep.mubr.msk.bf16.mxu1 %vm669_vm0, %v20931_v14  ;;  %v21000_v14 = vld [vmem:[%s29243_s1 + $0x5ac] ss:$16 sps:$4 sm:$0xff]  }
  0x93   : > { %1807 = vmatpush1.bf16.msra.mxu0 %v20899_v15  ;;  %1880 = vmatpush1.bf16.msra.mxu1 %v20902_v16  ;;  %v20995_v15 = vld [vmem:[%s29243_s1 + $0x5a0] ss:$16 sps:$4 sm:$0xff]   ;;  %v20998_v16 = vld [vmem:[%s29243_s1 + $0x5a8] ss:$16 sps:$4 sm:$0xff]  }
  0x94   : > { %1808 = vmatprep.subr.bf16.mxu0 %v20907_v17  ;;  %1881 = vmatprep.subr.bf16.mxu1 %v20910_v18  ;;  %v21003_v17 = vld [vmem:[%s29243_s1 + $0x5c4] ss:$16 sps:$4 sm:$0xff]   ;;  %v21006_v18 = vld [vmem:[%s29243_s1 + $0x5cc] ss:$16 sps:$4 sm:$0xff]  }
  0x97   : > { %1809 = vmatpush1.bf16.msra.mxu0 %v20905_v19  ;;  %1882 = vmatpush1.bf16.msra.mxu1 %v20908_v20  ;;  %v21001_v19 = vld [vmem:[%s29243_s1 + $0x5c0] ss:$16 sps:$4 sm:$0xff]   ;;  %v21004_v20 = vld [vmem:[%s29243_s1 + $0x5c8] ss:$16 sps:$4 sm:$0xff]  }
  0x98   : > { %1810 = vmatprep.subr.bf16.mxu0 %v20913_v21  ;;  %1883 = vmatprep.subr.bf16.mxu1 %v20916_v22  ;;  %v21009_v21 = vld [vmem:[%s29243_s1 + $0x5e4] ss:$16 sps:$4 sm:$0xff]   ;;  %v21012_v22 = vld [vmem:[%s29243_s1 + $0x5ec] ss:$16 sps:$4 sm:$0xff]  }
  0x9b   : > { %1811 = vmatpush1.bf16.msra.mxu0 %v20911_v23  ;;  %1884 = vmatpush1.bf16.msra.mxu1 %v20914_v24  ;;  %v21007_v23 = vld [vmem:[%s29243_s1 + $0x5e0] ss:$16 sps:$4 sm:$0xff]   ;;  %v21010_v24 = vld [vmem:[%s29243_s1 + $0x5e8] ss:$16 sps:$4 sm:$0xff]  }
  0x9c   : > { %1812 = vmatprep.subr.bf16.mxu0 %v20919_v25  ;;  %1885 = vmatprep.subr.bf16.mxu1 %v20922_v26  ;;  %v21018_v25 = vld [vmem:[%s29243_s1 + $0x604] ss:$16 sps:$4 sm:$0xff]   ;;  %v21021_v26 = vld [vmem:[%s29243_s1 + $0x60c] ss:$16 sps:$4 sm:$0xff]  }
  0x9f   : > { %1813 = vmatpush1.bf16.msra.mxu0 %v20917_v27  ;;  %1886 = vmatpush1.bf16.msra.mxu1 %v20920_v28  ;;  %v21013_v27 = vld [vmem:[%s23407_s27 + $0xc0] ss:$8 sps:$4 sm:$0xff]  }
  0xa0   : > { %1814 = vmatprep.subr.bf16.mxu0 %v20925_v29  ;;  %1887 = vmatprep.subr.bf16.mxu1 %v20928_v30  ;;  %v21016_v28 = vld [vmem:[%s29243_s1 + $0x600] ss:$16 sps:$4 sm:$0xff]   ;;  %v21019_v29 = vld [vmem:[%s29243_s1 + $0x608] ss:$16 sps:$4 sm:$0xff]   ;;  %v21024_v30 = vld [vmem:[%s29243_s1 + $0x624] ss:$16 sps:$4 sm:$0xff]  }
  0xa3   : > { %1815 = vmatpush1.bf16.msra.mxu0 %v20923_v31  ;;  %1888 = vmatpush1.bf16.msra.mxu1 %v20926_v32  ;;  %v21027_v31 = vld [vmem:[%s29243_s1 + $0x62c] ss:$16 sps:$4 sm:$0xff]  }
  0xa4   : > { %2379 = vmatprep.subr.bf16.mxu0 %v20934_v33  ;;  %2452 = vmatprep.subr.bf16.mxu1 %v20937_v34  ;;  %v21028_v32 = vld [vmem:[%s23407_s27 + $0xd4] ss:$8 sps:$4 sm:$0xff]   ;;  %v21022_v33 = vld [vmem:[%s29243_s1 + $0x620] ss:$16 sps:$4 sm:$0xff]   ;;  %v21025_v34 = vld [vmem:[%s29243_s1 + $0x628] ss:$16 sps:$4 sm:$0xff]  }
  0xa6   : > { %1825 = vmatmul.mubr.bf16.vlgmr.msra.gmra.mrb[0].mxu0 %v20929_v35  ;;  %1898 = vmatmul.mubr.bf16.vlgmr.msra.gmra.mrb[0].mxu1 %v20929_v35  ;;  %v21033_v35 = vld [vmem:[%s29243_s1 + $0x644] ss:$16 sps:$4 sm:$0xff]  }
  0xa7   : > { %2380 = vmatpush1.bf16.msra.mxu0 %v20932_v36  ;;  %2453 = vmatpush1.bf16.msra.mxu1 %v20935_v37  ;;  %v21036_v36 = vld [vmem:[%s29243_s1 + $0x64c] ss:$16 sps:$4 sm:$0xff]   ;;  %v21030_v37 = vld [vmem:[%s23407_s27 + $0xd0] ss:$8 sps:$4 sm:$0xff]  }
  0xa8   : > { %2381 = vmatprep.subr.bf16.mxu0 %v20940_v38  ;;  %2454 = vmatprep.subr.bf16.mxu1 %v20943_v39  ;;  %v21031_v38 = vld [vmem:[%s29243_s1 + $0x640] ss:$16 sps:$4 sm:$0xff]   ;;  %v21034_v39 = vld [vmem:[%s29243_s1 + $0x648] ss:$16 sps:$4 sm:$0xff]  }
  0xa9   : > { %17203 = vmatprep.mubr.msk.bf16.mxu0 %vm669_vm0, %v20944_v40  ;;  %17207 = vmatprep.mubr.msk.bf16.mxu1 %vm669_vm0, %v20944_v40  ;;  %v21039_v40 = vld [vmem:[%s29243_s1 + $0x664] ss:$16 sps:$4 sm:$0xff]  }
  0xab   : > { %2382 = vmatpush1.bf16.msra.mxu0 %v20938_v41  ;;  %2455 = vmatpush1.bf16.msra.mxu1 %v20941_v42  ;;  %v21042_v41 = vld [vmem:[%s29243_s1 + $0x66c] ss:$16 sps:$4 sm:$0xff]  }
  0xac   : > { %2383 = vmatprep.subr.bf16.mxu0 %v20949_v43  ;;  %2456 = vmatprep.subr.bf16.mxu1 %v20952_v44  ;;  %v21043_v42 = vld [vmem:[%s23407_s27 + $0xe4] ss:$8 sps:$4 sm:$0xff]   ;;  %v21037_v43 = vld [vmem:[%s29243_s1 + $0x660] ss:$16 sps:$4 sm:$0xff]   ;;  %v21040_v44 = vld [vmem:[%s29243_s1 + $0x668] ss:$16 sps:$4 sm:$0xff]  }
  0xae   : > { %1835 = vmatmul.mubr.bf16.gmra.mrb[4].mxu0 %v20946_v45  ;;  %1908 = vmatmul.mubr.bf16.gmra.mrb[4].mxu1 %v20946_v45  ;;  %v21048_v45 = vld [vmem:[%s29243_s1 + $0x684] ss:$16 sps:$4 sm:$0xff]  }
  0xaf   : > { %2384 = vmatpush1.bf16.msra.mxu0 %v20947_v46  ;;  %2457 = vmatpush1.bf16.msra.mxu1 %v20950_v47  ;;  %v21051_v46 = vld [vmem:[%s29243_s1 + $0x68c] ss:$16 sps:$4 sm:$0xff]   ;;  %v21045_v47 = vld [vmem:[%s23407_s27 + $0xe0] ss:$8 sps:$4 sm:$0xff]  }
  0xb0   : > { %2385 = vmatprep.subr.bf16.mxu0 %v20955_v48  ;;  %2458 = vmatprep.subr.bf16.mxu1 %v20958_v49  ;;  %v21046_v48 = vld [vmem:[%s29243_s1 + $0x680] ss:$16 sps:$4 sm:$0xff]   ;;  %v21049_v49 = vld [vmem:[%s29243_s1 + $0x688] ss:$16 sps:$4 sm:$0xff]  }
  0xb1   : > { %17204 = vmatprep.mubr.msk.bf16.mxu0 %vm669_vm0, %v20959_v50  ;;  %17208 = vmatprep.mubr.msk.bf16.mxu1 %vm669_vm0, %v20959_v50  ;;  %v21054_v50 = vld [vmem:[%s29243_s1 + $0x6a4] ss:$16 sps:$4 sm:$0xff]  }
  0xb3   : > { %2386 = vmatpush1.bf16.msra.mxu0 %v20953_v51  ;;  %2459 = vmatpush1.bf16.msra.mxu1 %v20956_v52  ;;  %v21057_v51 = vld [vmem:[%s29243_s1 + $0x6ac] ss:$16 sps:$4 sm:$0xff]  }
  0xb4   : > { %2387 = vmatprep.subr.bf16.mxu0 %v20964_v53  ;;  %2460 = vmatprep.subr.bf16.mxu1 %v20967_v54  ;;  %v21058_v52 = vld [vmem:[%s23407_s27 + $0xf4] ss:$8 sps:$4 sm:$0xff]   ;;  %v21052_v53 = vld [vmem:[%s29243_s1 + $0x6a0] ss:$16 sps:$4 sm:$0xff]   ;;  %v21055_v54 = vld [vmem:[%s29243_s1 + $0x6a8] ss:$16 sps:$4 sm:$0xff]  }
  0xb6   : > { %1845 = vmatmul.mubr.bf16.gmra.mrb[8].mxu0 %v20961_v55  ;;  %1918 = vmatmul.mubr.bf16.gmra.mrb[8].mxu1 %v20961_v55  ;;  %v21063_v55 = vld [vmem:[%s29243_s1 + $0x6c4] ss:$16 sps:$4 sm:$0xff]  }
  0xb7   : > { %2388 = vmatpush1.bf16.msra.mxu0 %v20962_v56  ;;  %2461 = vmatpush1.bf16.msra.mxu1 %v20965_v57  ;;  %v21066_v56 = vld [vmem:[%s29243_s1 + $0x6cc] ss:$16 sps:$4 sm:$0xff]   ;;  %v21060_v57 = vld [vmem:[%s23407_s27 + $0xf0] ss:$8 sps:$4 sm:$0xff]  }
  0xb8   : > { %2389 = vmatprep.subr.bf16.mxu0 %v20970_v58  ;;  %2462 = vmatprep.subr.bf16.mxu1 %v20973_v59  ;;  %v21061_v58 = vld [vmem:[%s29243_s1 + $0x6c0] ss:$16 sps:$4 sm:$0xff]   ;;  %v21064_v59 = vld [vmem:[%s29243_s1 + $0x6c8] ss:$16 sps:$4 sm:$0xff]  }
  0xb9   : > { %17205 = vmatprep.mubr.msk.bf16.mxu0 %vm669_vm0, %v20974_v60  ;;  %17209 = vmatprep.mubr.msk.bf16.mxu1 %vm669_vm0, %v20974_v60  ;;  %v21069_v60 = vld [vmem:[%s29243_s1 + $0x6e4] ss:$16 sps:$4 sm:$0xff]  }
  0xbb   : > { %2390 = vmatpush1.bf16.msra.mxu0 %v20968_v61  ;;  %2463 = vmatpush1.bf16.msra.mxu1 %v20971_v62  ;;  %v21072_v61 = vld [vmem:[%s29243_s1 + $0x6ec] ss:$16 sps:$4 sm:$0xff]  }
  0xbc   : > { %2391 = vmatprep.subr.bf16.mxu0 %v20979_v63  ;;  %2464 = vmatprep.subr.bf16.mxu1 %v20982_v0  ;;  %v21099_v62 = vld [vmem:[%s23407_s27 + $0x104] ss:$8 sps:$4 sm:$0xff]   ;;  %v21067_v63 = vld [vmem:[%s29243_s1 + $0x6e0] ss:$16 sps:$4 sm:$0xff]   ;;  %v21070_v0 = vld [vmem:[%s29243_s1 + $0x6e8] ss:$16 sps:$4 sm:$0xff]  }
  0xbe   : > { %1855 = vmatmul.mubr.bf16.gmra.mrb[20].mxu0 %v20976_v1  ;;  %1928 = vmatmul.mubr.bf16.gmra.mrb[20].mxu1 %v20976_v1  ;;  %v21075_v1 = vld [vmem:[%s29243_s1 + $0x704] ss:$16 sps:$4 sm:$0xff]  }
  0xbf   : > { %2392 = vmatpush1.bf16.msra.mxu0 %v20977_v2  ;;  %2465 = vmatpush1.bf16.msra.mxu1 %v20980_v3  ;;  %v21078_v2 = vld [vmem:[%s29243_s1 + $0x70c] ss:$16 sps:$4 sm:$0xff]   ;;  %v21073_v3 = vld [vmem:[%s29243_s1 + $0x700] ss:$16 sps:$4 sm:$0xff]  }
  0xc0   : > { %2393 = vmatprep.subr.bf16.mxu0 %v20985_v4  ;;  %2466 = vmatprep.subr.bf16.mxu1 %v20988_v5  ;;  %v21076_v4 = vld [vmem:[%s29243_s1 + $0x708] ss:$16 sps:$4 sm:$0xff]   ;;  %v21081_v5 = vld [vmem:[%s29243_s1 + $0x724] ss:$16 sps:$4 sm:$0xff]  }
  0xc1   : > { %17314 = vmatprep.mubr.msk.bf16.mxu0 %vm669_vm0, %v21015_v6  ;;  %17318 = vmatprep.mubr.msk.bf16.mxu1 %vm669_vm0, %v21015_v6  ;;  %v21084_v6 = vld [vmem:[%s29243_s1 + $0x72c] ss:$16 sps:$4 sm:$0xff]  }
  0xc3   : > { %2394 = vmatpush1.bf16.msra.mxu0 %v20983_v7  ;;  %2467 = vmatpush1.bf16.msra.mxu1 %v20986_v8  ;;  %v21079_v7 = vld [vmem:[%s29243_s1 + $0x720] ss:$16 sps:$4 sm:$0xff]   ;;  %v21082_v8 = vld [vmem:[%s29243_s1 + $0x728] ss:$16 sps:$4 sm:$0xff]  }
  0xc4   : > { %2395 = vmatprep.subr.bf16.mxu0 %v20991_v9  ;;  %2468 = vmatprep.subr.bf16.mxu1 %v20994_v10  ;;  %v21087_v9 = vld [vmem:[%s29243_s1 + $0x744] ss:$16 sps:$4 sm:$0xff]   ;;  %v21090_v10 = vld [vmem:[%s29243_s1 + $0x74c] ss:$16 sps:$4 sm:$0xff]  }
  0xc7   : > { %2396 = vmatpush1.bf16.msra.mxu0 %v20989_v11  ;;  %2469 = vmatpush1.bf16.msra.mxu1 %v20992_v12  ;;  %v21085_v11 = vld [vmem:[%s29243_s1 + $0x740] ss:$16 sps:$4 sm:$0xff]   ;;  %v21088_v12 = vld [vmem:[%s29243_s1 + $0x748] ss:$16 sps:$4 sm:$0xff]  }
  0xc8   : > { %2397 = vmatprep.subr.bf16.mxu0 %v20997_v13  ;;  %2470 = vmatprep.subr.bf16.mxu1 %v21000_v14  ;;  %v21093_v13 = vld [vmem:[%s29243_s1 + $0x764] ss:$16 sps:$4 sm:$0xff]   ;;  %v21096_v14 = vld [vmem:[%s29243_s1 + $0x76c] ss:$16 sps:$4 sm:$0xff]  }
  0xcb   : > { %2398 = vmatpush1.bf16.msra.mxu0 %v20995_v15  ;;  %2471 = vmatpush1.bf16.msra.mxu1 %v20998_v16  ;;  %v21091_v15 = vld [vmem:[%s29243_s1 + $0x760] ss:$16 sps:$4 sm:$0xff]   ;;  %v21094_v16 = vld [vmem:[%s29243_s1 + $0x768] ss:$16 sps:$4 sm:$0xff]  }
  0xcc   : > { %2399 = vmatprep.subr.bf16.mxu0 %v21003_v17  ;;  %2472 = vmatprep.subr.bf16.mxu1 %v21006_v18  ;;  %v21102_v17 = vld [vmem:[%s29243_s1 + $0x784] ss:$16 sps:$4 sm:$0xff]   ;;  %v21105_v18 = vld [vmem:[%s29243_s1 + $0x78c] ss:$16 sps:$4 sm:$0xff]  }
  0xcf   : > { %2400 = vmatpush1.bf16.msra.mxu0 %v21001_v19  ;;  %2473 = vmatpush1.bf16.msra.mxu1 %v21004_v20  ;;  %v21097_v19 = vld [vmem:[%s23407_s27 + $0x100] ss:$8 sps:$4 sm:$0xff]  }
  0xd0   : > { %2401 = vmatprep.subr.bf16.mxu0 %v21009_v21  ;;  %2474 = vmatprep.subr.bf16.mxu1 %v21012_v22  ;;  %v21100_v20 = vld [vmem:[%s29243_s1 + $0x780] ss:$16 sps:$4 sm:$0xff]   ;;  %v21103_v21 = vld [vmem:[%s29243_s1 + $0x788] ss:$16 sps:$4 sm:$0xff]   ;;  %v21108_v22 = vld [vmem:[%s29243_s1 + $0x7a4] ss:$16 sps:$4 sm:$0xff]  }
  0xd3   : > { %2402 = vmatpush1.bf16.msra.mxu0 %v21007_v23  ;;  %2475 = vmatpush1.bf16.msra.mxu1 %v21010_v24  ;;  %v21111_v23 = vld [vmem:[%s29243_s1 + $0x7ac] ss:$16 sps:$4 sm:$0xff]  }
  0xd4   : > { %2966 = vmatprep.subr.bf16.mxu0 %v21018_v25  ;;  %3039 = vmatprep.subr.bf16.mxu1 %v21021_v26  ;;  %v21112_v24 = vld [vmem:[%s23407_s27 + $0x114] ss:$8 sps:$4 sm:$0xff]   ;;  %v21106_v25 = vld [vmem:[%s29243_s1 + $0x7a0] ss:$16 sps:$4 sm:$0xff]   ;;  %v21109_v26 = vld [vmem:[%s29243_s1 + $0x7a8] ss:$16 sps:$4 sm:$0xff]  }
  0xd6   : > { %2412 = vmatmul.mubr.bf16.vlgmr.msra.gmra.mrb[0].mxu0 %v21013_v27  ;;  %2485 = vmatmul.mubr.bf16.vlgmr.msra.gmra.mrb[0].mxu1 %v21013_v27  ;;  %v21117_v27 = vld [vmem:[%s29243_s1 + $0x7c4] ss:$16 sps:$4 sm:$0xff]  }
  0xd7   : > { %2967 = vmatpush1.bf16.msra.mxu0 %v21016_v28  ;;  %3040 = vmatpush1.bf16.msra.mxu1 %v21019_v29  ;;  %v21120_v28 = vld [vmem:[%s29243_s1 + $0x7cc] ss:$16 sps:$4 sm:$0xff]   ;;  %v21114_v29 = vld [vmem:[%s23407_s27 + $0x110] ss:$8 sps:$4 sm:$0xff]  }
  0xd8   : > { %2968 = vmatprep.subr.bf16.mxu0 %v21024_v30  ;;  %3041 = vmatprep.subr.bf16.mxu1 %v21027_v31  ;;  %v21115_v30 = vld [vmem:[%s29243_s1 + $0x7c0] ss:$16 sps:$4 sm:$0xff]   ;;  %v21118_v31 = vld [vmem:[%s29243_s1 + $0x7c8] ss:$16 sps:$4 sm:$0xff]  }
  0xd9   : > { %17315 = vmatprep.mubr.msk.bf16.mxu0 %vm669_vm0, %v21028_v32  ;;  %17319 = vmatprep.mubr.msk.bf16.mxu1 %vm669_vm0, %v21028_v32  ;;  %v21123_v32 = vld [vmem:[%s29243_s1 + $0x7e4] ss:$16 sps:$4 sm:$0xff]  }
  0xdb   : > { %2969 = vmatpush1.bf16.msra.mxu0 %v21022_v33  ;;  %3042 = vmatpush1.bf16.msra.mxu1 %v21025_v34  ;;  %v21126_v33 = vld [vmem:[%s29243_s1 + $0x7ec] ss:$16 sps:$4 sm:$0xff]  }
  0xdc   : > { %2970 = vmatprep.subr.bf16.mxu0 %v21033_v35  ;;  %3043 = vmatprep.subr.bf16.mxu1 %v21036_v36  ;;  %v21127_v34 = vld [vmem:[%s23407_s27 + $0x124] ss:$8 sps:$4 sm:$0xff]   ;;  %v21121_v35 = vld [vmem:[%s29243_s1 + $0x7e0] ss:$16 sps:$4 sm:$0xff]   ;;  %v21124_v36 = vld [vmem:[%s29243_s1 + $0x7e8] ss:$16 sps:$4 sm:$0xff]  }
  0xde   : > { %2422 = vmatmul.mubr.bf16.gmra.mrb[4].mxu0 %v21030_v37  ;;  %2495 = vmatmul.mubr.bf16.gmra.mrb[4].mxu1 %v21030_v37  ;;  %v21132_v37 = vld [vmem:[%s29243_s1 + $0x804] ss:$16 sps:$4 sm:$0xff]  }
  0xdf   : > { %2971 = vmatpush1.bf16.msra.mxu0 %v21031_v38  ;;  %3044 = vmatpush1.bf16.msra.mxu1 %v21034_v39  ;;  %v21135_v38 = vld [vmem:[%s29243_s1 + $0x80c] ss:$16 sps:$4 sm:$0xff]   ;;  %v21129_v39 = vld [vmem:[%s23407_s27 + $0x120] ss:$8 sps:$4 sm:$0xff]  }
  0xe0   : > { %2972 = vmatprep.subr.bf16.mxu0 %v21039_v40  ;;  %3045 = vmatprep.subr.bf16.mxu1 %v21042_v41  ;;  %v21130_v40 = vld [vmem:[%s29243_s1 + $0x800] ss:$16 sps:$4 sm:$0xff]   ;;  %v21133_v41 = vld [vmem:[%s29243_s1 + $0x808] ss:$16 sps:$4 sm:$0xff]  }
  0xe1   : > { %17316 = vmatprep.mubr.msk.bf16.mxu0 %vm669_vm0, %v21043_v42  ;;  %17320 = vmatprep.mubr.msk.bf16.mxu1 %vm669_vm0, %v21043_v42  ;;  %v21138_v42 = vld [vmem:[%s29243_s1 + $0x824] ss:$16 sps:$4 sm:$0xff]  }
  0xe3   : > { %2973 = vmatpush1.bf16.msra.mxu0 %v21037_v43  ;;  %3046 = vmatpush1.bf16.msra.mxu1 %v21040_v44  ;;  %v21141_v43 = vld [vmem:[%s29243_s1 + $0x82c] ss:$16 sps:$4 sm:$0xff]  }
  0xe4   : > { %2974 = vmatprep.subr.bf16.mxu0 %v21048_v45  ;;  %3047 = vmatprep.subr.bf16.mxu1 %v21051_v46  ;;  %v21142_v44 = vld [vmem:[%s23407_s27 + $0x134] ss:$8 sps:$4 sm:$0xff]   ;;  %v21136_v45 = vld [vmem:[%s29243_s1 + $0x820] ss:$16 sps:$4 sm:$0xff]   ;;  %v21139_v46 = vld [vmem:[%s29243_s1 + $0x828] ss:$16 sps:$4 sm:$0xff]  }
  0xe6   : > { %2432 = vmatmul.mubr.bf16.gmra.mrb[8].mxu0 %v21045_v47  ;;  %2505 = vmatmul.mubr.bf16.gmra.mrb[8].mxu1 %v21045_v47  ;;  %v21147_v47 = vld [vmem:[%s29243_s1 + $0x844] ss:$16 sps:$4 sm:$0xff]  }
  0xe7   : > { %2975 = vmatpush1.bf16.msra.mxu0 %v21046_v48  ;;  %3048 = vmatpush1.bf16.msra.mxu1 %v21049_v49  ;;  %v21150_v48 = vld [vmem:[%s29243_s1 + $0x84c] ss:$16 sps:$4 sm:$0xff]   ;;  %v21144_v49 = vld [vmem:[%s23407_s27 + $0x130] ss:$8 sps:$4 sm:$0xff]  }
  0xe8   : > { %2976 = vmatprep.subr.bf16.mxu0 %v21054_v50  ;;  %3049 = vmatprep.subr.bf16.mxu1 %v21057_v51  ;;  %v21145_v50 = vld [vmem:[%s29243_s1 + $0x840] ss:$16 sps:$4 sm:$0xff]   ;;  %v21148_v51 = vld [vmem:[%s29243_s1 + $0x848] ss:$16 sps:$4 sm:$0xff]  }
  0xe9   : > { %17317 = vmatprep.mubr.msk.bf16.mxu0 %vm669_vm0, %v21058_v52  ;;  %17321 = vmatprep.mubr.msk.bf16.mxu1 %vm669_vm0, %v21058_v52  ;;  %v21153_v52 = vld [vmem:[%s29243_s1 + $0x864] ss:$16 sps:$4 sm:$0xff]  }
  0xeb   : > { %2977 = vmatpush1.bf16.msra.mxu0 %v21052_v53  ;;  %3050 = vmatpush1.bf16.msra.mxu1 %v21055_v54  ;;  %v21156_v53 = vld [vmem:[%s29243_s1 + $0x86c] ss:$16 sps:$4 sm:$0xff]  }
  0xec   : > { %2978 = vmatprep.subr.bf16.mxu0 %v21063_v55  ;;  %3051 = vmatprep.subr.bf16.mxu1 %v21066_v56  ;;  %v21183_v54 = vld [vmem:[%s23407_s27 + $0x144] ss:$8 sps:$4 sm:$0xff]   ;;  %v21151_v55 = vld [vmem:[%s29243_s1 + $0x860] ss:$16 sps:$4 sm:$0xff]   ;;  %v21154_v56 = vld [vmem:[%s29243_s1 + $0x868] ss:$16 sps:$4 sm:$0xff]  }
  0xee   : > { %2442 = vmatmul.mubr.bf16.gmra.mrb[24].mxu0 %v21060_v57  ;;  %2515 = vmatmul.mubr.bf16.gmra.mrb[24].mxu1 %v21060_v57  ;;  %v21159_v57 = vld [vmem:[%s29243_s1 + $0x884] ss:$16 sps:$4 sm:$0xff]  }
  0xef   : > { %2979 = vmatpush1.bf16.msra.mxu0 %v21061_v58  ;;  %3052 = vmatpush1.bf16.msra.mxu1 %v21064_v59  ;;  %v21162_v58 = vld [vmem:[%s29243_s1 + $0x88c] ss:$16 sps:$4 sm:$0xff]   ;;  %v21157_v59 = vld [vmem:[%s29243_s1 + $0x880] ss:$16 sps:$4 sm:$0xff]  }
  0xf0   : > { %2980 = vmatprep.subr.bf16.mxu0 %v21069_v60  ;;  %3053 = vmatprep.subr.bf16.mxu1 %v21072_v61  ;;  %v21160_v60 = vld [vmem:[%s29243_s1 + $0x888] ss:$16 sps:$4 sm:$0xff]   ;;  %v21165_v61 = vld [vmem:[%s29243_s1 + $0x8a4] ss:$16 sps:$4 sm:$0xff]  }
  0xf1   : > { %17426 = vmatprep.mubr.msk.bf16.mxu0 %vm669_vm0, %v21099_v62  ;;  %17430 = vmatprep.mubr.msk.bf16.mxu1 %vm669_vm0, %v21099_v62  ;;  %v21168_v62 = vld [vmem:[%s29243_s1 + $0x8ac] ss:$16 sps:$4 sm:$0xff]  }
  0xf3   : > { %2981 = vmatpush1.bf16.msra.mxu0 %v21067_v63  ;;  %3054 = vmatpush1.bf16.msra.mxu1 %v21070_v0  ;;  %v21163_v63 = vld [vmem:[%s29243_s1 + $0x8a0] ss:$16 sps:$4 sm:$0xff]   ;;  %v21166_v0 = vld [vmem:[%s29243_s1 + $0x8a8] ss:$16 sps:$4 sm:$0xff]  }
  0xf4   : > { %2982 = vmatprep.subr.bf16.mxu0 %v21075_v1  ;;  %3055 = vmatprep.subr.bf16.mxu1 %v21078_v2  ;;  %v21171_v1 = vld [vmem:[%s29243_s1 + $0x8c4] ss:$16 sps:$4 sm:$0xff]   ;;  %v21174_v2 = vld [vmem:[%s29243_s1 + $0x8cc] ss:$16 sps:$4 sm:$0xff]  }
  0xf7   : > { %2983 = vmatpush1.bf16.msra.mxu0 %v21073_v3  ;;  %3056 = vmatpush1.bf16.msra.mxu1 %v21076_v4  ;;  %v21169_v3 = vld [vmem:[%s29243_s1 + $0x8c0] ss:$16 sps:$4 sm:$0xff]   ;;  %v21172_v4 = vld [vmem:[%s29243_s1 + $0x8c8] ss:$16 sps:$4 sm:$0xff]  }
  0xf8   : > { %2984 = vmatprep.subr.bf16.mxu0 %v21081_v5  ;;  %3057 = vmatprep.subr.bf16.mxu1 %v21084_v6  ;;  %v21177_v5 = vld [vmem:[%s29243_s1 + $0x8e4] ss:$16 sps:$4 sm:$0xff]   ;;  %v21180_v6 = vld [vmem:[%s29243_s1 + $0x8ec] ss:$16 sps:$4 sm:$0xff]  }
  0xfb   : > { %2985 = vmatpush1.bf16.msra.mxu0 %v21079_v7  ;;  %3058 = vmatpush1.bf16.msra.mxu1 %v21082_v8  ;;  %v21175_v7 = vld [vmem:[%s29243_s1 + $0x8e0] ss:$16 sps:$4 sm:$0xff]   ;;  %v21178_v8 = vld [vmem:[%s29243_s1 + $0x8e8] ss:$16 sps:$4 sm:$0xff]  }
  0xfc   : > { %2986 = vmatprep.subr.bf16.mxu0 %v21087_v9  ;;  %3059 = vmatprep.subr.bf16.mxu1 %v21090_v10  ;;  %v21186_v9 = vld [vmem:[%s29243_s1 + $0x904] ss:$16 sps:$4 sm:$0xff]   ;;  %v21189_v10 = vld [vmem:[%s29243_s1 + $0x90c] ss:$16 sps:$4 sm:$0xff]  }
  0xff   : > { %2987 = vmatpush1.bf16.msra.mxu0 %v21085_v11  ;;  %3060 = vmatpush1.bf16.msra.mxu1 %v21088_v12  ;;  %v21181_v11 = vld [vmem:[%s23407_s27 + $0x140] ss:$8 sps:$4 sm:$0xff]  }
 0x100   : > { %2988 = vmatprep.subr.bf16.mxu0 %v21093_v13  ;;  %3061 = vmatprep.subr.bf16.mxu1 %v21096_v14  ;;  %v21184_v14 = vld [vmem:[%s29243_s1 + $0x900] ss:$16 sps:$4 sm:$0xff]  }
 0x103   : > { %2989 = vmatpush1.bf16.msra.mxu0 %v21091_v15  ;;  %3062 = vmatpush1.bf16.msra.mxu1 %v21094_v16 }
 0x104   : > { %3553 = vmatprep.subr.bf16.mxu0 %v21102_v17  ;;  %3626 = vmatprep.subr.bf16.mxu1 %v21105_v18  ;;  %v21187_v17 = vld [vmem:[%s29243_s1 + $0x908] ss:$16 sps:$4 sm:$0xff]  }
 0x106   : > { %2999 = vmatmul.mubr.bf16.vlgmr.msra.gmra.mrb[0].mxu0 %v21097_v19  ;;  %3072 = vmatmul.mubr.bf16.vlgmr.msra.gmra.mrb[0].mxu1 %v21097_v19 }
 0x107   : > { %3554 = vmatpush1.bf16.msra.mxu0 %v21100_v20  ;;  %3627 = vmatpush1.bf16.msra.mxu1 %v21103_v21  ;;  %v21192_v20 = vld [vmem:[%s29243_s1 + $0x924] ss:$16 sps:$4 sm:$0xff]   ;;  %v21195_v21 = vld [vmem:[%s29243_s1 + $0x92c] ss:$16 sps:$4 sm:$0xff]  }
 0x108   : > { %3555 = vmatprep.subr.bf16.mxu0 %v21108_v22  ;;  %3628 = vmatprep.subr.bf16.mxu1 %v21111_v23 }
 0x109   : > { %17427 = vmatprep.mubr.msk.bf16.mxu0 %vm669_vm0, %v21112_v24  ;;  %17431 = vmatprep.mubr.msk.bf16.mxu1 %vm669_vm0, %v21112_v24  ;;  %v21196_v24 = vld [vmem:[%s23407_s27 + $0x154] ss:$8 sps:$4 sm:$0xff]  }
 0x10b   : > { %3556 = vmatpush1.bf16.msra.mxu0 %v21106_v25  ;;  %3629 = vmatpush1.bf16.msra.mxu1 %v21109_v26  ;;  %v21190_v25 = vld [vmem:[%s29243_s1 + $0x920] ss:$16 sps:$4 sm:$0xff]   ;;  %v21193_v26 = vld [vmem:[%s29243_s1 + $0x928] ss:$16 sps:$4 sm:$0xff]  }
 0x10c   : > { %3557 = vmatprep.subr.bf16.mxu0 %v21117_v27  ;;  %3630 = vmatprep.subr.bf16.mxu1 %v21120_v28  ;;  %v21201_v27 = vld [vmem:[%s29243_s1 + $0x944] ss:$16 sps:$4 sm:$0xff]   ;;  %v21204_v28 = vld [vmem:[%s29243_s1 + $0x94c] ss:$16 sps:$4 sm:$0xff]  }
 0x10e   : > { %3009 = vmatmul.mubr.bf16.gmra.mrb[4].mxu0 %v21114_v29  ;;  %3082 = vmatmul.mubr.bf16.gmra.mrb[4].mxu1 %v21114_v29  ;;  %v21198_v29 = vld [vmem:[%s23407_s27 + $0x150] ss:$8 sps:$4 sm:$0xff]  }
 0x10f   : > { %3558 = vmatpush1.bf16.msra.mxu0 %v21115_v30  ;;  %3631 = vmatpush1.bf16.msra.mxu1 %v21118_v31  ;;  %v21199_v30 = vld [vmem:[%s29243_s1 + $0x940] ss:$16 sps:$4 sm:$0xff]   ;;  %v21202_v31 = vld [vmem:[%s29243_s1 + $0x948] ss:$16 sps:$4 sm:$0xff]  }
 0x110   : > { %3559 = vmatprep.subr.bf16.mxu0 %v21123_v32  ;;  %3632 = vmatprep.subr.bf16.mxu1 %v21126_v33  ;;  %v21207_v32 = vld [vmem:[%s29243_s1 + $0x964] ss:$16 sps:$4 sm:$0xff]   ;;  %v21210_v33 = vld [vmem:[%s29243_s1 + $0x96c] ss:$16 sps:$4 sm:$0xff]  }
 0x111   : > { %17428 = vmatprep.mubr.msk.bf16.mxu0 %vm669_vm0, %v21127_v34  ;;  %17432 = vmatprep.mubr.msk.bf16.mxu1 %vm669_vm0, %v21127_v34  ;;  %v21211_v34 = vld [vmem:[%s23407_s27 + $0x164] ss:$8 sps:$4 sm:$0xff]  }
 0x113   : > { %3560 = vmatpush1.bf16.msra.mxu0 %v21121_v35  ;;  %3633 = vmatpush1.bf16.msra.mxu1 %v21124_v36  ;;  %v21205_v35 = vld [vmem:[%s29243_s1 + $0x960] ss:$16 sps:$4 sm:$0xff]   ;;  %v21208_v36 = vld [vmem:[%s29243_s1 + $0x968] ss:$16 sps:$4 sm:$0xff]  }
 0x114   : > { %3561 = vmatprep.subr.bf16.mxu0 %v21132_v37  ;;  %3634 = vmatprep.subr.bf16.mxu1 %v21135_v38  ;;  %v21216_v37 = vld [vmem:[%s29243_s1 + $0x984] ss:$16 sps:$4 sm:$0xff]   ;;  %v21219_v38 = vld [vmem:[%s29243_s1 + $0x98c] ss:$16 sps:$4 sm:$0xff]  }
 0x116   : > { %3019 = vmatmul.mubr.bf16.gmra.mrb[8].mxu0 %v21129_v39  ;;  %3092 = vmatmul.mubr.bf16.gmra.mrb[8].mxu1 %v21129_v39  ;;  %v21213_v39 = vld [vmem:[%s23407_s27 + $0x160] ss:$8 sps:$4 sm:$0xff]  }
 0x117   : > { %3562 = vmatpush1.bf16.msra.mxu0 %v21130_v40  ;;  %3635 = vmatpush1.bf16.msra.mxu1 %v21133_v41  ;;  %v21214_v40 = vld [vmem:[%s29243_s1 + $0x980] ss:$16 sps:$4 sm:$0xff]   ;;  %v21217_v41 = vld [vmem:[%s29243_s1 + $0x988] ss:$16 sps:$4 sm:$0xff]  }
 0x118   : > { %3563 = vmatprep.subr.bf16.mxu0 %v21138_v42  ;;  %3636 = vmatprep.subr.bf16.mxu1 %v21141_v43  ;;  %v21222_v42 = vld [vmem:[%s29243_s1 + $0x9a4] ss:$16 sps:$4 sm:$0xff]   ;;  %v21225_v43 = vld [vmem:[%s29243_s1 + $0x9ac] ss:$16 sps:$4 sm:$0xff]  }
 0x119   : > { %17429 = vmatprep.mubr.msk.bf16.mxu0 %vm669_vm0, %v21142_v44  ;;  %17433 = vmatprep.mubr.msk.bf16.mxu1 %vm669_vm0, %v21142_v44  ;;  %v21226_v44 = vld [vmem:[%s23407_s27 + $0x174] ss:$8 sps:$4 sm:$0xff]  }
 0x11b   : > { %3564 = vmatpush1.bf16.msra.mxu0 %v21136_v45  ;;  %3637 = vmatpush1.bf16.msra.mxu1 %v21139_v46  ;;  %v21220_v45 = vld [vmem:[%s29243_s1 + $0x9a0] ss:$16 sps:$4 sm:$0xff]   ;;  %v21223_v46 = vld [vmem:[%s29243_s1 + $0x9a8] ss:$16 sps:$4 sm:$0xff]  }
 0x11c   : > { %3565 = vmatprep.subr.bf16.mxu0 %v21147_v47  ;;  %3638 = vmatprep.subr.bf16.mxu1 %v21150_v48  ;;  %v21231_v47 = vld [vmem:[%s29243_s1 + $0x9c4] ss:$16 sps:$4 sm:$0xff]   ;;  %v21234_v48 = vld [vmem:[%s29243_s1 + $0x9cc] ss:$16 sps:$4 sm:$0xff]  }
 0x11e   : > { %3029 = vmatmul.mubr.bf16.gmra.mrb[28].mxu0 %v21144_v49  ;;  %3102 = vmatmul.mubr.bf16.gmra.mrb[28].mxu1 %v21144_v49  ;;  %v21228_v49 = vld [vmem:[%s23407_s27 + $0x170] ss:$8 sps:$4 sm:$0xff]  }
 0x11f   : > { %3566 = vmatpush1.bf16.msra.mxu0 %v21145_v50  ;;  %3639 = vmatpush1.bf16.msra.mxu1 %v21148_v51  ;;  %v21229_v50 = vld [vmem:[%s29243_s1 + $0x9c0] ss:$16 sps:$4 sm:$0xff]   ;;  %v21232_v51 = vld [vmem:[%s29243_s1 + $0x9c8] ss:$16 sps:$4 sm:$0xff]  }
 0x120   : > { %3567 = vmatprep.subr.bf16.mxu0 %v21153_v52  ;;  %3640 = vmatprep.subr.bf16.mxu1 %v21156_v53  ;;  %v21237_v52 = vld [vmem:[%s29243_s1 + $0x9e4] ss:$16 sps:$4 sm:$0xff]   ;;  %v21240_v53 = vld [vmem:[%s29243_s1 + $0x9ec] ss:$16 sps:$4 sm:$0xff]  }
 0x121   : > { %17538 = vmatprep.mubr.msk.bf16.mxu0 %vm669_vm0, %v21183_v54  ;;  %17542 = vmatprep.mubr.msk.bf16.mxu1 %vm669_vm0, %v21183_v54  ;;  %v21267_v54 = vld [vmem:[%s23407_s27 + $0x184] ss:$8 sps:$4 sm:$0xff]  }
 0x123   : > { %3568 = vmatpush1.bf16.msra.mxu0 %v21151_v55  ;;  %3641 = vmatpush1.bf16.msra.mxu1 %v21154_v56  ;;  %v21235_v55 = vld [vmem:[%s29243_s1 + $0x9e0] ss:$16 sps:$4 sm:$0xff]   ;;  %v21238_v56 = vld [vmem:[%s29243_s1 + $0x9e8] ss:$16 sps:$4 sm:$0xff]  }
 0x124   : > { %3569 = vmatprep.subr.bf16.mxu0 %v21159_v57  ;;  %3642 = vmatprep.subr.bf16.mxu1 %v21162_v58  ;;  %v21243_v57 = vld [vmem:[%s29243_s1 + $0xa04] ss:$16 sps:$4 sm:$0xff]   ;;  %v21246_v58 = vld [vmem:[%s29243_s1 + $0xa0c] ss:$16 sps:$4 sm:$0xff]  }
 0x127   : > { %3570 = vmatpush1.bf16.msra.mxu0 %v21157_v59  ;;  %3643 = vmatpush1.bf16.msra.mxu1 %v21160_v60  ;;  %v21241_v59 = vld [vmem:[%s29243_s1 + $0xa00] ss:$16 sps:$4 sm:$0xff]   ;;  %v21244_v60 = vld [vmem:[%s29243_s1 + $0xa08] ss:$16 sps:$4 sm:$0xff]  }
 0x128   : > { %3571 = vmatprep.subr.bf16.mxu0 %v21165_v61  ;;  %3644 = vmatprep.subr.bf16.mxu1 %v21168_v62  ;;  %v21249_v61 = vld [vmem:[%s29243_s1 + $0xa24] ss:$16 sps:$4 sm:$0xff]   ;;  %v21252_v62 = vld [vmem:[%s29243_s1 + $0xa2c] ss:$16 sps:$4 sm:$0xff]  }
 0x12b   : > { %3572 = vmatpush1.bf16.msra.mxu0 %v21163_v63  ;;  %3645 = vmatpush1.bf16.msra.mxu1 %v21166_v0  ;;  %v21247_v63 = vld [vmem:[%s29243_s1 + $0xa20] ss:$16 sps:$4 sm:$0xff]   ;;  %v21250_v0 = vld [vmem:[%s29243_s1 + $0xa28] ss:$16 sps:$4 sm:$0xff]  }
 0x12c   : > { %3573 = vmatprep.subr.bf16.mxu0 %v21171_v1  ;;  %3646 = vmatprep.subr.bf16.mxu1 %v21174_v2  ;;  %v21255_v1 = vld [vmem:[%s29243_s1 + $0xa44] ss:$16 sps:$4 sm:$0xff]   ;;  %v21258_v2 = vld [vmem:[%s29243_s1 + $0xa4c] ss:$16 sps:$4 sm:$0xff]  }
 0x12f   : > { %3574 = vmatpush1.bf16.msra.mxu0 %v21169_v3  ;;  %3647 = vmatpush1.bf16.msra.mxu1 %v21172_v4  ;;  %v21253_v3 = vld [vmem:[%s29243_s1 + $0xa40] ss:$16 sps:$4 sm:$0xff]   ;;  %v21256_v4 = vld [vmem:[%s29243_s1 + $0xa48] ss:$16 sps:$4 sm:$0xff]  }
 0x130   : > { %3575 = vmatprep.subr.bf16.mxu0 %v21177_v5  ;;  %3648 = vmatprep.subr.bf16.mxu1 %v21180_v6  ;;  %v21261_v5 = vld [vmem:[%s29243_s1 + $0xa64] ss:$16 sps:$4 sm:$0xff]   ;;  %v21264_v6 = vld [vmem:[%s29243_s1 + $0xa6c] ss:$16 sps:$4 sm:$0xff]  }
 0x131   : > { %v24261_v12 = vpop.f32.mrb[12].mxu0  ;;  %v24263_v13 = vpop.f32.mrb[12].mxu1 }
 0x132   : > { %v24268_v15 = vpop.f32.mrb[13].mxu0  ;;  %v24270_v16 = vpop.f32.mrb[13].mxu1 }
 0x133   : > { %3576 = vmatpush1.bf16.msra.mxu0 %v21175_v7  ;;  %3649 = vmatpush1.bf16.msra.mxu1 %v21178_v8  ;;  %v750_v18 = vpop.f32.mrb[14].mxu0  ;;  %v823_v19 = vpop.f32.mrb[14].mxu1  ;;  %v21259_v7 = vld [vmem:[%s29243_s1 + $0xa60] ss:$16 sps:$4 sm:$0xff]   ;;  %v21262_v8 = vld [vmem:[%s29243_s1 + $0xa68] ss:$16 sps:$4 sm:$0xff]  }
 0x134   : > { %4140 = vmatprep.subr.bf16.mxu0 %v21186_v9  ;;  %4213 = vmatprep.subr.bf16.mxu1 %v21189_v10  ;;  %v752_v22 = vpop.f32.mrb[15].mxu0  ;;  %v825_v23 = vpop.f32.mrb[15].mxu1  ;;  %v21270_v9 = vld [vmem:[%s29243_s1 + $0xa84] ss:$16 sps:$4 sm:$0xff]   ;;  %v21273_v10 = vld [vmem:[%s29243_s1 + $0xa8c] ss:$16 sps:$4 sm:$0xff]  }
 0x136   : > { %3586 = vmatmul.mubr.bf16.vlgmr.msra.gmra.mrb[0].mxu0 %v21181_v11  ;;  %3659 = vmatmul.mubr.bf16.vlgmr.msra.gmra.mrb[0].mxu1 %v21181_v11 }
 0x137   : > { %4141 = vmatpush1.bf16.msra.mxu0 %v21184_v14  ;;  %4214 = vmatpush1.bf16.msra.mxu1 %v21187_v17  ;;  %v21265_v14 = vld [vmem:[%s23407_s27 + $0x180] ss:$8 sps:$4 sm:$0xff]  }
 0x138   : > { %4142 = vmatprep.subr.bf16.mxu0 %v21192_v20  ;;  %4215 = vmatprep.subr.bf16.mxu1 %v21195_v21  ;;  %v21268_v20 = vld [vmem:[%s29243_s1 + $0xa80] ss:$16 sps:$4 sm:$0xff]  }
 0x139   : > { %17539 = vmatprep.mubr.msk.bf16.mxu0 %vm669_vm0, %v21196_v24  ;;  %17543 = vmatprep.mubr.msk.bf16.mxu1 %vm669_vm0, %v21196_v24  ;;  %v21276_v24 = vld [vmem:[%s29243_s1 + $0xaa4] ss:$16 sps:$4 sm:$0xff]  }
 0x13b   : > { %4143 = vmatpush1.bf16.msra.mxu0 %v21190_v25  ;;  %4216 = vmatpush1.bf16.msra.mxu1 %v21193_v26 }
 0x13c   : > { %4144 = vmatprep.subr.bf16.mxu0 %v21201_v27  ;;  %4217 = vmatprep.subr.bf16.mxu1 %v21204_v28 }
 0x13e   : > { %3596 = vmatmul.mubr.bf16.gmra.mrb[4].mxu0 %v21198_v29  ;;  %3669 = vmatmul.mubr.bf16.gmra.mrb[4].mxu1 %v21198_v29  ;;  %v21280_v29 = vld [vmem:[%s23407_s27 + $0x194] ss:$8 sps:$4 sm:$0xff]  }
 0x13f   : > { %4145 = vmatpush1.bf16.msra.mxu0 %v21199_v30  ;;  %4218 = vmatpush1.bf16.msra.mxu1 %v21202_v31  ;;  %v21274_v30 = vld [vmem:[%s29243_s1 + $0xaa0] ss:$16 sps:$4 sm:$0xff]   ;;  %v21285_v31 = vld [vmem:[%s29243_s1 + $0xac4] ss:$16 sps:$4 sm:$0xff]  }
 0x140   : > { %4146 = vmatprep.subr.bf16.mxu0 %v21207_v32  ;;  %4219 = vmatprep.subr.bf16.mxu1 %v21210_v33  ;;  %v21288_v32 = vld [vmem:[%s29243_s1 + $0xacc] ss:$16 sps:$4 sm:$0xff]   ;;  %v21282_v33 = vld [vmem:[%s23407_s27 + $0x190] ss:$8 sps:$4 sm:$0xff]  }
 0x141   : > { %17540 = vmatprep.mubr.msk.bf16.mxu0 %vm669_vm0, %v21211_v34  ;;  %17544 = vmatprep.mubr.msk.bf16.mxu1 %vm669_vm0, %v21211_v34  ;;  %v21283_v34 = vld [vmem:[%s29243_s1 + $0xac0] ss:$16 sps:$4 sm:$0xff]  }
 0x143   : > { %4147 = vmatpush1.bf16.msra.mxu0 %v21205_v35  ;;  %4220 = vmatpush1.bf16.msra.mxu1 %v21208_v36  ;;  %v21286_v35 = vld [vmem:[%s29243_s1 + $0xac8] ss:$16 sps:$4 sm:$0xff]   ;;  %v21291_v36 = vld [vmem:[%s29243_s1 + $0xae4] ss:$16 sps:$4 sm:$0xff]  }
 0x144   : > { %4148 = vmatprep.subr.bf16.mxu0 %v21216_v37  ;;  %4221 = vmatprep.subr.bf16.mxu1 %v21219_v38  ;;  %v21294_v37 = vld [vmem:[%s29243_s1 + $0xaec] ss:$16 sps:$4 sm:$0xff]  }
 0x145   : > { %v21295_v38 = vld [vmem:[%s23407_s27 + $0x1a4] ss:$8 sps:$4 sm:$0xff]  }
 0x146   : > { %3606 = vmatmul.mubr.bf16.gmra.mrb[8].mxu0 %v21213_v39  ;;  %3679 = vmatmul.mubr.bf16.gmra.mrb[8].mxu1 %v21213_v39  ;;  %v21289_v39 = vld [vmem:[%s29243_s1 + $0xae0] ss:$16 sps:$4 sm:$0xff]  }
 0x147   : > { %4149 = vmatpush1.bf16.msra.mxu0 %v21214_v40  ;;  %4222 = vmatpush1.bf16.msra.mxu1 %v21217_v41  ;;  %v21292_v40 = vld [vmem:[%s29243_s1 + $0xae8] ss:$16 sps:$4 sm:$0xff]   ;;  %v21300_v41 = vld [vmem:[%s29243_s1 + $0xb04] ss:$16 sps:$4 sm:$0xff]  }
 0x148   : > { %4150 = vmatprep.subr.bf16.mxu0 %v21222_v42  ;;  %4223 = vmatprep.subr.bf16.mxu1 %v21225_v43  ;;  %v21303_v42 = vld [vmem:[%s29243_s1 + $0xb0c] ss:$16 sps:$4 sm:$0xff]   ;;  %v21297_v43 = vld [vmem:[%s23407_s27 + $0x1a0] ss:$8 sps:$4 sm:$0xff]  }
 0x149   : > { %17541 = vmatprep.mubr.msk.bf16.mxu0 %vm669_vm0, %v21226_v44  ;;  %17545 = vmatprep.mubr.msk.bf16.mxu1 %vm669_vm0, %v21226_v44  ;;  %v21298_v44 = vld [vmem:[%s29243_s1 + $0xb00] ss:$16 sps:$4 sm:$0xff]  }
 0x14b   : > { %4151 = vmatpush1.bf16.msra.mxu0 %v21220_v45  ;;  %4224 = vmatpush1.bf16.msra.mxu1 %v21223_v46  ;;  %v21301_v45 = vld [vmem:[%s29243_s1 + $0xb08] ss:$16 sps:$4 sm:$0xff]   ;;  %v21306_v46 = vld [vmem:[%s29243_s1 + $0xb24] ss:$16 sps:$4 sm:$0xff]  }
 0x14c   : > { %4152 = vmatprep.subr.bf16.mxu0 %v21231_v47  ;;  %4225 = vmatprep.subr.bf16.mxu1 %v21234_v48  ;;  %v21309_v47 = vld [vmem:[%s29243_s1 + $0xb2c] ss:$16 sps:$4 sm:$0xff]  }
 0x14d   : > { %v21310_v48 = vld [vmem:[%s23407_s27 + $0x1b4] ss:$8 sps:$4 sm:$0xff]  }
 0x14e   : > { %3616 = vmatmul.mubr.bf16.gmra.mrb[32].mxu0 %v21228_v49  ;;  %3689 = vmatmul.mubr.bf16.gmra.mrb[32].mxu1 %v21228_v49  ;;  %v21304_v49 = vld [vmem:[%s29243_s1 + $0xb20] ss:$16 sps:$4 sm:$0xff]  }
 0x14f   : > { %4153 = vmatpush1.bf16.msra.mxu0 %v21229_v50  ;;  %4226 = vmatpush1.bf16.msra.mxu1 %v21232_v51  ;;  %v21307_v50 = vld [vmem:[%s29243_s1 + $0xb28] ss:$16 sps:$4 sm:$0xff]   ;;  %v21315_v51 = vld [vmem:[%s29243_s1 + $0xb44] ss:$16 sps:$4 sm:$0xff]  }
 0x150   : > { %4154 = vmatprep.subr.bf16.mxu0 %v21237_v52  ;;  %4227 = vmatprep.subr.bf16.mxu1 %v21240_v53  ;;  %v21318_v52 = vld [vmem:[%s29243_s1 + $0xb4c] ss:$16 sps:$4 sm:$0xff]   ;;  %v21312_v53 = vld [vmem:[%s23407_s27 + $0x1b0] ss:$8 sps:$4 sm:$0xff]  }
 0x151   : > { %17650 = vmatprep.mubr.msk.bf16.mxu0 %vm669_vm0, %v21267_v54  ;;  %17654 = vmatprep.mubr.msk.bf16.mxu1 %vm669_vm0, %v21267_v54  ;;  %v21313_v54 = vld [vmem:[%s29243_s1 + $0xb40] ss:$16 sps:$4 sm:$0xff]  }
 0x153   : > { %4155 = vmatpush1.bf16.msra.mxu0 %v21235_v55  ;;  %4228 = vmatpush1.bf16.msra.mxu1 %v21238_v56  ;;  %v21316_v55 = vld [vmem:[%s29243_s1 + $0xb48] ss:$16 sps:$4 sm:$0xff]   ;;  %v21321_v56 = vld [vmem:[%s29243_s1 + $0xb64] ss:$16 sps:$4 sm:$0xff]  }
 0x154   : > { %4156 = vmatprep.subr.bf16.mxu0 %v21243_v57  ;;  %4229 = vmatprep.subr.bf16.mxu1 %v21246_v58  ;;  %v21324_v57 = vld [vmem:[%s29243_s1 + $0xb6c] ss:$16 sps:$4 sm:$0xff]  }
 0x155   : > { %v21351_v58 = vld [vmem:[%s23407_s27 + $0x1c4] ss:$8 sps:$4 sm:$0xff]  }
 0x157   : > { %4157 = vmatpush1.bf16.msra.mxu0 %v21241_v59  ;;  %4230 = vmatpush1.bf16.msra.mxu1 %v21244_v60  ;;  %v21319_v59 = vld [vmem:[%s29243_s1 + $0xb60] ss:$16 sps:$4 sm:$0xff]   ;;  %v21322_v60 = vld [vmem:[%s29243_s1 + $0xb68] ss:$16 sps:$4 sm:$0xff]  }
 0x158   : > { %4158 = vmatprep.subr.bf16.mxu0 %v21249_v61  ;;  %4231 = vmatprep.subr.bf16.mxu1 %v21252_v62  ;;  %v21327_v61 = vld [vmem:[%s29243_s1 + $0xb84] ss:$16 sps:$4 sm:$0xff]   ;;  %v21330_v62 = vld [vmem:[%s29243_s1 + $0xb8c] ss:$16 sps:$4 sm:$0xff]  }
 0x15b   : > { %4159 = vmatpush1.bf16.msra.mxu0 %v21247_v63  ;;  %4232 = vmatpush1.bf16.msra.mxu1 %v21250_v0  ;;  %v21325_v63 = vld [vmem:[%s29243_s1 + $0xb80] ss:$16 sps:$4 sm:$0xff]   ;;  %v21328_v0 = vld [vmem:[%s29243_s1 + $0xb88] ss:$16 sps:$4 sm:$0xff]  }
 0x15c   : > { %4160 = vmatprep.subr.bf16.mxu0 %v21255_v1  ;;  %4233 = vmatprep.subr.bf16.mxu1 %v21258_v2  ;;  %v21333_v1 = vld [vmem:[%s29243_s1 + $0xba4] ss:$16 sps:$4 sm:$0xff]   ;;  %v21336_v2 = vld [vmem:[%s29243_s1 + $0xbac] ss:$16 sps:$4 sm:$0xff]  }
 0x15f   : > { %4161 = vmatpush1.bf16.msra.mxu0 %v21253_v3  ;;  %4234 = vmatpush1.bf16.msra.mxu1 %v21256_v4  ;;  %v21331_v3 = vld [vmem:[%s29243_s1 + $0xba0] ss:$16 sps:$4 sm:$0xff]   ;;  %v21334_v4 = vld [vmem:[%s29243_s1 + $0xba8] ss:$16 sps:$4 sm:$0xff]  }
 0x160   : > { %4162 = vmatprep.subr.bf16.mxu0 %v21261_v5  ;;  %4235 = vmatprep.subr.bf16.mxu1 %v21264_v6  ;;  %v21339_v5 = vld [vmem:[%s29243_s1 + $0xbc4] ss:$16 sps:$4 sm:$0xff]   ;;  %v21342_v6 = vld [vmem:[%s29243_s1 + $0xbcc] ss:$16 sps:$4 sm:$0xff]  }
 0x161   : > { %v1269_v11 = vpop.f32.mrb[16].mxu0  ;;  %v1342_v17 = vpop.f32.mrb[16].mxu1 }
 0x162   : > { %v24430_v18 = vadd.f32 %v1269_v11, %v24261_v12  ;;  %v1271_v19 = vpop.f32.mrb[17].mxu0  ;;  %v24436_v21 = vadd.f32 %v1342_v17, %v24263_v13  ;;  %v1344_v22 = vpop.f32.mrb[17].mxu1  ;;  %v21271_v12 = vld [vmem:[%s29243_s1 + $0xa88] ss:$16 sps:$4 sm:$0xff]   ;;  %v21343_v11 = vld [vmem:[%s29243_s1 + $0xbe0] ss:$16 sps:$4 sm:$0xff]  }
 0x163   : > { %v24439_v23 = vadd.f32 %v1271_v19, %v24268_v15  ;;  %4163 = vmatpush1.bf16.msra.mxu0 %v21259_v7  ;;  %4236 = vmatpush1.bf16.msra.mxu1 %v21262_v8  ;;  %v1273_v25 = vpop.f32.mrb[18].mxu0  ;;  %v24448_v26 = vadd.f32 %v1344_v22, %v24270_v16  ;;  %v1346_v13 = vpop.f32.mrb[18].mxu1  ;;  %v21279_v15 = vld [vmem:[%s29243_s1 + $0xaac] ss:$16 sps:$4 sm:$0xff]   ;;  %v21277_v16 = vld [vmem:[%s29243_s1 + $0xaa8] ss:$16 sps:$4 sm:$0xff]  }
 0x164   : > { %4727 = vmatprep.subr.bf16.mxu0 %v21270_v9  ;;  %4800 = vmatprep.subr.bf16.mxu1 %v21273_v10  ;;  %v1275_v27 = vpop.f32.mrb[19].mxu0  ;;  %v1348_v28 = vpop.f32.mrb[19].mxu1  ;;  %v21337_v7 = vld [vmem:[%s29243_s1 + $0xbc0] ss:$16 sps:$4 sm:$0xff]   ;;  %v21340_v8 = vld [vmem:[%s29243_s1 + $0xbc8] ss:$16 sps:$4 sm:$0xff]  }
 0x165   : > { %v21345_v9 = vld [vmem:[%s29243_s1 + $0xbe4] ss:$16 sps:$4 sm:$0xff]   ;;  %v21348_v10 = vld [vmem:[%s29243_s1 + $0xbec] ss:$16 sps:$4 sm:$0xff]   ;;  %v21352_v27 = vld [vmem:[%s29243_s1] ss:$16 sps:$4 sm:$0xff]  }
 0x166   : > { %4173 = vmatmul.mubr.bf16.vlgmr.msra.gmra.mrb[0].mxu0 %v21265_v14  ;;  %4246 = vmatmul.mubr.bf16.vlgmr.msra.gmra.mrb[0].mxu1 %v21265_v14  ;;  %v21346_v14 = vld [vmem:[%s29243_s1 + $0xbe8] ss:$16 sps:$4 sm:$0xff]   ;;  %v21354_v17 = vld [vmem:[%s29243_s1 + $0x4] ss:$16 sps:$4 sm:$0xff]   ;;  %v21357_v19 = vld [vmem:[%s29243_s1 + $0xc] ss:$16 sps:$4 sm:$0xff]  }
 0x167   : > { %4728 = vmatpush1.bf16.msra.mxu0 %v21268_v20  ;;  %4801 = vmatpush1.bf16.msra.mxu1 %v21271_v12  ;;  %v21349_v12 = vld [vmem:[%s23407_s27 + $0x1c0] ss:$8 sps:$4 sm:$0xff]  }
 0x168   : > { %4729 = vmatprep.subr.bf16.mxu0 %v21276_v24  ;;  %4802 = vmatprep.subr.bf16.mxu1 %v21279_v15 }
 0x169   : > { %17651 = vmatprep.mubr.msk.bf16.mxu0 %vm669_vm0, %v21280_v29  ;;  %17655 = vmatprep.mubr.msk.bf16.mxu1 %vm669_vm0, %v21280_v29 }
 0x16b   : > { %4730 = vmatpush1.bf16.msra.mxu0 %v21274_v30  ;;  %4803 = vmatpush1.bf16.msra.mxu1 %v21277_v16  ;;  %v21360_v16 = vld [vmem:[%s29243_s1 + $0x24] ss:$16 sps:$4 sm:$0xff]  }
 0x16c   : > { %4731 = vmatprep.subr.bf16.mxu0 %v21285_v31  ;;  %4804 = vmatprep.subr.bf16.mxu1 %v21288_v32  ;;  %v21364_v32 = vld [vmem:[%s23407_s27 + $0x1d4] ss:$8 sps:$4 sm:$0xff]  }
 0x16e   : > { %4183 = vmatmul.mubr.bf16.gmra.mrb[4].mxu0 %v21282_v33  ;;  %4256 = vmatmul.mubr.bf16.gmra.mrb[4].mxu1 %v21282_v33  ;;  %v21358_v33 = vld [vmem:[%s29243_s1 + $0x20] ss:$16 sps:$4 sm:$0xff]  }
 0x16f   : > { %4732 = vmatpush1.bf16.msra.mxu0 %v21283_v34  ;;  %4805 = vmatpush1.bf16.msra.mxu1 %v21286_v35  ;;  %v21361_v34 = vld [vmem:[%s29243_s1 + $0x28] ss:$16 sps:$4 sm:$0xff]   ;;  %v21369_v35 = vld [vmem:[%s29243_s1 + $0x44] ss:$16 sps:$4 sm:$0xff]  }
 0x170   : > { %4733 = vmatprep.subr.bf16.mxu0 %v21291_v36  ;;  %4806 = vmatprep.subr.bf16.mxu1 %v21294_v37  ;;  %v21372_v36 = vld [vmem:[%s29243_s1 + $0x4c] ss:$16 sps:$4 sm:$0xff]   ;;  %v21366_v37 = vld [vmem:[%s23407_s27 + $0x1d0] ss:$8 sps:$4 sm:$0xff]  }
 0x171   : > { %17652 = vmatprep.mubr.msk.bf16.mxu0 %vm669_vm0, %v21295_v38  ;;  %17656 = vmatprep.mubr.msk.bf16.mxu1 %vm669_vm0, %v21295_v38  ;;  %v21367_v38 = vld [vmem:[%s29243_s1 + $0x40] ss:$16 sps:$4 sm:$0xff]  }
 0x173   : > { %4734 = vmatpush1.bf16.msra.mxu0 %v21289_v39  ;;  %4807 = vmatpush1.bf16.msra.mxu1 %v21292_v40  ;;  %v21370_v39 = vld [vmem:[%s29243_s1 + $0x48] ss:$16 sps:$4 sm:$0xff]   ;;  %v21375_v40 = vld [vmem:[%s29243_s1 + $0x64] ss:$16 sps:$4 sm:$0xff]  }
 0x174   : > { %4735 = vmatprep.subr.bf16.mxu0 %v21300_v41  ;;  %4808 = vmatprep.subr.bf16.mxu1 %v21303_v42  ;;  %v21378_v41 = vld [vmem:[%s29243_s1 + $0x6c] ss:$16 sps:$4 sm:$0xff]  }
 0x175   : > { %v21379_v42 = vld [vmem:[%s23407_s27 + $0x1e4] ss:$8 sps:$4 sm:$0xff]  }
 0x176   : > { %4193 = vmatmul.mubr.bf16.gmra.mrb[8].mxu0 %v21297_v43  ;;  %4266 = vmatmul.mubr.bf16.gmra.mrb[8].mxu1 %v21297_v43  ;;  %v21373_v43 = vld [vmem:[%s29243_s1 + $0x60] ss:$16 sps:$4 sm:$0xff]  }
 0x177   : > { %4736 = vmatpush1.bf16.msra.mxu0 %v21298_v44  ;;  %4809 = vmatpush1.bf16.msra.mxu1 %v21301_v45  ;;  %v21376_v44 = vld [vmem:[%s29243_s1 + $0x68] ss:$16 sps:$4 sm:$0xff]   ;;  %v21384_v45 = vld [vmem:[%s29243_s1 + $0x84] ss:$16 sps:$4 sm:$0xff]  }
 0x178   : > { %4737 = vmatprep.subr.bf16.mxu0 %v21306_v46  ;;  %4810 = vmatprep.subr.bf16.mxu1 %v21309_v47  ;;  %v21387_v46 = vld [vmem:[%s29243_s1 + $0x8c] ss:$16 sps:$4 sm:$0xff]   ;;  %v21381_v47 = vld [vmem:[%s23407_s27 + $0x1e0] ss:$8 sps:$4 sm:$0xff]  }
 0x179   : > { %17653 = vmatprep.mubr.msk.bf16.mxu0 %vm669_vm0, %v21310_v48  ;;  %17657 = vmatprep.mubr.msk.bf16.mxu1 %vm669_vm0, %v21310_v48  ;;  %v21382_v48 = vld [vmem:[%s29243_s1 + $0x80] ss:$16 sps:$4 sm:$0xff]  }
 0x17b   : > { %4738 = vmatpush1.bf16.msra.mxu0 %v21304_v49  ;;  %4811 = vmatpush1.bf16.msra.mxu1 %v21307_v50  ;;  %v21385_v49 = vld [vmem:[%s29243_s1 + $0x88] ss:$16 sps:$4 sm:$0xff]   ;;  %v21390_v50 = vld [vmem:[%s29243_s1 + $0xa4] ss:$16 sps:$4 sm:$0xff]  }
 0x17c   : > { %4739 = vmatprep.subr.bf16.mxu0 %v21315_v51  ;;  %4812 = vmatprep.subr.bf16.mxu1 %v21318_v52  ;;  %v21393_v51 = vld [vmem:[%s29243_s1 + $0xac] ss:$16 sps:$4 sm:$0xff]  }
 0x17d   : > { %v21394_v52 = vld [vmem:[%s23407_s27 + $0x1f4] ss:$8 sps:$4 sm:$0xff]  }
 0x17e   : > { %4203 = vmatmul.mubr.bf16.gmra.mrb[36].mxu0 %v21312_v53  ;;  %4276 = vmatmul.mubr.bf16.gmra.mrb[36].mxu1 %v21312_v53  ;;  %v21388_v53 = vld [vmem:[%s29243_s1 + $0xa0] ss:$16 sps:$4 sm:$0xff]  }
 0x17f   : > { %4740 = vmatpush1.bf16.msra.mxu0 %v21313_v54  ;;  %4813 = vmatpush1.bf16.msra.mxu1 %v21316_v55  ;;  %v21391_v54 = vld [vmem:[%s29243_s1 + $0xa8] ss:$16 sps:$4 sm:$0xff]   ;;  %v21399_v55 = vld [vmem:[%s29243_s1 + $0xc4] ss:$16 sps:$4 sm:$0xff]  }
 0x180   : > { %4741 = vmatprep.subr.bf16.mxu0 %v21321_v56  ;;  %4814 = vmatprep.subr.bf16.mxu1 %v21324_v57  ;;  %v21402_v56 = vld [vmem:[%s29243_s1 + $0xcc] ss:$16 sps:$4 sm:$0xff]   ;;  %v21396_v57 = vld [vmem:[%s23407_s27 + $0x1f0] ss:$8 sps:$4 sm:$0xff]  }
 0x181   : > { %17762 = vmatprep.mubr.msk.bf16.mxu0 %vm669_vm0, %v21351_v58  ;;  %17766 = vmatprep.mubr.msk.bf16.mxu1 %vm669_vm0, %v21351_v58  ;;  %v21397_v58 = vld [vmem:[%s29243_s1 + $0xc0] ss:$16 sps:$4 sm:$0xff]  }
 0x183   : > { %4742 = vmatpush1.bf16.msra.mxu0 %v21319_v59  ;;  %4815 = vmatpush1.bf16.msra.mxu1 %v21322_v60  ;;  %v21400_v59 = vld [vmem:[%s29243_s1 + $0xc8] ss:$16 sps:$4 sm:$0xff]   ;;  %v21405_v60 = vld [vmem:[%s29243_s1 + $0xe4] ss:$16 sps:$4 sm:$0xff]  }
 0x184   : > { %4743 = vmatprep.subr.bf16.mxu0 %v21327_v61  ;;  %4816 = vmatprep.subr.bf16.mxu1 %v21330_v62  ;;  %v21408_v61 = vld [vmem:[%s29243_s1 + $0xec] ss:$16 sps:$4 sm:$0xff]  }
 0x185   : > { %v21435_v62 = vld [vmem:[%s23407_s27 + $0x104] ss:$8 sps:$4 sm:$0xff]  }
 0x187   : > { %4744 = vmatpush1.bf16.msra.mxu0 %v21325_v63  ;;  %4817 = vmatpush1.bf16.msra.mxu1 %v21328_v0  ;;  %v21403_v63 = vld [vmem:[%s29243_s1 + $0xe0] ss:$16 sps:$4 sm:$0xff]   ;;  %v21406_v0 = vld [vmem:[%s29243_s1 + $0xe8] ss:$16 sps:$4 sm:$0xff]  }
 0x188   : > { %4745 = vmatprep.subr.bf16.mxu0 %v21333_v1  ;;  %4818 = vmatprep.subr.bf16.mxu1 %v21336_v2  ;;  %v21411_v1 = vld [vmem:[%s29243_s1 + $0x104] ss:$16 sps:$4 sm:$0xff]   ;;  %v21414_v2 = vld [vmem:[%s29243_s1 + $0x10c] ss:$16 sps:$4 sm:$0xff]  }
 0x18b   : > { %4746 = vmatpush1.bf16.msra.mxu0 %v21331_v3  ;;  %4819 = vmatpush1.bf16.msra.mxu1 %v21334_v4  ;;  %v21409_v3 = vld [vmem:[%s29243_s1 + $0x100] ss:$16 sps:$4 sm:$0xff]   ;;  %v21412_v4 = vld [vmem:[%s29243_s1 + $0x108] ss:$16 sps:$4 sm:$0xff]  }
 0x18c   : > { %4747 = vmatprep.subr.bf16.mxu0 %v21339_v5  ;;  %4820 = vmatprep.subr.bf16.mxu1 %v21342_v6  ;;  %v21417_v5 = vld [vmem:[%s29243_s1 + $0x124] ss:$16 sps:$4 sm:$0xff]   ;;  %v21420_v6 = vld [vmem:[%s29243_s1 + $0x12c] ss:$16 sps:$4 sm:$0xff]  }
 0x18f   : > { %4748 = vmatpush1.bf16.msra.mxu0 %v21337_v7  ;;  %4821 = vmatpush1.bf16.msra.mxu1 %v21340_v8  ;;  %v21415_v7 = vld [vmem:[%s29243_s1 + $0x120] ss:$16 sps:$4 sm:$0xff]   ;;  %v21418_v8 = vld [vmem:[%s29243_s1 + $0x128] ss:$16 sps:$4 sm:$0xff]  }
 0x190   : > { %4749 = vmatprep.subr.bf16.mxu0 %v21345_v9  ;;  %4822 = vmatprep.subr.bf16.mxu1 %v21348_v10  ;;  %v21423_v9 = vld [vmem:[%s29243_s1 + $0x144] ss:$16 sps:$4 sm:$0xff]   ;;  %v21426_v10 = vld [vmem:[%s29243_s1 + $0x14c] ss:$16 sps:$4 sm:$0xff]  }
 0x191   : > { %v1856_v20 = vpop.f32.mrb[20].mxu0  ;;  %v1929_v22 = vpop.f32.mrb[20].mxu1 }
 0x192   : > { %v24602_v24 = vadd.f32 %v1856_v20, %v24430_v18  ;;  %v24605_v25 = vadd.f32 %v1929_v22, %v24436_v21  ;;  %v1858_v13 = vpop.f32.mrb[21].mxu0  ;;  %v1931_v15 = vpop.f32.mrb[21].mxu1  ;;  %v21355_v18 = vld [vmem:[%s29243_s1 + $0x8] ss:$16 sps:$4 sm:$0xff]   ;;  %v21427_v20 = vld [vmem:[%s29243_s1 + $0x160] ss:$16 sps:$4 sm:$0xff]  }
 0x193   : > { %v24611_v28 = vadd.f32 %v1858_v13, %v24439_v23  ;;  %v24614_v29 = vadd.f32 %v1931_v15, %v24448_v26  ;;  %4750 = vmatpush1.bf16.msra.mxu0 %v21343_v11  ;;  %4823 = vmatpush1.bf16.msra.mxu1 %v21346_v14  ;;  %v1860_v21 = vpop.f32.mrb[22].mxu0  ;;  %v1933_v30 = vpop.f32.mrb[22].mxu1  ;;  %v21363_v23 = vld [vmem:[%s29243_s1 + $0x2c] ss:$16 sps:$4 sm:$0xff]   ;;  %v21421_v11 = vld [vmem:[%s29243_s1 + $0x140] ss:$16 sps:$4 sm:$0xff]  }
 0x194   : > { %5459 = vmatprep.subr.bf16.mxu0 %v21354_v17  ;;  %5530 = vmatprep.subr.bf16.mxu1 %v21357_v19  ;;  %v1862_v26 = vpop.f32.mrb[23].mxu0  ;;  %v1935_v31 = vpop.f32.mrb[23].mxu1  ;;  %v21424_v14 = vld [vmem:[%s29243_s1 + $0x148] ss:$16 sps:$4 sm:$0xff]   ;;  %v21429_v17 = vld [vmem:[%s29243_s1 + $0x164] ss:$16 sps:$4 sm:$0xff]  }
 0x195   : > { %v21432_v19 = vld [vmem:[%s29243_s1 + $0x16c] ss:$16 sps:$4 sm:$0xff]   ;;  %v21430_v22 = vld [vmem:[%s29243_s1 + $0x168] ss:$16 sps:$4 sm:$0xff]   ;;  %v21436_v21 = vld [vmem:[%s29243_s1 + $0x180] ss:$16 sps:$4 sm:$0xff]  }
 0x196   : > { %4760 = vmatmul.mubr.bf16.vlgmr.msra.gmra.mrb[0].mxu0 %v21349_v12  ;;  %4833 = vmatmul.mubr.bf16.vlgmr.msra.gmra.mrb[0].mxu1 %v21349_v12  ;;  %v21438_v12 = vld [vmem:[%s29243_s1 + $0x184] ss:$16 sps:$4 sm:$0xff]   ;;  %v21441_v13 = vld [vmem:[%s29243_s1 + $0x18c] ss:$16 sps:$4 sm:$0xff]  }
 0x197   : > { %5460 = vmatpush1.bf16.msra.mxu0 %v21352_v27  ;;  %5531 = vmatpush1.bf16.msra.mxu1 %v21355_v18  ;;  %v21433_v18 = vld [vmem:[%s23407_s27 + $0x100] ss:$8 sps:$4 sm:$0xff]  }
 0x198   : > { %5461 = vmatprep.subr.bf16.mxu0 %v21360_v16  ;;  %5532 = vmatprep.subr.bf16.mxu1 %v21363_v23 }
 0x199   : > { %17763 = vmatprep.mubr.msk.bf16.mxu0 %vm669_vm0, %v21364_v32  ;;  %17767 = vmatprep.mubr.msk.bf16.mxu1 %vm669_vm0, %v21364_v32 }
 0x19b   : > { %5462 = vmatpush1.bf16.msra.mxu0 %v21358_v33  ;;  %5533 = vmatpush1.bf16.msra.mxu1 %v21361_v34  ;;  %v21439_v33 = vld [vmem:[%s29243_s1 + $0x188] ss:$16 sps:$4 sm:$0xff]  }
 0x19c   : > { %5463 = vmatprep.subr.bf16.mxu0 %v21369_v35  ;;  %5534 = vmatprep.subr.bf16.mxu1 %v21372_v36  ;;  %v21442_v36 = vld [vmem:[%s29243_s1 + $0x1a0] ss:$16 sps:$4 sm:$0xff]  }
 0x19e   : > { %4770 = vmatmul.mubr.bf16.gmra.mrb[4].mxu0 %v21366_v37  ;;  %4843 = vmatmul.mubr.bf16.gmra.mrb[4].mxu1 %v21366_v37  ;;  %v21472_v37 = vld [vmem:[%s23407_s27 + $0x114] ss:$8 sps:$4 sm:$0xff]  }
 0x19f   : > { %5464 = vmatpush1.bf16.msra.mxu0 %v21367_v38  ;;  %5535 = vmatpush1.bf16.msra.mxu1 %v21370_v39  ;;  %v21445_v38 = vld [vmem:[%s29243_s1 + $0x1a8] ss:$16 sps:$4 sm:$0xff]   ;;  %v21450_v39 = vld [vmem:[%s29243_s1 + $0x1c4] ss:$16 sps:$4 sm:$0xff]  }
 0x1a0   : > { %5465 = vmatprep.subr.bf16.mxu0 %v21375_v40  ;;  %5536 = vmatprep.subr.bf16.mxu1 %v21378_v41  ;;  %v21453_v40 = vld [vmem:[%s29243_s1 + $0x1cc] ss:$16 sps:$4 sm:$0xff]   ;;  %v21474_v41 = vld [vmem:[%s23407_s27 + $0x110] ss:$8 sps:$4 sm:$0xff]  }
 0x1a1   : > { %17764 = vmatprep.mubr.msk.bf16.mxu0 %vm669_vm0, %v21379_v42  ;;  %17768 = vmatprep.mubr.msk.bf16.mxu1 %vm669_vm0, %v21379_v42  ;;  %v21448_v42 = vld [vmem:[%s29243_s1 + $0x1c0] ss:$16 sps:$4 sm:$0xff]  }
 0x1a3   : > { %5466 = vmatpush1.bf16.msra.mxu0 %v21373_v43  ;;  %5537 = vmatpush1.bf16.msra.mxu1 %v21376_v44  ;;  %v21451_v43 = vld [vmem:[%s29243_s1 + $0x1c8] ss:$16 sps:$4 sm:$0xff]   ;;  %v21456_v44 = vld [vmem:[%s29243_s1 + $0x1e4] ss:$16 sps:$4 sm:$0xff]  }
 0x1a4   : > { %5467 = vmatprep.subr.bf16.mxu0 %v21384_v45  ;;  %5538 = vmatprep.subr.bf16.mxu1 %v21387_v46  ;;  %v21459_v45 = vld [vmem:[%s29243_s1 + $0x1ec] ss:$16 sps:$4 sm:$0xff]  }
 0x1a5   : > { %v21487_v46 = vld [vmem:[%s23407_s27 + $0x124] ss:$8 sps:$4 sm:$0xff]  }
 0x1a6   : > { %4780 = vmatmul.mubr.bf16.gmra.mrb[8].mxu0 %v21381_v47  ;;  %4853 = vmatmul.mubr.bf16.gmra.mrb[8].mxu1 %v21381_v47  ;;  %v21454_v47 = vld [vmem:[%s29243_s1 + $0x1e0] ss:$16 sps:$4 sm:$0xff]  }
 0x1a7   : > { %5468 = vmatpush1.bf16.msra.mxu0 %v21382_v48  ;;  %5539 = vmatpush1.bf16.msra.mxu1 %v21385_v49  ;;  %v21457_v48 = vld [vmem:[%s29243_s1 + $0x1e8] ss:$16 sps:$4 sm:$0xff]   ;;  %v21462_v49 = vld [vmem:[%s29243_s1 + $0x204] ss:$16 sps:$4 sm:$0xff]  }
 0x1a8   : > { %5469 = vmatprep.subr.bf16.mxu0 %v21390_v50  ;;  %5540 = vmatprep.subr.bf16.mxu1 %v21393_v51  ;;  %v21465_v50 = vld [vmem:[%s29243_s1 + $0x20c] ss:$16 sps:$4 sm:$0xff]   ;;  %v21489_v51 = vld [vmem:[%s23407_s27 + $0x120] ss:$8 sps:$4 sm:$0xff]  }
 0x1a9   : > { %17765 = vmatprep.mubr.msk.bf16.mxu0 %vm669_vm0, %v21394_v52  ;;  %17769 = vmatprep.mubr.msk.bf16.mxu1 %vm669_vm0, %v21394_v52  ;;  %v5125_v52 = vld [vmem:[%s23407_s27 + $0x130] sm:$0xff] }
 0x1ab   : > { %5470 = vmatpush1.bf16.msra.mxu0 %v21388_v53  ;;  %5541 = vmatpush1.bf16.msra.mxu1 %v21391_v54  ;;  %v21460_v53 = vld [vmem:[%s29243_s1 + $0x200] ss:$16 sps:$4 sm:$0xff]   ;;  %v21463_v54 = vld [vmem:[%s29243_s1 + $0x208] ss:$16 sps:$4 sm:$0xff]  }
 0x1ac   : > { %5471 = vmatprep.subr.bf16.mxu0 %v21399_v55  ;;  %5542 = vmatprep.subr.bf16.mxu1 %v21402_v56  ;;  %v21468_v55 = vld [vmem:[%s29243_s1 + $0x224] ss:$16 sps:$4 sm:$0xff]   ;;  %v21471_v56 = vld [vmem:[%s29243_s1 + $0x22c] ss:$16 sps:$4 sm:$0xff]  }
 0x1ae   : > { %4790 = vmatmul.mubr.bf16.gmra.mrb[40].mxu0 %v21396_v57  ;;  %4863 = vmatmul.mubr.bf16.gmra.mrb[40].mxu1 %v21396_v57  ;;  %v17777_v57 = vcombine.high %v5125_v52, %v5125_v52 }
 0x1af   : > { %5472 = vmatpush1.bf16.msra.mxu0 %v21397_v58  ;;  %5543 = vmatpush1.bf16.msra.mxu1 %v21400_v59  ;;  %v21466_v58 = vld [vmem:[%s29243_s1 + $0x220] ss:$16 sps:$4 sm:$0xff]   ;;  %v21469_v59 = vld [vmem:[%s29243_s1 + $0x228] ss:$16 sps:$4 sm:$0xff]  }
 0x1b0   : > { %5473 = vmatprep.subr.bf16.mxu0 %v21405_v60  ;;  %5544 = vmatprep.subr.bf16.mxu1 %v21408_v61  ;;  %v21477_v60 = vld [vmem:[%s29243_s1 + $0x244] ss:$16 sps:$4 sm:$0xff]   ;;  %v21480_v61 = vld [vmem:[%s29243_s1 + $0x24c] ss:$16 sps:$4 sm:$0xff]  }
 0x1b1   : > { %17826 = vmatprep.mubr.msk.bf16.mxu0 %vm669_vm0, %v21435_v62  ;;  %17830 = vmatprep.mubr.msk.bf16.mxu1 %vm669_vm0, %v21435_v62  ;;  %v17776_v62 = vcombine.low %v5125_v52, %v5125_v52  ;;  %v21540_v52 = vld [vmem:[%s29243_s1 + $0x360] ss:$16 sps:$4 sm:$0xff]  }
 0x1b3   : > { %5474 = vmatpush1.bf16.msra.mxu0 %v21403_v63  ;;  %5545 = vmatpush1.bf16.msra.mxu1 %v21406_v0  ;;  %v21475_v63 = vld [vmem:[%s29243_s1 + $0x240] ss:$16 sps:$4 sm:$0xff]   ;;  %v21478_v0 = vld [vmem:[%s29243_s1 + $0x248] ss:$16 sps:$4 sm:$0xff]  }
 0x1b4   : > { %5475 = vmatprep.subr.bf16.mxu0 %v21411_v1  ;;  %5546 = vmatprep.subr.bf16.mxu1 %v21414_v2  ;;  %v21483_v1 = vld [vmem:[%s29243_s1 + $0x264] ss:$16 sps:$4 sm:$0xff]   ;;  %v21486_v2 = vld [vmem:[%s29243_s1 + $0x26c] ss:$16 sps:$4 sm:$0xff]  }
 0x1b7   : > { %5476 = vmatpush1.bf16.msra.mxu0 %v21409_v3  ;;  %5547 = vmatpush1.bf16.msra.mxu1 %v21412_v4  ;;  %v21518_v3 = vld [vmem:[%s23407_s27 + $0x144] ss:$8 sps:$4 sm:$0xff]   ;;  %v21481_v4 = vld [vmem:[%s29243_s1 + $0x260] ss:$16 sps:$4 sm:$0xff]  }
 0x1b8   : > { %5477 = vmatprep.subr.bf16.mxu0 %v21417_v5  ;;  %5548 = vmatprep.subr.bf16.mxu1 %v21420_v6  ;;  %v21484_v5 = vld [vmem:[%s29243_s1 + $0x268] ss:$16 sps:$4 sm:$0xff]   ;;  %v21492_v6 = vld [vmem:[%s29243_s1 + $0x284] ss:$16 sps:$4 sm:$0xff]  }
 0x1bb   : > { %5478 = vmatpush1.bf16.msra.mxu0 %v21415_v7  ;;  %5549 = vmatpush1.bf16.msra.mxu1 %v21418_v8  ;;  %v21495_v7 = vld [vmem:[%s29243_s1 + $0x28c] ss:$16 sps:$4 sm:$0xff]   ;;  %v21490_v8 = vld [vmem:[%s29243_s1 + $0x280] ss:$16 sps:$4 sm:$0xff]  }
 0x1bc   : > { %5479 = vmatprep.subr.bf16.mxu0 %v21423_v9  ;;  %5550 = vmatprep.subr.bf16.mxu1 %v21426_v10  ;;  %v21493_v9 = vld [vmem:[%s29243_s1 + $0x288] ss:$16 sps:$4 sm:$0xff]   ;;  %v21498_v10 = vld [vmem:[%s29243_s1 + $0x2a4] ss:$16 sps:$4 sm:$0xff]  }
 0x1bf   : > { %5480 = vmatpush1.bf16.msra.mxu0 %v21421_v11  ;;  %5551 = vmatpush1.bf16.msra.mxu1 %v21424_v14  ;;  %v21501_v11 = vld [vmem:[%s29243_s1 + $0x2ac] ss:$16 sps:$4 sm:$0xff]   ;;  %v21496_v14 = vld [vmem:[%s29243_s1 + $0x2a0] ss:$16 sps:$4 sm:$0xff]  }
 0x1c0   : > { %5481 = vmatprep.subr.bf16.mxu0 %v21429_v17  ;;  %5552 = vmatprep.subr.bf16.mxu1 %v21432_v19  ;;  %v21499_v17 = vld [vmem:[%s29243_s1 + $0x2a8] ss:$16 sps:$4 sm:$0xff]   ;;  %v21506_v19 = vld [vmem:[%s29243_s1 + $0x2c4] ss:$16 sps:$4 sm:$0xff]  }
 0x1c1   : > { %v2443_v15 = vpop.f32.mrb[24].mxu0  ;;  %v2516_v27 = vpop.f32.mrb[24].mxu1 }
 0x1c2   : > { %v24777_v30 = vadd.f32 %v2443_v15, %v24602_v24  ;;  %v24780_v16 = vadd.f32 %v2516_v27, %v24605_v25  ;;  %v2445_v23 = vpop.f32.mrb[25].mxu0  ;;  %v2518_v26 = vpop.f32.mrb[25].mxu1  ;;  %v21444_v24 = vld [vmem:[%s29243_s1 + $0x1a4] ss:$16 sps:$4 sm:$0xff]   ;;  %v21515_v15 = vld [vmem:[%s29243_s1 + $0x2ec] ss:$16 sps:$4 sm:$0xff]  }
 0x1c3   : > { %v24783_v31 = vadd.f32 %v2445_v23, %v24611_v28  ;;  %v24786_v32 = vadd.f32 %v2518_v26, %v24614_v29  ;;  %5482 = vmatpush1.bf16.msra.mxu0 %v21427_v20  ;;  %5553 = vmatpush1.bf16.msra.mxu1 %v21430_v22  ;;  %v2447_v25 = vpop.f32.mrb[26].mxu0  ;;  %v2520_v34 = vpop.f32.mrb[26].mxu1  ;;  %v21447_v28 = vld [vmem:[%s29243_s1 + $0x1ac] ss:$16 sps:$4 sm:$0xff]   ;;  %v21504_v22 = vld [vmem:[%s29243_s1 + $0x2c0] ss:$16 sps:$4 sm:$0xff]  }
 0x1c4   : > { %5969 = vmatprep.subr.bf16.mxu0 %v21438_v12  ;;  %6040 = vmatprep.subr.bf16.mxu1 %v21441_v13  ;;  %v2449_v29 = vpop.f32.mrb[27].mxu0  ;;  %v2522_v35 = vpop.f32.mrb[27].mxu1  ;;  %v21509_v20 = vld [vmem:[%s29243_s1 + $0x2cc] ss:$16 sps:$4 sm:$0xff]   ;;  %v21507_v12 = vld [vmem:[%s29243_s1 + $0x2c8] ss:$16 sps:$4 sm:$0xff]  }
 0x1c5   : > { %v21512_v13 = vld [vmem:[%s29243_s1 + $0x2e4] ss:$16 sps:$4 sm:$0xff]   ;;  %v21510_v27 = vld [vmem:[%s29243_s1 + $0x2e0] ss:$16 sps:$4 sm:$0xff]   ;;  %v21524_v23 = vld [vmem:[%s29243_s1 + $0x30c] ss:$16 sps:$4 sm:$0xff]  }
 0x1c6   : > { %5492 = vmatmul.mubr.bf16.vlgmr.msra.gmra.mrb[44].mxu0 %v21433_v18  ;;  %5563 = vmatmul.mubr.bf16.vlgmr.msra.gmra.mrb[44].mxu1 %v21433_v18  ;;  %v21513_v18 = vld [vmem:[%s29243_s1 + $0x2e8] ss:$16 sps:$4 sm:$0xff]   ;;  %v21519_v25 = vld [vmem:[%s29243_s1 + $0x300] ss:$16 sps:$4 sm:$0xff]  }
 0x1c7   : > { %5970 = vmatpush1.bf16.msra.mxu0 %v21436_v21  ;;  %6041 = vmatpush1.bf16.msra.mxu1 %v21439_v33  ;;  %v21521_v21 = vld [vmem:[%s29243_s1 + $0x304] ss:$16 sps:$4 sm:$0xff]   ;;  %v21516_v26 = vld [vmem:[%s23407_s27 + $0x140] ss:$8 sps:$4 sm:$0xff]  }
 0x1c8   : > { %5971 = vmatprep.subr.bf16.mxu0 %v21444_v24  ;;  %6042 = vmatprep.subr.bf16.mxu1 %v21447_v28 }
 0x1c9   : > { %17827 = vmatprep.mubr.msk.bf16.mxu0 %vm669_vm0, %v21472_v37  ;;  %17831 = vmatprep.mubr.msk.bf16.mxu1 %vm669_vm0, %v21472_v37  ;;  %v21527_v37 = vld [vmem:[%s29243_s1 + $0x324] ss:$16 sps:$4 sm:$0xff]  }
 0x1cb   : > { %5972 = vmatpush1.bf16.msra.mxu0 %v21442_v36  ;;  %6043 = vmatpush1.bf16.msra.mxu1 %v21445_v38  ;;  %v21522_v36 = vld [vmem:[%s29243_s1 + $0x308] ss:$16 sps:$4 sm:$0xff]  }
 0x1cc   : > { %5973 = vmatprep.subr.bf16.mxu0 %v21450_v39  ;;  %6044 = vmatprep.subr.bf16.mxu1 %v21453_v40 }
 0x1ce   : > { %5502 = vmatmul.mubr.bf16.gmra.mrb[48].mxu0 %v21474_v41  ;;  %5573 = vmatmul.mubr.bf16.gmra.mrb[48].mxu1 %v21474_v41 }
 0x1cf   : > { %5974 = vmatpush1.bf16.msra.mxu0 %v21448_v42  ;;  %6045 = vmatpush1.bf16.msra.mxu1 %v21451_v43 }
 0x1d0   : > { %5975 = vmatprep.subr.bf16.mxu0 %v21456_v44  ;;  %6046 = vmatprep.subr.bf16.mxu1 %v21459_v45  ;;  %v21533_v44 = vld [vmem:[%s23407_s27 + $0x150] ss:$8 sps:$4 sm:$0xff]   ;;  %v21536_v45 = vld [vmem:[%s29243_s1 + $0x344] ss:$16 sps:$4 sm:$0xff]  }
 0x1d1   : > { %17828 = vmatprep.mubr.msk.bf16.mxu0 %vm669_vm0, %v21487_v46  ;;  %17832 = vmatprep.mubr.msk.bf16.mxu1 %vm669_vm0, %v21487_v46  ;;  %v21539_v46 = vld [vmem:[%s29243_s1 + $0x34c] ss:$16 sps:$4 sm:$0xff]  }
 0x1d3   : > { %5976 = vmatpush1.bf16.msra.mxu0 %v21454_v47  ;;  %6047 = vmatpush1.bf16.msra.mxu1 %v21457_v48  ;;  %v21534_v47 = vld [vmem:[%s29243_s1 + $0x340] ss:$16 sps:$4 sm:$0xff]   ;;  %v21537_v48 = vld [vmem:[%s29243_s1 + $0x348] ss:$16 sps:$4 sm:$0xff]  }
 0x1d4   : > { %5977 = vmatprep.subr.bf16.mxu0 %v21462_v49  ;;  %6048 = vmatprep.subr.bf16.mxu1 %v21465_v50  ;;  %v21542_v49 = vld [vmem:[%s29243_s1 + $0x364] ss:$16 sps:$4 sm:$0xff]   ;;  %v21545_v50 = vld [vmem:[%s29243_s1 + $0x36c] ss:$16 sps:$4 sm:$0xff]  }
 0x1d6   : > { %5512 = vmatmul.mubr.bf16.gmra.mrb[52].mxu0 %v21489_v51  ;;  %5583 = vmatmul.mubr.bf16.gmra.mrb[52].mxu1 %v21489_v51  ;;  %v21546_v51 = vld [vmem:[%s23407_s27 + $0x164] ss:$8 sps:$4 sm:$0xff]  }
 0x1d7   : > { %5978 = vmatpush1.bf16.msra.mxu0 %v21460_v53  ;;  %6049 = vmatpush1.bf16.msra.mxu1 %v21463_v54  ;;  %v21543_v53 = vld [vmem:[%s29243_s1 + $0x368] ss:$16 sps:$4 sm:$0xff]  }
 0x1d8   : > { %5979 = vmatprep.subr.bf16.mxu0 %v21468_v55  ;;  %6050 = vmatprep.subr.bf16.mxu1 %v21471_v56  ;;  %v21548_v54 = vld [vmem:[%s23407_s27 + $0x160] ss:$8 sps:$4 sm:$0xff]   ;;  %v21551_v55 = vld [vmem:[%s29243_s1 + $0x384] ss:$16 sps:$4 sm:$0xff]   ;;  %v21554_v56 = vld [vmem:[%s29243_s1 + $0x38c] ss:$16 sps:$4 sm:$0xff]  }
 0x1d9   : > { %17829 = vmatprep.mubr.msk.bf16.mxu0 %vm669_vm0, %v17777_v57  ;;  %17833 = vmatprep.mubr.msk.bf16.mxu1 %vm669_vm0, %v17777_v57  ;;  %v21549_v57 = vld [vmem:[%s29243_s1 + $0x380] ss:$16 sps:$4 sm:$0xff]  }
 0x1db   : > { %5980 = vmatpush1.bf16.msra.mxu0 %v21466_v58  ;;  %6051 = vmatpush1.bf16.msra.mxu1 %v21469_v59  ;;  %v21552_v58 = vld [vmem:[%s29243_s1 + $0x388] ss:$16 sps:$4 sm:$0xff]   ;;  %v5635_v59 = vld [vmem:[%s23407_s27 + $0x170] sm:$0xff] }
 0x1dc   : > { %5981 = vmatprep.subr.bf16.mxu0 %v21477_v60  ;;  %6052 = vmatprep.subr.bf16.mxu1 %v21480_v61  ;;  %v21557_v60 = vld [vmem:[%s29243_s1 + $0x3a4] ss:$16 sps:$4 sm:$0xff]   ;;  %v21560_v61 = vld [vmem:[%s29243_s1 + $0x3ac] ss:$16 sps:$4 sm:$0xff]  }
 0x1de   : > { %5522 = vmatmul.mubr.bf16.gmra.mrb[56].mxu0 %v17776_v62  ;;  %5593 = vmatmul.mubr.bf16.gmra.mrb[56].mxu1 %v17776_v62  ;;  %v21555_v62 = vld [vmem:[%s29243_s1 + $0x3a0] ss:$16 sps:$4 sm:$0xff]  }
 0x1df   : > { %5982 = vmatpush1.bf16.msra.mxu0 %v21475_v63  ;;  %6053 = vmatpush1.bf16.msra.mxu1 %v21478_v0  ;;  %v17889_v63 = vcombine.high %v5635_v59, %v5635_v59  ;;  %v21558_v0 = vld [vmem:[%s29243_s1 + $0x3a8] ss:$16 sps:$4 sm:$0xff]  }
 0x1e0   : > { %5983 = vmatprep.subr.bf16.mxu0 %v21483_v1  ;;  %6054 = vmatprep.subr.bf16.mxu1 %v21486_v2  ;;  %v21565_v1 = vld [vmem:[%s29243_s1 + $0x3c4] ss:$16 sps:$4 sm:$0xff]   ;;  %v21568_v2 = vld [vmem:[%s29243_s1 + $0x3cc] ss:$16 sps:$4 sm:$0xff]  }
 0x1e1   : > { %17938 = vmatprep.mubr.msk.bf16.mxu0 %vm669_vm0, %v21518_v3  ;;  %17942 = vmatprep.mubr.msk.bf16.mxu1 %vm669_vm0, %v21518_v3  ;;  %v17888_v3 = vcombine.low %v5635_v59, %v5635_v59  ;;  %v21631_v59 = vld [vmem:[%s23407_s27 + $0x1a0] ss:$8 sps:$4 sm:$0xff]  }
 0x1e3   : > { %5984 = vmatpush1.bf16.msra.mxu0 %v21481_v4  ;;  %6055 = vmatpush1.bf16.msra.mxu1 %v21484_v5  ;;  %v21563_v4 = vld [vmem:[%s29243_s1 + $0x3c0] ss:$16 sps:$4 sm:$0xff]   ;;  %v21566_v5 = vld [vmem:[%s29243_s1 + $0x3c8] ss:$16 sps:$4 sm:$0xff]  }
 0x1e4   : > { %5985 = vmatprep.subr.bf16.mxu0 %v21492_v6  ;;  %6056 = vmatprep.subr.bf16.mxu1 %v21495_v7  ;;  %v21571_v6 = vld [vmem:[%s29243_s1 + $0x3e4] ss:$16 sps:$4 sm:$0xff]   ;;  %v21574_v7 = vld [vmem:[%s29243_s1 + $0x3ec] ss:$16 sps:$4 sm:$0xff]  }
 0x1e7   : > { %5986 = vmatpush1.bf16.msra.mxu0 %v21490_v8  ;;  %6057 = vmatpush1.bf16.msra.mxu1 %v21493_v9  ;;  %v21601_v8 = vld [vmem:[%s23407_s27 + $0x184] ss:$8 sps:$4 sm:$0xff]   ;;  %v21569_v9 = vld [vmem:[%s29243_s1 + $0x3e0] ss:$16 sps:$4 sm:$0xff]  }
 0x1e8   : > { %5987 = vmatprep.subr.bf16.mxu0 %v21498_v10  ;;  %6058 = vmatprep.subr.bf16.mxu1 %v21501_v11  ;;  %v21572_v10 = vld [vmem:[%s29243_s1 + $0x3e8] ss:$16 sps:$4 sm:$0xff]   ;;  %v21577_v11 = vld [vmem:[%s29243_s1 + $0x404] ss:$16 sps:$4 sm:$0xff]  }
 0x1eb   : > { %5988 = vmatpush1.bf16.msra.mxu0 %v21496_v14  ;;  %6059 = vmatpush1.bf16.msra.mxu1 %v21499_v17  ;;  %v21580_v14 = vld [vmem:[%s29243_s1 + $0x40c] ss:$16 sps:$4 sm:$0xff]   ;;  %v21575_v17 = vld [vmem:[%s29243_s1 + $0x400] ss:$16 sps:$4 sm:$0xff]  }
 0x1ec   : > { %5989 = vmatprep.subr.bf16.mxu0 %v21506_v19  ;;  %6060 = vmatprep.subr.bf16.mxu1 %v21509_v20  ;;  %v21578_v19 = vld [vmem:[%s29243_s1 + $0x408] ss:$16 sps:$4 sm:$0xff]   ;;  %v21583_v20 = vld [vmem:[%s29243_s1 + $0x424] ss:$16 sps:$4 sm:$0xff]  }
 0x1ef   : > { %5990 = vmatpush1.bf16.msra.mxu0 %v21504_v22  ;;  %6061 = vmatpush1.bf16.msra.mxu1 %v21507_v12  ;;  %v21586_v22 = vld [vmem:[%s29243_s1 + $0x42c] ss:$16 sps:$4 sm:$0xff]   ;;  %v21581_v12 = vld [vmem:[%s29243_s1 + $0x420] ss:$16 sps:$4 sm:$0xff]  }
 0x1f0   : > { %5991 = vmatprep.subr.bf16.mxu0 %v21512_v13  ;;  %6062 = vmatprep.subr.bf16.mxu1 %v21515_v15  ;;  %v21584_v13 = vld [vmem:[%s29243_s1 + $0x428] ss:$16 sps:$4 sm:$0xff]   ;;  %v21589_v15 = vld [vmem:[%s29243_s1 + $0x444] ss:$16 sps:$4 sm:$0xff]  }
 0x1f1   : > { %v3030_v33 = vpop.f32.mrb[28].mxu0  ;;  %v3103_v24 = vpop.f32.mrb[28].mxu1 }
 0x1f2   : > { %v24948_v34 = vadd.f32 %v3030_v33, %v24777_v30  ;;  %v24951_v28 = vadd.f32 %v3103_v24, %v24780_v16  ;;  %v3032_v29 = vpop.f32.mrb[29].mxu0  ;;  %v3105_v35 = vpop.f32.mrb[29].mxu1  ;;  %v21530_v30 = vld [vmem:[%s29243_s1 + $0x32c] ss:$16 sps:$4 sm:$0xff]   ;;  %v21593_v33 = vld [vmem:[%s29243_s1 + $0x460] ss:$16 sps:$4 sm:$0xff]  }
 0x1f3   : > { %v24960_v38 = vadd.f32 %v3032_v29, %v24783_v31  ;;  %v24963_v39 = vadd.f32 %v3105_v35, %v24786_v32  ;;  %5992 = vmatpush1.bf16.msra.mxu0 %v21510_v27  ;;  %6063 = vmatpush1.bf16.msra.mxu1 %v21513_v18  ;;  %v21531_v16 = vld [vmem:[%s23407_s27 + $0x154] ss:$8 sps:$4 sm:$0xff]   ;;  %v3034_v40 = vpop.f32.mrb[30].mxu0  ;;  %v3107_v41 = vpop.f32.mrb[30].mxu1  ;;  %v21525_v31 = vld [vmem:[%s29243_s1 + $0x320] ss:$16 sps:$4 sm:$0xff]  }
 0x1f4   : > { %6535 = vmatprep.subr.bf16.mxu0 %v21521_v21  ;;  %6606 = vmatprep.subr.bf16.mxu1 %v21524_v23  ;;  %v3036_v42 = vpop.f32.mrb[31].mxu0  ;;  %v3109_v43 = vpop.f32.mrb[31].mxu1  ;;  %v21528_v32 = vld [vmem:[%s29243_s1 + $0x328] ss:$16 sps:$4 sm:$0xff]   ;;  %v21592_v27 = vld [vmem:[%s29243_s1 + $0x44c] ss:$16 sps:$4 sm:$0xff]  }
 0x1f5   : > { %v21587_v18 = vld [vmem:[%s29243_s1 + $0x440] ss:$16 sps:$4 sm:$0xff]   ;;  %v21590_v21 = vld [vmem:[%s29243_s1 + $0x448] ss:$16 sps:$4 sm:$0xff]   ;;  %v21595_v23 = vld [vmem:[%s29243_s1 + $0x464] ss:$16 sps:$4 sm:$0xff]  }
 0x1f6   : > { %6002 = vmatmul.mubr.bf16.vlgmr.msra.gmra.mrb[44].mxu0 %v21516_v26  ;;  %6073 = vmatmul.mubr.bf16.vlgmr.msra.gmra.mrb[44].mxu1 %v21516_v26  ;;  %v21598_v26 = vld [vmem:[%s29243_s1 + $0x46c] ss:$16 sps:$4 sm:$0xff]   ;;  %v21596_v24 = vld [vmem:[%s29243_s1 + $0x468] ss:$16 sps:$4 sm:$0xff]   ;;  %v21604_v29 = vld [vmem:[%s29243_s1 + $0x484] ss:$16 sps:$4 sm:$0xff]  }
 0x1f7   : > { %6536 = vmatpush1.bf16.msra.mxu0 %v21519_v25  ;;  %6607 = vmatpush1.bf16.msra.mxu1 %v21522_v36  ;;  %v21599_v25 = vld [vmem:[%s23407_s27 + $0x180] ss:$8 sps:$4 sm:$0xff]   ;;  %v21607_v35 = vld [vmem:[%s29243_s1 + $0x48c] ss:$16 sps:$4 sm:$0xff]  }
 0x1f8   : > { %6537 = vmatprep.subr.bf16.mxu0 %v21527_v37  ;;  %6608 = vmatprep.subr.bf16.mxu1 %v21530_v30  ;;  %v21602_v30 = vld [vmem:[%s29243_s1 + $0x480] ss:$16 sps:$4 sm:$0xff]  }
 0x1f9   : > { %17939 = vmatprep.mubr.msk.bf16.mxu0 %vm669_vm0, %v21531_v16  ;;  %17943 = vmatprep.mubr.msk.bf16.mxu1 %vm669_vm0, %v21531_v16  ;;  %v21605_v16 = vld [vmem:[%s29243_s1 + $0x488] ss:$16 sps:$4 sm:$0xff]  }
 0x1fb   : > { %6538 = vmatpush1.bf16.msra.mxu0 %v21525_v31  ;;  %6609 = vmatpush1.bf16.msra.mxu1 %v21528_v32 }
 0x1fc   : > { %6539 = vmatprep.subr.bf16.mxu0 %v21536_v45  ;;  %6610 = vmatprep.subr.bf16.mxu1 %v21539_v46 }
 0x1fe   : > { %6012 = vmatmul.mubr.bf16.gmra.mrb[48].mxu0 %v21533_v44  ;;  %6083 = vmatmul.mubr.bf16.gmra.mrb[48].mxu1 %v21533_v44 }
 0x1ff   : > { %6540 = vmatpush1.bf16.msra.mxu0 %v21534_v47  ;;  %6611 = vmatpush1.bf16.msra.mxu1 %v21537_v48  ;;  %v21611_v47 = vld [vmem:[%s29243_s1 + $0x4a8] ss:$16 sps:$4 sm:$0xff]   ;;  %v21614_v48 = vld [vmem:[%s23407_s27 + $0x194] ss:$8 sps:$4 sm:$0xff]  }
 0x200   : > { %6541 = vmatprep.subr.bf16.mxu0 %v21542_v49  ;;  %6612 = vmatprep.subr.bf16.mxu1 %v21545_v50  ;;  %v21616_v49 = vld [vmem:[%s23407_s27 + $0x190] ss:$8 sps:$4 sm:$0xff]   ;;  %v21619_v50 = vld [vmem:[%s29243_s1 + $0x4c4] ss:$16 sps:$4 sm:$0xff]  }
 0x201   : > { %17940 = vmatprep.mubr.msk.bf16.mxu0 %vm669_vm0, %v21546_v51  ;;  %17944 = vmatprep.mubr.msk.bf16.mxu1 %vm669_vm0, %v21546_v51  ;;  %v21622_v51 = vld [vmem:[%s29243_s1 + $0x4cc] ss:$16 sps:$4 sm:$0xff]  }
 0x203   : > { %6542 = vmatpush1.bf16.msra.mxu0 %v21540_v52  ;;  %6613 = vmatpush1.bf16.msra.mxu1 %v21543_v53  ;;  %v21617_v52 = vld [vmem:[%s29243_s1 + $0x4c0] ss:$16 sps:$4 sm:$0xff]   ;;  %v21620_v53 = vld [vmem:[%s29243_s1 + $0x4c8] ss:$16 sps:$4 sm:$0xff]  }
 0x204   : > { %6543 = vmatprep.subr.bf16.mxu0 %v21551_v55  ;;  %6614 = vmatprep.subr.bf16.mxu1 %v21554_v56  ;;  %v21628_v55 = vld [vmem:[%s29243_s1 + $0x4ec] ss:$16 sps:$4 sm:$0xff]   ;;  %v21623_v56 = vld [vmem:[%s29243_s1 + $0x4e0] ss:$16 sps:$4 sm:$0xff]  }
 0x206   : > { %6022 = vmatmul.mubr.bf16.gmra.mrb[52].mxu0 %v21548_v54  ;;  %6093 = vmatmul.mubr.bf16.gmra.mrb[52].mxu1 %v21548_v54  ;;  %v21625_v54 = vld [vmem:[%s29243_s1 + $0x4e4] ss:$16 sps:$4 sm:$0xff]  }
 0x207   : > { %6544 = vmatpush1.bf16.msra.mxu0 %v21549_v57  ;;  %6615 = vmatpush1.bf16.msra.mxu1 %v21552_v58  ;;  %v21626_v57 = vld [vmem:[%s29243_s1 + $0x4e8] ss:$16 sps:$4 sm:$0xff]   ;;  %v21629_v58 = vld [vmem:[%s23407_s27 + $0x1a4] ss:$8 sps:$4 sm:$0xff]  }
 0x208   : > { %6545 = vmatprep.subr.bf16.mxu0 %v21557_v60  ;;  %6616 = vmatprep.subr.bf16.mxu1 %v21560_v61  ;;  %v21634_v60 = vld [vmem:[%s29243_s1 + $0x504] ss:$16 sps:$4 sm:$0xff]   ;;  %v21637_v61 = vld [vmem:[%s29243_s1 + $0x50c] ss:$16 sps:$4 sm:$0xff]  }
 0x209   : > { %17941 = vmatprep.mubr.msk.bf16.mxu0 %vm669_vm0, %v17889_v63  ;;  %17945 = vmatprep.mubr.msk.bf16.mxu1 %vm669_vm0, %v17889_v63  ;;  %v21635_v63 = vld [vmem:[%s29243_s1 + $0x508] ss:$16 sps:$4 sm:$0xff]  }
 0x20b   : > { %6546 = vmatpush1.bf16.msra.mxu0 %v21555_v62  ;;  %6617 = vmatpush1.bf16.msra.mxu1 %v21558_v0  ;;  %v21632_v62 = vld [vmem:[%s29243_s1 + $0x500] ss:$16 sps:$4 sm:$0xff]  }
 0x20c   : > { %6547 = vmatprep.subr.bf16.mxu0 %v21565_v1  ;;  %6618 = vmatprep.subr.bf16.mxu1 %v21568_v2  ;;  %v6201_v0 = vld [vmem:[%s23407_s27 + $0x1b0] sm:$0xff]  ;;  %v21643_v2 = vld [vmem:[%s29243_s1 + $0x52c] ss:$16 sps:$4 sm:$0xff]  }
 0x20d   : > { %v21640_v1 = vld [vmem:[%s29243_s1 + $0x524] ss:$16 sps:$4 sm:$0xff]  }
 0x20e   : > { %6032 = vmatmul.mubr.bf16.gmra.mrb[60].mxu0 %v17888_v3  ;;  %6103 = vmatmul.mubr.bf16.gmra.mrb[60].mxu1 %v17888_v3  ;;  %v18001_v3 = vcombine.high %v6201_v0, %v6201_v0 }
 0x20f   : > { %6548 = vmatpush1.bf16.msra.mxu0 %v21563_v4  ;;  %6619 = vmatpush1.bf16.msra.mxu1 %v21566_v5  ;;  %v21638_v4 = vld [vmem:[%s29243_s1 + $0x520] ss:$16 sps:$4 sm:$0xff]   ;;  %v21641_v5 = vld [vmem:[%s29243_s1 + $0x528] ss:$16 sps:$4 sm:$0xff]  }
 0x210   : > { %6549 = vmatprep.subr.bf16.mxu0 %v21571_v6  ;;  %6620 = vmatprep.subr.bf16.mxu1 %v21574_v7  ;;  %v21648_v6 = vld [vmem:[%s29243_s1 + $0x544] ss:$16 sps:$4 sm:$0xff]   ;;  %v21651_v7 = vld [vmem:[%s29243_s1 + $0x54c] ss:$16 sps:$4 sm:$0xff]  }
 0x211   : > { %18050 = vmatprep.mubr.msk.bf16.mxu0 %vm669_vm0, %v21601_v8  ;;  %18054 = vmatprep.mubr.msk.bf16.mxu1 %vm669_vm0, %v21601_v8  ;;  %v21646_v8 = vld [vmem:[%s29243_s1 + $0x540] ss:$16 sps:$4 sm:$0xff]  }
 0x213   : > { %6550 = vmatpush1.bf16.msra.mxu0 %v21569_v9  ;;  %6621 = vmatpush1.bf16.msra.mxu1 %v21572_v10  ;;  %v21649_v9 = vld [vmem:[%s29243_s1 + $0x548] ss:$16 sps:$4 sm:$0xff]   ;;  %v18000_v10 = vcombine.low %v6201_v0, %v6201_v0  ;;  %v21712_v0 = vld [vmem:[%s23407_s27 + $0x1e4] ss:$8 sps:$4 sm:$0xff]  }
 0x214   : > { %6551 = vmatprep.subr.bf16.mxu0 %v21577_v11  ;;  %6622 = vmatprep.subr.bf16.mxu1 %v21580_v14  ;;  %v21654_v11 = vld [vmem:[%s29243_s1 + $0x564] ss:$16 sps:$4 sm:$0xff]   ;;  %v21657_v14 = vld [vmem:[%s29243_s1 + $0x56c] ss:$16 sps:$4 sm:$0xff]  }
 0x217   : > { %6552 = vmatpush1.bf16.msra.mxu0 %v21575_v17  ;;  %6623 = vmatpush1.bf16.msra.mxu1 %v21578_v19  ;;  %v21684_v17 = vld [vmem:[%s23407_s27 + $0x1c4] ss:$8 sps:$4 sm:$0xff]   ;;  %v21652_v19 = vld [vmem:[%s29243_s1 + $0x560] ss:$16 sps:$4 sm:$0xff]  }
 0x218   : > { %6553 = vmatprep.subr.bf16.mxu0 %v21583_v20  ;;  %6624 = vmatprep.subr.bf16.mxu1 %v21586_v22  ;;  %v21655_v20 = vld [vmem:[%s29243_s1 + $0x568] ss:$16 sps:$4 sm:$0xff]   ;;  %v21660_v22 = vld [vmem:[%s29243_s1 + $0x584] ss:$16 sps:$4 sm:$0xff]  }
 0x21b   : > { %6554 = vmatpush1.bf16.msra.mxu0 %v21581_v12  ;;  %6625 = vmatpush1.bf16.msra.mxu1 %v21584_v13  ;;  %v21663_v12 = vld [vmem:[%s29243_s1 + $0x58c] ss:$16 sps:$4 sm:$0xff]   ;;  %v21658_v13 = vld [vmem:[%s29243_s1 + $0x580] ss:$16 sps:$4 sm:$0xff]  }
 0x21c   : > { %6555 = vmatprep.subr.bf16.mxu0 %v21589_v15  ;;  %6626 = vmatprep.subr.bf16.mxu1 %v21592_v27  ;;  %v21661_v15 = vld [vmem:[%s29243_s1 + $0x588] ss:$16 sps:$4 sm:$0xff]   ;;  %v21666_v27 = vld [vmem:[%s29243_s1 + $0x5a4] ss:$16 sps:$4 sm:$0xff]  }
 0x21f   : > { %6556 = vmatpush1.bf16.msra.mxu0 %v21587_v18  ;;  %6627 = vmatpush1.bf16.msra.mxu1 %v21590_v21  ;;  %v21669_v18 = vld [vmem:[%s29243_s1 + $0x5ac] ss:$16 sps:$4 sm:$0xff]   ;;  %v21664_v21 = vld [vmem:[%s29243_s1 + $0x5a0] ss:$16 sps:$4 sm:$0xff]  }
 0x220   : > { %6557 = vmatprep.subr.bf16.mxu0 %v21595_v23  ;;  %6628 = vmatprep.subr.bf16.mxu1 %v21598_v26  ;;  %v21667_v23 = vld [vmem:[%s29243_s1 + $0x5a8] ss:$16 sps:$4 sm:$0xff]   ;;  %v21672_v26 = vld [vmem:[%s29243_s1 + $0x5c4] ss:$16 sps:$4 sm:$0xff]  }
 0x221   : > { %v3617_v36 = vpop.f32.mrb[32].mxu0  ;;  %v3690_v37 = vpop.f32.mrb[32].mxu1 }
 0x222   : > { %v25122_v40 = vadd.f32 %v3617_v36, %v24948_v34  ;;  %v25125_v41 = vadd.f32 %v3690_v37, %v24951_v28  ;;  %v3619_v42 = vpop.f32.mrb[33].mxu0  ;;  %v3692_v43 = vpop.f32.mrb[33].mxu1  ;;  %v21610_v34 = vld [vmem:[%s29243_s1 + $0x4a4] ss:$16 sps:$4 sm:$0xff]   ;;  %v21613_v28 = vld [vmem:[%s29243_s1 + $0x4ac] ss:$16 sps:$4 sm:$0xff]  }
 0x223   : > { %v25128_v31 = vadd.f32 %v3619_v42, %v24960_v38  ;;  %v25131_v32 = vadd.f32 %v3692_v43, %v24963_v39  ;;  %6558 = vmatpush1.bf16.msra.mxu0 %v21593_v33  ;;  %6629 = vmatpush1.bf16.msra.mxu1 %v21596_v24  ;;  %v3621_v44 = vpop.f32.mrb[34].mxu0  ;;  %v3694_v45 = vpop.f32.mrb[34].mxu1  ;;  %v21608_v39 = vld [vmem:[%s29243_s1 + $0x4a0] ss:$16 sps:$4 sm:$0xff]   ;;  %v21675_v33 = vld [vmem:[%s29243_s1 + $0x5cc] ss:$16 sps:$4 sm:$0xff]  }
 0x224   : > { %7101 = vmatprep.subr.bf16.mxu0 %v21604_v29  ;;  %7172 = vmatprep.subr.bf16.mxu1 %v21607_v35  ;;  %v3623_v38 = vpop.f32.mrb[35].mxu0  ;;  %v3696_v46 = vpop.f32.mrb[35].mxu1  ;;  %v21670_v24 = vld [vmem:[%s29243_s1 + $0x5c0] ss:$16 sps:$4 sm:$0xff]   ;;  %v21678_v29 = vld [vmem:[%s29243_s1 + $0x5e4] ss:$16 sps:$4 sm:$0xff]  }
 0x225   : > { %v21681_v35 = vld [vmem:[%s29243_s1 + $0x5ec] ss:$16 sps:$4 sm:$0xff]   ;;  %v21676_v36 = vld [vmem:[%s29243_s1 + $0x5e0] ss:$16 sps:$4 sm:$0xff]   ;;  %v21679_v37 = vld [vmem:[%s29243_s1 + $0x5e8] ss:$16 sps:$4 sm:$0xff]  }
 0x226   : > { %6568 = vmatmul.mubr.bf16.vlgmr.msra.gmra.mrb[44].mxu0 %v21599_v25  ;;  %6639 = vmatmul.mubr.bf16.vlgmr.msra.gmra.mrb[44].mxu1 %v21599_v25  ;;  %v21673_v25 = vld [vmem:[%s29243_s1 + $0x5c8] ss:$16 sps:$4 sm:$0xff]   ;;  %v21690_v42 = vld [vmem:[%s29243_s1 + $0x60c] ss:$16 sps:$4 sm:$0xff]   ;;  %v21685_v45 = vld [vmem:[%s29243_s1 + $0x600] ss:$16 sps:$4 sm:$0xff]  }
 0x227   : > { %7102 = vmatpush1.bf16.msra.mxu0 %v21602_v30  ;;  %7173 = vmatpush1.bf16.msra.mxu1 %v21605_v16  ;;  %v21682_v30 = vld [vmem:[%s23407_s27 + $0x1c0] ss:$8 sps:$4 sm:$0xff]   ;;  %v21687_v16 = vld [vmem:[%s29243_s1 + $0x604] ss:$16 sps:$4 sm:$0xff]  }
 0x228   : > { %7103 = vmatprep.subr.bf16.mxu0 %v21610_v34  ;;  %7174 = vmatprep.subr.bf16.mxu1 %v21613_v28  ;;  %v21688_v34 = vld [vmem:[%s29243_s1 + $0x608] ss:$16 sps:$4 sm:$0xff]  }
 0x229   : > { %18051 = vmatprep.mubr.msk.bf16.mxu0 %vm669_vm0, %v21614_v48  ;;  %18055 = vmatprep.mubr.msk.bf16.mxu1 %vm669_vm0, %v21614_v48 }
 0x22b   : > { %7104 = vmatpush1.bf16.msra.mxu0 %v21608_v39  ;;  %7175 = vmatpush1.bf16.msra.mxu1 %v21611_v47 }
 0x22c   : > { %7105 = vmatprep.subr.bf16.mxu0 %v21619_v50  ;;  %7176 = vmatprep.subr.bf16.mxu1 %v21622_v51 }
 0x22e   : > { %6578 = vmatmul.mubr.bf16.gmra.mrb[48].mxu0 %v21616_v49  ;;  %6649 = vmatmul.mubr.bf16.gmra.mrb[48].mxu1 %v21616_v49 }
 0x22f   : > { %7106 = vmatpush1.bf16.msra.mxu0 %v21617_v52  ;;  %7177 = vmatpush1.bf16.msra.mxu1 %v21620_v53  ;;  %v21694_v52 = vld [vmem:[%s29243_s1 + $0x628] ss:$16 sps:$4 sm:$0xff]   ;;  %v21697_v53 = vld [vmem:[%s23407_s27 + $0x1d4] ss:$8 sps:$4 sm:$0xff]  }
 0x230   : > { %7107 = vmatprep.subr.bf16.mxu0 %v21625_v54  ;;  %7178 = vmatprep.subr.bf16.mxu1 %v21628_v55  ;;  %v21699_v54 = vld [vmem:[%s23407_s27 + $0x1d0] ss:$8 sps:$4 sm:$0xff]   ;;  %v21702_v55 = vld [vmem:[%s29243_s1 + $0x644] ss:$16 sps:$4 sm:$0xff]  }
 0x231   : > { %18052 = vmatprep.mubr.msk.bf16.mxu0 %vm669_vm0, %v21629_v58  ;;  %18056 = vmatprep.mubr.msk.bf16.mxu1 %vm669_vm0, %v21629_v58  ;;  %v21703_v58 = vld [vmem:[%s29243_s1 + $0x648] ss:$16 sps:$4 sm:$0xff]  }
 0x233   : > { %7108 = vmatpush1.bf16.msra.mxu0 %v21623_v56  ;;  %7179 = vmatpush1.bf16.msra.mxu1 %v21626_v57  ;;  %v21705_v56 = vld [vmem:[%s29243_s1 + $0x64c] ss:$16 sps:$4 sm:$0xff]   ;;  %v21700_v57 = vld [vmem:[%s29243_s1 + $0x640] ss:$16 sps:$4 sm:$0xff]  }
 0x234   : > { %7109 = vmatprep.subr.bf16.mxu0 %v21634_v60  ;;  %7180 = vmatprep.subr.bf16.mxu1 %v21637_v61  ;;  %v21708_v60 = vld [vmem:[%s29243_s1 + $0x664] ss:$16 sps:$4 sm:$0xff]   ;;  %v21711_v61 = vld [vmem:[%s29243_s1 + $0x66c] ss:$16 sps:$4 sm:$0xff]  }
 0x236   : > { %6588 = vmatmul.mubr.bf16.gmra.mrb[52].mxu0 %v21631_v59  ;;  %6659 = vmatmul.mubr.bf16.gmra.mrb[52].mxu1 %v21631_v59  ;;  %v4939_v59 = vlaneseq }
 0x237   : > { %7110 = vmatpush1.bf16.msra.mxu0 %v21632_v62  ;;  %7181 = vmatpush1.bf16.msra.mxu1 %v21635_v63  ;;  %v21706_v62 = vld [vmem:[%s29243_s1 + $0x660] ss:$16 sps:$4 sm:$0xff]   ;;  %v21709_v63 = vld [vmem:[%s29243_s1 + $0x668] ss:$16 sps:$4 sm:$0xff]  }
 0x238   : > { %7111 = vmatprep.subr.bf16.mxu0 %v21640_v1  ;;  %7182 = vmatprep.subr.bf16.mxu1 %v21643_v2  ;;  %v4940_v1 = vshrl.u32 %v4939_v59, 7  ;;  %v21717_v2 = vld [vmem:[%s29243_s1 + $0x684] ss:$16 sps:$4 sm:$0xff]  }
 0x239   : > { %18053 = vmatprep.mubr.msk.bf16.mxu0 %vm669_vm0, %v18001_v3  ;;  %18057 = vmatprep.mubr.msk.bf16.mxu1 %vm669_vm0, %v18001_v3  ;;  %v21720_v3 = vld [vmem:[%s29243_s1 + $0x68c] ss:$16 sps:$4 sm:$0xff]  }
 0x23b   : > { %7112 = vmatpush1.bf16.msra.mxu0 %v21638_v4  ;;  %7183 = vmatpush1.bf16.msra.mxu1 %v21641_v5  ;;  %v21714_v4 = vld [vmem:[%s23407_s27 + $0x1e0] ss:$8 sps:$4 sm:$0xff]   ;;  %v6767_v5 = vld [vmem:[%s23407_s27 + $0x1f0] sm:$0xff] }
 0x23c   : > { %7113 = vmatprep.subr.bf16.mxu0 %v21648_v6  ;;  %7184 = vmatprep.subr.bf16.mxu1 %v21651_v7  ;;  %v25355_v6 = vsub.s32 0, %v4940_v1  ;;  %v25357_v7 = vsub.s32 2, %v4940_v1 }
 0x23e   : > { %6598 = vmatmul.mubr.bf16.gmra.mrb[64].mxu0 %v18000_v10  ;;  %6669 = vmatmul.mubr.bf16.gmra.mrb[64].mxu1 %v18000_v10  ;;  %v4937_v10 = vld [vmem:[%s29247_s5] sm:$0xf] }
 0x23f   : > { %7114 = vmatpush1.bf16.msra.mxu0 %v21646_v8  ;;  %7185 = vmatpush1.bf16.msra.mxu1 %v21649_v9  ;;  %v21715_v8 = vld [vmem:[%s29243_s1 + $0x680] ss:$16 sps:$4 sm:$0xff]   ;;  %v21718_v9 = vld [vmem:[%s29243_s1 + $0x688] ss:$16 sps:$4 sm:$0xff]  }
 0x240   : > { %7115 = vmatprep.subr.bf16.mxu0 %v21654_v11  ;;  %7186 = vmatprep.subr.bf16.mxu1 %v21657_v14  ;;  %v21723_v11 = vld [vmem:[%s29243_s1 + $0x6a4] ss:$16 sps:$4 sm:$0xff]   ;;  %v21726_v14 = vld [vmem:[%s29243_s1 + $0x6ac] ss:$16 sps:$4 sm:$0xff]  }
 0x241   : > { %18162 = vmatprep.mubr.msk.bf16.mxu0 %vm669_vm0, %v21684_v17  ;;  %18166 = vmatprep.mubr.msk.bf16.mxu1 %vm669_vm0, %v21684_v17  ;;  %v25374_v17 = vsub.s32 1, %v4940_v1 }
 0x243   : > { %7116 = vmatpush1.bf16.msra.mxu0 %v21652_v19  ;;  %7187 = vmatpush1.bf16.msra.mxu1 %v21655_v20  ;;  %29257 = vst [vmem:[#allocation7_spill] sm:$0xff] %v25374_v17  ;;  %v18113_v19 = vcombine.high %v6767_v5, %v6767_v5  ;;  %v25377_v20 = vrot.slane %v4937_v10, %v25355_v6 }
 0x244   : > { %7117 = vmatprep.subr.bf16.mxu0 %v21660_v22  ;;  %7188 = vmatprep.subr.bf16.mxu1 %v21663_v12  ;;  %v25380_v22 = vrot.slane %v4937_v10, %v25357_v7  ;;  %v21721_v12 = vld [vmem:[%s29243_s1 + $0x6a0] ss:$16 sps:$4 sm:$0xff]  }
 0x247   : > { %7118 = vmatpush1.bf16.msra.mxu0 %v21658_v13  ;;  %7189 = vmatpush1.bf16.msra.mxu1 %v21661_v15  ;;  %v21724_v13 = vld [vmem:[%s29243_s1 + $0x6a8] ss:$16 sps:$4 sm:$0xff]   ;;  %v21731_v15 = vld [vmem:[%s29243_s1 + $0x6c4] ss:$16 sps:$4 sm:$0xff]  }
 0x248   : > { %7119 = vmatprep.subr.bf16.mxu0 %v21666_v27  ;;  %7190 = vmatprep.subr.bf16.mxu1 %v21669_v18  ;;  %v21734_v27 = vld [vmem:[%s29243_s1 + $0x6cc] ss:$16 sps:$4 sm:$0xff]  }
 0x24b   : > { %7120 = vmatpush1.bf16.msra.mxu0 %v21664_v21  ;;  %7191 = vmatpush1.bf16.msra.mxu1 %v21667_v23  ;;  %v25395_v23 = vrot.slane %v4937_v10, %v25374_v17 }
 0x24c   : > { %7121 = vmatprep.subr.bf16.mxu0 %v21672_v26  ;;  %7192 = vmatprep.subr.bf16.mxu1 %v21675_v33  ;;  %v25397_v26 = vsub.s32 3, %v4940_v1  ;;  %v21729_v33 = vld [vmem:[%s29243_s1 + $0x6c0] ss:$16 sps:$4 sm:$0xff]  }
 0x24e   : > { %29258 = vst [vmem:[#allocation8_spill] sm:$0xff] %v25397_v26 }
 0x24f   : > { %7122 = vmatpush1.bf16.msra.mxu0 %v21670_v24  ;;  %7193 = vmatpush1.bf16.msra.mxu1 %v21673_v25 }
 0x250   : > { %7123 = vmatprep.subr.bf16.mxu0 %v21678_v29  ;;  %7194 = vmatprep.subr.bf16.mxu1 %v21681_v35 }
 0x251   : > { %v4204_v43 = vpop.f32.mrb[36].mxu0  ;;  %v4277_v44 = vpop.f32.mrb[36].mxu1 }
 0x252   : > { %v25293_v28 = vadd.f32 %v4204_v43, %v25122_v40  ;;  %v25296_v38 = vadd.f32 %v4277_v44, %v25125_v41  ;;  %v4206_v46 = vpop.f32.mrb[37].mxu0  ;;  %v4279_v39 = vpop.f32.mrb[37].mxu1  ;;  %v21693_v40 = vld [vmem:[%s29243_s1 + $0x624] ss:$16 sps:$4 sm:$0xff]   ;;  %v21696_v41 = vld [vmem:[%s29243_s1 + $0x62c] ss:$16 sps:$4 sm:$0xff]   ;;  %v25416_v44 = vrot.slane %v4937_v10, %v25397_v26 }
 0x253   : > { %v25299_v47 = vadd.f32 %v4206_v46, %v25128_v31  ;;  %v25302_v48 = vadd.f32 %v4279_v39, %v25131_v32  ;;  %7124 = vmatpush1.bf16.msra.mxu0 %v21676_v36  ;;  %7195 = vmatpush1.bf16.msra.mxu1 %v21679_v37  ;;  %v4208_v49 = vpop.f32.mrb[38].mxu0  ;;  %v4281_v50 = vpop.f32.mrb[38].mxu1  ;;  %v21691_v32 = vld [vmem:[%s29243_s1 + $0x620] ss:$16 sps:$4 sm:$0xff]   ;;  %v18112_v36 = vcombine.low %v6767_v5, %v6767_v5  ;;  %v21767_v46 = vld [vmem:[%s23407_s27 + $0xc] ss:$8 sps:$4 sm:$0xff]  }
 0x254   : > { %7667 = vmatprep.subr.bf16.mxu0 %v21687_v16  ;;  %7738 = vmatprep.subr.bf16.mxu1 %v21690_v42  ;;  %v4210_v31 = vpop.f32.mrb[39].mxu0  ;;  %v4283_v51 = vpop.f32.mrb[39].mxu1  ;;  %v21732_v16 = vld [vmem:[%s29243_s1 + $0x6c8] ss:$16 sps:$4 sm:$0xff]   ;;  %v21737_v42 = vld [vmem:[%s29243_s1 + $0x6e4] ss:$16 sps:$4 sm:$0xff]  }
 0x255   : > { %v21738_v51 = vld [vmem:[%s29243_s1 + $0x6e8] ss:$16 sps:$4 sm:$0xff]  }
 0x256   : > { %7134 = vmatmul.mubr.bf16.vlgmr.msra.gmra.mrb[44].mxu0 %v21682_v30  ;;  %7205 = vmatmul.mubr.bf16.vlgmr.msra.gmra.mrb[44].mxu1 %v21682_v30 }
 0x257   : > { %7668 = vmatpush1.bf16.msra.mxu0 %v21685_v45  ;;  %7739 = vmatpush1.bf16.msra.mxu1 %v21688_v34  ;;  %v21735_v45 = vld [vmem:[%s29243_s1 + $0x6e0] ss:$16 sps:$4 sm:$0xff]   ;;  %v21740_v34 = vld [vmem:[%s29243_s1 + $0x6ec] ss:$16 sps:$4 sm:$0xff]  }
 0x258   : > { %7669 = vmatprep.subr.bf16.mxu0 %v21693_v40  ;;  %7740 = vmatprep.subr.bf16.mxu1 %v21696_v41 }
 0x259   : > { %18163 = vmatprep.mubr.msk.bf16.mxu0 %vm669_vm0, %v21697_v53  ;;  %18167 = vmatprep.mubr.msk.bf16.mxu1 %vm669_vm0, %v21697_v53  ;;  %v21746_v53 = vld [vmem:[%s29243_s1 + $0x70c] ss:$16 sps:$4 sm:$0xff]  }
 0x25b   : > { %7670 = vmatpush1.bf16.msra.mxu0 %v21691_v32  ;;  %7741 = vmatpush1.bf16.msra.mxu1 %v21694_v52  ;;  %v21743_v52 = vld [vmem:[%s29243_s1 + $0x704] ss:$16 sps:$4 sm:$0xff]  }
 0x25c   : > { %7671 = vmatprep.subr.bf16.mxu0 %v21702_v55  ;;  %7742 = vmatprep.subr.bf16.mxu1 %v21705_v56 }
 0x25e   : > { %7144 = vmatmul.mubr.bf16.gmra.mrb[48].mxu0 %v21699_v54  ;;  %7215 = vmatmul.mubr.bf16.gmra.mrb[48].mxu1 %v21699_v54 }
 0x25f   : > { %7672 = vmatpush1.bf16.msra.mxu0 %v21700_v57  ;;  %7743 = vmatpush1.bf16.msra.mxu1 %v21703_v58 }
 0x260   : > { %7673 = vmatprep.subr.bf16.mxu0 %v21708_v60  ;;  %7744 = vmatprep.subr.bf16.mxu1 %v21711_v61 }
 0x261   : > { %18164 = vmatprep.mubr.msk.bf16.mxu0 %vm669_vm0, %v21712_v0  ;;  %18168 = vmatprep.mubr.msk.bf16.mxu1 %vm669_vm0, %v21712_v0 }
 0x263   : > { %7674 = vmatpush1.bf16.msra.mxu0 %v21706_v62  ;;  %7745 = vmatpush1.bf16.msra.mxu1 %v21709_v63 }
 0x264   : > { %7675 = vmatprep.subr.bf16.mxu0 %v21717_v2  ;;  %7746 = vmatprep.subr.bf16.mxu1 %v21720_v3 }
 0x266   : > { %7154 = vmatmul.mubr.bf16.gmra.mrb[52].mxu0 %v21714_v4  ;;  %7225 = vmatmul.mubr.bf16.gmra.mrb[52].mxu1 %v21714_v4 }
 0x267   : > { %7676 = vmatpush1.bf16.msra.mxu0 %v21715_v8  ;;  %7747 = vmatpush1.bf16.msra.mxu1 %v21718_v9  ;;  %v21741_v8 = vld [vmem:[%s29243_s1 + $0x700] ss:$16 sps:$4 sm:$0xff]  }
 0x268   : > { %7677 = vmatprep.subr.bf16.mxu0 %v21723_v11  ;;  %7748 = vmatprep.subr.bf16.mxu1 %v21726_v14 }
 0x269   : > { %v4761_v18 = vpop.f32.mrb[0].mxu0  ;;  %v4834_v21 = vpop.f32.mrb[0].mxu1  ;;  %18165 = vmatprep.mubr.msk.bf16.mxu0 %vm669_vm0, %v18113_v19  ;;  %18169 = vmatprep.mubr.msk.bf16.mxu1 %vm669_vm0, %v18113_v19  ;;  %v21744_v19 = vld [vmem:[%s29243_s1 + $0x708] ss:$16 sps:$4 sm:$0xff]  }
 0x26a   : > { %v4959_v24 = vadd.f32 %v25377_v20, %v4761_v18  ;;  %v4961_v25 = vadd.f32 %v25380_v22, %v4834_v21  ;;  %v4763_v29 = vpop.f32.mrb[1].mxu0  ;;  %v4836_v35 = vpop.f32.mrb[1].mxu1  ;;  %v21747_v21 = vld [vmem:[%s29243_s1 + $0x720] ss:$16 sps:$4 sm:$0xff]  }
 0x26b   : > { %v4765_v37 = vpop.f32.mrb[2].mxu0  ;;  %v4838_v30 = vpop.f32.mrb[2].mxu1  ;;  %7678 = vmatpush1.bf16.msra.mxu0 %v21721_v12  ;;  %7749 = vmatpush1.bf16.msra.mxu1 %v21724_v13  ;;  %v25413_v43 = vadd.f32 %v25395_v23, %v4763_v29  ;;  %v25439_v57 = vadd.f32 %v25416_v44, %v4836_v35  ;;  %v21749_v12 = vld [vmem:[%s29243_s1 + $0x724] ss:$16 sps:$4 sm:$0xff]  }
 0x26c   : > { %7679 = vmatprep.subr.bf16.mxu0 %v21731_v15  ;;  %7750 = vmatprep.subr.bf16.mxu1 %v21734_v27  ;;  %v5023_v39 = vmul.f32 0.01, %v4959_v24  ;;  %v5025_v49 = vmul.f32 0.01, %v4961_v25  ;;  %v4963_v50 = vadd.f32 %v25377_v20, %v4765_v37  ;;  %v4965_v40 = vadd.f32 %v25380_v22, %v4838_v30  ;;  %v4767_v41 = vpop.f32.mrb[3].mxu0  ;;  %v4840_v31 = vpop.f32.mrb[3].mxu1 }
 0x26d   : > { %vm4991_vm1 = vcmp.ge.f32.partialorder %v4959_v24, 0.0  ;;  %vm4993_vm2 = vcmp.ge.f32.partialorder %v4961_v25, 0.0  ;;  %v4964_v32 = vadd.f32 %v25395_v23, %v4767_v41  ;;  %v5024_v56 = vmul.f32 0.01, %v25413_v43  ;;  %v21752_v27 = vld [vmem:[%s29243_s1 + $0x72c] ss:$16 sps:$4 sm:$0xff]  }
 0x26e   : > { %7164 = vmatmul.mubr.bf16.gmra.mrb[68].mxu0 %v18112_v36  ;;  %7235 = vmatmul.mubr.bf16.gmra.mrb[68].mxu1 %v18112_v36  ;;  %vm4995_vm3 = vcmp.ge.f32.partialorder %v4963_v50, 0.0  ;;  %v5027_v54 = vmul.f32 0.01, %v4963_v50  ;;  %vm4997_vm4 = vcmp.ge.f32.partialorder %v4965_v40, 0.0  ;;  %v5029_v55 = vmul.f32 0.01, %v4965_v40 }
 0x26f   : > { %7680 = vmatpush1.bf16.msra.mxu0 %v21729_v33  ;;  %7751 = vmatpush1.bf16.msra.mxu1 %v21732_v16  ;;  %vm4996_vm5 = vcmp.ge.f32.partialorder %v4964_v32, 0.0  ;;  %v5028_v58 = vmul.f32 0.01, %v4964_v32  ;;  %v5055_v59 = vsel %vm4991_vm1, %v4959_v24, %v5023_v39  ;;  %v5057_v60 = vsel %vm4993_vm2, %v4961_v25, %v5025_v49  ;;  %v21750_v37 = vld [vmem:[%s29243_s1 + $0x728] ss:$16 sps:$4 sm:$0xff]  }
 0x270   : > { %7681 = vmatprep.subr.bf16.mxu0 %v21737_v42  ;;  %7752 = vmatprep.subr.bf16.mxu1 %v21740_v34  ;;  %v25444_v61 = vsel %vm4995_vm3, %v4963_v50, %v5027_v54  ;;  %v25446_v62 = vsel %vm4997_vm4, %v4965_v40, %v5029_v55  ;;  %vm4992_vm6 = vcmp.ge.f32.partialorder %v25413_v43, 0.0  ;;  %v25461_v9 = vadd.f32 %v25416_v44, %v4840_v31  ;;  %v21755_v42 = vld [vmem:[%s29243_s1 + $0x744] ss:$16 sps:$4 sm:$0xff]   ;;  %v21753_v49 = vld [vmem:[%s29243_s1 + $0x740] ss:$16 sps:$4 sm:$0xff]  }
 0x271   : > { %18274 = vmatprep.mubr.msk.bf16.mxu0 %vm669_vm0, %v21767_v46  ;;  %v4771_v63 = vpop.f32.mrb[4].mxu0  ;;  %v4844_v0 = vpop.f32.mrb[4].mxu1  ;;  %18278 = vmatprep.mubr.msk.bf16.mxu1 %vm669_vm0, %v21767_v46  ;;  %v25451_v1 = vpack.c.bf16 %v25444_v61, %v5055_v59  ;;  %v25454_v2 = vpack.c.bf16 %v25446_v62, %v5057_v60  ;;  %v25471_v13 = vsel %vm4996_vm5, %v4964_v32, %v5028_v58  ;;  %vm4994_vm8 = vcmp.ge.f32.partialorder %v25439_v57, 0.0  ;;  %v21756_v31 = vld [vmem:[%s29243_s1 + $0x748] ss:$16 sps:$4 sm:$0xff]  }
 0x272   : > { %v4967_v3 = vadd.f32 %v25377_v20, %v4771_v63  ;;  %v4773_v4 = vpop.f32.mrb[5].mxu0  ;;  %v4846_v5 = vpop.f32.mrb[5].mxu1  ;;  %v5026_v18 = vmul.f32 0.01, %v25439_v57  ;;  %v5056_v33 = vsel %vm4992_vm6, %v25413_v43, %v5024_v56  ;;  %vm4998_vm9 = vcmp.ge.f32.partialorder %v25461_v9, 0.0 }
 0x273   : > { %7682 = vmatpush1.bf16.msra.mxu0 %v21735_v45  ;;  %v4968_v10 = vadd.f32 %v25395_v23, %v4773_v4  ;;  %v4775_v11 = vpop.f32.mrb[6].mxu0  ;;  %v4848_v14 = vpop.f32.mrb[6].mxu1  ;;  %7753 = vmatpush1.bf16.msra.mxu1 %v21738_v51  ;;  %v25485_v25 = vadd.f32 %v25416_v44, %v4846_v5  ;;  %v25492_v30 = vpack.c.bf16 %v25471_v13, %v5056_v33  ;;  %v21758_v43 = vld [vmem:[%s29243_s1 + $0x74c] ss:$16 sps:$4 sm:$0xff]   ;;  %v5030_v34 = vmul.f32 0.01, %v25461_v9 }
 0x274   : > { %7683 = vmatprep.subr.bf16.mxu0 %v21743_v52  ;;  %vm4999_vm7 = vcmp.ge.f32.partialorder %v4967_v3, 0.0  ;;  %v5031_v15 = vmul.f32 0.01, %v4967_v3  ;;  %7754 = vmatprep.subr.bf16.mxu1 %v21746_v53  ;;  %v4971_v29 = vadd.f32 %v25377_v20, %v4775_v11  ;;  %v4777_v35 = vpop.f32.mrb[7].mxu0  ;;  %v4850_v36 = vpop.f32.mrb[7].mxu1  ;;  %v25505_v46 = vadd.f32 %v25380_v22, %v4844_v0 }
 0x275   : > { %v5032_v24 = vmul.f32 0.01, %v4968_v10  ;;  %vm5000_vm10 = vcmp.ge.f32.partialorder %v4968_v10, 0.0  ;;  %v4972_v16 = vadd.f32 %v25395_v23, %v4777_v35  ;;  %v25511_v50 = vadd.f32 %v25380_v22, %v4848_v14  ;;  %v21761_v53 = vld [vmem:[%s29243_s1 + $0x764] ss:$16 sps:$4 sm:$0xff]  }
 0x276   : > { %v5063_v45 = vsel %vm4999_vm7, %v4967_v3, %v5031_v15  ;;  %vm5003_vm11 = vcmp.ge.f32.partialorder %v4971_v29, 0.0  ;;  %v5035_v39 = vmul.f32 0.01, %v4971_v29  ;;  %v25514_v41 = vadd.f32 %v25416_v44, %v4850_v36  ;;  %v21764_v0 = vld [vmem:[%s29243_s1 + $0x76c] ss:$16 sps:$4 sm:$0xff]  }
 0x277   : > { %7684 = vmatpush1.bf16.msra.mxu0 %v21741_v8  ;;  %7755 = vmatpush1.bf16.msra.mxu1 %v21744_v19  ;;  %vm5004_vm12 = vcmp.ge.f32.partialorder %v4972_v16, 0.0  ;;  %v5036_v40 = vmul.f32 0.01, %v4972_v16  ;;  %v5034_v51 = vmul.f32 0.01, %v25485_v25  ;;  %v25524_v54 = vsel %vm5000_vm10, %v4968_v10, %v5032_v24 }
 0x278   : > { %7685 = vmatprep.subr.bf16.mxu0 %v21749_v12  ;;  %7756 = vmatprep.subr.bf16.mxu1 %v21752_v27  ;;  %v25526_v55 = vsel %vm5003_vm11, %v4971_v29, %v5035_v39  ;;  %v25529_v56 = vpack.c.bf16 %v5063_v45, %v25444_v61  ;;  %vm5002_vm13 = vcmp.ge.f32.partialorder %v25485_v25, 0.0  ;;  %v21759_v10 = vld [vmem:[%s29243_s1 + $0x760] ss:$16 sps:$4 sm:$0xff]   ;;  %v25559_v19 = vmul.f32 0.01, %v25505_v46 }
 0x279   : > { %v4781_v32 = vpop.f32.mrb[8].mxu0  ;;  %v4854_v52 = vpop.f32.mrb[8].mxu1  ;;  %v25542_v3 = vsel %vm5004_vm12, %v4972_v16, %v5036_v40  ;;  %v25556_v14 = vpack.c.bf16 %v25526_v55, %v5063_v45  ;;  %v25562_v12 = vmul.f32 0.01, %v25511_v50  ;;  %v25565_v15 = vmul.f32 0.01, %v25514_v41 }
 0x27a   : > { %v25533_v58 = vadd.f32 %v25377_v20, %v4781_v32  ;;  %v25536_v59 = vadd.f32 %v25380_v22, %v4854_v52  ;;  %v4783_v60 = vpop.f32.mrb[9].mxu0  ;;  %v4856_v63 = vpop.f32.mrb[9].mxu1  ;;  %v25553_v11 = vpack.c.bf16 %v25542_v3, %v25524_v54  ;;  %v21762_v27 = vld [vmem:[%s29243_s1 + $0x768] ss:$16 sps:$4 sm:$0xff]   ;;  %v25576_v33 = vsel %vm4994_vm8, %v25439_v57, %v5026_v18  ;;  %v21773_v29 = vld [vmem:[%s29243_s1 + $0x78c] ss:$16 sps:$4 sm:$0xff]  }
 0x27b   : > { %7686 = vmatpush1.bf16.msra.mxu0 %v21747_v21  ;;  %7757 = vmatpush1.bf16.msra.mxu1 %v21750_v37  ;;  %v4976_v61 = vadd.f32 %v25395_v23, %v4783_v60  ;;  %v25546_v4 = vadd.f32 %v25416_v44, %v4856_v63  ;;  %v4785_v5 = vpop.f32.mrb[10].mxu0  ;;  %v4858_v8 = vpop.f32.mrb[10].mxu1  ;;  %v21770_v21 = vld [vmem:[%s29243_s1 + $0x784] ss:$16 sps:$4 sm:$0xff]   ;;  %vm5001_vm14 = vcmp.ge.f32.partialorder %v25505_v46, 0.0  ;;  %vm5005_vm15 = vcmp.ge.f32.partialorder %v25511_v50, 0.0 }
 0x27c   : > { %7687 = vmatprep.subr.bf16.mxu0 %v21755_v42  ;;  %7758 = vmatprep.subr.bf16.mxu1 %v21758_v43  ;;  %vm5006_vm1 = vcmp.ge.f32.partialorder %v25514_v41, 0.0  ;;  %vm5007_vm2 = vcmp.ge.f32.partialorder %v25533_v58, 0.0  ;;  %v25588_v57 = vsel %vm4998_vm9, %v25461_v9, %v5030_v34  ;;  %v25593_v18 = vsel %vm5002_vm13, %v25485_v25, %v5034_v51  ;;  %v4787_v16 = vpop.f32.mrb[11].mxu0  ;;  %v4860_v42 = vpop.f32.mrb[11].mxu1  ;;  %v21765_v43 = vld [vmem:[%s23407_s27 + $0x8] ss:$8 sps:$4 sm:$0xff]  }
 0x27d   : > { %v5040_v24 = vmul.f32 0.01, %v4976_v61  ;;  %v5039_v35 = vmul.f32 0.01, %v25533_v58  ;;  %vm5008_vm3 = vcmp.ge.f32.partialorder %v4976_v61, 0.0  ;;  %v4979_v36 = vadd.f32 %v25377_v20, %v4785_v5 }
 0x27e   : > { %v25598_v37 = vadd.f32 %v25380_v22, %v4858_v8  ;;  %vm5009_vm4 = vcmp.ge.f32.partialorder %v25536_v59, 0.0  ;;  %v25603_v9 = vmul.f32 0.01, %v25536_v59  ;;  %vm5010_vm5 = vcmp.ge.f32.partialorder %v25546_v4, 0.0  ;;  %v21768_v39 = vld [vmem:[%s29243_s1 + $0x780] ss:$16 sps:$4 sm:$0xff]  }
 0x27f   : > { %7688 = vmatpush1.bf16.msra.mxu0 %v21753_v49  ;;  %7759 = vmatpush1.bf16.msra.mxu1 %v21756_v31  ;;  %v4980_v25 = vadd.f32 %v25395_v23, %v4787_v16  ;;  %v25611_v49 = vmul.f32 0.01, %v25546_v4  ;;  %vm5011_vm6 = vcmp.ge.f32.partialorder %v4979_v36, 0.0  ;;  %v5043_v40 = vmul.f32 0.01, %v4979_v36 }
 0x280   : > { %7689 = vmatprep.subr.bf16.mxu0 %v21761_v53  ;;  %7760 = vmatprep.subr.bf16.mxu1 %v21764_v0  ;;  %v25614_v31 = vadd.f32 %v25416_v44, %v4860_v42  ;;  %vm5013_vm7 = vcmp.ge.f32.partialorder %v25598_v37, 0.0  ;;  %v21771_v32 = vld [vmem:[%s29243_s1 + $0x788] ss:$16 sps:$4 sm:$0xff]   ;;  %v25621_v52 = vsel %vm5008_vm3, %v4976_v61, %v5040_v24  ;;  %v25624_v53 = vmul.f32 0.01, %v25598_v37 }
 0x281   : > { %v4791_v45 = vpop.f32.mrb[40].mxu0  ;;  %v4864_v34 = vpop.f32.mrb[40].mxu1  ;;  %vm5012_vm8 = vcmp.ge.f32.partialorder %v4980_v25, 0.0  ;;  %v5044_v51 = vmul.f32 0.01, %v4980_v25  ;;  %v25634_v61 = vsel %vm5007_vm2, %v25533_v58, %v5039_v35  ;;  %v25649_v58 = vsel %vm5011_vm6, %v4979_v36, %v5043_v40 }
 0x282   : > { %v4929_v60 = vadd.f32 %v4791_v45, %v25293_v28  ;;  %v4931_v63 = vadd.f32 %v4864_v34, %v25296_v38  ;;  %v4793_v0 = vpop.f32.mrb[41].mxu0  ;;  %v4866_v5 = vpop.f32.mrb[41].mxu1  ;;  %v21776_v8 = vld [vmem:[%s29243_s1 + $0x7a4] ss:$16 sps:$4 sm:$0xff]   ;;  %v21774_v28 = vld [vmem:[%s29243_s1 + $0x7a0] ss:$16 sps:$4 sm:$0xff]  }
 0x283   : > { %7690 = vmatpush1.bf16.msra.mxu0 %v21759_v10  ;;  %7761 = vmatpush1.bf16.msra.mxu1 %v21762_v27  ;;  %v4930_v10 = vadd.f32 %v4793_v0, %v25299_v47  ;;  %v4932_v24 = vadd.f32 %v4866_v5, %v25302_v48  ;;  %v21779_v38 = vld [vmem:[%s29243_s1 + $0x7ac] ss:$16 sps:$4 sm:$0xff]   ;;  %v4868_v16 = vpop.f32.mrb[42].mxu1  ;;  %v25646_v42 = vsel %vm5012_vm8, %v4980_v25, %v5044_v51  ;;  %v21785_v35 = vld [vmem:[%s29243_s1 + $0x7c4] ss:$16 sps:$4 sm:$0xff]   ;;  %vm5014_vm9 = vcmp.ge.f32.partialorder %v25614_v31, 0.0 }
 0x284   : > { %8233 = vmatprep.subr.bf16.mxu0 %v21770_v21  ;;  %8304 = vmatprep.subr.bf16.mxu1 %v21773_v29  ;;  %v21780_v27 = vld [vmem:[%s23407_s27 + $0x1c] ss:$8 sps:$4 sm:$0xff]   ;;  %v4795_v21 = vpop.f32.mrb[42].mxu0  ;;  %v4983_v47 = vadd.f32 %v25377_v20, %v4929_v60  ;;  %v25653_v48 = vadd.f32 %v25380_v22, %v4931_v63  ;;  %v21777_v29 = vld [vmem:[%s29243_s1 + $0x7a8] ss:$16 sps:$4 sm:$0xff]   ;;  %v4870_v25 = vpop.f32.mrb[43].mxu1  ;;  %v25663_v36 = vpack.c.bf16 %v25646_v42, %v25621_v52 }
 0x285   : > { %v4797_v45 = vpop.f32.mrb[43].mxu0  ;;  %v25667_v20 = vpack.c.bf16 %v25649_v58, %v25634_v61  ;;  %v5046_v22 = vmul.f32 0.01, %v25614_v31  ;;  %v4984_v34 = vadd.f32 %v25395_v23, %v4930_v10  ;;  %v25672_v40 = vadd.f32 %v25416_v44, %v4932_v24  ;;  %v21788_v51 = vld [vmem:[%s29243_s1 + $0x7cc] ss:$16 sps:$4 sm:$0xff]  }
 0x286   : > { %7700 = vmatmul.mubr.bf16.vlgmr.msra.gmra.mrb[44].mxu0 %v21765_v43  ;;  %7771 = vmatmul.mubr.bf16.vlgmr.msra.gmra.mrb[44].mxu1 %v21765_v43  ;;  %v25679_v60 = vpack.c.bf16 %v25588_v57, %v25576_v33  ;;  %vm5015_vm10 = vcmp.ge.f32.partialorder %v4983_v47, 0.0  ;;  %v5047_v63 = vmul.f32 0.01, %v4983_v47  ;;  %vm5017_vm11 = vcmp.ge.f32.partialorder %v25653_v48, 0.0  ;;  %v21782_v33 = vld [vmem:[%s23407_s27 + $0x18] ss:$8 sps:$4 sm:$0xff]  }
 0x287   : > { %8234 = vmatpush1.bf16.msra.mxu0 %v21768_v39  ;;  %8305 = vmatpush1.bf16.msra.mxu1 %v21771_v32  ;;  %v5049_v23 = vmul.f32 0.01, %v25653_v48  ;;  %vm5016_vm12 = vcmp.ge.f32.partialorder %v4984_v34, 0.0  ;;  %v5048_v44 = vmul.f32 0.01, %v4984_v34  ;;  %vm5018_vm13 = vcmp.ge.f32.partialorder %v25672_v40, 0.0 }
 0x288   : > { %8235 = vmatprep.subr.bf16.mxu0 %v21776_v8  ;;  %8306 = vmatprep.subr.bf16.mxu1 %v21779_v38  ;;  %v21783_v43 = vld [vmem:[%s29243_s1 + $0x7c0] ss:$16 sps:$4 sm:$0xff]   ;;  %v5070_v39 = vsel %vm5006_vm1, %v25514_v41, %v25565_v15  ;;  %v5065_v32 = vsel %vm5001_vm14, %v25505_v46, %v25559_v19  ;;  %v5069_v0 = vsel %vm5005_vm15, %v25511_v50, %v25562_v12  ;;  %v21786_v41 = vld [vmem:[%s29243_s1 + $0x7c8] ss:$16 sps:$4 sm:$0xff]   ;;  %v21791_v12 = vld [vmem:[%s29243_s1 + $0x7e4] ss:$16 sps:$4 sm:$0xff]  }
 0x289   : > { %18275 = vmatprep.mubr.msk.bf16.mxu0 %vm669_vm0, %v21780_v27  ;;  %18279 = vmatprep.mubr.msk.bf16.mxu1 %vm669_vm0, %v21780_v27  ;;  %v5074_v5 = vsel %vm5010_vm5, %v25546_v4, %v25611_v49  ;;  %v25711_v15 = vpack.c.bf16 %v5070_v39, %v25593_v18  ;;  %v25713_v46 = vpack.c.bf16 %v5069_v0, %v5065_v32  ;;  %v5050_v4 = vmul.f32 0.01, %v25672_v40  ;;  %v21794_v49 = vld [vmem:[%s29243_s1 + $0x7ec] ss:$16 sps:$4 sm:$0xff]   ;;  %v21789_v10 = vld [vmem:[%s29243_s1 + $0x7e0] ss:$16 sps:$4 sm:$0xff]  }
 0x28a   : > { %v25716_v19 = vpack.c.bf16 %v5065_v32, %v25446_v62  ;;  %v5078_v50 = vsel %vm5014_vm9, %v25614_v31, %v5046_v22  ;;  %v5073_v62 = vsel %vm5009_vm4, %v25536_v59, %v25603_v9  ;;  %v5077_v31 = vsel %vm5013_vm7, %v25598_v37, %v25624_v53  ;;  %v21795_v24 = vld [vmem:[%s23407_s27 + $0x2c] ss:$8 sps:$4 sm:$0xff]   ;;  %v21792_v37 = vld [vmem:[%s29243_s1 + $0x7e8] ss:$16 sps:$4 sm:$0xff]   ;;  %v21804_v22 = vld [vmem:[%s29243_s1 + $0x820] ss:$16 sps:$4 sm:$0xff]  }
 0x28b   : > { %8236 = vmatpush1.bf16.msra.mxu0 %v21774_v28  ;;  %8307 = vmatpush1.bf16.msra.mxu1 %v21777_v29  ;;  %v25728_v8 = vpack.c.bf16 %v5078_v50, %v5074_v5  ;;  %v25742_v28 = vpack.c.bf16 %v5077_v31, %v5073_v62  ;;  %v25746_v38 = vpack.c.bf16 %v25524_v54, %v25471_v13  ;;  %v21800_v13 = vld [vmem:[%s29243_s1 + $0x804] ss:$16 sps:$4 sm:$0xff]   ;;  %v21803_v53 = vld [vmem:[%s29243_s1 + $0x80c] ss:$16 sps:$4 sm:$0xff]   ;;  %v21798_v29 = vld [vmem:[%s29243_s1 + $0x800] ss:$16 sps:$4 sm:$0xff]  }
 0x28c   : > { %8237 = vmatprep.subr.bf16.mxu0 %v21785_v35  ;;  %8308 = vmatprep.subr.bf16.mxu1 %v21788_v51  ;;  %v25750_v59 = vpack.c.bf16 %v25621_v52, %v25542_v3  ;;  %v25754_v9 = vpack.c.bf16 %v25634_v61, %v25526_v55  ;;  %v5080_v54 = vsel %vm5016_vm12, %v4984_v34, %v5048_v44  ;;  %v21806_v35 = vld [vmem:[%s29243_s1 + $0x824] ss:$16 sps:$4 sm:$0xff]   ;;  %v21809_v45 = vld [vmem:[%s29243_s1 + $0x82c] ss:$16 sps:$4 sm:$0xff]   ;;  %v21807_v34 = vld [vmem:[%s29243_s1 + $0x828] ss:$16 sps:$4 sm:$0xff]  }
 0x28d   : > { %v5079_v3 = vsel %vm5015_vm10, %v4983_v47, %v5047_v63  ;;  %v25766_v52 = vpack.c.bf16 %v25593_v18, %v25588_v57  ;;  %v25768_v55 = vpack.c.bf16 %v5074_v5, %v5070_v39  ;;  %v25774_v61 = vpack.c.bf16 %v5080_v54, %v25646_v42  ;;  %v21797_v57 = vld [vmem:[%s23407_s27 + $0x28] ss:$8 sps:$4 sm:$0xff]   ;;  %v7333_v18 = vld [vmem:[%s23407_s27 + $0x38] sm:$0xff]  ;;  %v21850_v39 = vld [vmem:[%s23407_s27 + $0x4c] ss:$8 sps:$4 sm:$0xff]  }
 0x28e   : > { %7710 = vmatmul.mubr.bf16.gmra.mrb[48].mxu0 %v21782_v33  ;;  %7781 = vmatmul.mubr.bf16.gmra.mrb[48].mxu1 %v21782_v33  ;;  %v25777_v27 = vpack.c.bf16 %v5079_v3, %v25649_v58  ;;  %v25779_v21 = vpack.c.bf16 %v5073_v62, %v5069_v0  ;;  %v5082_v16 = vsel %vm5018_vm13, %v25672_v40, %v5050_v4  ;;  %v21814_v40 = vld [vmem:[%s29243_s1 + $0x844] ss:$16 sps:$4 sm:$0xff]   ;;  %v21812_v51 = vld [vmem:[%s29243_s1 + $0x840] ss:$16 sps:$4 sm:$0xff]   ;;  %v21817_v63 = vld [vmem:[%s29243_s1 + $0x84c] ss:$16 sps:$4 sm:$0xff]  }
 0x28f   : > { %8238 = vmatpush1.bf16.msra.mxu0 %v21783_v43  ;;  %8309 = vmatpush1.bf16.msra.mxu1 %v21786_v41  ;;  %v5081_v47 = vsel %vm5017_vm11, %v25653_v48, %v5049_v23  ;;  %v25790_v42 = vpack.c.bf16 %v5082_v16, %v5078_v50  ;;  %v21801_v48 = vld [vmem:[%s29243_s1 + $0x808] ss:$16 sps:$4 sm:$0xff]   ;;  %v18225_v25 = vcombine.high %v7333_v18, %v7333_v18  ;;  %v21820_v33 = vld [vmem:[%s29243_s1 + $0x864] ss:$16 sps:$4 sm:$0xff]   ;;  %v21823_v43 = vld [vmem:[%s29243_s1 + $0x86c] ss:$16 sps:$4 sm:$0xff]  }
 0x290   : > { %8239 = vmatprep.subr.bf16.mxu0 %v21791_v12  ;;  %8310 = vmatprep.subr.bf16.mxu1 %v21794_v49  ;;  %v25792_v58 = vpack.c.bf16 %v5081_v47, %v5077_v31  ;;  %v18224_v23 = vcombine.low %v7333_v18, %v7333_v18  ;;  %v21815_v44 = vld [vmem:[%s29243_s1 + $0x848] ss:$16 sps:$4 sm:$0xff]   ;;  %v21818_v32 = vld [vmem:[%s29243_s1 + $0x860] ss:$16 sps:$4 sm:$0xff]   ;;  %v21826_v5 = vld [vmem:[%s29243_s1 + $0x884] ss:$16 sps:$4 sm:$0xff]  }
 0x291   : > { %18276 = vmatprep.mubr.msk.bf16.mxu0 %vm669_vm0, %v21795_v24  ;;  %18280 = vmatprep.mubr.msk.bf16.mxu1 %vm669_vm0, %v21795_v24  ;;  %v21821_v0 = vld [vmem:[%s29243_s1 + $0x868] ss:$16 sps:$4 sm:$0xff]   ;;  %v21824_v41 = vld [vmem:[%s29243_s1 + $0x880] ss:$16 sps:$4 sm:$0xff]   ;;  %v21829_v50 = vld [vmem:[%s29243_s1 + $0x88c] ss:$16 sps:$4 sm:$0xff]  }
 0x292   : > { %v21827_v4 = vld [vmem:[%s29243_s1 + $0x888] ss:$16 sps:$4 sm:$0xff]   ;;  %v21832_v12 = vld [vmem:[%s29243_s1 + $0x8a4] ss:$16 sps:$4 sm:$0xff]   ;;  %v21835_v49 = vld [vmem:[%s29243_s1 + $0x8ac] ss:$16 sps:$4 sm:$0xff]  }
 0x293   : > { %8240 = vmatpush1.bf16.msra.mxu0 %v21789_v10  ;;  %8311 = vmatpush1.bf16.msra.mxu1 %v21792_v37  ;;  %v21830_v62 = vld [vmem:[%s29243_s1 + $0x8a0] ss:$16 sps:$4 sm:$0xff]   ;;  %v21833_v31 = vld [vmem:[%s29243_s1 + $0x8a8] ss:$16 sps:$4 sm:$0xff]   ;;  %v21838_v10 = vld [vmem:[%s29243_s1 + $0x8c4] ss:$16 sps:$4 sm:$0xff]  }
 0x294   : > { %8241 = vmatprep.subr.bf16.mxu0 %v21800_v13  ;;  %8312 = vmatprep.subr.bf16.mxu1 %v21803_v53  ;;  %v21836_v24 = vld [vmem:[%s29243_s1 + $0x8c0] ss:$16 sps:$4 sm:$0xff]   ;;  %v21841_v37 = vld [vmem:[%s29243_s1 + $0x8cc] ss:$16 sps:$4 sm:$0xff]   ;;  %v21839_v13 = vld [vmem:[%s29243_s1 + $0x8c8] ss:$16 sps:$4 sm:$0xff]  }
 0x295   : > { %v21844_v54 = vld [vmem:[%s29243_s1 + $0x8e4] ss:$16 sps:$4 sm:$0xff]   ;;  %v21847_v3 = vld [vmem:[%s29243_s1 + $0x8ec] ss:$16 sps:$4 sm:$0xff]   ;;  %v21842_v53 = vld [vmem:[%s29243_s1 + $0x8e0] ss:$16 sps:$4 sm:$0xff]  }
 0x296   : > { %7720 = vmatmul.mubr.bf16.gmra.mrb[52].mxu0 %v21797_v57  ;;  %7791 = vmatmul.mubr.bf16.gmra.mrb[52].mxu1 %v21797_v57  ;;  %v21845_v57 = vld [vmem:[%s29243_s1 + $0x8e8] ss:$16 sps:$4 sm:$0xff]   ;;  %v21853_v16 = vld [vmem:[%s29243_s1 + $0x904] ss:$16 sps:$4 sm:$0xff]   ;;  %v21851_v47 = vld [vmem:[%s29243_s1 + $0x900] ss:$16 sps:$4 sm:$0xff]  }
 0x297   : > { %8242 = vmatpush1.bf16.msra.mxu0 %v21798_v29  ;;  %8313 = vmatpush1.bf16.msra.mxu1 %v21801_v48  ;;  %v21848_v18 = vld [vmem:[%s23407_s27 + $0x48] ss:$8 sps:$4 sm:$0xff]   ;;  %v21856_v29 = vld [vmem:[%s29243_s1 + $0x90c] ss:$16 sps:$4 sm:$0xff]  }
 0x298   : > { %8243 = vmatprep.subr.bf16.mxu0 %v21806_v35  ;;  %8314 = vmatprep.subr.bf16.mxu1 %v21809_v45  ;;  %v21854_v45 = vld [vmem:[%s29243_s1 + $0x908] ss:$16 sps:$4 sm:$0xff]  }
 0x299   : > { %18277 = vmatprep.mubr.msk.bf16.mxu0 %vm669_vm0, %v18225_v25  ;;  %18281 = vmatprep.mubr.msk.bf16.mxu1 %vm669_vm0, %v18225_v25 }
 0x29b   : > { %8244 = vmatpush1.bf16.msra.mxu0 %v21804_v22  ;;  %8315 = vmatpush1.bf16.msra.mxu1 %v21807_v34  ;;  %v21859_v34 = vld [vmem:[%s29243_s1 + $0x924] ss:$16 sps:$4 sm:$0xff]  }
 0x29c   : > { %8245 = vmatprep.subr.bf16.mxu0 %v21814_v40  ;;  %8316 = vmatprep.subr.bf16.mxu1 %v21817_v63  ;;  %v21862_v63 = vld [vmem:[%s29243_s1 + $0x92c] ss:$16 sps:$4 sm:$0xff]  }
 0x29e   : > { %7730 = vmatmul.mubr.bf16.gmra.mrb[72].mxu0 %v18224_v23  ;;  %7801 = vmatmul.mubr.bf16.gmra.mrb[72].mxu1 %v18224_v23  ;;  %v21863_v23 = vld [vmem:[%s23407_s27 + $0x5c] ss:$8 sps:$4 sm:$0xff]  }
 0x29f   : > { %8246 = vmatpush1.bf16.msra.mxu0 %v21812_v51  ;;  %8317 = vmatpush1.bf16.msra.mxu1 %v21815_v44 }
 0x2a0   : > { %8247 = vmatprep.subr.bf16.mxu0 %v21820_v33  ;;  %8318 = vmatprep.subr.bf16.mxu1 %v21823_v43  ;;  %v21857_v43 = vld [vmem:[%s29243_s1 + $0x920] ss:$16 sps:$4 sm:$0xff]  }
 0x2a1   : > { %18386 = vmatprep.mubr.msk.bf16.mxu0 %vm669_vm0, %v21850_v39  ;;  %18390 = vmatprep.mubr.msk.bf16.mxu1 %vm669_vm0, %v21850_v39  ;;  %v21860_v39 = vld [vmem:[%s29243_s1 + $0x928] ss:$16 sps:$4 sm:$0xff]  }
 0x2a3   : > { %8248 = vmatpush1.bf16.msra.mxu0 %v21818_v32  ;;  %8319 = vmatpush1.bf16.msra.mxu1 %v21821_v0  ;;  %v21865_v32 = vld [vmem:[%s23407_s27 + $0x58] ss:$8 sps:$4 sm:$0xff]   ;;  %v21868_v0 = vld [vmem:[%s29243_s1 + $0x944] ss:$16 sps:$4 sm:$0xff]  }
 0x2a4   : > { %8249 = vmatprep.subr.bf16.mxu0 %v21826_v5  ;;  %8320 = vmatprep.subr.bf16.mxu1 %v21829_v50  ;;  %v21866_v5 = vld [vmem:[%s29243_s1 + $0x940] ss:$16 sps:$4 sm:$0xff]   ;;  %v21869_v50 = vld [vmem:[%s29243_s1 + $0x948] ss:$16 sps:$4 sm:$0xff]  }
 0x2a7   : > { %8250 = vmatpush1.bf16.msra.mxu0 %v21824_v41  ;;  %8321 = vmatpush1.bf16.msra.mxu1 %v21827_v4  ;;  %v21871_v41 = vld [vmem:[%s29243_s1 + $0x94c] ss:$16 sps:$4 sm:$0xff]   ;;  %v21874_v4 = vld [vmem:[%s29243_s1 + $0x964] ss:$16 sps:$4 sm:$0xff]  }
 0x2a8   : > { %8251 = vmatprep.subr.bf16.mxu0 %v21832_v12  ;;  %8322 = vmatprep.subr.bf16.mxu1 %v21835_v49  ;;  %v21877_v12 = vld [vmem:[%s29243_s1 + $0x96c] ss:$16 sps:$4 sm:$0xff]  }
 0x2a9   : > { %v21878_v49 = vld [vmem:[%s23407_s27 + $0x6c] ss:$8 sps:$4 sm:$0xff]  }
 0x2ab   : > { %8252 = vmatpush1.bf16.msra.mxu0 %v21830_v62  ;;  %8323 = vmatpush1.bf16.msra.mxu1 %v21833_v31  ;;  %v21872_v62 = vld [vmem:[%s29243_s1 + $0x960] ss:$16 sps:$4 sm:$0xff]   ;;  %v21875_v31 = vld [vmem:[%s29243_s1 + $0x968] ss:$16 sps:$4 sm:$0xff]  }
 0x2ac   : > { %8253 = vmatprep.subr.bf16.mxu0 %v21838_v10  ;;  %8324 = vmatprep.subr.bf16.mxu1 %v21841_v37  ;;  %v21883_v10 = vld [vmem:[%s29243_s1 + $0x984] ss:$16 sps:$4 sm:$0xff]   ;;  %v21880_v37 = vld [vmem:[%s23407_s27 + $0x68] ss:$8 sps:$4 sm:$0xff]  }
 0x2af   : > { %8254 = vmatpush1.bf16.msra.mxu0 %v21836_v24  ;;  %8325 = vmatpush1.bf16.msra.mxu1 %v21839_v13  ;;  %v21886_v24 = vld [vmem:[%s29243_s1 + $0x98c] ss:$16 sps:$4 sm:$0xff]  }
 0x2b0   : > { %8255 = vmatprep.subr.bf16.mxu0 %v21844_v54  ;;  %8326 = vmatprep.subr.bf16.mxu1 %v21847_v3  ;;  %v7899_v13 = vld [vmem:[%s23407_s27 + $0x78] sm:$0xff]  ;;  %v21881_v54 = vld [vmem:[%s29243_s1 + $0x980] ss:$16 sps:$4 sm:$0xff]  }
 0x2b1   : > { %v25900_v48 = vpop.f32.mrb[56].mxu0  ;;  %v25902_v35 = vpop.f32.mrb[56].mxu1  ;;  %v21884_v3 = vld [vmem:[%s29243_s1 + $0x988] ss:$16 sps:$4 sm:$0xff]  }
 0x2b2   : > { %v25907_v25 = vpop.f32.mrb[57].mxu0  ;;  %v25909_v22 = vpop.f32.mrb[57].mxu1 }
 0x2b3   : > { %8256 = vmatpush1.bf16.msra.mxu0 %v21842_v53  ;;  %v5527_v40 = vpop.f32.mrb[58].mxu0  ;;  %v5598_v51 = vpop.f32.mrb[58].mxu1  ;;  %8327 = vmatpush1.bf16.msra.mxu1 %v21845_v57  ;;  %v21889_v53 = vld [vmem:[%s29243_s1 + $0x9a4] ss:$16 sps:$4 sm:$0xff]   ;;  %v21892_v57 = vld [vmem:[%s29243_s1 + $0x9ac] ss:$16 sps:$4 sm:$0xff]  }
 0x2b4   : > { %8799 = vmatprep.subr.bf16.mxu0 %v21853_v16  ;;  %v5528_v44 = vpop.f32.mrb[59].mxu0  ;;  %v5599_v33 = vpop.f32.mrb[59].mxu1  ;;  %8870 = vmatprep.subr.bf16.mxu1 %v21856_v29  ;;  %v21887_v16 = vld [vmem:[%s29243_s1 + $0x9a0] ss:$16 sps:$4 sm:$0xff]   ;;  %v21897_v29 = vld [vmem:[%s29243_s1 + $0x9c4] ss:$16 sps:$4 sm:$0xff]   ;;  %v18336_v40 = vcombine.low %v7899_v13, %v7899_v13 }
 0x2b5   : > { %v21898_v51 = vld [vmem:[%s29243_s1 + $0x9c8] ss:$16 sps:$4 sm:$0xff]   ;;  %v21933_v44 = vld [vmem:[%s23407_s27 + $0x8c] ss:$8 sps:$4 sm:$0xff]   ;;  %v21901_v33 = vld [vmem:[%s29243_s1 + $0x9e0] ss:$16 sps:$4 sm:$0xff]  }
 0x2b6   : > { %8266 = vmatmul.mubr.bf16.vlgmr.msra.gmra.mrb[44].mxu0 %v21848_v18  ;;  %8337 = vmatmul.mubr.bf16.vlgmr.msra.gmra.mrb[44].mxu1 %v21848_v18  ;;  %v18337_v18 = vcombine.high %v7899_v13, %v7899_v13  ;;  %v21925_v13 = vld [vmem:[%s29243_s1 + $0xa60] ss:$16 sps:$4 sm:$0xff]  }
 0x2b7   : > { %8800 = vmatpush1.bf16.msra.mxu0 %v21851_v47  ;;  %8871 = vmatpush1.bf16.msra.mxu1 %v21854_v45  ;;  %v21890_v47 = vld [vmem:[%s29243_s1 + $0x9a8] ss:$16 sps:$4 sm:$0xff]   ;;  %v21895_v45 = vld [vmem:[%s29243_s1 + $0x9c0] ss:$16 sps:$4 sm:$0xff]  }
 0x2b8   : > { %8801 = vmatprep.subr.bf16.mxu0 %v21859_v34  ;;  %8872 = vmatprep.subr.bf16.mxu1 %v21862_v63  ;;  %v21900_v34 = vld [vmem:[%s29243_s1 + $0x9cc] ss:$16 sps:$4 sm:$0xff]   ;;  %v21903_v63 = vld [vmem:[%s29243_s1 + $0x9e4] ss:$16 sps:$4 sm:$0xff]  }
 0x2b9   : > { %18387 = vmatprep.mubr.msk.bf16.mxu0 %vm669_vm0, %v21863_v23  ;;  %18391 = vmatprep.mubr.msk.bf16.mxu1 %vm669_vm0, %v21863_v23  ;;  %v21906_v23 = vld [vmem:[%s29243_s1 + $0x9ec] ss:$16 sps:$4 sm:$0xff]  }
 0x2bb   : > { %8802 = vmatpush1.bf16.msra.mxu0 %v21857_v43  ;;  %8873 = vmatpush1.bf16.msra.mxu1 %v21860_v39  ;;  %v21904_v43 = vld [vmem:[%s29243_s1 + $0x9e8] ss:$16 sps:$4 sm:$0xff]   ;;  %v21909_v39 = vld [vmem:[%s29243_s1 + $0xa04] ss:$16 sps:$4 sm:$0xff]  }
 0x2bc   : > { %8803 = vmatprep.subr.bf16.mxu0 %v21868_v0  ;;  %8874 = vmatprep.subr.bf16.mxu1 %v21871_v41  ;;  %v21907_v0 = vld [vmem:[%s29243_s1 + $0xa00] ss:$16 sps:$4 sm:$0xff]   ;;  %v21915_v41 = vld [vmem:[%s29243_s1 + $0xa24] ss:$16 sps:$4 sm:$0xff]  }
 0x2be   : > { %8276 = vmatmul.mubr.bf16.gmra.mrb[48].mxu0 %v21865_v32  ;;  %8347 = vmatmul.mubr.bf16.gmra.mrb[48].mxu1 %v21865_v32  ;;  %v21912_v32 = vld [vmem:[%s29243_s1 + $0xa0c] ss:$16 sps:$4 sm:$0xff]  }
 0x2bf   : > { %8804 = vmatpush1.bf16.msra.mxu0 %v21866_v5  ;;  %8875 = vmatpush1.bf16.msra.mxu1 %v21869_v50  ;;  %v21910_v5 = vld [vmem:[%s29243_s1 + $0xa08] ss:$16 sps:$4 sm:$0xff]   ;;  %v21918_v50 = vld [vmem:[%s29243_s1 + $0xa2c] ss:$16 sps:$4 sm:$0xff]  }
 0x2c0   : > { %8805 = vmatprep.subr.bf16.mxu0 %v21874_v4  ;;  %8876 = vmatprep.subr.bf16.mxu1 %v21877_v12  ;;  %v21913_v4 = vld [vmem:[%s29243_s1 + $0xa20] ss:$16 sps:$4 sm:$0xff]   ;;  %v21916_v12 = vld [vmem:[%s29243_s1 + $0xa28] ss:$16 sps:$4 sm:$0xff]  }
 0x2c1   : > { %18388 = vmatprep.mubr.msk.bf16.mxu0 %vm669_vm0, %v21878_v49  ;;  %18392 = vmatprep.mubr.msk.bf16.mxu1 %vm669_vm0, %v21878_v49  ;;  %v21921_v49 = vld [vmem:[%s29243_s1 + $0xa44] ss:$16 sps:$4 sm:$0xff]  }
 0x2c3   : > { %8806 = vmatpush1.bf16.msra.mxu0 %v21872_v62  ;;  %8877 = vmatpush1.bf16.msra.mxu1 %v21875_v31  ;;  %v21924_v62 = vld [vmem:[%s29243_s1 + $0xa4c] ss:$16 sps:$4 sm:$0xff]   ;;  %v21919_v31 = vld [vmem:[%s29243_s1 + $0xa40] ss:$16 sps:$4 sm:$0xff]  }
 0x2c4   : > { %8807 = vmatprep.subr.bf16.mxu0 %v21883_v10  ;;  %8878 = vmatprep.subr.bf16.mxu1 %v21886_v24  ;;  %v21922_v10 = vld [vmem:[%s29243_s1 + $0xa48] ss:$16 sps:$4 sm:$0xff]   ;;  %v21927_v24 = vld [vmem:[%s29243_s1 + $0xa64] ss:$16 sps:$4 sm:$0xff]  }
 0x2c6   : > { %8286 = vmatmul.mubr.bf16.gmra.mrb[52].mxu0 %v21880_v37  ;;  %8357 = vmatmul.mubr.bf16.gmra.mrb[52].mxu1 %v21880_v37  ;;  %v21930_v37 = vld [vmem:[%s29243_s1 + $0xa6c] ss:$16 sps:$4 sm:$0xff]  }
 0x2c7   : > { %8808 = vmatpush1.bf16.msra.mxu0 %v21881_v54  ;;  %8879 = vmatpush1.bf16.msra.mxu1 %v21884_v3  ;;  %v21928_v54 = vld [vmem:[%s29243_s1 + $0xa68] ss:$16 sps:$4 sm:$0xff]  }
 0x2c8   : > { %8809 = vmatprep.subr.bf16.mxu0 %v21889_v53  ;;  %8880 = vmatprep.subr.bf16.mxu1 %v21892_v57  ;;  %v21931_v3 = vld [vmem:[%s23407_s27 + $0x88] ss:$8 sps:$4 sm:$0xff]   ;;  %v21936_v53 = vld [vmem:[%s29243_s1 + $0xa84] ss:$16 sps:$4 sm:$0xff]   ;;  %v21939_v57 = vld [vmem:[%s29243_s1 + $0xa8c] ss:$16 sps:$4 sm:$0xff]  }
 0x2c9   : > { %18389 = vmatprep.mubr.msk.bf16.mxu0 %vm669_vm0, %v18337_v18  ;;  %18393 = vmatprep.mubr.msk.bf16.mxu1 %vm669_vm0, %v18337_v18 }
 0x2cb   : > { %8810 = vmatpush1.bf16.msra.mxu0 %v21887_v16  ;;  %8881 = vmatpush1.bf16.msra.mxu1 %v21890_v47  ;;  %v21934_v16 = vld [vmem:[%s29243_s1 + $0xa80] ss:$16 sps:$4 sm:$0xff]  }
 0x2cc   : > { %8811 = vmatprep.subr.bf16.mxu0 %v21897_v29  ;;  %8882 = vmatprep.subr.bf16.mxu1 %v21900_v34  ;;  %v21937_v34 = vld [vmem:[%s29243_s1 + $0xa88] ss:$16 sps:$4 sm:$0xff]  }
 0x2ce   : > { %8296 = vmatmul.mubr.bf16.gmra.mrb[76].mxu0 %v18336_v40  ;;  %8367 = vmatmul.mubr.bf16.gmra.mrb[76].mxu1 %v18336_v40  ;;  %v21942_v40 = vld [vmem:[%s29243_s1 + $0xaa4] ss:$16 sps:$4 sm:$0xff]  }
 0x2cf   : > { %8812 = vmatpush1.bf16.msra.mxu0 %v21895_v45  ;;  %8883 = vmatpush1.bf16.msra.mxu1 %v21898_v51 }
 0x2d0   : > { %8813 = vmatprep.subr.bf16.mxu0 %v21903_v63  ;;  %8884 = vmatprep.subr.bf16.mxu1 %v21906_v23 }
 0x2d1   : > { %18498 = vmatprep.mubr.msk.bf16.mxu0 %vm669_vm0, %v21933_v44  ;;  %18502 = vmatprep.mubr.msk.bf16.mxu1 %vm669_vm0, %v21933_v44  ;;  %v21946_v44 = vld [vmem:[%s23407_s27 + $0x9c] ss:$8 sps:$4 sm:$0xff]  }
 0x2d3   : > { %8814 = vmatpush1.bf16.msra.mxu0 %v21901_v33  ;;  %8885 = vmatpush1.bf16.msra.mxu1 %v21904_v43 }
 0x2d4   : > { %8815 = vmatprep.subr.bf16.mxu0 %v21909_v39  ;;  %8886 = vmatprep.subr.bf16.mxu1 %v21912_v32 }
 0x2d7   : > { %8816 = vmatpush1.bf16.msra.mxu0 %v21907_v0  ;;  %8887 = vmatpush1.bf16.msra.mxu1 %v21910_v5  ;;  %v21943_v0 = vld [vmem:[%s29243_s1 + $0xaa8] ss:$16 sps:$4 sm:$0xff]   ;;  %v21951_v5 = vld [vmem:[%s29243_s1 + $0xac4] ss:$16 sps:$4 sm:$0xff]  }
 0x2d8   : > { %8817 = vmatprep.subr.bf16.mxu0 %v21915_v41  ;;  %8888 = vmatprep.subr.bf16.mxu1 %v21918_v50  ;;  %v21954_v41 = vld [vmem:[%s29243_s1 + $0xacc] ss:$16 sps:$4 sm:$0xff]   ;;  %v21949_v50 = vld [vmem:[%s29243_s1 + $0xac0] ss:$16 sps:$4 sm:$0xff]  }
 0x2db   : > { %8818 = vmatpush1.bf16.msra.mxu0 %v21913_v4  ;;  %8889 = vmatpush1.bf16.msra.mxu1 %v21916_v12  ;;  %v21952_v4 = vld [vmem:[%s29243_s1 + $0xac8] ss:$16 sps:$4 sm:$0xff]   ;;  %v21957_v12 = vld [vmem:[%s29243_s1 + $0xae4] ss:$16 sps:$4 sm:$0xff]  }
 0x2dc   : > { %8819 = vmatprep.subr.bf16.mxu0 %v21921_v49  ;;  %8890 = vmatprep.subr.bf16.mxu1 %v21924_v62  ;;  %v21960_v49 = vld [vmem:[%s29243_s1 + $0xaec] ss:$16 sps:$4 sm:$0xff]  }
 0x2dd   : > { %v21961_v62 = vld [vmem:[%s23407_s27 + $0xac] ss:$8 sps:$4 sm:$0xff]  }
 0x2df   : > { %8820 = vmatpush1.bf16.msra.mxu0 %v21919_v31  ;;  %8891 = vmatpush1.bf16.msra.mxu1 %v21922_v10  ;;  %v21955_v31 = vld [vmem:[%s29243_s1 + $0xae0] ss:$16 sps:$4 sm:$0xff]   ;;  %v21958_v10 = vld [vmem:[%s29243_s1 + $0xae8] ss:$16 sps:$4 sm:$0xff]  }
 0x2e0   : > { %8821 = vmatprep.subr.bf16.mxu0 %v21927_v24  ;;  %8892 = vmatprep.subr.bf16.mxu1 %v21930_v37  ;;  %v21966_v24 = vld [vmem:[%s29243_s1 + $0xb04] ss:$16 sps:$4 sm:$0xff]   ;;  %v21969_v37 = vld [vmem:[%s29243_s1 + $0xb0c] ss:$16 sps:$4 sm:$0xff]  }
 0x2e1   : > { %v6033_v18 = vpop.f32.mrb[60].mxu0  ;;  %v6104_v47 = vpop.f32.mrb[60].mxu1 }
 0x2e2   : > { %v26068_v29 = vadd.f32 %v6033_v18, %v25900_v48  ;;  %v6035_v45 = vpop.f32.mrb[61].mxu0  ;;  %v26077_v51 = vadd.f32 %v6104_v47, %v25902_v35  ;;  %v6106_v63 = vpop.f32.mrb[61].mxu1  ;;  %v21945_v48 = vld [vmem:[%s29243_s1 + $0xaac] ss:$16 sps:$4 sm:$0xff]   ;;  %v21970_v18 = vld [vmem:[%s29243_s1 + $0xb20] ss:$16 sps:$4 sm:$0xff]  }
 0x2e3   : > { %v26080_v23 = vadd.f32 %v6035_v45, %v25907_v25  ;;  %8822 = vmatpush1.bf16.msra.mxu0 %v21925_v13  ;;  %v6037_v33 = vpop.f32.mrb[62].mxu0  ;;  %v26087_v43 = vadd.f32 %v6106_v63, %v25909_v22  ;;  %v6108_v39 = vpop.f32.mrb[62].mxu1  ;;  %8893 = vmatpush1.bf16.msra.mxu1 %v21928_v54  ;;  %v21940_v25 = vld [vmem:[%s29243_s1 + $0xaa0] ss:$16 sps:$4 sm:$0xff]   ;;  %v8465_v54 = vld [vmem:[%s23407_s27 + $0xb8] sm:$0xff] }
 0x2e4   : > { %9365 = vmatprep.subr.bf16.mxu0 %v21936_v53  ;;  %v6038_v35 = vpop.f32.mrb[63].mxu0  ;;  %v6109_v32 = vpop.f32.mrb[63].mxu1  ;;  %9436 = vmatprep.subr.bf16.mxu1 %v21939_v57  ;;  %v21948_v22 = vld [vmem:[%s23407_s27 + $0x98] ss:$8 sps:$4 sm:$0xff]   ;;  %v21963_v13 = vld [vmem:[%s23407_s27 + $0xa8] ss:$8 sps:$4 sm:$0xff]   ;;  %v18449_v47 = vcombine.high %v8465_v54, %v8465_v54 }
 0x2e5   : > { %v21967_v53 = vld [vmem:[%s29243_s1 + $0xb08] ss:$16 sps:$4 sm:$0xff]   ;;  %v21972_v57 = vld [vmem:[%s29243_s1 + $0xb24] ss:$16 sps:$4 sm:$0xff]   ;;  %v21978_v63 = vld [vmem:[%s29243_s1 + $0xb40] ss:$16 sps:$4 sm:$0xff]  }
 0x2e6   : > { %8832 = vmatmul.mubr.bf16.vlgmr.msra.gmra.mrb[44].mxu0 %v21931_v3  ;;  %8903 = vmatmul.mubr.bf16.vlgmr.msra.gmra.mrb[44].mxu1 %v21931_v3  ;;  %v21964_v3 = vld [vmem:[%s29243_s1 + $0xb00] ss:$16 sps:$4 sm:$0xff]   ;;  %v21973_v45 = vld [vmem:[%s29243_s1 + $0xb28] ss:$16 sps:$4 sm:$0xff]   ;;  %v21986_v33 = vld [vmem:[%s29243_s1 + $0xb64] ss:$16 sps:$4 sm:$0xff]  }
 0x2e7   : > { %9366 = vmatpush1.bf16.msra.mxu0 %v21934_v16  ;;  %9437 = vmatpush1.bf16.msra.mxu1 %v21937_v34  ;;  %v21975_v16 = vld [vmem:[%s29243_s1 + $0xb2c] ss:$16 sps:$4 sm:$0xff]   ;;  %v21980_v34 = vld [vmem:[%s29243_s1 + $0xb44] ss:$16 sps:$4 sm:$0xff]   ;;  %v21984_v32 = vld [vmem:[%s29243_s1 + $0xb60] ss:$16 sps:$4 sm:$0xff]  }
 0x2e8   : > { %9367 = vmatprep.subr.bf16.mxu0 %v21942_v40  ;;  %9438 = vmatprep.subr.bf16.mxu1 %v21945_v48  ;;  %v21983_v40 = vld [vmem:[%s29243_s1 + $0xb4c] ss:$16 sps:$4 sm:$0xff]   ;;  %v18448_v48 = vcombine.low %v8465_v54, %v8465_v54  ;;  %v22008_v54 = vld [vmem:[%s29243_s1 + $0xbe0] ss:$16 sps:$4 sm:$0xff]  }
 0x2e9   : > { %18499 = vmatprep.mubr.msk.bf16.mxu0 %vm669_vm0, %v21946_v44  ;;  %18503 = vmatprep.mubr.msk.bf16.mxu1 %vm669_vm0, %v21946_v44  ;;  %v21981_v44 = vld [vmem:[%s29243_s1 + $0xb48] ss:$16 sps:$4 sm:$0xff]   ;;  %v21989_v39 = vld [vmem:[%s29243_s1 + $0xb6c] ss:$16 sps:$4 sm:$0xff]  }
 0x2ea   : > { %v22016_v35 = vld [vmem:[%s23407_s27 + $0xcc] ss:$8 sps:$4 sm:$0xff]  }
 0x2eb   : > { %9368 = vmatpush1.bf16.msra.mxu0 %v21940_v25  ;;  %9439 = vmatpush1.bf16.msra.mxu1 %v21943_v0  ;;  %v21987_v25 = vld [vmem:[%s29243_s1 + $0xb68] ss:$16 sps:$4 sm:$0xff]   ;;  %v21992_v0 = vld [vmem:[%s29243_s1 + $0xb84] ss:$16 sps:$4 sm:$0xff]  }
 0x2ec   : > { %9369 = vmatprep.subr.bf16.mxu0 %v21951_v5  ;;  %9440 = vmatprep.subr.bf16.mxu1 %v21954_v41  ;;  %v21990_v5 = vld [vmem:[%s29243_s1 + $0xb80] ss:$16 sps:$4 sm:$0xff]   ;;  %v21993_v41 = vld [vmem:[%s29243_s1 + $0xb88] ss:$16 sps:$4 sm:$0xff]  }
 0x2ee   : > { %8842 = vmatmul.mubr.bf16.gmra.mrb[48].mxu0 %v21948_v22  ;;  %8913 = vmatmul.mubr.bf16.gmra.mrb[48].mxu1 %v21948_v22  ;;  %v21995_v22 = vld [vmem:[%s29243_s1 + $0xb8c] ss:$16 sps:$4 sm:$0xff]  }
 0x2ef   : > { %9370 = vmatpush1.bf16.msra.mxu0 %v21949_v50  ;;  %9441 = vmatpush1.bf16.msra.mxu1 %v21952_v4  ;;  %v21998_v50 = vld [vmem:[%s29243_s1 + $0xba4] ss:$16 sps:$4 sm:$0xff]   ;;  %v22001_v4 = vld [vmem:[%s29243_s1 + $0xbac] ss:$16 sps:$4 sm:$0xff]  }
 0x2f0   : > { %9371 = vmatprep.subr.bf16.mxu0 %v21957_v12  ;;  %9442 = vmatprep.subr.bf16.mxu1 %v21960_v49  ;;  %v21996_v12 = vld [vmem:[%s29243_s1 + $0xba0] ss:$16 sps:$4 sm:$0xff]   ;;  %v21999_v49 = vld [vmem:[%s29243_s1 + $0xba8] ss:$16 sps:$4 sm:$0xff]  }
 0x2f1   : > { %18500 = vmatprep.mubr.msk.bf16.mxu0 %vm669_vm0, %v21961_v62  ;;  %18504 = vmatprep.mubr.msk.bf16.mxu1 %vm669_vm0, %v21961_v62  ;;  %v22004_v62 = vld [vmem:[%s29243_s1 + $0xbc4] ss:$16 sps:$4 sm:$0xff]  }
 0x2f3   : > { %9372 = vmatpush1.bf16.msra.mxu0 %v21955_v31  ;;  %9443 = vmatpush1.bf16.msra.mxu1 %v21958_v10  ;;  %v22007_v31 = vld [vmem:[%s29243_s1 + $0xbcc] ss:$16 sps:$4 sm:$0xff]   ;;  %v22002_v10 = vld [vmem:[%s29243_s1 + $0xbc0] ss:$16 sps:$4 sm:$0xff]  }
 0x2f4   : > { %9373 = vmatprep.subr.bf16.mxu0 %v21966_v24  ;;  %9444 = vmatprep.subr.bf16.mxu1 %v21969_v37  ;;  %v22005_v24 = vld [vmem:[%s29243_s1 + $0xbc8] ss:$16 sps:$4 sm:$0xff]   ;;  %v22010_v37 = vld [vmem:[%s29243_s1 + $0xbe4] ss:$16 sps:$4 sm:$0xff]  }
 0x2f6   : > { %8852 = vmatmul.mubr.bf16.gmra.mrb[52].mxu0 %v21963_v13  ;;  %8923 = vmatmul.mubr.bf16.gmra.mrb[52].mxu1 %v21963_v13  ;;  %v22013_v13 = vld [vmem:[%s29243_s1 + $0xbec] ss:$16 sps:$4 sm:$0xff]  }
 0x2f7   : > { %9374 = vmatpush1.bf16.msra.mxu0 %v21964_v3  ;;  %9445 = vmatpush1.bf16.msra.mxu1 %v21967_v53  ;;  %v22011_v3 = vld [vmem:[%s29243_s1 + $0xbe8] ss:$16 sps:$4 sm:$0xff]  }
 0x2f8   : > { %9375 = vmatprep.subr.bf16.mxu0 %v21972_v57  ;;  %9446 = vmatprep.subr.bf16.mxu1 %v21975_v16  ;;  %v22014_v53 = vld [vmem:[%s23407_s27 + $0xc8] ss:$8 sps:$4 sm:$0xff]  }
 0x2f9   : > { %18501 = vmatprep.mubr.msk.bf16.mxu0 %vm669_vm0, %v18449_v47  ;;  %18505 = vmatprep.mubr.msk.bf16.mxu1 %vm669_vm0, %v18449_v47  ;;  %v22019_v57 = vld [vmem:[%s29244_s2 + $0x4] ss:$12 sps:$4 sm:$0xff]  }
 0x2fb   : > { %9376 = vmatpush1.bf16.msra.mxu0 %v21970_v18  ;;  %9447 = vmatpush1.bf16.msra.mxu1 %v21973_v45  ;;  %v22020_v18 = vld [vmem:[%s29244_s2 + $0xc8] ss:$12 sps:$4 sm:$0xff]   ;;  %v22017_v45 = vld [vmem:[%s29244_s2] ss:$12 sps:$4 sm:$0xff]  }
 0x2fc   : > { %9377 = vmatprep.subr.bf16.mxu0 %v21980_v34  ;;  %9448 = vmatprep.subr.bf16.mxu1 %v21983_v40 }
 0x2fe   : > { %8862 = vmatmul.mubr.bf16.gmra.mrb[80].mxu0 %v18448_v48  ;;  %8933 = vmatmul.mubr.bf16.gmra.mrb[80].mxu1 %v18448_v48 }
 0x2ff   : > { %9378 = vmatpush1.bf16.msra.mxu0 %v21978_v63  ;;  %9449 = vmatpush1.bf16.msra.mxu1 %v21981_v44  ;;  %v22021_v44 = vld [vmem:[%s29244_s2 + $0x8] ss:$12 sps:$4 sm:$0xff]  }
 0x300   : > { %9379 = vmatprep.subr.bf16.mxu0 %v21986_v33  ;;  %9450 = vmatprep.subr.bf16.mxu1 %v21989_v39  ;;  %v22024_v33 = vld [vmem:[%s29244_s2 + $0x1c] ss:$12 sps:$4 sm:$0xff]  }
 0x301   : > { %18610 = vmatprep.mubr.msk.bf16.mxu0 %vm669_vm0, %v22016_v35  ;;  %18614 = vmatprep.mubr.msk.bf16.mxu1 %vm669_vm0, %v22016_v35 }
 0x303   : > { %9380 = vmatpush1.bf16.msra.mxu0 %v21984_v32  ;;  %9451 = vmatpush1.bf16.msra.mxu1 %v21987_v25 }
 0x304   : > { %9381 = vmatprep.subr.bf16.mxu0 %v21992_v0  ;;  %9452 = vmatprep.subr.bf16.mxu1 %v21995_v22 }
 0x307   : > { %9382 = vmatpush1.bf16.msra.mxu0 %v21990_v5  ;;  %9453 = vmatpush1.bf16.msra.mxu1 %v21993_v41  ;;  %v22032_v5 = vld [vmem:[%s29244_s2 + $0x34] ss:$12 sps:$4 sm:$0xff]   ;;  %v22033_v41 = vld [vmem:[%s29244_s2 + $0xf8] ss:$12 sps:$4 sm:$0xff]  }
 0x308   : > { %9383 = vmatprep.subr.bf16.mxu0 %v21998_v50  ;;  %9454 = vmatprep.subr.bf16.mxu1 %v22001_v4  ;;  %v22029_v50 = vld [vmem:[%s23407_s27 + $0xd8] ss:$8 sps:$4 sm:$0xff]   ;;  %v22030_v4 = vld [vmem:[%s29244_s2 + $0x30] ss:$12 sps:$4 sm:$0xff]  }
 0x30b   : > { %9384 = vmatpush1.bf16.msra.mxu0 %v21996_v12  ;;  %9455 = vmatpush1.bf16.msra.mxu1 %v21999_v49  ;;  %v22034_v12 = vld [vmem:[%s29244_s2 + $0x38] ss:$12 sps:$4 sm:$0xff]  }
 0x30c   : > { %9385 = vmatprep.subr.bf16.mxu0 %v22004_v62  ;;  %9456 = vmatprep.subr.bf16.mxu1 %v22007_v31  ;;  %v22037_v49 = vld [vmem:[%s29244_s2 + $0x4c] ss:$12 sps:$4 sm:$0xff]   ;;  %v22038_v62 = vld [vmem:[%s29244_s2 + $0x110] ss:$12 sps:$4 sm:$0xff]  }
 0x30d   : > { %v22040_v31 = vld [vmem:[%s23407_s27 + $0xec] ss:$8 sps:$4 sm:$0xff]  }
 0x30f   : > { %9386 = vmatpush1.bf16.msra.mxu0 %v22002_v10  ;;  %9457 = vmatpush1.bf16.msra.mxu1 %v22005_v24  ;;  %v22035_v10 = vld [vmem:[%s29244_s2 + $0x48] ss:$12 sps:$4 sm:$0xff]   ;;  %v22039_v24 = vld [vmem:[%s29244_s2 + $0x50] ss:$12 sps:$4 sm:$0xff]  }
 0x310   : > { %9387 = vmatprep.subr.bf16.mxu0 %v22010_v37  ;;  %9458 = vmatprep.subr.bf16.mxu1 %v22013_v13  ;;  %v22045_v37 = vld [vmem:[%s29244_s2 + $0x64] ss:$12 sps:$4 sm:$0xff]   ;;  %v22046_v13 = vld [vmem:[%s29244_s2 + $0x128] ss:$12 sps:$4 sm:$0xff]  }
 0x311   : > { %v6599_v16 = vpop.f32.mrb[64].mxu0  ;;  %v6670_v47 = vpop.f32.mrb[64].mxu1 }
 0x312   : > { %v26239_v34 = vadd.f32 %v6599_v16, %v26068_v29  ;;  %v26242_v40 = vadd.f32 %v6670_v47, %v26077_v51  ;;  %v6601_v63 = vpop.f32.mrb[65].mxu0  ;;  %v6672_v48 = vpop.f32.mrb[65].mxu1  ;;  %v22025_v29 = vld [vmem:[%s29244_s2 + $0xe0] ss:$12 sps:$4 sm:$0xff]   ;;  %v22027_v51 = vld [vmem:[%s23407_s27 + $0xdc] ss:$8 sps:$4 sm:$0xff]  }
 0x313   : > { %v26251_v39 = vadd.f32 %v6601_v63, %v26080_v23  ;;  %v26254_v35 = vadd.f32 %v6672_v48, %v26087_v43  ;;  %9388 = vmatpush1.bf16.msra.mxu0 %v22008_v54  ;;  %v6603_v32 = vpop.f32.mrb[66].mxu0  ;;  %v6674_v25 = vpop.f32.mrb[66].mxu1  ;;  %9459 = vmatpush1.bf16.msra.mxu1 %v22011_v3  ;;  %v22022_v23 = vld [vmem:[%s29244_s2 + $0x18] ss:$12 sps:$4 sm:$0xff]   ;;  %v22026_v43 = vld [vmem:[%s29244_s2 + $0x20] ss:$12 sps:$4 sm:$0xff]  }
 0x314   : > { %10401 = vmatprep.subr.bf16.mxu0 %v22019_v57  ;;  %v6604_v0 = vpop.f32.mrb[67].mxu0  ;;  %v6675_v22 = vpop.f32.mrb[67].mxu1  ;;  %19889 = vmatprep.subr.bf16.mxu1 %v22020_v18  ;;  %v22042_v54 = vld [vmem:[%s23407_s27 + $0xe8] ss:$8 sps:$4 sm:$0xff]   ;;  %v9031_v3 = vld [vmem:[%s23407_s27 + $0xf8] sm:$0xff]  ;;  %s328_s27 = scalar_lea.vmem [#allocation4], %s16918_s26 }
 0x315   : > { %v22047_v57 = vld [vmem:[%s29244_s2 + $0x68] ss:$12 sps:$4 sm:$0xff]   ;;  %v22051_v16 = vld [vmem:[%s29244_s2 + $0x140] ss:$12 sps:$4 sm:$0xff]   ;;  %v18561_v47 = vcombine.high %v9031_v3, %v9031_v3  ;;  %v22063_v25 = vld [vmem:[%s29244_s2 + $0x170] ss:$12 sps:$4 sm:$0xff]  }
 0x316   : > { %9398 = vmatmul.mubr.bf16.vlgmr.msra.gmra.mrb[44].mxu0 %v22014_v53  ;;  %9469 = vmatmul.mubr.bf16.vlgmr.msra.gmra.mrb[44].mxu1 %v22014_v53  ;;  %v22043_v53 = vld [vmem:[%s29244_s2 + $0x60] ss:$12 sps:$4 sm:$0xff]   ;;  %v22050_v18 = vld [vmem:[%s29244_s2 + $0x7c] ss:$12 sps:$4 sm:$0xff]   ;;  %s16855_s16 = sshll.u32 %s328_s27, 4  ;;  %s23141_s26 = sshll.u32 %s23202_s23, 4  ;;  %s29202_s16 = int_to_ptr.vmem [resolvable:$true] %s16855_s16  ;;  %s23142_s26 = int_to_ptr.vmem [resolvable:$false] %s23141_s26 }
 0x317   : > { %10402 = vmatpush1.bf16.msra.mxu0 %v22017_v45  ;;  %19890 = vmatpush3.bf16.msra.mxu1 %v22021_v44  ;;  %v22048_v45 = vld [vmem:[%s29244_s2 + $0x78] ss:$12 sps:$4 sm:$0xff]   ;;  %v22052_v63 = vld [vmem:[%s29244_s2 + $0x80] ss:$12 sps:$4 sm:$0xff]   ;;  %v22060_v0 = vld [vmem:[%s29244_s2 + $0xa8] ss:$12 sps:$4 sm:$0xff]   ;;  %p23144_p0 = scmp.lt.s32.totalorder %s29202_s16, %s23142_s26 }
 0x318   : > { %10403 = vmatprep.subr.bf16.mxu0 %v22024_v33  ;;  %19891 = vmatprep.subr.bf16.mxu1 %v22025_v29  ;;  %v22057_v48 = vld [vmem:[%s29244_s2 + $0x94] ss:$12 sps:$4 sm:$0xff]   ;;  %v22058_v44 = vld [vmem:[%s29244_s2 + $0x158] ss:$12 sps:$4 sm:$0xff]   ;;  %v18560_v33 = vcombine.low %v9031_v3, %v9031_v3  ;;  %v22055_v29 = vld [vmem:[%s29244_s2 + $0x90] ss:$12 sps:$4 sm:$0xff]  }
 0x319   : > { %18611 = vmatprep.mubr.msk.bf16.mxu0 %vm669_vm0, %v22027_v51  ;;  %18615 = vmatprep.mubr.msk.bf16.mxu1 %vm669_vm0, %v22027_v51  ;;  %v22059_v51 = vld [vmem:[%s29244_s2 + $0x98] ss:$12 sps:$4 sm:$0xff]   ;;  %v22064_v22 = vld [vmem:[%s29244_s2 + $0xb0] ss:$12 sps:$4 sm:$0xff]   ;;  %s23137_s22 = scalar_lea.vmem %s29202_s16, 512  ;;  %s23143_s28 = scalar_lea.vmem %s23142_s26, 1024 }
 0x31a   : > { %v22062_v32 = vld [vmem:[%s29244_s2 + $0xac] ss:$12 sps:$4 sm:$0xff]   ;;  %v22087_v3 = vld [vmem:[%s29244_s2 + $0x124] ss:$12 sps:$4 sm:$0xff]   ;;  %p23138_p11 = scmp.ne.s32.totalorder %s29202_s16, %s23137_s22  ;;  %p23145_p1 = scmp.lt.s32.totalorder %s23143_s28, %s23137_s22 }
 0x31b   : > { %10404 = vmatpush1.bf16.msra.mxu0 %v22022_v23  ;;  %19892 = vmatpush3.bf16.msra.mxu1 %v22026_v43  ;;  %v22067_v23 = vld [vmem:[%s29244_s2 + $0xc4] ss:$12 sps:$4 sm:$0xff]   ;;  %v22068_v43 = vld [vmem:[%s29244_s2 + $0x248] ss:$12 sps:$4 sm:$0xff]  }
 0x31c   : > { %10405 = vmatprep.subr.bf16.mxu0 %v22032_v5  ;;  %19893 = vmatprep.subr.bf16.mxu1 %v22033_v41  ;;  %v22065_v5 = vld [vmem:[%s29244_s2 + $0xc0] ss:$12 sps:$4 sm:$0xff]   ;;  %v22069_v41 = vld [vmem:[%s29244_s2 + $0x188] ss:$12 sps:$4 sm:$0xff]   ;;  %p23139_p12 = pnand %p23138_p11, %p23291_p5  ;;  %p23146_p2 = por %p23145_p1, %p23144_p0 }
 0x31e   : > { %9408 = vmatmul.mubr.bf16.gmra.mrb[48].mxu0 %v22029_v50  ;;  %9479 = vmatmul.mubr.bf16.gmra.mrb[48].mxu1 %v22029_v50  ;;  %v22072_v50 = vld [vmem:[%s29244_s2 + $0xdc] ss:$12 sps:$4 sm:$0xff]   ;;  %p23140_p13 = pneg %p23139_p12 }
 0x31f   : > { %10406 = vmatpush1.bf16.msra.mxu0 %v22030_v4  ;;  %19894 = vmatpush3.bf16.msra.mxu1 %v22034_v12  ;;  %v22073_v4 = vld [vmem:[%s29244_s2 + $0x260] ss:$12 sps:$4 sm:$0xff]  }
 0x320   : > { %10407 = vmatprep.subr.bf16.mxu0 %v22037_v49  ;;  %19895 = vmatprep.subr.bf16.mxu1 %v22038_v62  ;;  %v22074_v12 = vld [vmem:[%s29244_s2 + $0x1a0] ss:$12 sps:$4 sm:$0xff]   ;;  %v22078_v62 = vld [vmem:[%s29244_s2 + $0x278] ss:$12 sps:$4 sm:$0xff]   ;;  %p23147_p3 = pnand %p23146_p2, %p23140_p13 }
 0x321   : > { %18612 = vmatprep.mubr.msk.bf16.mxu0 %vm669_vm0, %v22040_v31  ;;  %18616 = vmatprep.mubr.msk.bf16.mxu1 %vm669_vm0, %v22040_v31  ;;  %v22077_v49 = vld [vmem:[%s29244_s2 + $0xf4] ss:$12 sps:$4 sm:$0xff]   ;;  %v22075_v31 = vld [vmem:[%s29244_s2 + $0xf0] ss:$12 sps:$4 sm:$0xff]  }
 0x323   : > { %10408 = vmatpush1.bf16.msra.mxu0 %v22035_v10  ;;  %19896 = vmatpush3.bf16.msra.mxu1 %v22039_v24  ;;  %v22079_v10 = vld [vmem:[%s29244_s2 + $0x1b8] ss:$12 sps:$4 sm:$0xff]  }
 0x324   : > { %10409 = vmatprep.subr.bf16.mxu0 %v22045_v37  ;;  %19897 = vmatprep.subr.bf16.mxu1 %v22046_v13  ;;  %v22082_v24 = vld [vmem:[%s29244_s2 + $0x10c] ss:$12 sps:$4 sm:$0xff]   ;;  %v22083_v37 = vld [vmem:[%s29244_s2 + $0x290] ss:$12 sps:$4 sm:$0xff]   ;;  %v22080_v13 = vld [vmem:[%s29244_s2 + $0x108] ss:$12 sps:$4 sm:$0xff]  }
 0x326   : > { %9418 = vmatmul.mubr.bf16.gmra.mrb[52].mxu0 %v22042_v54  ;;  %9489 = vmatmul.mubr.bf16.gmra.mrb[52].mxu1 %v22042_v54  ;;  %v22084_v54 = vld [vmem:[%s29244_s2 + $0x1d0] ss:$12 sps:$4 sm:$0xff]  }
 0x327   : > { %10410 = vmatpush1.bf16.msra.mxu0 %v22043_v53  ;;  %19898 = vmatpush3.bf16.msra.mxu1 %v22047_v57  ;;  %v22088_v53 = vld [vmem:[%s29244_s2 + $0x2a8] ss:$12 sps:$4 sm:$0xff]  }
 0x328   : > { %10411 = vmatprep.subr.bf16.mxu0 %v22050_v18  ;;  %19899 = vmatprep.subr.bf16.mxu1 %v22051_v16  ;;  %v22085_v18 = vld [vmem:[%s29244_s2 + $0x120] ss:$12 sps:$4 sm:$0xff]  }
 0x329   : > { %18613 = vmatprep.mubr.msk.bf16.mxu0 %vm669_vm0, %v18561_v47  ;;  %18617 = vmatprep.mubr.msk.bf16.mxu1 %vm669_vm0, %v18561_v47 }
 0x32b   : > { %10412 = vmatpush1.bf16.msra.mxu0 %v22048_v45  ;;  %19900 = vmatpush3.bf16.msra.mxu1 %v22052_v63  ;;  %v22089_v63 = vld [vmem:[%s29244_s2 + $0x1e8] ss:$12 sps:$4 sm:$0xff]  }
 0x32c   : > { %10413 = vmatprep.subr.bf16.mxu0 %v22057_v48  ;;  %19901 = vmatprep.subr.bf16.mxu1 %v22058_v44 }
 0x32e   : > { %9428 = vmatmul.mubr.bf16.gmra.mrb[84].mxu0 %v18560_v33  ;;  %9499 = vmatmul.mubr.bf16.gmra.mrb[84].mxu1 %v18560_v33 }
 0x32f   : > { %10414 = vmatpush1.bf16.msra.mxu0 %v22055_v29  ;;  %10433 = vmatprep.mubr.bf16.mxu0 %v25492_v30  ;;  %v22092_v29 = vld [vmem:[%s29244_s2 + $0x13c] ss:$12 sps:$4 sm:$0xff]  }
 0x330   : > { %19902 = vmatpush3.bf16.msra.mxu1 %v22059_v51  ;;  %10559 = vmatprep.mubr.bf16.mxu1 %v25492_v30  ;;  %v22070_v30 = vld [vmem:[%s29244_s2 + $0xd8] ss:$12 sps:$4 sm:$0xff]  }
 0x331   : > { %10415 = vmatprep.subr.bf16.mxu0 %v22062_v32  ;;  %19903 = vmatprep.subr.bf16.mxu1 %v22063_v25 }
 0x333   : > { %10416 = vmatpush1.bf16.msra.mxu0 %v22060_v0 }
 0x334   : > { %19904 = vmatpush3.bf16.msra.mxu1 %v22064_v22  ;;  %10417 = vmatprep.subr.bf16.mxu0 %v22067_v23  ;;  %v22094_v22 = vld [vmem:[%s29244_s2 + $0x200] ss:$12 sps:$4 sm:$0xff]  }
 0x335   : > { %19923 = vmatprep.subr.bf16.mxu1 %v22068_v43  ;;  %v22097_v23 = vld [vmem:[%s29244_s2 + $0x154] ss:$12 sps:$4 sm:$0xff]   ;;  %v22095_v43 = vld [vmem:[%s29244_s2 + $0x150] ss:$12 sps:$4 sm:$0xff]  }
 0x337   : > { %10560 = vmatmul.mubr.bf16.vlgmr.msra.gmra.mrb[88].mxu1 %v25451_v1  ;;  %10418 = vmatpush1.bf16.msra.mxu0 %v22065_v5  ;;  %v22099_v5 = vld [vmem:[%s29244_s2 + $0x218] ss:$12 sps:$4 sm:$0xff]  }
 0x338   : > { %10567 = vmatprep.mubr.bf16.mxu1 %v25553_v11  ;;  %19924 = vmatpush3.bf16.msra.mxu1 %v22069_v41  ;;  %v22102_v41 = vld [vmem:[%s29244_s2 + $0x16c] ss:$12 sps:$4 sm:$0xff]  }
 0x339   : > { %10419 = vmatprep.subr.bf16.mxu0 %v22072_v50  ;;  %19925 = vmatprep.subr.bf16.mxu1 %v22073_v4  ;;  %v22103_v50 = vld [vmem:[%s29244_s2 + $0x2f0] ss:$12 sps:$4 sm:$0xff]   ;;  %v22100_v4 = vld [vmem:[%s29244_s2 + $0x168] ss:$12 sps:$4 sm:$0xff]  }
 0x33b   : > { %10420 = vmatpush1.bf16.msra.mxu0 %v22070_v30  ;;  %v22104_v30 = vld [vmem:[%s29244_s2 + $0x230] ss:$12 sps:$4 sm:$0xff]  }
 0x33c   : > { %19926 = vmatpush3.bf16.msra.mxu1 %v22074_v12  ;;  %10421 = vmatprep.subr.bf16.mxu0 %v22077_v49  ;;  %v22107_v12 = vld [vmem:[%s29244_s2 + $0x184] ss:$12 sps:$4 sm:$0xff]   ;;  %v22105_v49 = vld [vmem:[%s29244_s2 + $0x180] ss:$12 sps:$4 sm:$0xff]  }
 0x33d   : > { %19927 = vmatprep.subr.bf16.mxu1 %v22078_v62  ;;  %v22180_v62 = vld [vmem:[%s29244_s2 + $0x3c8] ss:$12 sps:$4 sm:$0xff]  }
 0x33f   : > { %10568 = vmatmul.mubr.bf16.gmra.mrb[92].mxu1 %v25556_v14  ;;  %10422 = vmatpush1.bf16.msra.mxu0 %v22075_v31  ;;  %v22110_v31 = vld [vmem:[%s29244_s2 + $0x19c] ss:$12 sps:$4 sm:$0xff]  }
 0x340   : > { %10575 = vmatprep.mubr.bf16.mxu1 %v25663_v36  ;;  %19928 = vmatpush3.bf16.msra.mxu1 %v22079_v10  ;;  %v22181_v10 = vld [vmem:[%s29244_s2 + $0x308] ss:$12 sps:$4 sm:$0xff]  }
 0x341   : > { %v7165_v57 = vpop.f32.mrb[68].mxu0  ;;  %10423 = vmatprep.subr.bf16.mxu0 %v22082_v24  ;;  %19929 = vmatprep.subr.bf16.mxu1 %v22083_v37  ;;  %v7236_v47 = vpop.f32.mrb[68].mxu1  ;;  %v22185_v24 = vld [vmem:[%s29244_s2 + $0x3e0] ss:$12 sps:$4 sm:$0xff]   ;;  %v22108_v37 = vld [vmem:[%s29244_s2 + $0x198] ss:$12 sps:$4 sm:$0xff]  }
 0x342   : > { %v26412_v16 = vadd.f32 %v7165_v57, %v26239_v34  ;;  %v7167_v45 = vpop.f32.mrb[69].mxu0  ;;  %v26418_v48 = vadd.f32 %v7236_v47, %v26242_v40  ;;  %v7238_v33 = vpop.f32.mrb[69].mxu1  ;;  %v22093_v34 = vld [vmem:[%s29244_s2 + $0x2c0] ss:$12 sps:$4 sm:$0xff]   ;;  %v22195_v57 = vld [vmem:[%s29244_s2 + $0x410] ss:$12 sps:$4 sm:$0xff]  }
 0x343   : > { %v26421_v44 = vadd.f32 %v7167_v45, %v26251_v39  ;;  %10424 = vmatpush1.bf16.msra.mxu0 %v22080_v13  ;;  %v7169_v51 = vpop.f32.mrb[70].mxu0  ;;  %v26430_v32 = vadd.f32 %v7238_v33, %v26254_v35  ;;  %v7240_v25 = vpop.f32.mrb[70].mxu1  ;;  %v22090_v39 = vld [vmem:[%s29244_s2 + $0x138] ss:$12 sps:$4 sm:$0xff]   ;;  %v22186_v13 = vld [vmem:[%s29244_s2 + $0x320] ss:$12 sps:$4 sm:$0xff]  }
 0x344   : > { %19930 = vmatpush3.bf16.msra.mxu1 %v22084_v54  ;;  %10425 = vmatprep.subr.bf16.mxu0 %v22087_v3  ;;  %v7170_v40 = vpop.f32.mrb[71].mxu0  ;;  %v7241_v0 = vpop.f32.mrb[71].mxu1  ;;  %v22098_v35 = vld [vmem:[%s29244_s2 + $0x2d8] ss:$12 sps:$4 sm:$0xff]   ;;  %v22196_v45 = vld [vmem:[%s29244_s2 + $0x350] ss:$12 sps:$4 sm:$0xff]  }
 0x345   : > { %19931 = vmatprep.subr.bf16.mxu1 %v22088_v53  ;;  %v22190_v54 = vld [vmem:[%s29244_s2 + $0x3f8] ss:$12 sps:$4 sm:$0xff]   ;;  %v22201_v33 = vld [vmem:[%s29244_s2 + $0x368] ss:$12 sps:$4 sm:$0xff]  }
 0x346   : > { %v22116_v3 = vld [vmem:[%s29244_s2 + $0x1cc] ss:$12 sps:$4 sm:$0xff]   ;;  %v22119_v47 = vld [vmem:[%s29244_s2 + $0x1e4] ss:$12 sps:$4 sm:$0xff]   ;;  %v22125_v51 = vld [vmem:[%s29244_s2 + $0x214] ss:$12 sps:$4 sm:$0xff]  }
 0x347   : > { %10576 = vmatmul.mubr.bf16.gmra.mrb[96].mxu1 %v25667_v20  ;;  %10426 = vmatpush1.bf16.msra.mxu0 %v22085_v18  ;;  %v22191_v53 = vld [vmem:[%s29244_s2 + $0x338] ss:$12 sps:$4 sm:$0xff]   ;;  %v22114_v18 = vld [vmem:[%s29244_s2 + $0x1c8] ss:$12 sps:$4 sm:$0xff]  }
 0x348   : > { %19932 = vmatpush3.bf16.msra.mxu1 %v22089_v63  ;;  %10616 = vmatprep.mubr.bf16.mxu1 %v25679_v60  ;;  %v22122_v63 = vld [vmem:[%s29244_s2 + $0x1fc] ss:$12 sps:$4 sm:$0xff]   ;;  %v22128_v40 = vld [vmem:[%s29244_s2 + $0x22c] ss:$12 sps:$4 sm:$0xff]   ;;  %v22131_v25 = vld [vmem:[%s29244_s2 + $0x244] ss:$12 sps:$4 sm:$0xff]  }
 0x349   : > { %10427 = vmatprep.subr.bf16.mxu0 %v22092_v29  ;;  %19933 = vmatprep.subr.bf16.mxu1 %v22093_v34  ;;  %v22205_v29 = vld [vmem:[%s29244_s2 + $0x440] ss:$12 sps:$4 sm:$0xff]   ;;  %v22120_v34 = vld [vmem:[%s29244_s2 + $0x1f8] ss:$12 sps:$4 sm:$0xff]  }
 0x34b   : > { %10428 = vmatpush1.bf16.msra.mxu0 %v22090_v39  ;;  %v22206_v39 = vld [vmem:[%s29244_s2 + $0x380] ss:$12 sps:$4 sm:$0xff]  }
 0x34c   : > { %19934 = vmatpush3.bf16.msra.mxu1 %v22094_v22  ;;  %10429 = vmatprep.subr.bf16.mxu0 %v22097_v23 }
 0x34d   : > { %19935 = vmatprep.subr.bf16.mxu1 %v22098_v35 }
 0x34f   : > { %10430 = vmatpush1.bf16.msra.mxu0 %v22095_v43 }
 0x350   : > { %19936 = vmatpush3.bf16.msra.mxu1 %v22099_v5  ;;  %10431 = vmatprep.subr.bf16.mxu0 %v22102_v41 }
 0x351   : > { %19937 = vmatprep.subr.bf16.mxu1 %v22103_v50 }
 0x353   : > { %10432 = vmatpush1.bf16.msra.mxu0 %v22100_v4 }
 0x354   : > { %19938 = vmatpush3.bf16.msra.mxu1 %v22104_v30  ;;  %10464 = vmatprep.subr.bf16.mxu0 %v22107_v12  ;;  %v22129_v30 = vld [vmem:[%s29244_s2 + $0x240] ss:$12 sps:$4 sm:$0xff]  }
 0x355   : > { %19957 = vmatprep.subr.bf16.mxu1 %v22180_v62  ;;  %v22132_v62 = vld [vmem:[%s29244_s2 + $0x258] ss:$12 sps:$4 sm:$0xff]  }
 0x356   : > { %10434 = vmatmul.mubr.bf16.vlgmr.msra.gmra.mrb[88].mxu0 %v25451_v1  ;;  %v22113_v1 = vld [vmem:[%s29244_s2 + $0x1b4] ss:$12 sps:$4 sm:$0xff]  }
 0x357   : > { %10617 = vmatmul.mubr.bf16.vlgmr.msra.gmra.mrb[100].mxu1 %v25454_v2  ;;  %10443 = vmatprep.mubr.bf16.mxu0 %v25553_v11  ;;  %v22111_v11 = vld [vmem:[%s29244_s2 + $0x1b0] ss:$12 sps:$4 sm:$0xff]  }
 0x358   : > { %10465 = vmatpush1.bf16.msra.mxu0 %v22105_v49  ;;  %10624 = vmatprep.mubr.bf16.mxu1 %v25711_v15 }
 0x359   : > { %10466 = vmatprep.subr.bf16.mxu0 %v22110_v31  ;;  %19958 = vmatpush3.bf16.msra.mxu1 %v22181_v10  ;;  %v22215_v31 = vld [vmem:[%s29244_s2 + $0x470] ss:$12 sps:$4 sm:$0xff]   ;;  %v22137_v10 = vld [vmem:[%s29244_s2 + $0x274] ss:$12 sps:$4 sm:$0xff]  }
 0x35a   : > { %19959 = vmatprep.subr.bf16.mxu1 %v22185_v24  ;;  %v22216_v24 = vld [vmem:[%s29244_s2 + $0x3b0] ss:$12 sps:$4 sm:$0xff]  }
 0x35c   : > { %10467 = vmatpush1.bf16.msra.mxu0 %v22108_v37  ;;  %v22220_v37 = vld [vmem:[%s29244_s2 + $0x548] ss:$12 sps:$4 sm:$0xff]  }
 0x35d   : > { %10468 = vmatprep.subr.bf16.mxu0 %v22113_v1  ;;  %19960 = vmatpush3.bf16.msra.mxu1 %v22186_v13  ;;  %v22135_v1 = vld [vmem:[%s29244_s2 + $0x270] ss:$12 sps:$4 sm:$0xff]   ;;  %v22140_v13 = vld [vmem:[%s29244_s2 + $0x28c] ss:$12 sps:$4 sm:$0xff]  }
 0x35e   : > { %10444 = vmatmul.mubr.bf16.gmra.mrb[92].mxu0 %v25556_v14  ;;  %19961 = vmatprep.subr.bf16.mxu1 %v22190_v54  ;;  %v22200_v14 = vld [vmem:[%s29244_s2 + $0x428] ss:$12 sps:$4 sm:$0xff]   ;;  %v22143_v54 = vld [vmem:[%s29244_s2 + $0x2a4] ss:$12 sps:$4 sm:$0xff]  }
 0x35f   : > { %10625 = vmatmul.mubr.bf16.gmra.mrb[104].mxu1 %v25713_v46  ;;  %10453 = vmatprep.mubr.bf16.mxu0 %v25663_v36  ;;  %v22117_v36 = vld [vmem:[%s29244_s2 + $0x1e0] ss:$12 sps:$4 sm:$0xff]  }
 0x360   : > { %10469 = vmatpush1.bf16.msra.mxu0 %v22111_v11  ;;  %10632 = vmatprep.mubr.bf16.mxu1 %v25728_v8  ;;  %v22138_v11 = vld [vmem:[%s29244_s2 + $0x288] ss:$12 sps:$4 sm:$0xff]  }
 0x361   : > { %10470 = vmatprep.subr.bf16.mxu0 %v22116_v3  ;;  %19962 = vmatpush3.bf16.msra.mxu1 %v22191_v53  ;;  %v22141_v3 = vld [vmem:[%s29244_s2 + $0x2a0] ss:$12 sps:$4 sm:$0xff]   ;;  %v22146_v53 = vld [vmem:[%s29244_s2 + $0x2bc] ss:$12 sps:$4 sm:$0xff]  }
 0x362   : > { %19963 = vmatprep.subr.bf16.mxu1 %v22195_v57  ;;  %v22144_v57 = vld [vmem:[%s29244_s2 + $0x2b8] ss:$12 sps:$4 sm:$0xff]  }
 0x364   : > { %10471 = vmatpush1.bf16.msra.mxu0 %v22114_v18  ;;  %v22149_v18 = vld [vmem:[%s29244_s2 + $0x2d4] ss:$12 sps:$4 sm:$0xff]  }
 0x365   : > { %10472 = vmatprep.subr.bf16.mxu0 %v22119_v47  ;;  %19964 = vmatpush3.bf16.msra.mxu1 %v22196_v45  ;;  %v22147_v47 = vld [vmem:[%s29244_s2 + $0x2d0] ss:$12 sps:$4 sm:$0xff]   ;;  %v22152_v45 = vld [vmem:[%s29244_s2 + $0x2ec] ss:$12 sps:$4 sm:$0xff]  }
 0x366   : > { %10454 = vmatmul.mubr.bf16.gmra.mrb[96].mxu0 %v25667_v20  ;;  %19965 = vmatprep.subr.bf16.mxu1 %v22200_v14  ;;  %v22123_v20 = vld [vmem:[%s29244_s2 + $0x210] ss:$12 sps:$4 sm:$0xff]   ;;  %v22150_v14 = vld [vmem:[%s29244_s2 + $0x2e8] ss:$12 sps:$4 sm:$0xff]  }
 0x367   : > { %10633 = vmatmul.mubr.bf16.gmra.mrb[108].mxu1 %v25742_v28  ;;  %10496 = vmatprep.mubr.bf16.mxu0 %v25679_v60  ;;  %v22126_v60 = vld [vmem:[%s29244_s2 + $0x228] ss:$12 sps:$4 sm:$0xff]  }
 0x368   : > { %10473 = vmatpush1.bf16.msra.mxu0 %v22117_v36  ;;  %v22155_v36 = vld [vmem:[%s29244_s2 + $0x304] ss:$12 sps:$4 sm:$0xff]  }
 0x369   : > { %10474 = vmatprep.subr.bf16.mxu0 %v22122_v63  ;;  %19966 = vmatpush3.bf16.msra.mxu1 %v22201_v33  ;;  %v22153_v63 = vld [vmem:[%s29244_s2 + $0x300] ss:$12 sps:$4 sm:$0xff]   ;;  %v22158_v33 = vld [vmem:[%s29244_s2 + $0x31c] ss:$12 sps:$4 sm:$0xff]  }
 0x36a   : > { %19967 = vmatprep.subr.bf16.mxu1 %v22205_v29  ;;  %v22156_v29 = vld [vmem:[%s29244_s2 + $0x318] ss:$12 sps:$4 sm:$0xff]  }
 0x36c   : > { %10475 = vmatpush1.bf16.msra.mxu0 %v22120_v34  ;;  %v22161_v34 = vld [vmem:[%s29244_s2 + $0x334] ss:$12 sps:$4 sm:$0xff]  }
 0x36d   : > { %10476 = vmatprep.subr.bf16.mxu0 %v22125_v51  ;;  %19968 = vmatpush3.bf16.msra.mxu1 %v22206_v39  ;;  %v22159_v51 = vld [vmem:[%s29244_s2 + $0x330] ss:$12 sps:$4 sm:$0xff]  }
 0x370   : > { %10477 = vmatpush1.bf16.msra.mxu0 %v22123_v20  ;;  %v22167_v20 = vld [vmem:[%s29244_s2 + $0x364] ss:$12 sps:$4 sm:$0xff]  }
 0x371   : > { %v7731_v0 = vpop.f32.mrb[72].mxu0  ;;  %10478 = vmatprep.subr.bf16.mxu0 %v22128_v40  ;;  %v7802_v23 = vpop.f32.mrb[72].mxu1 }
 0x372   : > { %v26563_v22 = vadd.f32 %v7731_v0, %v26412_v16  ;;  %v7733_v35 = vpop.f32.mrb[73].mxu0  ;;  %v26566_v43 = vadd.f32 %v7802_v23, %v26418_v48  ;;  %v7804_v41 = vpop.f32.mrb[73].mxu1  ;;  %v22134_v16 = vld [vmem:[%s29244_s2 + $0x25c] ss:$12 sps:$4 sm:$0xff]  }
 0x373   : > { %v26569_v5 = vadd.f32 %v7733_v35, %v26421_v44  ;;  %v7735_v50 = vpop.f32.mrb[74].mxu0  ;;  %v26572_v4 = vadd.f32 %v7804_v41, %v26430_v32  ;;  %v7806_v48 = vpop.f32.mrb[74].mxu1  ;;  %v22210_v44 = vld [vmem:[%s29244_s2 + $0x458] ss:$12 sps:$4 sm:$0xff]  }
 0x374   : > { %10479 = vmatpush1.bf16.msra.mxu0 %v22126_v60  ;;  %v7736_v12 = vpop.f32.mrb[75].mxu0  ;;  %v7807_v49 = vpop.f32.mrb[75].mxu1  ;;  %v22211_v32 = vld [vmem:[%s29244_s2 + $0x398] ss:$12 sps:$4 sm:$0xff]   ;;  %19969 = vmatprep.subr.bf16.mxu1 %v22210_v44  ;;  %v22165_v50 = vld [vmem:[%s29244_s2 + $0x360] ss:$12 sps:$4 sm:$0xff]  }
 0x375   : > { %10480 = vmatprep.subr.bf16.mxu0 %v22131_v25  ;;  %19970 = vmatpush3.bf16.msra.mxu1 %v22211_v32  ;;  %v22176_v12 = vld [vmem:[%s29244_s2 + $0x3ac] ss:$12 sps:$4 sm:$0xff]   ;;  %v22179_v48 = vld [vmem:[%s29244_s2 + $0x3c4] ss:$12 sps:$4 sm:$0xff]   ;;  %v22184_v44 = vld [vmem:[%s29244_s2 + $0x3dc] ss:$12 sps:$4 sm:$0xff]  }
 0x376   : > { %19971 = vmatprep.subr.bf16.mxu1 %v22215_v31  ;;  %v22177_v49 = vld [vmem:[%s29244_s2 + $0x3c0] ss:$12 sps:$4 sm:$0xff]   ;;  %v22182_v32 = vld [vmem:[%s29244_s2 + $0x3d8] ss:$12 sps:$4 sm:$0xff]   ;;  %v22187_v31 = vld [vmem:[%s29244_s2 + $0x3f0] ss:$12 sps:$4 sm:$0xff]  }
 0x378   : > { %10481 = vmatpush1.bf16.msra.mxu0 %v22129_v30 }
 0x379   : > { %10482 = vmatprep.subr.bf16.mxu0 %v22134_v16  ;;  %19972 = vmatpush3.bf16.msra.mxu1 %v22216_v24  ;;  %v22192_v24 = vld [vmem:[%s29244_s2 + $0x408] ss:$12 sps:$4 sm:$0xff]  }
 0x37a   : > { %19991 = vmatprep.subr.bf16.mxu1 %v22220_v37  ;;  %v22199_v37 = vld [vmem:[%s29244_s2 + $0x424] ss:$12 sps:$4 sm:$0xff]  }
 0x37c   : > { %10483 = vmatpush1.bf16.msra.mxu0 %v22132_v62  ;;  %v22189_v62 = vld [vmem:[%s29244_s2 + $0x3f4] ss:$12 sps:$4 sm:$0xff]  }
 0x37d   : > { %10484 = vmatprep.subr.bf16.mxu0 %v22137_v10  ;;  %v22194_v10 = vld [vmem:[%s29244_s2 + $0x40c] ss:$12 sps:$4 sm:$0xff]  }
 0x380   : > { %10485 = vmatpush1.bf16.msra.mxu0 %v22135_v1  ;;  %v22197_v1 = vld [vmem:[%s29244_s2 + $0x420] ss:$12 sps:$4 sm:$0xff]  }
 0x381   : > { %10486 = vmatprep.subr.bf16.mxu0 %v22140_v13  ;;  %v22204_v13 = vld [vmem:[%s29244_s2 + $0x43c] ss:$12 sps:$4 sm:$0xff]  }
 0x384   : > { %10487 = vmatpush1.bf16.msra.mxu0 %v22138_v11  ;;  %v22202_v11 = vld [vmem:[%s29244_s2 + $0x438] ss:$12 sps:$4 sm:$0xff]  }
 0x385   : > { %10488 = vmatprep.subr.bf16.mxu0 %v22143_v54  ;;  %v22209_v54 = vld [vmem:[%s29244_s2 + $0x454] ss:$12 sps:$4 sm:$0xff]  }
 0x388   : > { %10489 = vmatpush1.bf16.msra.mxu0 %v22141_v3  ;;  %v22207_v3 = vld [vmem:[%s29244_s2 + $0x450] ss:$12 sps:$4 sm:$0xff]  }
 0x389   : > { %10490 = vmatprep.subr.bf16.mxu0 %v22146_v53  ;;  %v22214_v53 = vld [vmem:[%s29244_s2 + $0x46c] ss:$12 sps:$4 sm:$0xff]  }
 0x38c   : > { %10491 = vmatpush1.bf16.msra.mxu0 %v22144_v57  ;;  %v22212_v57 = vld [vmem:[%s29244_s2 + $0x468] ss:$12 sps:$4 sm:$0xff]  }
 0x38d   : > { %10492 = vmatprep.subr.bf16.mxu0 %v22149_v18 }
 0x390   : > { %10493 = vmatpush1.bf16.msra.mxu0 %v22147_v47  ;;  %v22219_v47 = vld [vmem:[%s29244_s2 + $0x484] ss:$12 sps:$4 sm:$0xff]  }
 0x391   : > { %10494 = vmatprep.subr.bf16.mxu0 %v22152_v45 }
 0x394   : > { %10495 = vmatpush1.bf16.msra.mxu0 %v22150_v14 }
 0x395   : > { %11336 = vmatprep.subr.bf16.mxu0 %v22155_v36 }
 0x397   : > { %10497 = vmatmul.mubr.bf16.vlgmr.msra.gmra.mrb[88].mxu0 %v25454_v2  ;;  %v22164_v2 = vld [vmem:[%s29244_s2 + $0x34c] ss:$12 sps:$4 sm:$0xff]  }
 0x398   : > { %10506 = vmatprep.mubr.bf16.mxu0 %v25711_v15  ;;  %11337 = vmatpush1.bf16.msra.mxu0 %v22153_v63  ;;  %v22162_v15 = vld [vmem:[%s29244_s2 + $0x348] ss:$12 sps:$4 sm:$0xff]  }
 0x399   : > { %11338 = vmatprep.subr.bf16.mxu0 %v22158_v33 }
 0x39c   : > { %11339 = vmatpush1.bf16.msra.mxu0 %v22156_v29 }
 0x39d   : > { %11340 = vmatprep.subr.bf16.mxu0 %v22161_v34 }
 0x39f   : > { %10507 = vmatmul.mubr.bf16.gmra.mrb[92].mxu0 %v25713_v46 }
 0x3a0   : > { %10516 = vmatprep.mubr.bf16.mxu0 %v25728_v8  ;;  %11341 = vmatpush1.bf16.msra.mxu0 %v22159_v51 }
 0x3a1   : > { %v8297_v40 = vpop.f32.mrb[76].mxu0  ;;  %11342 = vmatprep.subr.bf16.mxu0 %v22164_v2  ;;  %v8368_v25 = vpop.f32.mrb[76].mxu1 }
 0x3a2   : > { %v8427_v60 = vadd.f32 %v8297_v40, %v26563_v22  ;;  %v8299_v39 = vpop.f32.mrb[77].mxu0  ;;  %v8429_v0 = vadd.f32 %v8368_v25, %v26566_v43  ;;  %v8370_v8 = vpop.f32.mrb[77].mxu1  ;;  %v22170_v22 = vld [vmem:[%s29244_s2 + $0x37c] ss:$12 sps:$4 sm:$0xff]   ;;  %v22168_v43 = vld [vmem:[%s29244_s2 + $0x378] ss:$12 sps:$4 sm:$0xff]  }
 0x3a3   : > { %v8428_v46 = vadd.f32 %v8299_v39, %v26569_v5  ;;  %v8301_v23 = vpop.f32.mrb[78].mxu0  ;;  %v8430_v35 = vadd.f32 %v8370_v8, %v26572_v4  ;;  %v8372_v30 = vpop.f32.mrb[78].mxu1  ;;  %v22173_v5 = vld [vmem:[%s29244_s2 + $0x394] ss:$12 sps:$4 sm:$0xff]   ;;  %v22171_v4 = vld [vmem:[%s29244_s2 + $0x390] ss:$12 sps:$4 sm:$0xff]  }
 0x3a4   : > { %v8302_v41 = vpop.f32.mrb[79].mxu0  ;;  %11343 = vmatpush1.bf16.msra.mxu0 %v22162_v15  ;;  %v8373_v16 = vpop.f32.mrb[79].mxu1  ;;  %v9563_v40 = vld [vmem:[%s29247_s5] sm:$0xf] }
 0x3a5   : > { %11344 = vmatprep.subr.bf16.mxu0 %v22167_v20  ;;  %v26757_v25 = vrot.slane %v9563_v40, %v25357_v7  ;;  %v26761_v23 = vrot.slane %v9563_v40, %v25374_v17 }
 0x3a7   : > { %10517 = vmatmul.mubr.bf16.gmra.mrb[96].mxu0 %v25742_v28  ;;  %v22174_v28 = vld [vmem:[%s29244_s2 + $0x3a8] ss:$12 sps:$4 sm:$0xff]  }
 0x3a8   : > { %11345 = vmatpush1.bf16.msra.mxu0 %v22165_v50 }
 0x3a9   : > { %11346 = vmatprep.subr.bf16.mxu0 %v22170_v22 }
 0x3ac   : > { %11347 = vmatpush1.bf16.msra.mxu0 %v22168_v43 }
 0x3ad   : > { %11348 = vmatprep.subr.bf16.mxu0 %v22173_v5 }
 0x3b0   : > { %11349 = vmatpush1.bf16.msra.mxu0 %v22171_v4  ;;  %v26767_v4 = vrot.slane %v9563_v40, %v25397_v26 }
 0x3b1   : > { %11350 = vmatprep.subr.bf16.mxu0 %v22176_v12 }
 0x3b4   : > { %11351 = vmatpush1.bf16.msra.mxu0 %v22174_v28 }
 0x3b5   : > { %11352 = vmatprep.subr.bf16.mxu0 %v22179_v48 }
 0x3b8   : > { %11353 = vmatpush1.bf16.msra.mxu0 %v22177_v49 }
 0x3b9   : > { %11354 = vmatprep.subr.bf16.mxu0 %v22184_v44 }
 0x3bc   : > { %11355 = vmatpush1.bf16.msra.mxu0 %v22182_v32 }
 0x3bd   : > { %11356 = vmatprep.subr.bf16.mxu0 %v22189_v62 }
 0x3c0   : > { %11357 = vmatpush1.bf16.msra.mxu0 %v22187_v31 }
 0x3c1   : > { %11358 = vmatprep.subr.bf16.mxu0 %v22194_v10 }
 0x3c4   : > { %11359 = vmatpush1.bf16.msra.mxu0 %v22192_v24 }
 0x3c5   : > { %11360 = vmatprep.subr.bf16.mxu0 %v22199_v37 }
 0x3c8   : > { %11361 = vmatpush1.bf16.msra.mxu0 %v22197_v1 }
 0x3c9   : > { %11362 = vmatprep.subr.bf16.mxu0 %v22204_v13 }
 0x3cc   : > { %11363 = vmatpush1.bf16.msra.mxu0 %v22202_v11 }
 0x3cd   : > { %11364 = vmatprep.subr.bf16.mxu0 %v22209_v54 }
 0x3d0   : > { %11365 = vmatpush1.bf16.msra.mxu0 %v22207_v3 }
 0x3d1   : > { %v8863_v18 = vpop.f32.mrb[80].mxu0  ;;  %11366 = vmatprep.subr.bf16.mxu0 %v22214_v53  ;;  %v8934_v14 = vpop.f32.mrb[80].mxu1 }
 0x3d2   : > { %v26742_v45 = vadd.f32 %v8863_v18, %v8427_v60  ;;  %v8865_v36 = vpop.f32.mrb[81].mxu0  ;;  %v26744_v63 = vadd.f32 %v8934_v14, %v8429_v0  ;;  %v8936_v29 = vpop.f32.mrb[81].mxu1  ;;  %v26754_v60 = vrot.slane %v9563_v40, %v25355_v6 }
 0x3d3   : > { %v26746_v33 = vadd.f32 %v8865_v36, %v8428_v46  ;;  %v8867_v34 = vpop.f32.mrb[82].mxu0  ;;  %v26748_v51 = vadd.f32 %v8936_v29, %v8430_v35  ;;  %v8938_v15 = vpop.f32.mrb[82].mxu1 }
 0x3d4   : > { %v8868_v2 = vpop.f32.mrb[83].mxu0  ;;  %11367 = vmatpush1.bf16.msra.mxu0 %v22212_v57  ;;  %v8939_v20 = vpop.f32.mrb[83].mxu1 }
 0x3d5   : > { %11399 = vmatprep.subr.bf16.mxu0 %v22219_v47 }
 0x3e9   : > { %v9399_v39 = vpop.f32.mrb[44].mxu0  ;;  %v9470_v46 = vpop.f32.mrb[44].mxu1 }
 0x3ea   : > { %v9585_v0 = vadd.f32 %v26754_v60, %v9399_v39  ;;  %v9401_v8 = vpop.f32.mrb[45].mxu0  ;;  %v9587_v35 = vadd.f32 %v26757_v25, %v9470_v46  ;;  %v9472_v41 = vpop.f32.mrb[45].mxu1  ;;  %v22217_v39 = vld [vmem:[%s29244_s2 + $0x480] ss:$12 sps:$4 sm:$0xff]  }
 0x3eb   : > { %v9403_v50 = vpop.f32.mrb[46].mxu0  ;;  %v9474_v16 = vpop.f32.mrb[46].mxu1  ;;  %v9586_v5 = vadd.f32 %v26761_v23, %v9401_v8  ;;  %v26772_v37 = vadd.f32 %v26767_v4, %v9472_v41 }
 0x3ec   : > { %v9641_v30 = vmul.f32 0.01, %v9585_v0  ;;  %v9589_v22 = vadd.f32 %v26754_v60, %v9403_v50  ;;  %v9405_v43 = vpop.f32.mrb[47].mxu0  ;;  %vm9613_vm0 = vcmp.ge.f32.partialorder %v9585_v0, 0.0  ;;  %v9476_v12 = vpop.f32.mrb[47].mxu1  ;;  %v9591_v49 = vadd.f32 %v26757_v25, %v9474_v16 }
 0x3ed   : > { %v9643_v28 = vmul.f32 0.01, %v9587_v35  ;;  %v9590_v44 = vadd.f32 %v26761_v23, %v9405_v43  ;;  %vm9615_vm15 = vcmp.ge.f32.partialorder %v9587_v35, 0.0  ;;  %v9642_v24 = vmul.f32 0.01, %v9586_v5 }
 0x3ee   : > { %vm9617_vm14 = vcmp.ge.f32.partialorder %v9589_v22, 0.0  ;;  %v9645_v48 = vmul.f32 0.01, %v9589_v22  ;;  %v9669_v32 = vsel %vm9613_vm0, %v9585_v0, %v9641_v30  ;;  %vm9619_vm1 = vcmp.ge.f32.partialorder %v9591_v49, 0.0  ;;  %v22221_v0 = vld [vmem:[%s29244_s2 + $0x488] ss:$12 sps:$4 sm:$0xff]  }
 0x3ef   : > { %v9647_v31 = vmul.f32 0.01, %v9591_v49  ;;  %vm9618_vm2 = vcmp.ge.f32.partialorder %v9590_v44, 0.0  ;;  %v9646_v13 = vmul.f32 0.01, %v9590_v44  ;;  %v9671_v54 = vsel %vm9615_vm15, %v9587_v35, %v9643_v28 }
 0x3f0   : > { %v9673_v62 = vsel %vm9617_vm14, %v9589_v22, %v9645_v48  ;;  %vm9614_vm3 = vcmp.ge.f32.partialorder %v9586_v5, 0.0  ;;  %v26785_v2 = vadd.f32 %v26767_v4, %v9476_v12  ;;  %vm9616_vm5 = vcmp.ge.f32.partialorder %v26772_v37, 0.0  ;;  %v22224_v30 = vld [vmem:[%s29244_s2 + $0x49c] ss:$12 sps:$4 sm:$0xff]  }
 0x3f1   : > { %v9409_v10 = vpop.f32.mrb[48].mxu0  ;;  %v10683_v1 = vpack.c.bf16 %v9673_v62, %v9669_v32  ;;  %v9480_v11 = vpop.f32.mrb[48].mxu1  ;;  %v26774_v3 = vsel %vm9619_vm1, %v9591_v49, %v9647_v31  ;;  %v26782_v34 = vsel %vm9618_vm2, %v9590_v44, %v9646_v13  ;;  %v9670_v40 = vsel %vm9614_vm3, %v9586_v5, %v9642_v24  ;;  %v22225_v5 = vld [vmem:[%s29244_s2 + $0x560] ss:$12 sps:$4 sm:$0xff]   ;;  %v22222_v49 = vld [vmem:[%s29244_s2 + $0x498] ss:$12 sps:$4 sm:$0xff]  }
 0x3f2   : > { %v9593_v53 = vadd.f32 %v26754_v60, %v9409_v10  ;;  %v9411_v57 = vpop.f32.mrb[49].mxu0  ;;  %v9482_v18 = vpop.f32.mrb[49].mxu1  ;;  %v26778_v47 = vpack.c.bf16 %v26774_v3, %v9671_v54  ;;  %v10684_v50 = vpack.c.bf16 %v26782_v34, %v9670_v40  ;;  %v9644_v16 = vmul.f32 0.01, %v26772_v37  ;;  %v22226_v44 = vld [vmem:[%s29244_s2 + $0x4a0] ss:$12 sps:$4 sm:$0xff]  }
 0x3f3   : > { %v9594_v14 = vadd.f32 %v26761_v23, %v9411_v57  ;;  %v9413_v36 = vpop.f32.mrb[50].mxu0  ;;  %v9484_v29 = vpop.f32.mrb[50].mxu1  ;;  %v26789_v20 = vadd.f32 %v26767_v4, %v9482_v18  ;;  %vm9620_vm7 = vcmp.ge.f32.partialorder %v26785_v2, 0.0  ;;  %v26811_v28 = vadd.f32 %v26757_v25, %v9480_v11  ;;  %v22229_v10 = vld [vmem:[%s29244_s2 + $0x4b4] ss:$12 sps:$4 sm:$0xff]  }
 0x3f4   : > { %vm9621_vm4 = vcmp.ge.f32.partialorder %v9593_v53, 0.0  ;;  %v9649_v15 = vmul.f32 0.01, %v9593_v53  ;;  %v9597_v8 = vadd.f32 %v26754_v60, %v9413_v36  ;;  %v9415_v35 = vpop.f32.mrb[51].mxu0  ;;  %v9486_v41 = vpop.f32.mrb[51].mxu1  ;;  %11368 = vmatprep.mubr.bf16.mxu0 %v10684_v50  ;;  %11494 = vmatprep.mubr.bf16.mxu1 %v10684_v50 }
 0x3f5   : > { %v9650_v46 = vmul.f32 0.01, %v9594_v14  ;;  %vm9622_vm6 = vcmp.ge.f32.partialorder %v9594_v14, 0.0  ;;  %v9598_v43 = vadd.f32 %v26761_v23, %v9415_v35  ;;  %v9648_v32 = vmul.f32 0.01, %v26785_v2  ;;  %11369 = vmatmul.mubr.bf16.vlgmr.msra.gmra.mrb[88].mxu0 %v10683_v1  ;;  %11495 = vmatmul.mubr.bf16.vlgmr.msra.gmra.mrb[112].mxu1 %v10683_v1 }
 0x3f6   : > { %v9677_v22 = vsel %vm9621_vm4, %v9593_v53, %v9649_v15  ;;  %vm9625_vm8 = vcmp.ge.f32.partialorder %v9597_v8, 0.0  ;;  %v9653_v48 = vmul.f32 0.01, %v9597_v8  ;;  %vm9624_vm10 = vcmp.ge.f32.partialorder %v26789_v20, 0.0  ;;  %11400 = vmatpush1.bf16.msra.mxu0 %v22217_v39  ;;  %19992 = vmatpush3.bf16.msra.mxu1 %v22221_v0  ;;  %v22230_v1 = vld [vmem:[%s29244_s2 + $0x578] ss:$12 sps:$4 sm:$0xff]  }
 0x3f7   : > { %v26807_v12 = vpack.c.bf16 %v9677_v22, %v9673_v62  ;;  %v26821_v62 = vadd.f32 %v26757_v25, %v9484_v29  ;;  %vm9626_vm9 = vcmp.ge.f32.partialorder %v9598_v43, 0.0  ;;  %v9654_v31 = vmul.f32 0.01, %v9598_v43  ;;  %11401 = vmatprep.subr.bf16.mxu0 %v22224_v30  ;;  %19993 = vmatprep.subr.bf16.mxu1 %v22225_v5  ;;  %v22227_v35 = vld [vmem:[%s29244_s2 + $0x4b0] ss:$12 sps:$4 sm:$0xff]  }
 0x3f8   : > { %v26828_v24 = vadd.f32 %v26767_v4, %v9486_v41  ;;  %v26831_v54 = vsel %vm9622_vm6, %v9594_v14, %v9650_v46  ;;  %v26837_v53 = vsel %vm9625_vm8, %v9597_v8, %v9653_v48  ;;  %v9652_v57 = vmul.f32 0.01, %v26789_v20  ;;  %v22231_v50 = vld [vmem:[%s29244_s2 + $0x4b8] ss:$12 sps:$4 sm:$0xff]  }
 0x3f9   : > { %v9419_v13 = vpop.f32.mrb[52].mxu0  ;;  %v9490_v11 = vpop.f32.mrb[52].mxu1  ;;  %v26845_v14 = vsel %vm9626_vm9, %v9598_v43, %v9654_v31  ;;  %vm9623_vm11 = vcmp.ge.f32.partialorder %v26811_v28, 0.0  ;;  %v10687_v41 = vpack.c.bf16 %v26837_v53, %v9677_v22  ;;  %v26862_v30 = vmul.f32 0.01, %v26811_v28 }
 0x3fa   : > { %v9601_v18 = vadd.f32 %v26754_v60, %v9419_v13  ;;  %v26842_v36 = vadd.f32 %v26757_v25, %v9490_v11  ;;  %v9421_v29 = vpop.f32.mrb[53].mxu0  ;;  %v9492_v15 = vpop.f32.mrb[53].mxu1  ;;  %v10688_v8 = vpack.c.bf16 %v26845_v14, %v26831_v54  ;;  %v26865_v43 = vmul.f32 0.01, %v26821_v62  ;;  %v22234_v48 = vld [vmem:[%s29244_s2 + $0x4cc] ss:$12 sps:$4 sm:$0xff]   ;;  %11402 = vmatpush1.bf16.msra.mxu0 %v22222_v49  ;;  %19994 = vmatpush3.bf16.msra.mxu1 %v22226_v44 }
 0x3fb   : > { %v9602_v40 = vadd.f32 %v26761_v23, %v9421_v29  ;;  %v26850_v39 = vadd.f32 %v26767_v4, %v9492_v15  ;;  %v9423_v0 = vpop.f32.mrb[54].mxu0  ;;  %v9494_v46 = vpop.f32.mrb[54].mxu1  ;;  %v9672_v31 = vsel %vm9616_vm5, %v26772_v37, %v9644_v16  ;;  %vm9627_vm12 = vcmp.ge.f32.partialorder %v26821_v62, 0.0  ;;  %11403 = vmatprep.subr.bf16.mxu0 %v22229_v10  ;;  %v22235_v37 = vld [vmem:[%s29244_s2 + $0x590] ss:$12 sps:$4 sm:$0xff]   ;;  %19995 = vmatprep.subr.bf16.mxu1 %v22230_v1 }
 0x3fc   : > { %v9657_v5 = vmul.f32 0.01, %v9601_v18  ;;  %vm9628_vm13 = vcmp.ge.f32.partialorder %v26828_v24, 0.0  ;;  %v9656_v22 = vmul.f32 0.01, %v26828_v24  ;;  %vm9629_vm0 = vcmp.ge.f32.partialorder %v9601_v18, 0.0  ;;  %11378 = vmatprep.mubr.bf16.mxu0 %v10688_v8  ;;  %11502 = vmatprep.mubr.bf16.mxu1 %v10688_v8 }
 0x3fd   : > { %v9658_v13 = vmul.f32 0.01, %v9602_v40  ;;  %vm9630_vm14 = vcmp.ge.f32.partialorder %v9602_v40, 0.0  ;;  %v9605_v11 = vadd.f32 %v26754_v60, %v9423_v0  ;;  %v9425_v29 = vpop.f32.mrb[55].mxu0  ;;  %v9496_v15 = vpop.f32.mrb[55].mxu1  ;;  %v26883_v16 = vsel %vm9620_vm7, %v26785_v2, %v9648_v32  ;;  %11379 = vmatmul.mubr.bf16.gmra.mrb[92].mxu0 %v10687_v41  ;;  %11503 = vmatmul.mubr.bf16.gmra.mrb[116].mxu1 %v10687_v41 }
 0x3fe   : > { %v26888_v49 = vsel %vm9624_vm10, %v26789_v20, %v9652_v57  ;;  %vm9631_vm15 = vcmp.ge.f32.partialorder %v26842_v36, 0.0  ;;  %v26892_v44 = vmul.f32 0.01, %v26842_v36  ;;  %vm9632_vm1 = vcmp.ge.f32.partialorder %v26850_v39, 0.0  ;;  %v22232_v20 = vld [vmem:[%s29244_s2 + $0x4c8] ss:$12 sps:$4 sm:$0xff]   ;;  %11404 = vmatpush1.bf16.msra.mxu0 %v22227_v35  ;;  %19996 = vmatpush3.bf16.msra.mxu1 %v22231_v50 }
 0x3ff   : > { %v9606_v10 = vadd.f32 %v26761_v23, %v9425_v29  ;;  %vm9633_vm2 = vcmp.ge.f32.partialorder %v9605_v11, 0.0  ;;  %v9661_v2 = vmul.f32 0.01, %v9605_v11  ;;  %v26897_v32 = vadd.f32 %v26757_v25, %v9494_v46  ;;  %v22236_v1 = vld [vmem:[%s29244_s2 + $0x4d0] ss:$12 sps:$4 sm:$0xff]   ;;  %11405 = vmatprep.subr.bf16.mxu0 %v22234_v48  ;;  %19997 = vmatprep.subr.bf16.mxu1 %v22235_v37 }
 0x400   : > { %v26903_v57 = vsel %vm9629_vm0, %v9601_v18, %v9657_v5  ;;  %v26906_v8 = vadd.f32 %v26767_v4, %v9496_v15  ;;  %v26912_v46 = vsel %vm9630_vm14, %v9602_v40, %v9658_v13  ;;  %v9660_v41 = vmul.f32 0.01, %v26850_v39  ;;  %v22239_v35 = vld [vmem:[%s29244_s2 + $0x4e4] ss:$12 sps:$4 sm:$0xff]  }
 0x401   : > { %v9429_v0 = vpop.f32.mrb[84].mxu0  ;;  %vm9634_vm3 = vcmp.ge.f32.partialorder %v9606_v10, 0.0  ;;  %v9662_v26 = vmul.f32 0.01, %v9606_v10  ;;  %v9500_v5 = vpop.f32.mrb[84].mxu1  ;;  %v26920_v50 = vsel %vm9633_vm2, %v9605_v11, %v9661_v2  ;;  %v10686_v15 = vpack.c.bf16 %v26883_v16, %v9672_v31 }
 0x402   : > { %v9559_v18 = vadd.f32 %v9429_v0, %v26742_v45  ;;  %v9431_v29 = vpop.f32.mrb[85].mxu0  ;;  %v9561_v40 = vadd.f32 %v9500_v5, %v26744_v63  ;;  %v9502_v17 = vpop.f32.mrb[85].mxu1  ;;  %v22240_v45 = vld [vmem:[%s29244_s2 + $0x5a8] ss:$12 sps:$4 sm:$0xff]   ;;  %v10691_v37 = vpack.c.bf16 %v26920_v50, %v26903_v57  ;;  %v26948_v2 = vsel %vm9628_vm13, %v26828_v24, %v9656_v22  ;;  %11406 = vmatpush1.bf16.msra.mxu0 %v22232_v20  ;;  %v22245_v24 = vld [vmem:[%s29244_s2 + $0x5c0] ss:$12 sps:$4 sm:$0xff]  }
 0x403   : > { %v9560_v13 = vadd.f32 %v9431_v29, %v26746_v33  ;;  %v26926_v48 = vsel %vm9634_vm3, %v9606_v10, %v9662_v26  ;;  %v9433_v0 = vpop.f32.mrb[86].mxu0  ;;  %v9562_v31 = vadd.f32 %v9502_v17, %v26748_v51  ;;  %v22237_v26 = vld [vmem:[%s29244_s2 + $0x4e0] ss:$12 sps:$4 sm:$0xff]   ;;  %v22241_v33 = vld [vmem:[%s29244_s2 + $0x4e8] ss:$12 sps:$4 sm:$0xff]   ;;  %v9504_v10 = vpop.f32.mrb[86].mxu1  ;;  %19998 = vmatpush3.bf16.msra.mxu1 %v22236_v1  ;;  %v26963_v22 = vpack.c.bf16 %v26948_v2, %v26888_v49 }
 0x404   : > { %v26934_v11 = vadd.f32 %v26754_v60, %v9559_v18  ;;  %v10692_v63 = vpack.c.bf16 %v26926_v48, %v26912_v46  ;;  %v9434_v60 = vpop.f32.mrb[87].mxu0  ;;  %v9664_v17 = vmul.f32 0.01, %v26906_v8  ;;  %v26952_v51 = vadd.f32 %v26757_v25, %v9561_v40  ;;  %v9505_v5 = vpop.f32.mrb[87].mxu1  ;;  %v22244_v29 = vld [vmem:[%s29244_s2 + $0x4fc] ss:$12 sps:$4 sm:$0xff]   ;;  %11407 = vmatprep.subr.bf16.mxu0 %v22239_v35  ;;  %19999 = vmatprep.subr.bf16.mxu1 %v22240_v45 }
 0x405   : > { %v9610_v18 = vadd.f32 %v26761_v23, %v9560_v13  ;;  %vm9635_vm4 = vcmp.ge.f32.partialorder %v26897_v32, 0.0  ;;  %vm9636_vm5 = vcmp.ge.f32.partialorder %v26906_v8, 0.0  ;;  %v9612_v25 = vadd.f32 %v26767_v4, %v9562_v31  ;;  %v22242_v4 = vld [vmem:[%s29244_s2 + $0x4f8] ss:$12 sps:$4 sm:$0xff]   ;;  %v22246_v35 = vld [vmem:[%s29244_s2 + $0x500] ss:$12 sps:$4 sm:$0xff]  }
 0x406   : > { %11388 = vmatprep.mubr.bf16.mxu0 %v10692_v63  ;;  %v9679_v23 = vsel %vm9623_vm11, %v26811_v28, %v26862_v30  ;;  %v9663_v20 = vmul.f32 0.01, %v26897_v32  ;;  %vm9637_vm6 = vcmp.ge.f32.partialorder %v26934_v11, 0.0  ;;  %v9665_v1 = vmul.f32 0.01, %v26934_v11  ;;  %11510 = vmatprep.mubr.bf16.mxu1 %v10692_v63 }
 0x407   : > { %vm9639_vm7 = vcmp.ge.f32.partialorder %v26952_v51, 0.0  ;;  %v9667_v28 = vmul.f32 0.01, %v26952_v51  ;;  %v9666_v30 = vmul.f32 0.01, %v9610_v18  ;;  %11389 = vmatmul.mubr.bf16.gmra.mrb[96].mxu0 %v10691_v37  ;;  %11511 = vmatmul.mubr.bf16.gmra.mrb[120].mxu1 %v10691_v37  ;;  %v9683_v13 = vsel %vm9627_vm12, %v26821_v62, %v26865_v43 }
 0x408   : > { %v26988_v45 = vpack.c.bf16 %v9679_v23, %v26774_v3  ;;  %vm9638_vm8 = vcmp.ge.f32.partialorder %v9610_v18, 0.0  ;;  %11408 = vmatpush1.bf16.msra.mxu0 %v22237_v26  ;;  %20000 = vmatpush3.bf16.msra.mxu1 %v22241_v33  ;;  %v22249_v31 = vld [vmem:[%s29244_s2 + $0x514] ss:$12 sps:$4 sm:$0xff]   ;;  %v26993_v63 = vpack.c.bf16 %v9683_v13, %v9679_v23  ;;  %v9688_v37 = vsel %vm9632_vm1, %v26850_v39, %v9660_v41  ;;  %v22250_v26 = vld [vmem:[%s29244_s2 + $0x5d8] ss:$12 sps:$4 sm:$0xff]  }
 0x409   : > { %v9692_v62 = vsel %vm9636_vm5, %v26906_v8, %v9664_v17  ;;  %vm9640_vm9 = vcmp.ge.f32.partialorder %v9612_v25, 0.0  ;;  %11431 = vmatprep.mubr.bf16.mxu0 %v10686_v15  ;;  %11551 = vmatprep.mubr.bf16.mxu1 %v10686_v15  ;;  %v9687_v39 = vsel %vm9631_vm15, %v26842_v36, %v26892_v44  ;;  %v9668_v41 = vmul.f32 0.01, %v9612_v25  ;;  %v22247_v15 = vld [vmem:[%s29244_s2 + $0x510] ss:$12 sps:$4 sm:$0xff]  }
 0x40a   : > { %v19905_v40 = vpop.f32.mrb[88].mxu1  ;;  %v27006_v33 = vpack.c.bf16 %v9692_v62, %v9688_v37  ;;  %11409 = vmatprep.subr.bf16.mxu0 %v22244_v29  ;;  %20001 = vmatprep.subr.bf16.mxu1 %v22245_v24  ;;  %v9691_v10 = vsel %vm9635_vm4, %v26897_v32, %v9663_v20  ;;  %v27020_v60 = vpack.c.bf16 %v26831_v54, %v26782_v34  ;;  %v22251_v44 = vld [vmem:[%s29244_s2 + $0x518] ss:$12 sps:$4 sm:$0xff]   ;;  %v22255_v32 = vld [vmem:[%s29244_s2 + $0x5f0] ss:$12 sps:$4 sm:$0xff]  }
 0x40b   : > { %v19906_v0 = vpop.f32.mrb[89].mxu1  ;;  %v27024_v17 = vpack.c.bf16 %v26912_v46, %v26845_v14  ;;  %v22254_v5 = vld [vmem:[%s29244_s2 + $0x52c] ss:$12 sps:$4 sm:$0xff]   ;;  %v27037_v34 = vpack.c.bf16 %v9691_v10, %v9687_v39  ;;  %v27041_v54 = vpack.c.bf16 %v26903_v57, %v26837_v53  ;;  %v9694_v14 = vsel %vm9638_vm8, %v9610_v18, %v9666_v30 }
 0x40c   : > { %v27001_v3 = vadd.f32 %v19906_v0, %v19905_v40  ;;  %v19908_v43 = vpop.f32.mrb[90].mxu1  ;;  %11410 = vmatpush1.bf16.msra.mxu0 %v22242_v4  ;;  %20002 = vmatpush3.bf16.msra.mxu1 %v22246_v35  ;;  %v27045_v46 = vpack.c.bf16 %v9694_v14, %v26926_v48  ;;  %v9693_v29 = vsel %vm9637_vm6, %v26934_v11, %v9665_v1  ;;  %v22252_v48 = vld [vmem:[%s29244_s2 + $0x528] ss:$12 sps:$4 sm:$0xff]   ;;  %v22257_v30 = vld [vmem:[%s29244_s2 + $0x540] ss:$12 sps:$4 sm:$0xff]  }
 0x40d   : > { %v19909_v8 = vpop.f32.mrb[91].mxu1  ;;  %v27052_v24 = vpack.c.bf16 %v26888_v49, %v26883_v16  ;;  %11411 = vmatprep.subr.bf16.mxu0 %v22249_v31  ;;  %20003 = vmatprep.subr.bf16.mxu1 %v22250_v26  ;;  %v27055_v53 = vpack.c.bf16 %v9693_v29, %v26920_v50  ;;  %v27058_v57 = vpack.c.bf16 %v9688_v37, %v26948_v2  ;;  %v22256_v50 = vld [vmem:[%s29244_s2 + $0x530] ss:$12 sps:$4 sm:$0xff]   ;;  %v22261_v40 = vld [vmem:[%s29244_s2 + $0x608] ss:$12 sps:$4 sm:$0xff]  }
 0x40e   : > { %v27026_v36 = vadd.f32 %v19909_v8, %v19908_v43  ;;  %v27060_v18 = vpack.c.bf16 %v9687_v39, %v9683_v13  ;;  %v9696_v11 = vsel %vm9640_vm9, %v9612_v25, %v9668_v41  ;;  %v9695_v16 = vsel %vm9639_vm7, %v26952_v51, %v9667_v28  ;;  %v22259_v2 = vld [vmem:[%s29244_s2 + $0x544] ss:$12 sps:$4 sm:$0xff]   ;;  %v22260_v51 = vld [vmem:[%s29244_s2 + $0x6c8] ss:$12 sps:$4 sm:$0xff]   ;;  %v22265_v31 = vld [vmem:[%s29244_s2 + $0x6e0] ss:$12 sps:$4 sm:$0xff]  }
 0x40f   : > { %v27075_v23 = vpack.c.bf16 %v9696_v11, %v9692_v62  ;;  %v27077_v20 = vpack.c.bf16 %v9695_v16, %v9691_v10  ;;  %v22264_v13 = vld [vmem:[%s29244_s2 + $0x55c] ss:$12 sps:$4 sm:$0xff]   ;;  %v22262_v0 = vld [vmem:[%s29244_s2 + $0x558] ss:$12 sps:$4 sm:$0xff]   ;;  %v22266_v62 = vld [vmem:[%s29244_s2 + $0x620] ss:$12 sps:$4 sm:$0xff]  }
 0x410   : > { %11412 = vmatpush1.bf16.msra.mxu0 %v22247_v15  ;;  %20004 = vmatpush3.bf16.msra.mxu1 %v22251_v44  ;;  %v22269_v43 = vld [vmem:[%s29244_s2 + $0x574] ss:$12 sps:$4 sm:$0xff]   ;;  %v22270_v39 = vld [vmem:[%s29244_s2 + $0x6f8] ss:$12 sps:$4 sm:$0xff]   ;;  %v22267_v10 = vld [vmem:[%s29244_s2 + $0x570] ss:$12 sps:$4 sm:$0xff]  }
 0x411   : > { %11413 = vmatprep.subr.bf16.mxu0 %v22254_v5  ;;  %20005 = vmatprep.subr.bf16.mxu1 %v22255_v32  ;;  %v22271_v5 = vld [vmem:[%s29244_s2 + $0x638] ss:$12 sps:$4 sm:$0xff]   ;;  %v22275_v14 = vld [vmem:[%s29244_s2 + $0x710] ss:$12 sps:$4 sm:$0xff]   ;;  %v22272_v29 = vld [vmem:[%s29244_s2 + $0x588] ss:$12 sps:$4 sm:$0xff]  }
 0x412   : > { %v19911_v49 = vpop.f32.mrb[92].mxu1  ;;  %v22274_v32 = vld [vmem:[%s29244_s2 + $0x58c] ss:$12 sps:$4 sm:$0xff]   ;;  %v22279_v11 = vld [vmem:[%s29244_s2 + $0x5a4] ss:$12 sps:$4 sm:$0xff]  }
 0x413   : > { %v19912_v25 = vpop.f32.mrb[93].mxu1  ;;  %v22280_v16 = vld [vmem:[%s29244_s2 + $0x728] ss:$12 sps:$4 sm:$0xff]  }
 0x414   : > { %v27082_v1 = vadd.f32 %v19912_v25, %v19911_v49  ;;  %v19914_v4 = vpop.f32.mrb[94].mxu1  ;;  %11414 = vmatpush1.bf16.msra.mxu0 %v22252_v48  ;;  %20006 = vmatpush3.bf16.msra.mxu1 %v22256_v50  ;;  %v22276_v48 = vld [vmem:[%s29244_s2 + $0x650] ss:$12 sps:$4 sm:$0xff]   ;;  %v22277_v49 = vld [vmem:[%s29244_s2 + $0x5a0] ss:$12 sps:$4 sm:$0xff]  }
 0x415   : > { %v19915_v35 = vpop.f32.mrb[95].mxu1  ;;  %11415 = vmatprep.subr.bf16.mxu0 %v22259_v2  ;;  %20025 = vmatprep.subr.bf16.mxu1 %v22260_v51  ;;  %v22281_v50 = vld [vmem:[%s29244_s2 + $0x668] ss:$12 sps:$4 sm:$0xff]   ;;  %v22285_v25 = vld [vmem:[%s29244_s2 + $0x740] ss:$12 sps:$4 sm:$0xff]  }
 0x416   : > { %v27084_v28 = vadd.f32 %v19915_v35, %v19914_v4  ;;  %v22284_v2 = vld [vmem:[%s29244_s2 + $0x5bc] ss:$12 sps:$4 sm:$0xff]   ;;  %v22282_v4 = vld [vmem:[%s29244_s2 + $0x5b8] ss:$12 sps:$4 sm:$0xff]  }
 0x417   : > { %11552 = vmatmul.mubr.bf16.vlgmr.msra.gmra.mrb[124].mxu1 %v26778_v47 }
 0x418   : > { %11416 = vmatpush1.bf16.msra.mxu0 %v22257_v30  ;;  %11559 = vmatprep.mubr.bf16.mxu1 %v26963_v22  ;;  %v22286_v30 = vld [vmem:[%s29244_s2 + $0x680] ss:$12 sps:$4 sm:$0xff]  }
 0x419   : > { %20026 = vmatpush3.bf16.msra.mxu1 %v22261_v40  ;;  %11417 = vmatprep.subr.bf16.mxu0 %v22264_v13 }
 0x41a   : > { %v19917_v37 = vpop.f32.mrb[96].mxu1  ;;  %20027 = vmatprep.subr.bf16.mxu1 %v22265_v31 }
 0x41b   : > { %v19918_v26 = vpop.f32.mrb[97].mxu1 }
 0x41c   : > { %v27112_v41 = vadd.f32 %v19918_v26, %v19917_v37  ;;  %v19920_v8 = vpop.f32.mrb[98].mxu1  ;;  %11418 = vmatpush1.bf16.msra.mxu0 %v22262_v0  ;;  %v22289_v0 = vld [vmem:[%s29244_s2 + $0x5d4] ss:$12 sps:$4 sm:$0xff]   ;;  %v22290_v37 = vld [vmem:[%s29244_s2 + $0x758] ss:$12 sps:$4 sm:$0xff]  }
 0x41d   : > { %v19921_v15 = vpop.f32.mrb[99].mxu1  ;;  %20028 = vmatpush3.bf16.msra.mxu1 %v22266_v62  ;;  %11419 = vmatprep.subr.bf16.mxu0 %v22269_v43  ;;  %v22287_v26 = vld [vmem:[%s29244_s2 + $0x5d0] ss:$12 sps:$4 sm:$0xff]  }
 0x41e   : > { %v27117_v44 = vadd.f32 %v19921_v15, %v19920_v8  ;;  %20029 = vmatprep.subr.bf16.mxu1 %v22270_v39  ;;  %v22291_v8 = vld [vmem:[%s29244_s2 + $0x698] ss:$12 sps:$4 sm:$0xff]   ;;  %v22295_v15 = vld [vmem:[%s29244_s2 + $0x770] ss:$12 sps:$4 sm:$0xff]  }
 0x41f   : > { %11560 = vmatmul.mubr.bf16.gmra.mrb[128].mxu1 %v26993_v63 }
 0x420   : > { %11420 = vmatpush1.bf16.msra.mxu0 %v22267_v10  ;;  %11567 = vmatprep.mubr.bf16.mxu1 %v27006_v33 }
 0x421   : > { %20030 = vmatpush3.bf16.msra.mxu1 %v22271_v5  ;;  %11421 = vmatprep.subr.bf16.mxu0 %v22274_v32  ;;  %v22296_v32 = vld [vmem:[%s29244_s2 + $0x6b0] ss:$12 sps:$4 sm:$0xff]  }
 0x422   : > { %20031 = vmatprep.subr.bf16.mxu1 %v22275_v14 }
 0x424   : > { %11422 = vmatpush1.bf16.msra.mxu0 %v22272_v29 }
 0x425   : > { %20032 = vmatpush3.bf16.msra.mxu1 %v22276_v48  ;;  %11423 = vmatprep.subr.bf16.mxu0 %v22279_v11  ;;  %v22299_v48 = vld [vmem:[%s29244_s2 + $0x604] ss:$12 sps:$4 sm:$0xff]  }
 0x426   : > { %20033 = vmatprep.subr.bf16.mxu1 %v22280_v16  ;;  %v22300_v16 = vld [vmem:[%s29244_s2 + $0x848] ss:$12 sps:$4 sm:$0xff]  }
 0x427   : > { %11568 = vmatmul.mubr.bf16.gmra.mrb[132].mxu1 %v27037_v34 }
 0x428   : > { %11424 = vmatpush1.bf16.msra.mxu0 %v22277_v49  ;;  %12465 = vmatprep.mubr.bf16.mxu1 %v25746_v38 }
 0x429   : > { %20034 = vmatpush3.bf16.msra.mxu1 %v22281_v50  ;;  %11425 = vmatprep.subr.bf16.mxu0 %v22284_v2 }
 0x42a   : > { %v19939_v51 = vpop.f32.mrb[100].mxu1  ;;  %20035 = vmatprep.subr.bf16.mxu1 %v22285_v25  ;;  %v22297_v25 = vld [vmem:[%s29244_s2 + $0x600] ss:$12 sps:$4 sm:$0xff]  }
 0x42b   : > { %v19940_v35 = vpop.f32.mrb[101].mxu1 }
 0x42c   : > { %v19941_v40 = vadd.f32 %v19940_v35, %v19939_v51  ;;  %v19942_v13 = vpop.f32.mrb[102].mxu1  ;;  %11426 = vmatpush1.bf16.msra.mxu0 %v22282_v4  ;;  %v22301_v51 = vld [vmem:[%s29244_s2 + $0x788] ss:$12 sps:$4 sm:$0xff]  }
 0x42d   : > { %v19943_v31 = vpop.f32.mrb[103].mxu1  ;;  %20036 = vmatpush3.bf16.msra.mxu1 %v22286_v30  ;;  %11427 = vmatprep.subr.bf16.mxu0 %v22289_v0  ;;  %v22302_v30 = vld [vmem:[%s29244_s2 + $0x618] ss:$12 sps:$4 sm:$0xff]  }
 0x42e   : > { %v27169_v62 = vadd.f32 %v19941_v40, %v27001_v3  ;;  %v19944_v43 = vadd.f32 %v19943_v31, %v19942_v13  ;;  %v22294_v3 = vld [vmem:[%s29244_s2 + $0x5ec] ss:$12 sps:$4 sm:$0xff]   ;;  %20037 = vmatprep.subr.bf16.mxu1 %v22290_v37 }
 0x430   : > { %v27175_v39 = vadd.f32 %v19944_v43, %v27026_v36  ;;  %11428 = vmatpush1.bf16.msra.mxu0 %v22287_v26  ;;  %v22292_v36 = vld [vmem:[%s29244_s2 + $0x5e8] ss:$12 sps:$4 sm:$0xff]   ;;  %v22310_v43 = vld [vmem:[%s29244_s2 + $0x878] ss:$12 sps:$4 sm:$0xff]  }
 0x431   : > { %20038 = vmatpush3.bf16.msra.mxu1 %v22291_v8  ;;  %11429 = vmatprep.subr.bf16.mxu0 %v22294_v3  ;;  %v22307_v8 = vld [vmem:[%s29244_s2 + $0x630] ss:$12 sps:$4 sm:$0xff]   ;;  %v22314_v3 = vld [vmem:[%s29244_s2 + $0x64c] ss:$12 sps:$4 sm:$0xff]  }
 0x432   : > { %v19945_v10 = vpop.f32.mrb[104].mxu1  ;;  %20039 = vmatprep.subr.bf16.mxu1 %v22295_v15  ;;  %v22312_v15 = vld [vmem:[%s29244_s2 + $0x648] ss:$12 sps:$4 sm:$0xff]  }
 0x433   : > { %v19946_v5 = vpop.f32.mrb[105].mxu1 }
 0x434   : > { %v19947_v14 = vadd.f32 %v19946_v5, %v19945_v10  ;;  %v19948_v29 = vpop.f32.mrb[106].mxu1  ;;  %11430 = vmatpush1.bf16.msra.mxu0 %v22292_v36  ;;  %v22319_v10 = vld [vmem:[%s29244_s2 + $0x664] ss:$12 sps:$4 sm:$0xff]   ;;  %v22317_v36 = vld [vmem:[%s29244_s2 + $0x660] ss:$12 sps:$4 sm:$0xff]  }
 0x435   : > { %v19949_v11 = vpop.f32.mrb[107].mxu1  ;;  %20040 = vmatpush3.bf16.msra.mxu1 %v22296_v32  ;;  %12307 = vmatprep.subr.bf16.mxu0 %v22299_v48  ;;  %v22321_v5 = vld [vmem:[%s29244_s2 + $0x7e8] ss:$12 sps:$4 sm:$0xff]  }
 0x436   : > { %v27199_v49 = vadd.f32 %v19947_v14, %v27082_v1  ;;  %v19950_v50 = vadd.f32 %v19949_v11, %v19948_v29  ;;  %20059 = vmatprep.subr.bf16.mxu1 %v22300_v16  ;;  %v22304_v1 = vld [vmem:[%s29244_s2 + $0x61c] ss:$12 sps:$4 sm:$0xff]   ;;  %v22325_v14 = vld [vmem:[%s29244_s2 + $0x8c0] ss:$12 sps:$4 sm:$0xff]   ;;  %v22322_v29 = vld [vmem:[%s29244_s2 + $0x678] ss:$12 sps:$4 sm:$0xff]  }
 0x437   : > { %11432 = vmatmul.mubr.bf16.vlgmr.msra.gmra.mrb[88].mxu0 %v26778_v47  ;;  %v22306_v47 = vld [vmem:[%s29244_s2 + $0x7a0] ss:$12 sps:$4 sm:$0xff]   ;;  %v22324_v32 = vld [vmem:[%s29244_s2 + $0x67c] ss:$12 sps:$4 sm:$0xff]   ;;  %v22331_v16 = vld [vmem:[%s29244_s2 + $0x818] ss:$12 sps:$4 sm:$0xff]  }
 0x438   : > { %v27202_v2 = vadd.f32 %v19950_v50, %v27084_v28  ;;  %v22305_v28 = vld [vmem:[%s29244_s2 + $0x860] ss:$12 sps:$4 sm:$0xff]   ;;  %12466 = vmatmul.mubr.bf16.vlgmr.msra.gmra.mrb[136].mxu1 %v25529_v56  ;;  %11441 = vmatprep.mubr.bf16.mxu0 %v26963_v22  ;;  %v22327_v11 = vld [vmem:[%s29244_s2 + $0x690] ss:$12 sps:$4 sm:$0xff]  }
 0x439   : > { %12308 = vmatpush1.bf16.msra.mxu0 %v22297_v25  ;;  %12473 = vmatprep.mubr.bf16.mxu1 %v25750_v59  ;;  %v22309_v22 = vld [vmem:[%s29244_s2 + $0x634] ss:$12 sps:$4 sm:$0xff]   ;;  %v22334_v50 = vld [vmem:[%s29244_s2 + $0x6ac] ss:$12 sps:$4 sm:$0xff]   ;;  %v22335_v25 = vld [vmem:[%s29244_s2 + $0x8f0] ss:$12 sps:$4 sm:$0xff]  }
 0x43a   : > { %v19951_v4 = vpop.f32.mrb[108].mxu1  ;;  %20060 = vmatpush3.bf16.msra.mxu1 %v22301_v51  ;;  %12309 = vmatprep.subr.bf16.mxu0 %v22304_v1  ;;  %v22329_v48 = vld [vmem:[%s29244_s2 + $0x694] ss:$12 sps:$4 sm:$0xff]   ;;  %v22336_v1 = vld [vmem:[%s29244_s2 + $0x830] ss:$12 sps:$4 sm:$0xff]  }
 0x43b   : > { %v19952_v35 = vpop.f32.mrb[109].mxu1  ;;  %20061 = vmatprep.subr.bf16.mxu1 %v22305_v28  ;;  %v22332_v51 = vld [vmem:[%s29244_s2 + $0x6a8] ss:$12 sps:$4 sm:$0xff]   ;;  %v22339_v28 = vld [vmem:[%s29244_s2 + $0x6c4] ss:$12 sps:$4 sm:$0xff]  }
 0x43c   : > { %v19953_v40 = vadd.f32 %v19952_v35, %v19951_v4  ;;  %v19954_v13 = vpop.f32.mrb[110].mxu1  ;;  %v22340_v4 = vld [vmem:[%s29244_s2 + $0x9c8] ss:$12 sps:$4 sm:$0xff]   ;;  %v22337_v35 = vld [vmem:[%s29244_s2 + $0x6c0] ss:$12 sps:$4 sm:$0xff]  }
 0x43d   : > { %v19955_v0 = vpop.f32.mrb[111].mxu1  ;;  %12310 = vmatpush1.bf16.msra.mxu0 %v22302_v30  ;;  %v22341_v30 = vld [vmem:[%s29244_s2 + $0x908] ss:$12 sps:$4 sm:$0xff]  }
 0x43e   : > { %v27230_v31 = vadd.f32 %v19953_v40, %v27112_v41  ;;  %v19956_v37 = vadd.f32 %v19955_v0, %v19954_v13  ;;  %20062 = vmatpush3.bf16.msra.mxu1 %v22306_v47  ;;  %12311 = vmatprep.subr.bf16.mxu0 %v22309_v22  ;;  %v22311_v41 = vld [vmem:[%s29244_s2 + $0x7b8] ss:$12 sps:$4 sm:$0xff]   ;;  %v22344_v40 = vld [vmem:[%s29244_s2 + $0x6dc] ss:$12 sps:$4 sm:$0xff]   ;;  %v22345_v13 = vld [vmem:[%s29244_s2 + $0x9e0] ss:$12 sps:$4 sm:$0xff]  }
 0x43f   : > { %11442 = vmatmul.mubr.bf16.gmra.mrb[92].mxu0 %v26993_v63  ;;  %20063 = vmatprep.subr.bf16.mxu1 %v22310_v43  ;;  %v22316_v63 = vld [vmem:[%s29244_s2 + $0x7d0] ss:$12 sps:$4 sm:$0xff]   ;;  %v22342_v47 = vld [vmem:[%s29244_s2 + $0x6d8] ss:$12 sps:$4 sm:$0xff]   ;;  %v22346_v0 = vld [vmem:[%s29244_s2 + $0x920] ss:$12 sps:$4 sm:$0xff]  }
 0x440   : > { %v27236_v26 = vadd.f32 %v19956_v37, %v27117_v44  ;;  %v22315_v44 = vld [vmem:[%s29244_s2 + $0x890] ss:$12 sps:$4 sm:$0xff]   ;;  %12474 = vmatmul.mubr.bf16.gmra.mrb[140].mxu1 %v25754_v9  ;;  %11451 = vmatprep.mubr.bf16.mxu0 %v27006_v33  ;;  %v22320_v33 = vld [vmem:[%s29244_s2 + $0x8a8] ss:$12 sps:$4 sm:$0xff]   ;;  %v22350_v37 = vld [vmem:[%s29244_s2 + $0x9f8] ss:$12 sps:$4 sm:$0xff]  }
 0x441   : > { %12312 = vmatpush1.bf16.msra.mxu0 %v22307_v8  ;;  %12481 = vmatprep.mubr.bf16.mxu1 %v25774_v61  ;;  %v22349_v22 = vld [vmem:[%s29244_s2 + $0x6f4] ss:$12 sps:$4 sm:$0xff]   ;;  %v22347_v43 = vld [vmem:[%s29244_s2 + $0x6f0] ss:$12 sps:$4 sm:$0xff]   ;;  %v22351_v8 = vld [vmem:[%s29244_s2 + $0x938] ss:$12 sps:$4 sm:$0xff]  }
 0x442   : > { %20064 = vmatpush3.bf16.msra.mxu1 %v22311_v41  ;;  %12313 = vmatprep.subr.bf16.mxu0 %v22314_v3  ;;  %v22354_v41 = vld [vmem:[%s29244_s2 + $0x70c] ss:$12 sps:$4 sm:$0xff]   ;;  %v22355_v3 = vld [vmem:[%s29244_s2 + $0xa10] ss:$12 sps:$4 sm:$0xff]  }
 0x443   : > { %20065 = vmatprep.subr.bf16.mxu1 %v22315_v44  ;;  %v22352_v44 = vld [vmem:[%s29244_s2 + $0x708] ss:$12 sps:$4 sm:$0xff]  }
 0x445   : > { %12314 = vmatpush1.bf16.msra.mxu0 %v22312_v15  ;;  %v22356_v15 = vld [vmem:[%s29244_s2 + $0x950] ss:$12 sps:$4 sm:$0xff]  }
 0x446   : > { %20066 = vmatpush3.bf16.msra.mxu1 %v22316_v63  ;;  %12315 = vmatprep.subr.bf16.mxu0 %v22319_v10  ;;  %v22359_v63 = vld [vmem:[%s29244_s2 + $0x724] ss:$12 sps:$4 sm:$0xff]   ;;  %v22360_v10 = vld [vmem:[%s29244_s2 + $0xa28] ss:$12 sps:$4 sm:$0xff]  }
 0x447   : > { %11452 = vmatmul.mubr.bf16.gmra.mrb[96].mxu0 %v27037_v34  ;;  %20067 = vmatprep.subr.bf16.mxu1 %v22320_v33  ;;  %v22326_v34 = vld [vmem:[%s29244_s2 + $0x800] ss:$12 sps:$4 sm:$0xff]  }
 0x448   : > { %12482 = vmatmul.mubr.bf16.gmra.mrb[144].mxu1 %v25777_v27  ;;  %12339 = vmatprep.mubr.bf16.mxu0 %v25746_v38  ;;  %v22330_v38 = vld [vmem:[%s29244_s2 + $0x8d8] ss:$12 sps:$4 sm:$0xff]   ;;  %v22357_v33 = vld [vmem:[%s29244_s2 + $0x720] ss:$12 sps:$4 sm:$0xff]  }
 0x449   : > { %12316 = vmatpush1.bf16.msra.mxu0 %v22317_v36  ;;  %12522 = vmatprep.mubr.bf16.mxu1 %v25766_v52  ;;  %v22361_v36 = vld [vmem:[%s29244_s2 + $0x968] ss:$12 sps:$4 sm:$0xff]  }
 0x44a   : > { %20068 = vmatpush3.bf16.msra.mxu1 %v22321_v5  ;;  %12317 = vmatprep.subr.bf16.mxu0 %v22324_v32  ;;  %v22364_v5 = vld [vmem:[%s29244_s2 + $0x73c] ss:$12 sps:$4 sm:$0xff]   ;;  %v22365_v32 = vld [vmem:[%s29244_s2 + $0xa40] ss:$12 sps:$4 sm:$0xff]  }
 0x44b   : > { %20069 = vmatprep.subr.bf16.mxu1 %v22325_v14  ;;  %v22362_v14 = vld [vmem:[%s29244_s2 + $0x738] ss:$12 sps:$4 sm:$0xff]  }
 0x44d   : > { %12318 = vmatpush1.bf16.msra.mxu0 %v22322_v29  ;;  %v22366_v29 = vld [vmem:[%s29244_s2 + $0x980] ss:$12 sps:$4 sm:$0xff]  }
 0x44e   : > { %20070 = vmatpush3.bf16.msra.mxu1 %v22326_v34  ;;  %12319 = vmatprep.subr.bf16.mxu0 %v22329_v48  ;;  %v22369_v34 = vld [vmem:[%s29244_s2 + $0x754] ss:$12 sps:$4 sm:$0xff]   ;;  %v22370_v48 = vld [vmem:[%s29244_s2 + $0xa58] ss:$12 sps:$4 sm:$0xff]  }
 0x44f   : > { %20071 = vmatprep.subr.bf16.mxu1 %v22330_v38  ;;  %v22367_v38 = vld [vmem:[%s29244_s2 + $0x750] ss:$12 sps:$4 sm:$0xff]  }
 0x451   : > { %12320 = vmatpush1.bf16.msra.mxu0 %v22327_v11  ;;  %v22371_v11 = vld [vmem:[%s29244_s2 + $0x998] ss:$12 sps:$4 sm:$0xff]  }
 0x452   : > { %20072 = vmatpush3.bf16.msra.mxu1 %v22331_v16  ;;  %12321 = vmatprep.subr.bf16.mxu0 %v22334_v50  ;;  %v22374_v16 = vld [vmem:[%s29244_s2 + $0x76c] ss:$12 sps:$4 sm:$0xff]   ;;  %v22375_v50 = vld [vmem:[%s29244_s2 + $0xa70] ss:$12 sps:$4 sm:$0xff]  }
 0x453   : > { %20073 = vmatprep.subr.bf16.mxu1 %v22335_v25  ;;  %v22372_v25 = vld [vmem:[%s29244_s2 + $0x768] ss:$12 sps:$4 sm:$0xff]  }
 0x455   : > { %12322 = vmatpush1.bf16.msra.mxu0 %v22332_v51  ;;  %v22376_v51 = vld [vmem:[%s29244_s2 + $0x9b0] ss:$12 sps:$4 sm:$0xff]  }
 0x456   : > { %20074 = vmatpush3.bf16.msra.mxu1 %v22336_v1  ;;  %12323 = vmatprep.subr.bf16.mxu0 %v22339_v28  ;;  %v22379_v1 = vld [vmem:[%s29244_s2 + $0x784] ss:$12 sps:$4 sm:$0xff]   ;;  %v22380_v28 = vld [vmem:[%s29244_s2 + $0xb48] ss:$12 sps:$4 sm:$0xff]  }
 0x457   : > { %20093 = vmatprep.subr.bf16.mxu1 %v22340_v4  ;;  %v22377_v4 = vld [vmem:[%s29244_s2 + $0x780] ss:$12 sps:$4 sm:$0xff]  }
 0x459   : > { %12523 = vmatmul.mubr.bf16.vlgmr.msra.gmra.mrb[148].mxu1 %v25716_v19  ;;  %12324 = vmatpush1.bf16.msra.mxu0 %v22337_v35  ;;  %v22381_v35 = vld [vmem:[%s29244_s2 + $0xa88] ss:$12 sps:$4 sm:$0xff]  }
 0x45a   : > { %12530 = vmatprep.mubr.bf16.mxu1 %v25768_v55  ;;  %20094 = vmatpush3.bf16.msra.mxu1 %v22341_v30  ;;  %v22384_v30 = vld [vmem:[%s29244_s2 + $0x79c] ss:$12 sps:$4 sm:$0xff]  }
 0x45b   : > { %12325 = vmatprep.subr.bf16.mxu0 %v22344_v40  ;;  %20095 = vmatprep.subr.bf16.mxu1 %v22345_v13  ;;  %v22385_v40 = vld [vmem:[%s29244_s2 + $0xb60] ss:$12 sps:$4 sm:$0xff]   ;;  %v22382_v13 = vld [vmem:[%s29244_s2 + $0x798] ss:$12 sps:$4 sm:$0xff]  }
 0x45d   : > { %12326 = vmatpush1.bf16.msra.mxu0 %v22342_v47  ;;  %v22389_v47 = vld [vmem:[%s29244_s2 + $0x7b4] ss:$12 sps:$4 sm:$0xff]  }
 0x45e   : > { %20096 = vmatpush3.bf16.msra.mxu1 %v22346_v0  ;;  %12327 = vmatprep.subr.bf16.mxu0 %v22349_v22  ;;  %v22387_v0 = vld [vmem:[%s29244_s2 + $0x7b0] ss:$12 sps:$4 sm:$0xff]   ;;  %v22391_v22 = vld [vmem:[%s29244_s2 + $0xab8] ss:$12 sps:$4 sm:$0xff]  }
 0x45f   : > { %20097 = vmatprep.subr.bf16.mxu1 %v22350_v37  ;;  %v22394_v37 = vld [vmem:[%s29244_s2 + $0x7cc] ss:$12 sps:$4 sm:$0xff]  }
 0x461   : > { %12531 = vmatmul.mubr.bf16.gmra.mrb[152].mxu1 %v25779_v21  ;;  %12328 = vmatpush1.bf16.msra.mxu0 %v22347_v43  ;;  %v22395_v43 = vld [vmem:[%s29244_s2 + $0xb90] ss:$12 sps:$4 sm:$0xff]  }
 0x462   : > { %12538 = vmatprep.mubr.bf16.mxu1 %v25790_v42  ;;  %20098 = vmatpush3.bf16.msra.mxu1 %v22351_v8  ;;  %v22392_v8 = vld [vmem:[%s29244_s2 + $0x7c8] ss:$12 sps:$4 sm:$0xff]  }
 0x463   : > { %12329 = vmatprep.subr.bf16.mxu0 %v22354_v41  ;;  %20099 = vmatprep.subr.bf16.mxu1 %v22355_v3  ;;  %v22399_v41 = vld [vmem:[%s29244_s2 + $0x7e4] ss:$12 sps:$4 sm:$0xff]   ;;  %v22397_v3 = vld [vmem:[%s29244_s2 + $0x7e0] ss:$12 sps:$4 sm:$0xff]  }
 0x465   : > { %12330 = vmatpush1.bf16.msra.mxu0 %v22352_v44  ;;  %v22401_v44 = vld [vmem:[%s29244_s2 + $0xae8] ss:$12 sps:$4 sm:$0xff]  }
 0x466   : > { %20100 = vmatpush3.bf16.msra.mxu1 %v22356_v15  ;;  %12331 = vmatprep.subr.bf16.mxu0 %v22359_v63  ;;  %v22404_v15 = vld [vmem:[%s29244_s2 + $0x7fc] ss:$12 sps:$4 sm:$0xff]   ;;  %v22405_v63 = vld [vmem:[%s29244_s2 + $0xbc0] ss:$12 sps:$4 sm:$0xff]  }
 0x467   : > { %20101 = vmatprep.subr.bf16.mxu1 %v22360_v10  ;;  %v22402_v10 = vld [vmem:[%s29244_s2 + $0x7f8] ss:$12 sps:$4 sm:$0xff]  }
 0x469   : > { %12539 = vmatmul.mubr.bf16.gmra.mrb[156].mxu1 %v25792_v58  ;;  %12332 = vmatpush1.bf16.msra.mxu0 %v22357_v33  ;;  %v22409_v33 = vld [vmem:[%s29244_s2 + $0x814] ss:$12 sps:$4 sm:$0xff]  }
 0x46a   : > { %20102 = vmatpush3.bf16.msra.mxu1 %v22361_v36  ;;  %13436 = vmatprep.mubr.bf16.mxu1 %v27020_v60  ;;  %v22407_v36 = vld [vmem:[%s29244_s2 + $0x810] ss:$12 sps:$4 sm:$0xff]  }
 0x46b   : > { %12333 = vmatprep.subr.bf16.mxu0 %v22364_v5  ;;  %20103 = vmatprep.subr.bf16.mxu1 %v22365_v32  ;;  %v22411_v5 = vld [vmem:[%s29244_s2 + $0xb18] ss:$12 sps:$4 sm:$0xff]  }
 0x46c   : > { %v22414_v32 = vld [vmem:[%s29244_s2 + $0x82c] ss:$12 sps:$4 sm:$0xff]  }
 0x46d   : > { %12334 = vmatpush1.bf16.msra.mxu0 %v22362_v14  ;;  %v22415_v14 = vld [vmem:[%s29244_s2 + $0xbf0] ss:$12 sps:$4 sm:$0xff]  }
 0x46e   : > { %20104 = vmatpush3.bf16.msra.mxu1 %v22366_v29  ;;  %12335 = vmatprep.subr.bf16.mxu0 %v22369_v34  ;;  %v22412_v29 = vld [vmem:[%s29244_s2 + $0x828] ss:$12 sps:$4 sm:$0xff]   ;;  %v22416_v34 = vld [vmem:[%s29244_s2 + $0xb30] ss:$12 sps:$4 sm:$0xff]  }
 0x46f   : > { %20105 = vmatprep.subr.bf16.mxu1 %v22370_v48  ;;  %v22419_v48 = vld [vmem:[%s29244_s2 + $0x844] ss:$12 sps:$4 sm:$0xff]  }
 0x471   : > { %12336 = vmatpush1.bf16.msra.mxu0 %v22367_v38  ;;  %v22417_v38 = vld [vmem:[%s29244_s2 + $0x840] ss:$12 sps:$4 sm:$0xff]  }
 0x472   : > { %20106 = vmatpush3.bf16.msra.mxu1 %v22371_v11  ;;  %12337 = vmatprep.subr.bf16.mxu0 %v22374_v16  ;;  %v22422_v11 = vld [vmem:[%s29244_s2 + $0x85c] ss:$12 sps:$4 sm:$0xff]   ;;  %v22420_v16 = vld [vmem:[%s29244_s2 + $0x858] ss:$12 sps:$4 sm:$0xff]  }
 0x473   : > { %20107 = vmatprep.subr.bf16.mxu1 %v22375_v50  ;;  %v22425_v50 = vld [vmem:[%s29244_s2 + $0x874] ss:$12 sps:$4 sm:$0xff]  }
 0x475   : > { %12338 = vmatpush1.bf16.msra.mxu0 %v22372_v25  ;;  %v22423_v25 = vld [vmem:[%s29244_s2 + $0x870] ss:$12 sps:$4 sm:$0xff]  }
 0x476   : > { %20108 = vmatpush3.bf16.msra.mxu1 %v22376_v51  ;;  %12370 = vmatprep.subr.bf16.mxu0 %v22379_v1  ;;  %v22428_v51 = vld [vmem:[%s29244_s2 + $0x88c] ss:$12 sps:$4 sm:$0xff]   ;;  %v22426_v1 = vld [vmem:[%s29244_s2 + $0x888] ss:$12 sps:$4 sm:$0xff]  }
 0x477   : > { %20127 = vmatprep.subr.bf16.mxu1 %v22380_v28  ;;  %v22431_v28 = vld [vmem:[%s29244_s2 + $0x8a4] ss:$12 sps:$4 sm:$0xff]  }
 0x478   : > { %12340 = vmatmul.mubr.bf16.vlgmr.msra.gmra.mrb[88].mxu0 %v25529_v56  ;;  %v22386_v56 = vld [vmem:[%s29244_s2 + $0xaa0] ss:$12 sps:$4 sm:$0xff]  }
 0x479   : > { %13437 = vmatmul.mubr.bf16.vlgmr.msra.gmra.mrb[160].mxu1 %v26807_v12  ;;  %12349 = vmatprep.mubr.bf16.mxu0 %v25750_v59  ;;  %v22390_v59 = vld [vmem:[%s29244_s2 + $0xb78] ss:$12 sps:$4 sm:$0xff]  }
 0x47a   : > { %12371 = vmatpush1.bf16.msra.mxu0 %v22377_v4  ;;  %13444 = vmatprep.mubr.bf16.mxu1 %v27024_v17  ;;  %v22429_v4 = vld [vmem:[%s29244_s2 + $0x8a0] ss:$12 sps:$4 sm:$0xff]  }
 0x47b   : > { %20128 = vmatpush3.bf16.msra.mxu1 %v22381_v35  ;;  %12372 = vmatprep.subr.bf16.mxu0 %v22384_v30  ;;  %v22434_v35 = vld [vmem:[%s29244_s2 + $0x8bc] ss:$12 sps:$4 sm:$0xff]   ;;  %v22432_v30 = vld [vmem:[%s29244_s2 + $0x8b8] ss:$12 sps:$4 sm:$0xff]  }
 0x47c   : > { %20129 = vmatprep.subr.bf16.mxu1 %v22385_v40  ;;  %v22437_v40 = vld [vmem:[%s29244_s2 + $0x8d4] ss:$12 sps:$4 sm:$0xff]  }
 0x47e   : > { %12373 = vmatpush1.bf16.msra.mxu0 %v22382_v13  ;;  %v22435_v13 = vld [vmem:[%s29244_s2 + $0x8d0] ss:$12 sps:$4 sm:$0xff]  }
 0x47f   : > { %20130 = vmatpush3.bf16.msra.mxu1 %v22386_v56  ;;  %12374 = vmatprep.subr.bf16.mxu0 %v22389_v47  ;;  %v22440_v56 = vld [vmem:[%s29244_s2 + $0x8ec] ss:$12 sps:$4 sm:$0xff]   ;;  %v22438_v47 = vld [vmem:[%s29244_s2 + $0x8e8] ss:$12 sps:$4 sm:$0xff]  }
 0x480   : > { %12350 = vmatmul.mubr.bf16.gmra.mrb[92].mxu0 %v25754_v9  ;;  %20131 = vmatprep.subr.bf16.mxu1 %v22390_v59  ;;  %v22396_v9 = vld [vmem:[%s29244_s2 + $0xad0] ss:$12 sps:$4 sm:$0xff]  }
 0x481   : > { %13445 = vmatmul.mubr.bf16.gmra.mrb[164].mxu1 %v27041_v54  ;;  %12359 = vmatprep.mubr.bf16.mxu0 %v25774_v61  ;;  %v22400_v61 = vld [vmem:[%s29244_s2 + $0xba8] ss:$12 sps:$4 sm:$0xff]   ;;  %v22443_v59 = vld [vmem:[%s29244_s2 + $0x904] ss:$12 sps:$4 sm:$0xff]  }
 0x482   : > { %12375 = vmatpush1.bf16.msra.mxu0 %v22387_v0  ;;  %13452 = vmatprep.mubr.bf16.mxu1 %v27045_v46  ;;  %v22441_v0 = vld [vmem:[%s29244_s2 + $0x900] ss:$12 sps:$4 sm:$0xff]  }
 0x483   : > { %20132 = vmatpush3.bf16.msra.mxu1 %v22391_v22  ;;  %12376 = vmatprep.subr.bf16.mxu0 %v22394_v37  ;;  %v22446_v22 = vld [vmem:[%s29244_s2 + $0x91c] ss:$12 sps:$4 sm:$0xff]   ;;  %v22444_v37 = vld [vmem:[%s29244_s2 + $0x918] ss:$12 sps:$4 sm:$0xff]  }
 0x484   : > { %20133 = vmatprep.subr.bf16.mxu1 %v22395_v43  ;;  %v22449_v43 = vld [vmem:[%s29244_s2 + $0x934] ss:$12 sps:$4 sm:$0xff]  }
 0x486   : > { %12377 = vmatpush1.bf16.msra.mxu0 %v22392_v8  ;;  %v22447_v8 = vld [vmem:[%s29244_s2 + $0x930] ss:$12 sps:$4 sm:$0xff]  }
 0x487   : > { %20134 = vmatpush3.bf16.msra.mxu1 %v22396_v9  ;;  %12378 = vmatprep.subr.bf16.mxu0 %v22399_v41  ;;  %v22455_v9 = vld [vmem:[%s29244_s2 + $0x964] ss:$12 sps:$4 sm:$0xff]   ;;  %v22453_v41 = vld [vmem:[%s29244_s2 + $0x960] ss:$12 sps:$4 sm:$0xff]  }
 0x488   : > { %12360 = vmatmul.mubr.bf16.gmra.mrb[96].mxu0 %v25777_v27  ;;  %20135 = vmatprep.subr.bf16.mxu1 %v22400_v61  ;;  %v22406_v27 = vld [vmem:[%s29244_s2 + $0xb00] ss:$12 sps:$4 sm:$0xff]   ;;  %v22456_v61 = vld [vmem:[%s29244_s2 + $0x978] ss:$12 sps:$4 sm:$0xff]  }
 0x489   : > { %13453 = vmatmul.mubr.bf16.gmra.mrb[168].mxu1 %v27055_v53  ;;  %12402 = vmatprep.mubr.bf16.mxu0 %v25766_v52  ;;  %v22410_v52 = vld [vmem:[%s29244_s2 + $0xbd8] ss:$12 sps:$4 sm:$0xff]  }
 0x48a   : > { %12379 = vmatpush1.bf16.msra.mxu0 %v22397_v3  ;;  %13493 = vmatprep.mubr.bf16.mxu1 %v27052_v24 }
 0x48b   : > { %20136 = vmatpush3.bf16.msra.mxu1 %v22401_v44  ;;  %12380 = vmatprep.subr.bf16.mxu0 %v22404_v15  ;;  %v22461_v44 = vld [vmem:[%s29244_s2 + $0x994] ss:$12 sps:$4 sm:$0xff]  }
 0x48c   : > { %20137 = vmatprep.subr.bf16.mxu1 %v22405_v63 }
 0x48e   : > { %12381 = vmatpush1.bf16.msra.mxu0 %v22402_v10 }
 0x48f   : > { %20138 = vmatpush3.bf16.msra.mxu1 %v22406_v27  ;;  %12382 = vmatprep.subr.bf16.mxu0 %v22409_v33 }
 0x490   : > { %20139 = vmatprep.subr.bf16.mxu1 %v22410_v52  ;;  %v22462_v52 = vld [vmem:[%s29244_s2 + $0x9a8] ss:$12 sps:$4 sm:$0xff]  }
 0x492   : > { %12383 = vmatpush1.bf16.msra.mxu0 %v22407_v36 }
 0x493   : > { %20140 = vmatpush3.bf16.msra.mxu1 %v22411_v5  ;;  %12384 = vmatprep.subr.bf16.mxu0 %v22414_v32  ;;  %v22467_v5 = vld [vmem:[%s29244_s2 + $0x9c4] ss:$12 sps:$4 sm:$0xff]  }
 0x494   : > { %20141 = vmatprep.subr.bf16.mxu1 %v22415_v14 }
 0x496   : > { %12385 = vmatpush1.bf16.msra.mxu0 %v22412_v29 }
 0x497   : > { %20142 = vmatpush3.bf16.msra.mxu1 %v22416_v34  ;;  %12386 = vmatprep.subr.bf16.mxu0 %v22419_v48  ;;  %v22465_v48 = vld [vmem:[%s29244_s2 + $0x9c0] ss:$12 sps:$4 sm:$0xff]  }
 0x49a   : > { %13494 = vmatmul.mubr.bf16.vlgmr.msra.gmra.mrb[172].mxu1 %v26988_v45  ;;  %12387 = vmatpush1.bf16.msra.mxu0 %v22417_v38  ;;  %v22470_v38 = vld [vmem:[%s29244_s2 + $0x9dc] ss:$12 sps:$4 sm:$0xff]  }
 0x49b   : > { %13501 = vmatprep.mubr.bf16.mxu1 %v27058_v57  ;;  %12388 = vmatprep.subr.bf16.mxu0 %v22422_v11 }
 0x49e   : > { %12389 = vmatpush1.bf16.msra.mxu0 %v22420_v16  ;;  %v22468_v16 = vld [vmem:[%s29244_s2 + $0x9d8] ss:$12 sps:$4 sm:$0xff]  }
 0x49f   : > { %12390 = vmatprep.subr.bf16.mxu0 %v22425_v50 }
 0x4a2   : > { %13502 = vmatmul.mubr.bf16.gmra.mrb[176].mxu1 %v27060_v18  ;;  %12391 = vmatpush1.bf16.msra.mxu0 %v22423_v25  ;;  %v22473_v25 = vld [vmem:[%s29244_s2 + $0x9f4] ss:$12 sps:$4 sm:$0xff]  }
 0x4a3   : > { %13509 = vmatprep.mubr.bf16.mxu1 %v27075_v23  ;;  %12392 = vmatprep.subr.bf16.mxu0 %v22428_v51 }
 0x4a6   : > { %12393 = vmatpush1.bf16.msra.mxu0 %v22426_v1 }
 0x4a7   : > { %12394 = vmatprep.subr.bf16.mxu0 %v22431_v28 }
 0x4aa   : > { %13510 = vmatmul.mubr.bf16.gmra.mrb[180].mxu1 %v27077_v20  ;;  %12395 = vmatpush1.bf16.msra.mxu0 %v22429_v4 }
 0x4ab   : > { %12396 = vmatprep.subr.bf16.mxu0 %v22434_v35  ;;  %v22471_v35 = vld [vmem:[%s29244_s2 + $0x9f0] ss:$12 sps:$4 sm:$0xff]  }
 0x4ae   : > { %12397 = vmatpush1.bf16.msra.mxu0 %v22432_v30  ;;  %v22476_v30 = vld [vmem:[%s29244_s2 + $0xa0c] ss:$12 sps:$4 sm:$0xff]  }
 0x4af   : > { %12398 = vmatprep.subr.bf16.mxu0 %v22437_v40  ;;  %v22474_v40 = vld [vmem:[%s29244_s2 + $0xa08] ss:$12 sps:$4 sm:$0xff]  }
 0x4b2   : > { %12399 = vmatpush1.bf16.msra.mxu0 %v22435_v13  ;;  %v22479_v13 = vld [vmem:[%s29244_s2 + $0xa24] ss:$12 sps:$4 sm:$0xff]  }
 0x4b3   : > { %12400 = vmatprep.subr.bf16.mxu0 %v22440_v56  ;;  %v22477_v56 = vld [vmem:[%s29244_s2 + $0xa20] ss:$12 sps:$4 sm:$0xff]  }
 0x4b6   : > { %12401 = vmatpush1.bf16.msra.mxu0 %v22438_v47  ;;  %v22482_v47 = vld [vmem:[%s29244_s2 + $0xa3c] ss:$12 sps:$4 sm:$0xff]  }
 0x4b7   : > { %13278 = vmatprep.subr.bf16.mxu0 %v22443_v59 }
 0x4b9   : > { %12403 = vmatmul.mubr.bf16.vlgmr.msra.gmra.mrb[88].mxu0 %v25716_v19  ;;  %v22452_v19 = vld [vmem:[%s29244_s2 + $0x94c] ss:$12 sps:$4 sm:$0xff]  }
 0x4ba   : > { %12412 = vmatprep.mubr.bf16.mxu0 %v25768_v55  ;;  %13279 = vmatpush1.bf16.msra.mxu0 %v22441_v0  ;;  %v22450_v55 = vld [vmem:[%s29244_s2 + $0x948] ss:$12 sps:$4 sm:$0xff]   ;;  %v22480_v0 = vld [vmem:[%s29244_s2 + $0xa38] ss:$12 sps:$4 sm:$0xff]  }
 0x4bb   : > { %13280 = vmatprep.subr.bf16.mxu0 %v22446_v22 }
 0x4be   : > { %13281 = vmatpush1.bf16.msra.mxu0 %v22444_v37  ;;  %v22485_v37 = vld [vmem:[%s29244_s2 + $0xa54] ss:$12 sps:$4 sm:$0xff]  }
 0x4bf   : > { %13282 = vmatprep.subr.bf16.mxu0 %v22449_v43 }
 0x4c1   : > { %12413 = vmatmul.mubr.bf16.gmra.mrb[92].mxu0 %v25779_v21  ;;  %v22458_v21 = vld [vmem:[%s29244_s2 + $0x97c] ss:$12 sps:$4 sm:$0xff]  }
 0x4c2   : > { %12422 = vmatprep.mubr.bf16.mxu0 %v25790_v42  ;;  %13283 = vmatpush1.bf16.msra.mxu0 %v22447_v8 }
 0x4c3   : > { %13284 = vmatprep.subr.bf16.mxu0 %v22452_v19 }
 0x4c6   : > { %13285 = vmatpush1.bf16.msra.mxu0 %v22450_v55 }
 0x4c7   : > { %13286 = vmatprep.subr.bf16.mxu0 %v22455_v9 }
 0x4c8   : > { %v19973_v42 = vpop.f32.mrb[112].mxu1 }
 0x4c9   : > { %12423 = vmatmul.mubr.bf16.gmra.mrb[96].mxu0 %v25792_v58  ;;  %v19974_v3 = vpop.f32.mrb[113].mxu1  ;;  %v22459_v58 = vld [vmem:[%s29244_s2 + $0x990] ss:$12 sps:$4 sm:$0xff]  }
 0x4ca   : > { %13287 = vmatpush1.bf16.msra.mxu0 %v22453_v41  ;;  %13310 = vmatprep.mubr.bf16.mxu0 %v27020_v60  ;;  %v19975_v15 = vadd.f32 %v19974_v3, %v19973_v42  ;;  %v19976_v63 = vpop.f32.mrb[114].mxu1  ;;  %v22464_v60 = vld [vmem:[%s29244_s2 + $0x9ac] ss:$12 sps:$4 sm:$0xff]   ;;  %v22483_v41 = vld [vmem:[%s29244_s2 + $0xa50] ss:$12 sps:$4 sm:$0xff]  }
 0x4cb   : > { %13288 = vmatprep.subr.bf16.mxu0 %v22458_v21  ;;  %v19977_v10 = vpop.f32.mrb[115].mxu1  ;;  %v22488_v21 = vld [vmem:[%s29244_s2 + $0xa6c] ss:$12 sps:$4 sm:$0xff]  }
 0x4cc   : > { %v19978_v27 = vadd.f32 %v19977_v10, %v19976_v63  ;;  %v22491_v10 = vld [vmem:[%s29244_s2 + $0xa84] ss:$12 sps:$4 sm:$0xff]  }
 0x4ce   : > { %13289 = vmatpush1.bf16.msra.mxu0 %v22456_v61 }
 0x4cf   : > { %13290 = vmatprep.subr.bf16.mxu0 %v22461_v44 }
 0x4d0   : > { %v19979_v33 = vpop.f32.mrb[116].mxu1 }
 0x4d1   : > { %v19980_v36 = vpop.f32.mrb[117].mxu1 }
 0x4d2   : > { %13291 = vmatpush1.bf16.msra.mxu0 %v22459_v58  ;;  %v19981_v32 = vadd.f32 %v19980_v36, %v19979_v33  ;;  %v19982_v14 = vpop.f32.mrb[118].mxu1 }
 0x4d3   : > { %13292 = vmatprep.subr.bf16.mxu0 %v22464_v60  ;;  %v19983_v29 = vpop.f32.mrb[119].mxu1 }
 0x4d4   : > { %v19984_v34 = vadd.f32 %v19983_v29, %v19982_v14  ;;  %v22492_v29 = vld [vmem:[%s29244_s2 + $0xa98] ss:$12 sps:$4 sm:$0xff]  }
 0x4d6   : > { %13293 = vmatpush1.bf16.msra.mxu0 %v22462_v52  ;;  %v22494_v52 = vld [vmem:[%s29244_s2 + $0xa9c] ss:$12 sps:$4 sm:$0xff]  }
 0x4d7   : > { %13294 = vmatprep.subr.bf16.mxu0 %v22467_v5 }
 0x4da   : > { %13295 = vmatpush1.bf16.msra.mxu0 %v22465_v48  ;;  %v19985_v11 = vpop.f32.mrb[120].mxu1 }
 0x4db   : > { %13296 = vmatprep.subr.bf16.mxu0 %v22470_v38  ;;  %v19986_v50 = vpop.f32.mrb[121].mxu1 }
 0x4dc   : > { %v27644_v51 = vadd.f32 %v19986_v50, %v19985_v11  ;;  %v19988_v1 = vpop.f32.mrb[122].mxu1 }
 0x4dd   : > { %v19989_v28 = vpop.f32.mrb[123].mxu1 }
 0x4de   : > { %13297 = vmatpush1.bf16.msra.mxu0 %v22468_v16  ;;  %v27646_v4 = vadd.f32 %v19989_v28, %v19988_v1  ;;  %v22500_v16 = vld [vmem:[%s29244_s2 + $0xacc] ss:$12 sps:$4 sm:$0xff]   ;;  %v22498_v1 = vld [vmem:[%s29244_s2 + $0xac8] ss:$12 sps:$4 sm:$0xff]  }
 0x4df   : > { %13298 = vmatprep.subr.bf16.mxu0 %v22473_v25  ;;  %v22539_v28 = vld [vmem:[%s29245_s3 + $0x184] ss:$8 sps:$4 sm:$0xff]  }
 0x4e0   : > { %14025 = vmatprep.subr.bf16.mxu1 %v22539_v28  ;;  %v22566_v28 = vld [vmem:[%s29245_s3 + $0x214] ss:$8 sps:$4 sm:$0xff]  }
 0x4e2   : > { %13299 = vmatpush1.bf16.msra.mxu0 %v22471_v35  ;;  %v22504_v35 = vld [vmem:[%s29244_s2 + $0xaf8] ss:$12 sps:$4 sm:$0xff]  }
 0x4e3   : > { %13300 = vmatprep.subr.bf16.mxu0 %v22476_v30 }
 0x4e6   : > { %13301 = vmatpush1.bf16.msra.mxu0 %v22474_v40  ;;  %v22509_v40 = vld [vmem:[%s29244_s2 + $0xb14] ss:$12 sps:$4 sm:$0xff]  }
 0x4e7   : > { %13302 = vmatprep.subr.bf16.mxu0 %v22479_v13  ;;  %v22540_v13 = vld [vmem:[%s29245_s3 + $0x190] ss:$8 sps:$4 sm:$0xff]  }
 0x4ea   : > { %13303 = vmatpush1.bf16.msra.mxu0 %v22477_v56  ;;  %v20007_v59 = vpop.f32.mrb[124].mxu1 }
 0x4eb   : > { %v20008_v22 = vpop.f32.mrb[125].mxu1  ;;  %13304 = vmatprep.subr.bf16.mxu0 %v22482_v47 }
 0x4ec   : > { %v20009_v43 = vadd.f32 %v20008_v22, %v20007_v59  ;;  %v20010_v8 = vpop.f32.mrb[126].mxu1 }
 0x4ed   : > { %v20011_v19 = vpop.f32.mrb[127].mxu1 }
 0x4ee   : > { %v11554_v55 = vadd.f32 %v20009_v43, %v19975_v15  ;;  %13305 = vmatpush1.bf16.msra.mxu0 %v22480_v0  ;;  %v20012_v9 = vadd.f32 %v20011_v19, %v20010_v8  ;;  %v22486_v15 = vld [vmem:[%s29244_s2 + $0xa68] ss:$12 sps:$4 sm:$0xff]   ;;  %v22507_v0 = vld [vmem:[%s29244_s2 + $0xb10] ss:$12 sps:$4 sm:$0xff]  }
 0x4ef   : > { %13306 = vmatprep.subr.bf16.mxu0 %v22485_v37  ;;  %v22512_v37 = vld [vmem:[%s29244_s2 + $0xb2c] ss:$12 sps:$4 sm:$0xff]   ;;  %v22543_v43 = vld [vmem:[%s29245_s3 + $0x1a0] ss:$8 sps:$4 sm:$0xff]   ;;  %v22548_v8 = vld [vmem:[%s29245_s3 + $0x1b4] ss:$8 sps:$4 sm:$0xff]  }
 0x4f0   : > { %v27679_v42 = vadd.f32 %v11554_v55, %v27169_v62  ;;  %v11557_v61 = vadd.f32 %v20012_v9, %v19978_v27  ;;  %v22510_v19 = vld [vmem:[%s29244_s2 + $0xb28] ss:$12 sps:$4 sm:$0xff]   ;;  %v22515_v9 = vld [vmem:[%s29244_s2 + $0xb44] ss:$12 sps:$4 sm:$0xff]  }
 0x4f2   : > { %v27682_v3 = vadd.f32 %v11557_v61, %v27175_v39  ;;  %13307 = vmatpush1.bf16.msra.mxu0 %v22483_v41  ;;  %v20013_v44 = vpop.f32.mrb[128].mxu1  ;;  %v22489_v39 = vld [vmem:[%s29244_s2 + $0xa80] ss:$12 sps:$4 sm:$0xff]   ;;  %v22546_v41 = vld [vmem:[%s29245_s3 + $0x1b0] ss:$8 sps:$4 sm:$0xff]  }
 0x4f3   : > { %v20014_v63 = vpop.f32.mrb[129].mxu1  ;;  %13308 = vmatprep.subr.bf16.mxu0 %v22488_v21  ;;  %v22551_v61 = vld [vmem:[%s29245_s3 + $0x1c4] ss:$8 sps:$4 sm:$0xff]  }
 0x4f4   : > { %v20015_v58 = vadd.f32 %v20014_v63, %v20013_v44  ;;  %v20016_v60 = vpop.f32.mrb[130].mxu1 }
 0x4f5   : > { %v20017_v62 = vpop.f32.mrb[131].mxu1 }
 0x4f6   : > { %v11562_v33 = vadd.f32 %v20015_v58, %v19981_v32  ;;  %13309 = vmatpush1.bf16.msra.mxu0 %v22486_v15  ;;  %v20018_v27 = vadd.f32 %v20017_v62, %v20016_v60  ;;  %v22518_v60 = vld [vmem:[%s29244_s2 + $0xb5c] ss:$12 sps:$4 sm:$0xff]  }
 0x4f7   : > { %13341 = vmatprep.subr.bf16.mxu0 %v22491_v10  ;;  %v22513_v10 = vld [vmem:[%s29244_s2 + $0xb40] ss:$12 sps:$4 sm:$0xff]  }
 0x4f8   : > { %v27697_v36 = vadd.f32 %v11562_v33, %v27199_v49  ;;  %v11565_v5 = vadd.f32 %v20018_v27, %v19984_v34  ;;  %v22497_v49 = vld [vmem:[%s29244_s2 + $0xab4] ss:$12 sps:$4 sm:$0xff]   ;;  %v22516_v27 = vld [vmem:[%s29244_s2 + $0xb58] ss:$12 sps:$4 sm:$0xff]  }
 0x4f9   : > { %13311 = vmatmul.mubr.bf16.vlgmr.msra.gmra.mrb[88].mxu0 %v26807_v12  ;;  %v22549_v62 = vld [vmem:[%s29245_s3 + $0x1c0] ss:$8 sps:$4 sm:$0xff]   ;;  %v22554_v33 = vld [vmem:[%s29245_s3 + $0x1d4] ss:$8 sps:$4 sm:$0xff]  }
 0x4fa   : > { %v27701_v14 = vadd.f32 %v11565_v5, %v27202_v2  ;;  %13320 = vmatprep.mubr.bf16.mxu0 %v27024_v17  ;;  %13342 = vmatpush1.bf16.msra.mxu0 %v22489_v39  ;;  %v20019_v32 = vpop.f32.mrb[132].mxu1  ;;  %v22495_v17 = vld [vmem:[%s29244_s2 + $0xab0] ss:$12 sps:$4 sm:$0xff]  }
 0x4fb   : > { %v20020_v48 = vpop.f32.mrb[133].mxu1  ;;  %13343 = vmatprep.subr.bf16.mxu0 %v22494_v52  ;;  %v22521_v52 = vld [vmem:[%s29244_s2 + $0xb74] ss:$12 sps:$4 sm:$0xff]   ;;  %v22552_v5 = vld [vmem:[%s29245_s3 + $0x1d0] ss:$8 sps:$4 sm:$0xff]  }
 0x4fc   : > { %v20021_v34 = vadd.f32 %v20020_v48, %v20019_v32  ;;  %v20022_v38 = vpop.f32.mrb[134].mxu1 }
 0x4fd   : > { %v20023_v12 = vpop.f32.mrb[135].mxu1 }
 0x4fe   : > { %v11570_v2 = vadd.f32 %v20021_v34, %v27644_v51  ;;  %13344 = vmatpush1.bf16.msra.mxu0 %v22492_v29  ;;  %v20024_v11 = vadd.f32 %v20023_v12, %v20022_v38  ;;  %v22557_v29 = vld [vmem:[%s29245_s3 + $0x1e4] ss:$8 sps:$4 sm:$0xff]   ;;  %v22519_v38 = vld [vmem:[%s29244_s2 + $0xb70] ss:$12 sps:$4 sm:$0xff]  }
 0x4ff   : > { %13345 = vmatprep.subr.bf16.mxu0 %v22497_v49 }
 0x500   : > { %v27718_v50 = vadd.f32 %v11570_v2, %v27230_v31  ;;  %v11573_v25 = vadd.f32 %v20024_v11, %v27646_v4  ;;  %v22503_v31 = vld [vmem:[%s29244_s2 + $0xae4] ss:$12 sps:$4 sm:$0xff]   ;;  %v22542_v4 = vld [vmem:[%s29245_s3 + $0x194] ss:$8 sps:$4 sm:$0xff]   ;;  %v22524_v2 = vld [vmem:[%s29244_s2 + $0xb8c] ss:$12 sps:$4 sm:$0xff]  }
 0x501   : > { %13321 = vmatmul.mubr.bf16.gmra.mrb[92].mxu0 %v27041_v54  ;;  %v22501_v54 = vld [vmem:[%s29244_s2 + $0xae0] ss:$12 sps:$4 sm:$0xff]  }
 0x502   : > { %v27723_v51 = vadd.f32 %v11573_v25, %v27236_v26  ;;  %13330 = vmatprep.mubr.bf16.mxu0 %v27045_v46  ;;  %13346 = vmatpush1.bf16.msra.mxu0 %v22495_v17  ;;  %v22506_v46 = vld [vmem:[%s29244_s2 + $0xafc] ss:$12 sps:$4 sm:$0xff]   ;;  %v22527_v25 = vld [vmem:[%s29244_s2 + $0xba4] ss:$12 sps:$4 sm:$0xff]  }
 0x503   : > { %13347 = vmatprep.subr.bf16.mxu0 %v22500_v16  ;;  %v22537_v26 = vld [vmem:[%s29245_s3 + $0x180] ss:$8 sps:$4 sm:$0xff]   ;;  %v22560_v17 = vld [vmem:[%s29245_s3 + $0x1f4] ss:$8 sps:$4 sm:$0xff]  }
 0x504   : > { %14026 = vmatpush1.bf16.msra.mxu1 %v22537_v26  ;;  %v22555_v11 = vld [vmem:[%s29245_s3 + $0x1e0] ss:$8 sps:$4 sm:$0xff]  }
 0x505   : > { %14027 = vmatprep.subr.bf16.mxu1 %v22542_v4  ;;  %v22522_v16 = vld [vmem:[%s29244_s2 + $0xb88] ss:$12 sps:$4 sm:$0xff]   ;;  %v22528_v4 = vld [vmem:[%s29244_s2 + $0xbb8] ss:$12 sps:$4 sm:$0xff]  }
 0x506   : > { %13348 = vmatpush1.bf16.msra.mxu0 %v22498_v1  ;;  %v22558_v1 = vld [vmem:[%s29245_s3 + $0x1f0] ss:$8 sps:$4 sm:$0xff]   ;;  %v22561_v26 = vld [vmem:[%s29245_s3 + $0x200] ss:$8 sps:$4 sm:$0xff]  }
 0x507   : > { %13349 = vmatprep.subr.bf16.mxu0 %v22503_v31  ;;  %v22563_v31 = vld [vmem:[%s29245_s3 + $0x204] ss:$8 sps:$4 sm:$0xff]  }
 0x508   : > { %14028 = vmatpush1.bf16.msra.mxu1 %v22540_v13  ;;  %v22569_v13 = vld [vmem:[%s29245_s3 + $0x224] ss:$8 sps:$4 sm:$0xff]  }
 0x509   : > { %13331 = vmatmul.mubr.bf16.gmra.mrb[96].mxu0 %v27055_v53 }
 0x50a   : > { %13350 = vmatpush1.bf16.msra.mxu0 %v22501_v54  ;;  %13373 = vmatprep.mubr.bf16.mxu0 %v27052_v24  ;;  %v22545_v24 = vld [vmem:[%s29245_s3 + $0x1a4] ss:$8 sps:$4 sm:$0xff]  }
 0x50b   : > { %v20041_v30 = vpop.f32.mrb[136].mxu1  ;;  %13351 = vmatprep.subr.bf16.mxu0 %v22506_v46  ;;  %14029 = vmatprep.subr.bf16.mxu1 %v22545_v24  ;;  %v22525_v54 = vld [vmem:[%s29244_s2 + $0xba0] ss:$12 sps:$4 sm:$0xff]   ;;  %v22530_v46 = vld [vmem:[%s29244_s2 + $0xbbc] ss:$12 sps:$4 sm:$0xff]  }
 0x50c   : > { %v20042_v53 = vpop.f32.mrb[137].mxu1  ;;  %14030 = vmatpush1.bf16.msra.mxu1 %v22543_v43  ;;  %v22567_v43 = vld [vmem:[%s29245_s3 + $0x220] ss:$8 sps:$4 sm:$0xff]  }
 0x50d   : > { %v27761_v56 = vadd.f32 %v20042_v53, %v20041_v30  ;;  %v20044_v47 = vpop.f32.mrb[138].mxu1  ;;  %14031 = vmatprep.subr.bf16.mxu1 %v22548_v8  ;;  %v22564_v30 = vld [vmem:[%s29245_s3 + $0x210] ss:$8 sps:$4 sm:$0xff]  }
 0x50e   : > { %13352 = vmatpush1.bf16.msra.mxu0 %v22504_v35  ;;  %v20045_v59 = vpop.f32.mrb[139].mxu1  ;;  %v22533_v35 = vld [vmem:[%s29244_s2 + $0xbd4] ss:$12 sps:$4 sm:$0xff]  }
 0x50f   : > { %v27766_v22 = vadd.f32 %v20045_v59, %v20044_v47  ;;  %13353 = vmatprep.subr.bf16.mxu0 %v22509_v40  ;;  %v22531_v59 = vld [vmem:[%s29244_s2 + $0xbd0] ss:$12 sps:$4 sm:$0xff]  }
 0x510   : > { %14032 = vmatpush1.bf16.msra.mxu1 %v22546_v41 }
 0x511   : > { %14033 = vmatprep.subr.bf16.mxu1 %v22551_v61 }
 0x512   : > { %13354 = vmatpush1.bf16.msra.mxu0 %v22507_v0 }
 0x513   : > { %v20047_v55 = vpop.f32.mrb[140].mxu1  ;;  %13355 = vmatprep.subr.bf16.mxu0 %v22512_v37  ;;  %v22536_v37 = vld [vmem:[%s29244_s2 + $0xbec] ss:$12 sps:$4 sm:$0xff]  }
 0x514   : > { %v20048_v21 = vpop.f32.mrb[141].mxu1  ;;  %14034 = vmatpush1.bf16.msra.mxu1 %v22549_v62 }
 0x515   : > { %v27789_v44 = vadd.f32 %v20048_v21, %v20047_v55  ;;  %v20050_v15 = vpop.f32.mrb[142].mxu1  ;;  %14035 = vmatprep.subr.bf16.mxu1 %v22554_v33  ;;  %v22572_v55 = vld [vmem:[%s29245_s3 + $0x234] ss:$8 sps:$4 sm:$0xff]  }
 0x516   : > { %13356 = vmatpush1.bf16.msra.mxu0 %v22510_v19  ;;  %v20051_v63 = vpop.f32.mrb[143].mxu1  ;;  %v22534_v21 = vld [vmem:[%s29244_s2 + $0xbe8] ss:$12 sps:$4 sm:$0xff]  }
 0x517   : > { %v27794_v58 = vadd.f32 %v20051_v63, %v20050_v15  ;;  %13357 = vmatprep.subr.bf16.mxu0 %v22515_v9 }
 0x518   : > { %14036 = vmatpush1.bf16.msra.mxu1 %v22552_v5 }
 0x519   : > { %14037 = vmatprep.subr.bf16.mxu1 %v22557_v29 }
 0x51a   : > { %13358 = vmatpush1.bf16.msra.mxu0 %v22513_v10 }
 0x51b   : > { %v20053_v39 = vpop.f32.mrb[144].mxu1  ;;  %13359 = vmatprep.subr.bf16.mxu0 %v22518_v60 }
 0x51c   : > { %v20054_v32 = vpop.f32.mrb[145].mxu1  ;;  %14038 = vmatpush1.bf16.msra.mxu1 %v22555_v11 }
 0x51d   : > { %v27817_v48 = vadd.f32 %v20054_v32, %v20053_v39  ;;  %v20056_v49 = vpop.f32.mrb[146].mxu1  ;;  %14039 = vmatprep.subr.bf16.mxu1 %v22560_v17 }
 0x51e   : > { %13360 = vmatpush1.bf16.msra.mxu0 %v22516_v27  ;;  %v20057_v34 = vpop.f32.mrb[147].mxu1 }
 0x51f   : > { %v27822_v12 = vadd.f32 %v20057_v34, %v20056_v49  ;;  %13361 = vmatprep.subr.bf16.mxu0 %v22521_v52 }
 0x520   : > { %14040 = vmatpush1.bf16.msra.mxu1 %v22558_v1 }
 0x521   : > { %14041 = vmatprep.subr.bf16.mxu1 %v22563_v31 }
 0x522   : > { %13362 = vmatpush1.bf16.msra.mxu0 %v22519_v38 }
 0x523   : > { %13363 = vmatprep.subr.bf16.mxu0 %v22524_v2 }
 0x524   : > { %14042 = vmatpush1.bf16.msra.mxu1 %v22561_v26  ;;  %v27917_v26 = vld [vmem:[%s29248_s6] sm:$0x7] }
 0x525   : > { %14043 = vmatprep.subr.bf16.mxu1 %v22566_v28 }
 0x526   : > { %13364 = vmatpush1.bf16.msra.mxu0 %v22522_v16 }
 0x527   : > { %13365 = vmatprep.subr.bf16.mxu0 %v22527_v25 }
 0x528   : > { %14044 = vmatpush1.bf16.msra.mxu1 %v22564_v30 }
 0x529   : > { %14045 = vmatprep.subr.bf16.mxu1 %v22569_v13 }
 0x52a   : > { %13366 = vmatpush1.bf16.msra.mxu0 %v22525_v54 }
 0x52b   : > { %13367 = vmatprep.subr.bf16.mxu0 %v22530_v46 }
 0x52c   : > { %v20075_v40 = vpop.f32.mrb[148].mxu1  ;;  %14046 = vmatpush1.bf16.msra.mxu1 %v22567_v43 }
 0x52d   : > { %v20076_v53 = vpop.f32.mrb[149].mxu1  ;;  %14047 = vmatprep.subr.bf16.mxu1 %v22572_v55 }
 0x52e   : > { %v20077_v24 = vadd.f32 %v20076_v53, %v20075_v40  ;;  %v20078_v47 = vpop.f32.mrb[150].mxu1  ;;  %13368 = vmatpush1.bf16.msra.mxu0 %v22528_v4  ;;  %v13567_v40 = vrot.slane %v27917_v26, %v25357_v7 }
 0x52f   : > { %v20079_v0 = vpop.f32.mrb[151].mxu1  ;;  %13369 = vmatprep.subr.bf16.mxu0 %v22533_v35 }
 0x530   : > { %v12525_v8 = vadd.f32 %v20077_v24, %v27761_v56  ;;  %v20080_v19 = vadd.f32 %v20079_v0, %v20078_v47  ;;  %v22570_v56 = vld [vmem:[%s29245_s3 + $0x230] ss:$8 sps:$4 sm:$0xff]  }
 0x531   : > { %14048 = vmatpush1.bf16.msra.mxu1 %v22570_v56 }
 0x532   : > { %v27883_v9 = vadd.f32 %v12525_v8, %v27679_v42  ;;  %v12528_v41 = vadd.f32 %v20080_v19, %v27766_v22  ;;  %13370 = vmatpush1.bf16.msra.mxu0 %v22531_v59 }
 0x533   : > { %13371 = vmatprep.subr.bf16.mxu0 %v22536_v37 }
 0x534   : > { %v12570_v61 = vadd.f32 %v12528_v41, %v27682_v3  ;;  %v20081_v15 = vpop.f32.mrb[152].mxu1 }
 0x535   : > { %v20082_v63 = vpop.f32.mrb[153].mxu1 }
 0x536   : > { %v20083_v42 = vadd.f32 %v20082_v63, %v20081_v15  ;;  %v20084_v10 = vpop.f32.mrb[154].mxu1  ;;  %13372 = vmatpush1.bf16.msra.mxu0 %v22534_v21 }
 0x537   : > { %v20085_v22 = vpop.f32.mrb[155].mxu1 }
 0x538   : > { %v12533_v60 = vadd.f32 %v20083_v42, %v27789_v44  ;;  %v20086_v62 = vadd.f32 %v20085_v22, %v20084_v10 }
 0x539   : > { %13374 = vmatmul.mubr.bf16.vlgmr.msra.gmra.mrb[88].mxu0 %v26988_v45 }
 0x53a   : > { %v27896_v33 = vadd.f32 %v12533_v60, %v27697_v36  ;;  %v12536_v27 = vadd.f32 %v20086_v62, %v27794_v58  ;;  %13383 = vmatprep.mubr.bf16.mxu0 %v27058_v57 }
 0x53c   : > { %v27901_v3 = vadd.f32 %v12536_v27, %v27701_v14  ;;  %v20087_v39 = vpop.f32.mrb[156].mxu1 }
 0x53d   : > { %v20088_v52 = vpop.f32.mrb[157].mxu1 }
 0x53e   : > { %v20089_v5 = vadd.f32 %v20088_v52, %v20087_v39  ;;  %v20090_v32 = vpop.f32.mrb[158].mxu1 }
 0x53f   : > { %v20091_v29 = vpop.f32.mrb[159].mxu1 }
 0x540   : > { %v12541_v44 = vadd.f32 %v20089_v5, %v27817_v48  ;;  %v20092_v49 = vadd.f32 %v20091_v29, %v20090_v32 }
 0x541   : > { %13384 = vmatmul.mubr.bf16.gmra.mrb[92].mxu0 %v27060_v18 }
 0x542   : > { %v27906_v45 = vadd.f32 %v12541_v44, %v27718_v50  ;;  %v12544_v36 = vadd.f32 %v20092_v49, %v27822_v12  ;;  %13393 = vmatprep.mubr.bf16.mxu0 %v27075_v23 }
 0x544   : > { %v27911_v57 = vadd.f32 %v12544_v36, %v27723_v51 }
 0x549   : > { %13394 = vmatmul.mubr.bf16.gmra.mrb[96].mxu0 %v27077_v20 }
 0x54c   : > { %v20109_v14 = vpop.f32.mrb[160].mxu1 }
 0x54d   : > { %v20110_v58 = vpop.f32.mrb[161].mxu1 }
 0x54e   : > { %v20111_v34 = vadd.f32 %v20110_v58, %v20109_v14  ;;  %v20112_v38 = vpop.f32.mrb[162].mxu1 }
 0x54f   : > { %v20113_v48 = vpop.f32.mrb[163].mxu1 }
 0x550   : > { %v20114_v2 = vadd.f32 %v20113_v48, %v20112_v38 }
 0x554   : > { %v20115_v11 = vpop.f32.mrb[164].mxu1 }
 0x555   : > { %v20116_v18 = vpop.f32.mrb[165].mxu1 }
 0x556   : > { %v20117_v17 = vadd.f32 %v20116_v18, %v20115_v11  ;;  %v20118_v50 = vpop.f32.mrb[166].mxu1 }
 0x557   : > { %v20119_v16 = vpop.f32.mrb[167].mxu1 }
 0x558   : > { %v20120_v25 = vadd.f32 %v20119_v16, %v20118_v50 }
 0x55c   : > { %v20121_v12 = vpop.f32.mrb[168].mxu1 }
 0x55d   : > { %v20122_v1 = vpop.f32.mrb[169].mxu1 }
 0x55e   : > { %v20123_v23 = vadd.f32 %v20122_v1, %v20121_v12  ;;  %v20124_v31 = vpop.f32.mrb[170].mxu1  ;;  %v22575_v12 = vld [vmem:[%s29245_s3 + $0x244] ss:$8 sps:$4 sm:$0xff]   ;;  %v22576_v1 = vld [vmem:[%s29245_s3 + $0x250] ss:$8 sps:$4 sm:$0xff]  }
 0x55f   : > { %v20125_v51 = vpop.f32.mrb[171].mxu1  ;;  %14049 = vmatprep.subr.bf16.mxu1 %v22575_v12 }
 0x560   : > { %v20126_v54 = vadd.f32 %v20125_v51, %v20124_v31  ;;  %v22579_v31 = vld [vmem:[%s29245_s3 + $0x260] ss:$8 sps:$4 sm:$0xff]   ;;  %v22581_v51 = vld [vmem:[%s29245_s3 + $0x264] ss:$8 sps:$4 sm:$0xff]  }
 0x56d   : > { %v20143_v46 = vpop.f32.mrb[172].mxu1 }
 0x56e   : > { %v20144_v20 = vpop.f32.mrb[173].mxu1 }
 0x56f   : > { %v20145_v28 = vadd.f32 %v20144_v20, %v20143_v46  ;;  %v20146_v4 = vpop.f32.mrb[174].mxu1  ;;  %v22582_v46 = vld [vmem:[%s29245_s3 + $0x270] ss:$8 sps:$4 sm:$0xff]   ;;  %v22587_v20 = vld [vmem:[%s29245_s3 + $0x284] ss:$8 sps:$4 sm:$0xff]  }
 0x570   : > { %v20147_v35 = vpop.f32.mrb[175].mxu1 }
 0x571   : > { %v13496_v30 = vadd.f32 %v20145_v28, %v20111_v34  ;;  %v20148_v13 = vadd.f32 %v20147_v35, %v20146_v4  ;;  %v13559_v28 = vrot.slane %v27917_v26, %v25355_v6  ;;  %v29259_v4 = vld [vmem:[#allocation7_spill] sm:$0xff] }
 0x572   : > { %v27981_v35 = vrot.slane %v27917_v26, %v29259_v4 }
 0x573   : > { %v13538_v53 = vadd.f32 %v13496_v30, %v27883_v9  ;;  %v13499_v24 = vadd.f32 %v20148_v13, %v20114_v2 }
 0x575   : > { %v13573_v47 = vadd.f32 %v13567_v40, %v13538_v53  ;;  %v13541_v59 = vadd.f32 %v13499_v24, %v12570_v61  ;;  %v20149_v0 = vpop.f32.mrb[176].mxu1 }
 0x576   : > { %v20150_v37 = vpop.f32.mrb[177].mxu1 }
 0x577   : > { %v13609_v43 = vmul.f32 0.01, %v13573_v47  ;;  %v13576_v8 = vadd.f32 %v13567_v40, %v13541_v59  ;;  %v20151_v19 = vadd.f32 %v20150_v37, %v20149_v0  ;;  %v20152_v55 = vpop.f32.mrb[178].mxu1  ;;  %vm13591_vm10 = vcmp.ge.f32.partialorder %v13573_v47, 0.0 }
 0x578   : > { %v20153_v41 = vpop.f32.mrb[179].mxu1 }
 0x579   : > { %vm13594_vm11 = vcmp.ge.f32.partialorder %v13576_v8, 0.0  ;;  %v13612_v21 = vmul.f32 0.01, %v13576_v8  ;;  %v13504_v56 = vadd.f32 %v20151_v19, %v20117_v17  ;;  %v20154_v15 = vadd.f32 %v20153_v41, %v20152_v55 }
 0x57a   : > { %v27922_v63 = vsel %vm13591_vm10, %v13573_v47, %v13609_v43 }
 0x57b   : > { %v27924_v42 = vsel %vm13594_vm11, %v13576_v8, %v13612_v21  ;;  %v13544_v9 = vadd.f32 %v13504_v56, %v27896_v33  ;;  %v13507_v10 = vadd.f32 %v20154_v15, %v20120_v25 }
 0x57c   : > { %v13675_v61 = vpack.c.bf16 %v27924_v42, %v27922_v63  ;;  %v22795_v63 = vld [vmem:[%s29246_s4 + $0xe0] ss:$16 sps:$4 sm:$0xff]  }
 0x57d   : > { %v13579_v22 = vadd.f32 %v13567_v40, %v13544_v9  ;;  %v20155_v60 = vpop.f32.mrb[180].mxu1  ;;  %v13547_v62 = vadd.f32 %v13507_v10, %v27901_v3 }
 0x57e   : > { %v20156_v27 = vpop.f32.mrb[181].mxu1 }
 0x57f   : > { %vm13597_vm12 = vcmp.ge.f32.partialorder %v13579_v22, 0.0  ;;  %v13615_v39 = vmul.f32 0.01, %v13579_v22  ;;  %v20157_v52 = vadd.f32 %v20156_v27, %v20155_v60  ;;  %v20158_v5 = vpop.f32.mrb[182].mxu1  ;;  %v13582_v32 = vadd.f32 %v13567_v40, %v13547_v62 }
 0x580   : > { %v20159_v29 = vpop.f32.mrb[183].mxu1 }
 0x581   : > { %v27930_v44 = vsel %vm13597_vm12, %v13579_v22, %v13615_v39  ;;  %v13512_v49 = vadd.f32 %v20157_v52, %v20123_v23  ;;  %v20160_v36 = vadd.f32 %v20159_v29, %v20158_v5  ;;  %vm13600_vm13 = vcmp.ge.f32.partialorder %v13582_v32, 0.0  ;;  %v22578_v23 = vld [vmem:[%s29245_s3 + $0x254] ss:$8 sps:$4 sm:$0xff]  }
 0x582   : > { %v13732_v33 = vpack.c.bf16 %v27930_v44, %v27924_v42  ;;  %v13618_v14 = vmul.f32 0.01, %v13582_v32  ;;  %v22803_v42 = vld [vmem:[%s29246_s4 + $0x104] ss:$16 sps:$4 sm:$0xff]  }
 0x583   : > { %v13550_v58 = vadd.f32 %v13512_v49, %v27906_v45  ;;  %v13515_v34 = vadd.f32 %v20160_v36, %v20126_v54  ;;  %v22584_v54 = vld [vmem:[%s29245_s3 + $0x274] ss:$8 sps:$4 sm:$0xff]  }
 0x584   : > { %v27935_v3 = vsel %vm13600_vm13, %v13582_v32, %v13618_v14 }
 0x585   : > { %v13585_v38 = vadd.f32 %v13567_v40, %v13550_v58  ;;  %v13553_v48 = vadd.f32 %v13515_v34, %v27911_v57  ;;  %v27940_v2 = vpack.c.bf16 %v27935_v3, %v27930_v44  ;;  %v22573_v57 = vld [vmem:[%s29245_s3 + $0x240] ss:$8 sps:$4 sm:$0xff]   ;;  %v22620_v44 = vld [vmem:[%s29245_s3 + $0x34] ss:$8 sps:$4 sm:$0xff]  }
 0x586   : > { %14050 = vmatpush1.bf16.msra.mxu1 %v22573_v57 }
 0x587   : > { %v13588_v11 = vadd.f32 %v13567_v40, %v13553_v48  ;;  %vm13603_vm0 = vcmp.ge.f32.partialorder %v13585_v38, 0.0  ;;  %v13621_v18 = vmul.f32 0.01, %v13585_v38  ;;  %14051 = vmatprep.subr.bf16.mxu1 %v22578_v23 }
 0x589   : > { %v27942_v17 = vsel %vm13603_vm0, %v13585_v38, %v13621_v18  ;;  %vm13606_vm14 = vcmp.ge.f32.partialorder %v13588_v11, 0.0  ;;  %v13624_v50 = vmul.f32 0.01, %v13588_v11  ;;  %v22585_v38 = vld [vmem:[%s29245_s3 + $0x280] ss:$8 sps:$4 sm:$0xff]  }
 0x58a   : > { %v13735_v45 = vpack.c.bf16 %v27942_v17, %v27935_v3  ;;  %14052 = vmatpush1.bf16.msra.mxu1 %v22576_v1  ;;  %v22590_v18 = vld [vmem:[%s29245_s3 + $0x294] ss:$8 sps:$4 sm:$0xff]   ;;  %v22621_v3 = vld [vmem:[%s29245_s3 + $0x40] ss:$8 sps:$4 sm:$0xff]  }
 0x58b   : > { %v27946_v16 = vsel %vm13606_vm14, %v13588_v11, %v13624_v50  ;;  %14053 = vmatprep.subr.bf16.mxu1 %v22581_v51 }
 0x58c   : > { %v14494_v25 = vpack.c.bf16 %v27946_v16, %v27942_v17  ;;  %v22788_v17 = vld [vmem:[%s29246_s4 + $0xac] ss:$16 sps:$4 sm:$0xff]   ;;  %v22786_v16 = vld [vmem:[%s29246_s4 + $0xa8] ss:$16 sps:$4 sm:$0xff]  }
 0x58e   : > { %14054 = vmatpush1.bf16.msra.mxu1 %v22579_v31 }
 0x58f   : > { %14055 = vmatprep.subr.bf16.mxu1 %v22584_v54 }
 0x592   : > { %14056 = vmatpush1.bf16.msra.mxu1 %v22582_v46 }
 0x593   : > { %14078 = vmatprep.subr.bf16.mxu1 %v22587_v20 }
 0x60c   : > { %v13375_v30 = vpop.f32.mrb[88].mxu0 }
 0x60d   : > { %v13571_v40 = vadd.f32 %v13559_v28, %v13375_v30  ;;  %v13377_v13 = vpop.f32.mrb[89].mxu0  ;;  %v22588_v30 = vld [vmem:[%s29245_s3 + $0x290] ss:$8 sps:$4 sm:$0xff]  }
 0x60e   : > { %v13572_v53 = vadd.f32 %v27981_v35, %v13377_v13  ;;  %v13379_v24 = vpop.f32.mrb[90].mxu0 }
 0x60f   : > { %v13607_v47 = vmul.f32 0.01, %v13571_v40  ;;  %v13574_v59 = vadd.f32 %v13559_v28, %v13379_v24  ;;  %v13381_v0 = vpop.f32.mrb[91].mxu0  ;;  %vm13589_vm15 = vcmp.ge.f32.partialorder %v13571_v40, 0.0 }
 0x610   : > { %v13608_v37 = vmul.f32 0.01, %v13572_v53  ;;  %v13575_v43 = vadd.f32 %v27981_v35, %v13381_v0  ;;  %vm13590_vm1 = vcmp.ge.f32.partialorder %v13572_v53, 0.0 }
 0x611   : > { %vm13592_vm2 = vcmp.ge.f32.partialorder %v13574_v59, 0.0  ;;  %v13610_v8 = vmul.f32 0.01, %v13574_v59  ;;  %v27985_v26 = vsel %vm13589_vm15, %v13571_v40, %v13607_v47 }
 0x612   : > { %vm13593_vm3 = vcmp.ge.f32.partialorder %v13575_v43, 0.0  ;;  %v13611_v19 = vmul.f32 0.01, %v13575_v43  ;;  %v27993_v15 = vsel %vm13590_vm1, %v13572_v53, %v13608_v37  ;;  %v22593_v53 = vld [vmem:[%s29245_s3 + $0x2a4] ss:$8 sps:$4 sm:$0xff]  }
 0x613   : > { %v27987_v55 = vsel %vm13592_vm2, %v13574_v59, %v13610_v8  ;;  %v22596_v8 = vld [vmem:[%s29245_s3 + $0x2b4] ss:$8 sps:$4 sm:$0xff]  }
 0x614   : > { %v13673_v41 = vpack.c.bf16 %v27987_v55, %v27985_v26  ;;  %v13385_v21 = vpop.f32.mrb[92].mxu0  ;;  %v27991_v56 = vsel %vm13593_vm3, %v13575_v43, %v13611_v19  ;;  %v22668_v26 = vld [vmem:[%s29245_s3 + $0x134] ss:$8 sps:$4 sm:$0xff]  }
 0x615   : > { %v13577_v9 = vadd.f32 %v13559_v28, %v13385_v21  ;;  %v13387_v10 = vpop.f32.mrb[93].mxu0  ;;  %v13674_v22 = vpack.c.bf16 %v27991_v56, %v27993_v15  ;;  %v22629_v15 = vld [vmem:[%s29245_s3 + $0x64] ss:$8 sps:$4 sm:$0xff]  }
 0x616   : > { %v13578_v60 = vadd.f32 %v27981_v35, %v13387_v10  ;;  %v13389_v62 = vpop.f32.mrb[94].mxu0  ;;  %v22594_v10 = vld [vmem:[%s29245_s3 + $0x2b0] ss:$8 sps:$4 sm:$0xff]  }
 0x617   : > { %vm13595_vm4 = vcmp.ge.f32.partialorder %v13577_v9, 0.0  ;;  %v13613_v27 = vmul.f32 0.01, %v13577_v9  ;;  %v13580_v39 = vadd.f32 %v13559_v28, %v13389_v62  ;;  %v13391_v52 = vpop.f32.mrb[95].mxu0  ;;  %v22599_v62 = vld [vmem:[%s29245_s3 + $0x2c4] ss:$8 sps:$4 sm:$0xff]  }
 0x618   : > { %vm13596_vm5 = vcmp.ge.f32.partialorder %v13578_v60, 0.0  ;;  %v13614_v5 = vmul.f32 0.01, %v13578_v60  ;;  %v13581_v32 = vadd.f32 %v27981_v35, %v13391_v52  ;;  %v22600_v52 = vld [vmem:[%s29245_s3 + $0x2d0] ss:$8 sps:$4 sm:$0xff]  }
 0x619   : > { %v13631_v29 = vsel %vm13595_vm4, %v13577_v9, %v13613_v27  ;;  %vm13598_vm6 = vcmp.ge.f32.partialorder %v13580_v39, 0.0  ;;  %v13616_v49 = vmul.f32 0.01, %v13580_v39  ;;  %v22597_v27 = vld [vmem:[%s29245_s3 + $0x2c0] ss:$8 sps:$4 sm:$0xff]  }
 0x61a   : > { %v13730_v36 = vpack.c.bf16 %v13631_v29, %v27987_v55  ;;  %vm13599_vm7 = vcmp.ge.f32.partialorder %v13581_v32, 0.0  ;;  %v13617_v14 = vmul.f32 0.01, %v13581_v32  ;;  %v13632_v58 = vsel %vm13596_vm5, %v13578_v60, %v13614_v5  ;;  %v22605_v5 = vld [vmem:[%s29245_s3 + $0x2e4] ss:$8 sps:$4 sm:$0xff]  }
 0x61b   : > { %v13731_v34 = vpack.c.bf16 %v13632_v58, %v27991_v56  ;;  %v13634_v48 = vsel %vm13598_vm6, %v13580_v39, %v13616_v49  ;;  %v23201_v60 = vmov 0   ;;  %v22602_v39 = vld [vmem:[%s29245_s3 + $0x2d4] ss:$8 sps:$4 sm:$0xff]   ;;  %v22606_v49 = vld [vmem:[%s29245_s3 + $0x2f0] ss:$8 sps:$4 sm:$0xff]  }
 0x61c   : > { %v13395_v11 = vpop.f32.mrb[96].mxu0  ;;  %v13635_v50 = vsel %vm13599_vm7, %v13581_v32, %v13617_v14  ;;  %v28007_v57 = vpack.c.bf16 %v13634_v48, %v13631_v29  ;;  %v22603_v32 = vld [vmem:[%s29245_s3 + $0x2e0] ss:$8 sps:$4 sm:$0xff]   ;;  %v22608_v29 = vld [vmem:[%s29245_s3 + $0x2f4] ss:$8 sps:$4 sm:$0xff]  }
 0x61d   : > { %v13583_v12 = vadd.f32 %v13559_v28, %v13395_v11  ;;  %v13397_v1 = vpop.f32.mrb[97].mxu0  ;;  %14057 = vmatprep.mubr.bf16.mxu1 %v13731_v34  ;;  %v28009_v23 = vpack.c.bf16 %v13635_v50, %v13632_v58  ;;  %v22609_v14 = vld [vmem:[%s29245_s3] ss:$8 sps:$4 sm:$0xff]   ;;  %v22614_v58 = vld [vmem:[%s29245_s3 + $0x14] ss:$8 sps:$4 sm:$0xff]  }
 0x61e   : > { %v13584_v31 = vadd.f32 %v27981_v35, %v13397_v1  ;;  %v13399_v51 = vpop.f32.mrb[98].mxu0  ;;  %14058 = vmatmul.mubr.bf16.vlgmr.msra.gmra.mrb[184].mxu1 %v13730_v36  ;;  %v22611_v36 = vld [vmem:[%s29245_s3 + $0x4] ss:$8 sps:$4 sm:$0xff]   ;;  %v22612_v34 = vld [vmem:[%s29245_s3 + $0x10] ss:$8 sps:$4 sm:$0xff]  }
 0x61f   : > { %vm13601_vm8 = vcmp.ge.f32.partialorder %v13583_v12, 0.0  ;;  %v13619_v54 = vmul.f32 0.01, %v13583_v12  ;;  %v13586_v46 = vadd.f32 %v13559_v28, %v13399_v51  ;;  %14079 = vmatpush1.bf16.msra.mxu1 %v22585_v38  ;;  %v13401_v20 = vpop.f32.mrb[99].mxu0  ;;  %v22617_v38 = vld [vmem:[%s29245_s3 + $0x24] ss:$8 sps:$4 sm:$0xff]  }
 0x620   : > { %vm13602_vm9 = vcmp.ge.f32.partialorder %v13584_v31, 0.0  ;;  %v13620_v40 = vmul.f32 0.01, %v13584_v31  ;;  %v13587_v13 = vadd.f32 %v27981_v35, %v13401_v20  ;;  %14080 = vmatprep.subr.bf16.mxu1 %v22590_v18  ;;  %v22591_v35 = vld [vmem:[%s29245_s3 + $0x2a0] ss:$8 sps:$4 sm:$0xff]  }
 0x621   : > { %vm13604_vm10 = vcmp.ge.f32.partialorder %v13586_v46, 0.0  ;;  %v13622_v24 = vmul.f32 0.01, %v13586_v46  ;;  %v28019_v47 = vsel %vm13601_vm8, %v13583_v12, %v13619_v54  ;;  %v22623_v11 = vld [vmem:[%s29245_s3 + $0x44] ss:$8 sps:$4 sm:$0xff]  }
 0x622   : > { %vm13605_vm11 = vcmp.ge.f32.partialorder %v13587_v13, 0.0  ;;  %v13623_v28 = vmul.f32 0.01, %v13587_v13  ;;  %v28021_v59 = vsel %vm13602_vm9, %v13584_v31, %v13620_v40  ;;  %v13733_v0 = vpack.c.bf16 %v28019_v47, %v13634_v48  ;;  %v22615_v48 = vld [vmem:[%s29245_s3 + $0x20] ss:$8 sps:$4 sm:$0xff]  }
 0x623   : > { %14081 = vmatpush1.bf16.msra.mxu1 %v22588_v30  ;;  %v13734_v37 = vpack.c.bf16 %v28021_v59, %v13635_v50  ;;  %v28028_v43 = vsel %vm13604_vm10, %v13586_v46, %v13622_v24  ;;  %v22624_v56 = vld [vmem:[%s29245_s3 + $0x50] ss:$8 sps:$4 sm:$0xff]   ;;  %v22632_v18 = vld [vmem:[%s29245_s3 + $0x74] ss:$8 sps:$4 sm:$0xff]   ;;  %v22635_v12 = vld [vmem:[%s29245_s3 + $0x84] ss:$8 sps:$4 sm:$0xff]  }
 0x624   : > { %14082 = vmatprep.subr.bf16.mxu1 %v22593_v53  ;;  %v28033_v19 = vsel %vm13605_vm11, %v13587_v13, %v13623_v28  ;;  %v14492_v21 = vpack.c.bf16 %v28028_v43, %v28019_v47  ;;  %v22630_v50 = vld [vmem:[%s29245_s3 + $0x70] ss:$8 sps:$4 sm:$0xff]   ;;  %v22633_v1 = vld [vmem:[%s29245_s3 + $0x80] ss:$8 sps:$4 sm:$0xff]   ;;  %v22638_v31 = vld [vmem:[%s29245_s3 + $0x94] ss:$8 sps:$4 sm:$0xff]  }
 0x625   : > { %14067 = vmatprep.mubr.bf16.mxu1 %v13734_v37  ;;  %v14493_v9 = vpack.c.bf16 %v28033_v19, %v28021_v59  ;;  %v22636_v51 = vld [vmem:[%s29245_s3 + $0x90] ss:$8 sps:$4 sm:$0xff]   ;;  %v22641_v54 = vld [vmem:[%s29245_s3 + $0xa4] ss:$8 sps:$4 sm:$0xff]   ;;  %v22639_v46 = vld [vmem:[%s29245_s3 + $0xa0] ss:$8 sps:$4 sm:$0xff]  }
 0x626   : > { %14068 = vmatmul.mubr.bf16.gmra.mrb[188].mxu1 %v13733_v0  ;;  %v22644_v20 = vld [vmem:[%s29245_s3 + $0xb4] ss:$8 sps:$4 sm:$0xff]   ;;  %v22642_v30 = vld [vmem:[%s29245_s3 + $0xb0] ss:$8 sps:$4 sm:$0xff]   ;;  %v22647_v40 = vld [vmem:[%s29245_s3 + $0xc4] ss:$8 sps:$4 sm:$0xff]  }
 0x627   : > { %14083 = vmatpush1.bf16.msra.mxu1 %v22591_v35  ;;  %14110 = vmatprep.mubr.bf16.mxu1 %v23201_v60  ;;  %v22645_v13 = vld [vmem:[%s29245_s3 + $0xc0] ss:$8 sps:$4 sm:$0xff]   ;;  %v22650_v53 = vld [vmem:[%s29245_s3 + $0xd4] ss:$8 sps:$4 sm:$0xff]   ;;  %v22648_v24 = vld [vmem:[%s29245_s3 + $0xd0] ss:$8 sps:$4 sm:$0xff]  }
 0x628   : > { %14084 = vmatprep.subr.bf16.mxu1 %v22596_v8  ;;  %v22653_v28 = vld [vmem:[%s29245_s3 + $0xe4] ss:$8 sps:$4 sm:$0xff]   ;;  %v22651_v0 = vld [vmem:[%s29245_s3 + $0xe0] ss:$8 sps:$4 sm:$0xff]   ;;  %v22656_v37 = vld [vmem:[%s29245_s3 + $0xf4] ss:$8 sps:$4 sm:$0xff]  }
 0x629   : > { %v22654_v35 = vld [vmem:[%s29245_s3 + $0xf0] ss:$8 sps:$4 sm:$0xff]   ;;  %v22659_v8 = vld [vmem:[%s29245_s3 + $0x104] ss:$8 sps:$4 sm:$0xff]   ;;  %v22746_v47 = vld [vmem:[%s29245_s3 + $0x454] ss:$8 sps:$4 sm:$0xff]  }
 0x62a   : > { %v22753_v55 = vld [vmem:[%s29246_s4] ss:$16 sps:$4 sm:$0xff]   ;;  %v22743_v19 = vld [vmem:[%s29245_s3 + $0x444] ss:$8 sps:$4 sm:$0xff]  }
 0x62b   : > { %14085 = vmatpush1.bf16.msra.mxu1 %v22594_v10  ;;  %v22657_v10 = vld [vmem:[%s29245_s3 + $0x100] ss:$8 sps:$4 sm:$0xff]   ;;  %v22738_v59 = vld [vmem:[%s29245_s3 + $0x430] ss:$8 sps:$4 sm:$0xff]  }
 0x62c   : > { %14086 = vmatprep.subr.bf16.mxu1 %v22599_v62  ;;  %v22662_v62 = vld [vmem:[%s29245_s3 + $0x114] ss:$8 sps:$4 sm:$0xff]   ;;  %v22744_v43 = vld [vmem:[%s29245_s3 + $0x450] ss:$8 sps:$4 sm:$0xff]  }
 0x62f   : > { %14087 = vmatpush1.bf16.msra.mxu1 %v22597_v27  ;;  %v22660_v27 = vld [vmem:[%s29245_s3 + $0x110] ss:$8 sps:$4 sm:$0xff]  }
 0x630   : > { %14088 = vmatprep.subr.bf16.mxu1 %v22602_v39  ;;  %v22665_v39 = vld [vmem:[%s29245_s3 + $0x124] ss:$8 sps:$4 sm:$0xff]  }
 0x633   : > { %14089 = vmatpush1.bf16.msra.mxu1 %v22600_v52  ;;  %v22663_v52 = vld [vmem:[%s29245_s3 + $0x120] ss:$8 sps:$4 sm:$0xff]  }
 0x634   : > { %14090 = vmatprep.subr.bf16.mxu1 %v22605_v5  ;;  %v22666_v5 = vld [vmem:[%s29245_s3 + $0x130] ss:$8 sps:$4 sm:$0xff]  }
 0x637   : > { %14091 = vmatpush1.bf16.msra.mxu1 %v22603_v32  ;;  %v22761_v32 = vld [vmem:[%s29246_s4 + $0x24] ss:$16 sps:$4 sm:$0xff]  }
 0x638   : > { %14092 = vmatprep.subr.bf16.mxu1 %v22608_v29  ;;  %v22671_v29 = vld [vmem:[%s29245_s3 + $0x144] ss:$8 sps:$4 sm:$0xff]  }
 0x63b   : > { %14093 = vmatpush1.bf16.msra.mxu1 %v22606_v49  ;;  %v22759_v49 = vld [vmem:[%s29246_s4 + $0x20] ss:$16 sps:$4 sm:$0xff]  }
 0x63c   : > { %14371 = vmatprep.subr.bf16.mxu1 %v22611_v36  ;;  %v22767_v36 = vld [vmem:[%s29246_s4 + $0x44] ss:$16 sps:$4 sm:$0xff]  }
 0x63e   : > { %14111 = vmatmul.mubr.bf16.vlgmr.msra.gmra.mrb[184].mxu1 %v13732_v33  ;;  %v22618_v33 = vld [vmem:[%s29245_s3 + $0x30] ss:$8 sps:$4 sm:$0xff]  }
 0x63f   : > { %14372 = vmatpush1.bf16.msra.mxu1 %v22609_v14  ;;  %14120 = vmatprep.mubr.bf16.mxu1 %v23201_v60  ;;  %v22669_v14 = vld [vmem:[%s29245_s3 + $0x140] ss:$8 sps:$4 sm:$0xff]  }
 0x640   : > { %14373 = vmatprep.subr.bf16.mxu1 %v22614_v58  ;;  %v22674_v58 = vld [vmem:[%s29245_s3 + $0x154] ss:$8 sps:$4 sm:$0xff]  }
 0x643   : > { %14374 = vmatpush1.bf16.msra.mxu1 %v22612_v34  ;;  %v22765_v34 = vld [vmem:[%s29246_s4 + $0x40] ss:$16 sps:$4 sm:$0xff]  }
 0x644   : > { %14375 = vmatprep.subr.bf16.mxu1 %v22617_v38  ;;  %v22773_v38 = vld [vmem:[%s29246_s4 + $0x64] ss:$16 sps:$4 sm:$0xff]  }
 0x646   : > { %14121 = vmatmul.mubr.bf16.gmra.mrb[188].mxu1 %v13735_v45  ;;  %v22626_v45 = vld [vmem:[%s29245_s3 + $0x54] ss:$8 sps:$4 sm:$0xff]  }
 0x647   : > { %14376 = vmatpush1.bf16.msra.mxu1 %v22615_v48  ;;  %14403 = vmatprep.mubr.bf16.mxu1 %v13674_v22  ;;  %v22627_v22 = vld [vmem:[%s29245_s3 + $0x60] ss:$8 sps:$4 sm:$0xff]   ;;  %v22672_v48 = vld [vmem:[%s29245_s3 + $0x150] ss:$8 sps:$4 sm:$0xff]  }
 0x648   : > { %14377 = vmatprep.subr.bf16.mxu1 %v22620_v44  ;;  %v22677_v44 = vld [vmem:[%s29245_s3 + $0x164] ss:$8 sps:$4 sm:$0xff]  }
 0x64b   : > { %14378 = vmatpush1.bf16.msra.mxu1 %v22618_v33  ;;  %v22771_v33 = vld [vmem:[%s29246_s4 + $0x60] ss:$16 sps:$4 sm:$0xff]  }
 0x64c   : > { %14379 = vmatprep.subr.bf16.mxu1 %v22623_v11  ;;  %v22779_v11 = vld [vmem:[%s29246_s4 + $0x84] ss:$16 sps:$4 sm:$0xff]  }
 0x64f   : > { %14380 = vmatpush1.bf16.msra.mxu1 %v22621_v3  ;;  %v22675_v3 = vld [vmem:[%s29245_s3 + $0x160] ss:$8 sps:$4 sm:$0xff]  }
 0x650   : > { %14381 = vmatprep.subr.bf16.mxu1 %v22626_v45  ;;  %v22680_v45 = vld [vmem:[%s29245_s3 + $0x174] ss:$8 sps:$4 sm:$0xff]  }
 0x653   : > { %14382 = vmatpush1.bf16.msra.mxu1 %v22624_v56  ;;  %v22777_v56 = vld [vmem:[%s29246_s4 + $0x80] ss:$16 sps:$4 sm:$0xff]  }
 0x654   : > { %14383 = vmatprep.subr.bf16.mxu1 %v22629_v15  ;;  %v22785_v15 = vld [vmem:[%s29246_s4 + $0xa4] ss:$16 sps:$4 sm:$0xff]  }
 0x657   : > { %14384 = vmatpush1.bf16.msra.mxu1 %v22627_v22  ;;  %v22678_v22 = vld [vmem:[%s29245_s3 + $0x170] ss:$8 sps:$4 sm:$0xff]  }
 0x658   : > { %14385 = vmatprep.subr.bf16.mxu1 %v22632_v18  ;;  %v22683_v18 = vld [vmem:[%s29245_s3 + $0x304] ss:$8 sps:$4 sm:$0xff]  }
 0x65b   : > { %14386 = vmatpush1.bf16.msra.mxu1 %v22630_v50  ;;  %v22783_v50 = vld [vmem:[%s29246_s4 + $0xa0] ss:$16 sps:$4 sm:$0xff]  }
 0x65c   : > { %14387 = vmatprep.subr.bf16.mxu1 %v22635_v12  ;;  %v22791_v12 = vld [vmem:[%s29246_s4 + $0xc4] ss:$16 sps:$4 sm:$0xff]  }
 0x65f   : > { %14388 = vmatpush1.bf16.msra.mxu1 %v22633_v1  ;;  %v22681_v1 = vld [vmem:[%s29245_s3 + $0x300] ss:$8 sps:$4 sm:$0xff]  }
 0x660   : > { %14389 = vmatprep.subr.bf16.mxu1 %v22638_v31  ;;  %v22686_v31 = vld [vmem:[%s29245_s3 + $0x314] ss:$8 sps:$4 sm:$0xff]  }
 0x663   : > { %14390 = vmatpush1.bf16.msra.mxu1 %v22636_v51  ;;  %v22789_v51 = vld [vmem:[%s29246_s4 + $0xc0] ss:$16 sps:$4 sm:$0xff]  }
 0x664   : > { %14391 = vmatprep.subr.bf16.mxu1 %v22641_v54  ;;  %v22797_v54 = vld [vmem:[%s29246_s4 + $0xe4] ss:$16 sps:$4 sm:$0xff]  }
 0x667   : > { %14392 = vmatpush1.bf16.msra.mxu1 %v22639_v46  ;;  %v22684_v46 = vld [vmem:[%s29245_s3 + $0x310] ss:$8 sps:$4 sm:$0xff]  }
 0x668   : > { %14393 = vmatprep.subr.bf16.mxu1 %v22644_v20  ;;  %v22689_v20 = vld [vmem:[%s29245_s3 + $0x324] ss:$8 sps:$4 sm:$0xff]  }
 0x66b   : > { %14394 = vmatpush1.bf16.msra.mxu1 %v22642_v30  ;;  %v22692_v30 = vld [vmem:[%s29245_s3 + $0x334] ss:$8 sps:$4 sm:$0xff]  }
 0x66c   : > { %14395 = vmatprep.subr.bf16.mxu1 %v22647_v40  ;;  %v22801_v40 = vld [vmem:[%s29246_s4 + $0x100] ss:$16 sps:$4 sm:$0xff]  }
 0x66f   : > { %14396 = vmatpush1.bf16.msra.mxu1 %v22645_v13  ;;  %v22809_v13 = vld [vmem:[%s29246_s4 + $0x124] ss:$16 sps:$4 sm:$0xff]  }
 0x670   : > { %14397 = vmatprep.subr.bf16.mxu1 %v22650_v53  ;;  %v22690_v53 = vld [vmem:[%s29245_s3 + $0x330] ss:$8 sps:$4 sm:$0xff]  }
 0x673   : > { %14398 = vmatpush1.bf16.msra.mxu1 %v22648_v24  ;;  %v22695_v24 = vld [vmem:[%s29245_s3 + $0x344] ss:$8 sps:$4 sm:$0xff]  }
 0x674   : > { %14399 = vmatprep.subr.bf16.mxu1 %v22653_v28  ;;  %v22807_v28 = vld [vmem:[%s29246_s4 + $0x120] ss:$16 sps:$4 sm:$0xff]  }
 0x677   : > { %14400 = vmatpush1.bf16.msra.mxu1 %v22651_v0  ;;  %v22815_v0 = vld [vmem:[%s29246_s4 + $0x144] ss:$16 sps:$4 sm:$0xff]  }
 0x678   : > { %14401 = vmatprep.subr.bf16.mxu1 %v22656_v37  ;;  %v22698_v37 = vld [vmem:[%s29245_s3 + $0x354] ss:$8 sps:$4 sm:$0xff]  }
 0x67b   : > { %14402 = vmatpush1.bf16.msra.mxu1 %v22654_v35  ;;  %v22813_v35 = vld [vmem:[%s29246_s4 + $0x140] ss:$16 sps:$4 sm:$0xff]  }
 0x67c   : > { %14424 = vmatprep.subr.bf16.mxu1 %v22659_v8  ;;  %v22821_v8 = vld [vmem:[%s29246_s4 + $0x164] ss:$16 sps:$4 sm:$0xff]  }
 0x67e   : > { %14404 = vmatmul.mubr.bf16.vlgmr.msra.gmra.mrb[184].mxu1 %v13673_v41  ;;  %v22755_v41 = vld [vmem:[%s29246_s4 + $0x4] ss:$16 sps:$4 sm:$0xff]  }
 0x67f   : > { %14413 = vmatprep.mubr.bf16.mxu1 %v28009_v23  ;;  %14425 = vmatpush1.bf16.msra.mxu1 %v22657_v10  ;;  %v22696_v10 = vld [vmem:[%s29245_s3 + $0x350] ss:$8 sps:$4 sm:$0xff]  }
 0x680   : > { %14426 = vmatprep.subr.bf16.mxu1 %v22662_v62  ;;  %16508 = vmatprep.subr.bf16.mxu0 %v22755_v41  ;;  %v22701_v62 = vld [vmem:[%s29245_s3 + $0x364] ss:$8 sps:$4 sm:$0xff]  }
 0x681   : > { %16509 = vmatpush1.bf16.msra.mxu0 %v22753_v55  ;;  %v22825_v55 = vld [vmem:[%s29246_s4 + $0x180] ss:$16 sps:$4 sm:$0xff]   ;;  %v22833_v41 = vld [vmem:[%s29246_s4 + $0x1a4] ss:$16 sps:$4 sm:$0xff]  }
 0x682   : > { %16510 = vmatprep.subr.bf16.mxu0 %v22761_v32  ;;  %v22707_v32 = vld [vmem:[%s29245_s3 + $0x384] ss:$8 sps:$4 sm:$0xff]  }
 0x683   : > { %14427 = vmatpush1.bf16.msra.mxu1 %v22660_v27  ;;  %v22819_v27 = vld [vmem:[%s29246_s4 + $0x160] ss:$16 sps:$4 sm:$0xff]  }
 0x684   : > { %14428 = vmatprep.subr.bf16.mxu1 %v22665_v39  ;;  %v22827_v39 = vld [vmem:[%s29246_s4 + $0x184] ss:$16 sps:$4 sm:$0xff]  }
 0x685   : > { %16511 = vmatpush1.bf16.msra.mxu0 %v22759_v49  ;;  %v22705_v49 = vld [vmem:[%s29245_s3 + $0x380] ss:$8 sps:$4 sm:$0xff]  }
 0x686   : > { %14414 = vmatmul.mubr.bf16.gmra.mrb[188].mxu1 %v28007_v57  ;;  %16512 = vmatprep.subr.bf16.mxu0 %v22767_v36  ;;  %v22710_v36 = vld [vmem:[%s29245_s3 + $0x394] ss:$8 sps:$4 sm:$0xff]  }
 0x687   : > { %14429 = vmatpush1.bf16.msra.mxu1 %v22663_v52  ;;  %14456 = vmatprep.mubr.bf16.mxu1 %v23201_v60  ;;  %v22699_v52 = vld [vmem:[%s29245_s3 + $0x360] ss:$8 sps:$4 sm:$0xff]  }
 0x688   : > { %14430 = vmatprep.subr.bf16.mxu1 %v22668_v26  ;;  %v22704_v26 = vld [vmem:[%s29245_s3 + $0x374] ss:$8 sps:$4 sm:$0xff]  }
 0x689   : > { %16513 = vmatpush1.bf16.msra.mxu0 %v22765_v34  ;;  %v22711_v34 = vld [vmem:[%s29245_s3 + $0x3a0] ss:$8 sps:$4 sm:$0xff]  }
 0x68a   : > { %16514 = vmatprep.subr.bf16.mxu0 %v22773_v38  ;;  %v22716_v38 = vld [vmem:[%s29245_s3 + $0x3b4] ss:$8 sps:$4 sm:$0xff]  }
 0x68b   : > { %14431 = vmatpush1.bf16.msra.mxu1 %v22666_v5  ;;  %v22702_v5 = vld [vmem:[%s29245_s3 + $0x370] ss:$8 sps:$4 sm:$0xff]  }
 0x68c   : > { %14432 = vmatprep.subr.bf16.mxu1 %v22671_v29  ;;  %v22831_v29 = vld [vmem:[%s29246_s4 + $0x1a0] ss:$16 sps:$4 sm:$0xff]  }
 0x68d   : > { %16515 = vmatpush1.bf16.msra.mxu0 %v22771_v33  ;;  %v22717_v33 = vld [vmem:[%s29245_s3 + $0x3c0] ss:$8 sps:$4 sm:$0xff]  }
 0x68e   : > { %16516 = vmatprep.subr.bf16.mxu0 %v22779_v11  ;;  %v22722_v11 = vld [vmem:[%s29245_s3 + $0x3d4] ss:$8 sps:$4 sm:$0xff]  }
 0x68f   : > { %14433 = vmatpush1.bf16.msra.mxu1 %v22669_v14  ;;  %v22708_v14 = vld [vmem:[%s29245_s3 + $0x390] ss:$8 sps:$4 sm:$0xff]  }
 0x690   : > { %14434 = vmatprep.subr.bf16.mxu1 %v22674_v58  ;;  %v22713_v58 = vld [vmem:[%s29245_s3 + $0x3a4] ss:$8 sps:$4 sm:$0xff]  }
 0x691   : > { %16517 = vmatpush1.bf16.msra.mxu0 %v22777_v56  ;;  %v22723_v56 = vld [vmem:[%s29245_s3 + $0x3e0] ss:$8 sps:$4 sm:$0xff]  }
 0x692   : > { %16518 = vmatprep.subr.bf16.mxu0 %v22785_v15  ;;  %v22728_v15 = vld [vmem:[%s29245_s3 + $0x3f4] ss:$8 sps:$4 sm:$0xff]  }
 0x693   : > { %14435 = vmatpush1.bf16.msra.mxu1 %v22672_v48  ;;  %v22714_v48 = vld [vmem:[%s29245_s3 + $0x3b0] ss:$8 sps:$4 sm:$0xff]  }
 0x694   : > { %14436 = vmatprep.subr.bf16.mxu1 %v22677_v44  ;;  %v22719_v44 = vld [vmem:[%s29245_s3 + $0x3c4] ss:$8 sps:$4 sm:$0xff]  }
 0x695   : > { %16519 = vmatpush1.bf16.msra.mxu0 %v22783_v50  ;;  %v22729_v50 = vld [vmem:[%s29245_s3 + $0x400] ss:$8 sps:$4 sm:$0xff]  }
 0x696   : > { %16520 = vmatprep.subr.bf16.mxu0 %v22791_v12  ;;  %v22734_v12 = vld [vmem:[%s29245_s3 + $0x414] ss:$8 sps:$4 sm:$0xff]  }
 0x697   : > { %14437 = vmatpush1.bf16.msra.mxu1 %v22675_v3  ;;  %v22720_v3 = vld [vmem:[%s29245_s3 + $0x3d0] ss:$8 sps:$4 sm:$0xff]  }
 0x698   : > { %14438 = vmatprep.subr.bf16.mxu1 %v22680_v45  ;;  %v22725_v45 = vld [vmem:[%s29245_s3 + $0x3e4] ss:$8 sps:$4 sm:$0xff]  }
 0x699   : > { %16521 = vmatpush1.bf16.msra.mxu0 %v22789_v51  ;;  %v22735_v51 = vld [vmem:[%s29245_s3 + $0x420] ss:$8 sps:$4 sm:$0xff]  }
 0x69a   : > { %16522 = vmatprep.subr.bf16.mxu0 %v22797_v54  ;;  %v22747_v54 = vld [vmem:[%s29245_s3 + $0x460] ss:$8 sps:$4 sm:$0xff]  }
 0x69b   : > { %14439 = vmatpush1.bf16.msra.mxu1 %v22678_v22  ;;  %v22726_v22 = vld [vmem:[%s29245_s3 + $0x3f0] ss:$8 sps:$4 sm:$0xff]  }
 0x69c   : > { %14784 = vmatprep.subr.bf16.mxu1 %v22683_v18  ;;  %v22731_v18 = vld [vmem:[%s29245_s3 + $0x404] ss:$8 sps:$4 sm:$0xff]  }
 0x69d   : > { %16523 = vmatpush1.bf16.msra.mxu0 %v22795_v63  ;;  %v22758_v63 = vld [vmem:[%s29246_s4 + $0xc] ss:$16 sps:$4 sm:$0xff]  }
 0x69e   : > { %14457 = vmatmul.mubr.bf16.vlgmr.msra.gmra.mrb[184].mxu1 %v13675_v61  ;;  %v22687_v61 = vld [vmem:[%s29245_s3 + $0x320] ss:$8 sps:$4 sm:$0xff]   ;;  %16524 = vmatprep.subr.bf16.mxu0 %v22803_v42 }
 0x69f   : > { %14785 = vmatpush1.bf16.msra.mxu1 %v22681_v1  ;;  %14466 = vmatprep.mubr.bf16.mxu1 %v23201_v60  ;;  %v22732_v1 = vld [vmem:[%s29245_s3 + $0x410] ss:$8 sps:$4 sm:$0xff]  }
 0x6a0   : > { %14786 = vmatprep.subr.bf16.mxu1 %v22686_v31  ;;  %v22737_v31 = vld [vmem:[%s29245_s3 + $0x424] ss:$8 sps:$4 sm:$0xff]   ;;  %v22756_v42 = vld [vmem:[%s29246_s4 + $0x8] ss:$16 sps:$4 sm:$0xff]  }
 0x6a1   : > { %16525 = vmatpush1.bf16.msra.mxu0 %v22801_v40  ;;  %v22770_v40 = vld [vmem:[%s29246_s4 + $0x4c] ss:$16 sps:$4 sm:$0xff]  }
 0x6a2   : > { %16526 = vmatprep.subr.bf16.mxu0 %v22809_v13  ;;  %v22768_v13 = vld [vmem:[%s29246_s4 + $0x48] ss:$16 sps:$4 sm:$0xff]  }
 0x6a3   : > { %14787 = vmatpush1.bf16.msra.mxu1 %v22684_v46  ;;  %v22752_v46 = vld [vmem:[%s29245_s3 + $0x474] ss:$8 sps:$4 sm:$0xff]  }
 0x6a4   : > { %14788 = vmatprep.subr.bf16.mxu1 %v22689_v20  ;;  %v22750_v20 = vld [vmem:[%s29245_s3 + $0x470] ss:$8 sps:$4 sm:$0xff]  }
 0x6a5   : > { %16527 = vmatpush1.bf16.msra.mxu0 %v22807_v28  ;;  %v22792_v28 = vld [vmem:[%s29246_s4 + $0xc8] ss:$16 sps:$4 sm:$0xff]  }
 0x6a6   : > { %14467 = vmatmul.mubr.bf16.gmra.mrb[188].mxu1 %v27940_v2  ;;  %16528 = vmatprep.subr.bf16.mxu0 %v22815_v0  ;;  %v22800_v0 = vld [vmem:[%s29246_s4 + $0xec] ss:$16 sps:$4 sm:$0xff]  }
 0x6a7   : > { %14789 = vmatpush1.bf16.msra.mxu1 %v22687_v61  ;;  %14816 = vmatprep.mubr.bf16.mxu1 %v28009_v23  ;;  %v22693_v23 = vld [vmem:[%s29245_s3 + $0x340] ss:$8 sps:$4 sm:$0xff]   ;;  %v22764_v61 = vld [vmem:[%s29246_s4 + $0x2c] ss:$16 sps:$4 sm:$0xff]  }
 0x6a8   : > { %14790 = vmatprep.subr.bf16.mxu1 %v22692_v30  ;;  %v22762_v30 = vld [vmem:[%s29246_s4 + $0x28] ss:$16 sps:$4 sm:$0xff]  }
 0x6a9   : > { %16529 = vmatpush1.bf16.msra.mxu0 %v22813_v35  ;;  %v22804_v35 = vld [vmem:[%s29246_s4 + $0x108] ss:$16 sps:$4 sm:$0xff]  }
 0x6aa   : > { %16530 = vmatprep.subr.bf16.mxu0 %v22821_v8  ;;  %v22812_v8 = vld [vmem:[%s29246_s4 + $0x12c] ss:$16 sps:$4 sm:$0xff]  }
 0x6ab   : > { %14791 = vmatpush1.bf16.msra.mxu1 %v22690_v53  ;;  %v22782_v53 = vld [vmem:[%s29246_s4 + $0x8c] ss:$16 sps:$4 sm:$0xff]  }
 0x6ac   : > { %14792 = vmatprep.subr.bf16.mxu1 %v22695_v24  ;;  %v22780_v24 = vld [vmem:[%s29246_s4 + $0x88] ss:$16 sps:$4 sm:$0xff]  }
 0x6ad   : > { %16531 = vmatpush1.bf16.msra.mxu0 %v22819_v27  ;;  %v22816_v27 = vld [vmem:[%s29246_s4 + $0x148] ss:$16 sps:$4 sm:$0xff]  }
 0x6ae   : > { %16532 = vmatprep.subr.bf16.mxu0 %v22827_v39  ;;  %v22824_v39 = vld [vmem:[%s29246_s4 + $0x16c] ss:$16 sps:$4 sm:$0xff]  }
 0x6af   : > { %14793 = vmatpush1.bf16.msra.mxu1 %v22693_v23  ;;  %v22798_v23 = vld [vmem:[%s29246_s4 + $0xe8] ss:$16 sps:$4 sm:$0xff]  }
 0x6b0   : > { %14794 = vmatprep.subr.bf16.mxu1 %v22698_v37  ;;  %v22806_v37 = vld [vmem:[%s29246_s4 + $0x10c] ss:$16 sps:$4 sm:$0xff]  }
 0x6b1   : > { %16533 = vmatpush1.bf16.msra.mxu0 %v22825_v55  ;;  %v22828_v55 = vld [vmem:[%s29246_s4 + $0x188] ss:$16 sps:$4 sm:$0xff]  }
 0x6b2   : > { %16534 = vmatprep.subr.bf16.mxu0 %v22833_v41  ;;  %v22836_v41 = vld [vmem:[%s29246_s4 + $0x1ac] ss:$16 sps:$4 sm:$0xff]  }
 0x6b3   : > { %14795 = vmatpush1.bf16.msra.mxu1 %v22696_v10  ;;  %v22810_v10 = vld [vmem:[%s29246_s4 + $0x128] ss:$16 sps:$4 sm:$0xff]  }
 0x6b4   : > { %14796 = vmatprep.subr.bf16.mxu1 %v22701_v62  ;;  %v22818_v62 = vld [vmem:[%s29246_s4 + $0x14c] ss:$16 sps:$4 sm:$0xff]  }
 0x6b5   : > { %16535 = vmatpush1.bf16.msra.mxu0 %v22831_v29  ;;  %v22839_v29 = vld [vmem:[%s29246_s4 + $0x1c4] ss:$16 sps:$4 sm:$0xff]  }
 0x6b6   : > { %16536 = vmatprep.subr.bf16.mxu0 %v22839_v29  ;;  %v22885_v29 = vld [vmem:[%s29246_s4 + $0x2c0] ss:$16 sps:$4 sm:$0xff]  }
 0x6b7   : > { %14797 = vmatpush1.bf16.msra.mxu1 %v22699_v52  ;;  %v22822_v52 = vld [vmem:[%s29246_s4 + $0x168] ss:$16 sps:$4 sm:$0xff]  }
 0x6b8   : > { %14798 = vmatprep.subr.bf16.mxu1 %v22704_v26  ;;  %v22830_v26 = vld [vmem:[%s29246_s4 + $0x18c] ss:$16 sps:$4 sm:$0xff]  }
 0x6bb   : > { %14799 = vmatpush1.bf16.msra.mxu1 %v22702_v5  ;;  %v22834_v5 = vld [vmem:[%s29246_s4 + $0x1a8] ss:$16 sps:$4 sm:$0xff]  }
 0x6bc   : > { %14800 = vmatprep.subr.bf16.mxu1 %v22707_v32  ;;  %v22837_v32 = vld [vmem:[%s29246_s4 + $0x1c0] ss:$16 sps:$4 sm:$0xff]  }
 0x6bd   : > { %16537 = vmatpush1.bf16.msra.mxu0 %v22837_v32  ;;  %v22890_v32 = vld [vmem:[%s29246_s4 + $0x2cc] ss:$16 sps:$4 sm:$0xff]  }
 0x6bf   : > { %14801 = vmatpush1.bf16.msra.mxu1 %v22705_v49  ;;  %v22840_v49 = vld [vmem:[%s29246_s4 + $0x1c8] ss:$16 sps:$4 sm:$0xff]  }
 0x6c0   : > { %14802 = vmatprep.subr.bf16.mxu1 %v22710_v36  ;;  %v22842_v36 = vld [vmem:[%s29246_s4 + $0x1cc] ss:$16 sps:$4 sm:$0xff]  }
 0x6c3   : > { %14803 = vmatpush1.bf16.msra.mxu1 %v22708_v14  ;;  %v22845_v14 = vld [vmem:[%s29246_s4 + $0x1e4] ss:$16 sps:$4 sm:$0xff]  }
 0x6c4   : > { %14804 = vmatprep.subr.bf16.mxu1 %v22713_v58  ;;  %v22843_v58 = vld [vmem:[%s29246_s4 + $0x1e0] ss:$16 sps:$4 sm:$0xff]   ;;  %16538 = vmatprep.subr.bf16.mxu0 %v22845_v14  ;;  %v22896_v14 = vld [vmem:[%s29246_s4 + $0x2ec] ss:$16 sps:$4 sm:$0xff]  }
 0x6c5   : > { %16539 = vmatpush1.bf16.msra.mxu0 %v22843_v58  ;;  %v22891_v58 = vld [vmem:[%s29246_s4 + $0x2e0] ss:$16 sps:$4 sm:$0xff]  }
 0x6c7   : > { %14805 = vmatpush1.bf16.msra.mxu1 %v22711_v34  ;;  %v22848_v34 = vld [vmem:[%s29246_s4 + $0x1ec] ss:$16 sps:$4 sm:$0xff]  }
 0x6c8   : > { %14806 = vmatprep.subr.bf16.mxu1 %v22716_v38  ;;  %v22846_v38 = vld [vmem:[%s29246_s4 + $0x1e8] ss:$16 sps:$4 sm:$0xff]  }
 0x6cb   : > { %14807 = vmatpush1.bf16.msra.mxu1 %v22714_v48  ;;  %v22851_v48 = vld [vmem:[%s29246_s4 + $0x204] ss:$16 sps:$4 sm:$0xff]  }
 0x6cc   : > { %14808 = vmatprep.subr.bf16.mxu1 %v22719_v44  ;;  %v22854_v44 = vld [vmem:[%s29246_s4 + $0x20c] ss:$16 sps:$4 sm:$0xff]   ;;  %16549 = vmatprep.subr.bf16.mxu0 %v22851_v48 }
 0x6cd   : > { %v22902_v48 = vld [vmem:[%s29246_s4 + $0x30c] ss:$16 sps:$4 sm:$0xff]  }
 0x6cf   : > { %14809 = vmatpush1.bf16.msra.mxu1 %v22717_v33  ;;  %v14898_v33 = vld [vmem:[%s29249_s7] sm:$0x3] }
 0x6d0   : > { %14810 = vmatprep.subr.bf16.mxu1 %v22722_v11  ;;  %v14903_v11 = vrot.slane %v14898_v33, %v25355_v6 }
 0x6d3   : > { %14811 = vmatpush1.bf16.msra.mxu1 %v22720_v3  ;;  %v14907_v3 = vrot.slane %v14898_v33, %v29259_v4  ;;  %v22900_v33 = vld [vmem:[%s29246_s4 + $0x308] ss:$16 sps:$4 sm:$0xff]  }
 0x6d4   : > { %14812 = vmatprep.subr.bf16.mxu1 %v22725_v45 }
 0x6d7   : > { %14813 = vmatpush1.bf16.msra.mxu1 %v22723_v56 }
 0x6d8   : > { %14814 = vmatprep.subr.bf16.mxu1 %v22728_v15 }
 0x6db   : > { %14815 = vmatpush1.bf16.msra.mxu1 %v22726_v22 }
 0x6dc   : > { %14837 = vmatprep.subr.bf16.mxu1 %v22731_v18 }
 0x6de   : > { %14817 = vmatmul.mubr.bf16.vlgmr.msra.gmra.mrb[184].mxu1 %v28007_v57  ;;  %v22740_v57 = vld [vmem:[%s29245_s3 + $0x434] ss:$8 sps:$4 sm:$0xff]  }
 0x6df   : > { %14826 = vmatprep.mubr.bf16.mxu1 %v14493_v9  ;;  %14838 = vmatpush1.bf16.msra.mxu1 %v22729_v50  ;;  %v22741_v9 = vld [vmem:[%s29245_s3 + $0x440] ss:$8 sps:$4 sm:$0xff]  }
 0x6e0   : > { %14839 = vmatprep.subr.bf16.mxu1 %v22734_v12 }
 0x6e3   : > { %14840 = vmatpush1.bf16.msra.mxu1 %v22732_v1 }
 0x6e4   : > { %14841 = vmatprep.subr.bf16.mxu1 %v22737_v31 }
 0x6e6   : > { %14827 = vmatmul.mubr.bf16.gmra.mrb[188].mxu1 %v14492_v21  ;;  %v22749_v21 = vld [vmem:[%s29245_s3 + $0x464] ss:$8 sps:$4 sm:$0xff]  }
 0x6e7   : > { %14842 = vmatpush1.bf16.msra.mxu1 %v22735_v51  ;;  %14869 = vmatprep.mubr.bf16.mxu1 %v23201_v60 }
 0x6e8   : > { %14843 = vmatprep.subr.bf16.mxu1 %v22740_v57 }
 0x6eb   : > { %14844 = vmatpush1.bf16.msra.mxu1 %v22738_v59 }
 0x6ec   : > { %14845 = vmatprep.subr.bf16.mxu1 %v22743_v19 }
 0x6ef   : > { %14846 = vmatpush1.bf16.msra.mxu1 %v22741_v9 }
 0x6f0   : > { %14847 = vmatprep.subr.bf16.mxu1 %v22746_v47  ;;  %v22849_v47 = vld [vmem:[%s29246_s4 + $0x200] ss:$16 sps:$4 sm:$0xff]  }
 0x6f3   : > { %14848 = vmatpush1.bf16.msra.mxu1 %v22744_v43  ;;  %v22852_v43 = vld [vmem:[%s29246_s4 + $0x208] ss:$16 sps:$4 sm:$0xff]  }
 0x6f4   : > { %14849 = vmatprep.subr.bf16.mxu1 %v22749_v21 }
 0x6f7   : > { %14850 = vmatpush1.bf16.msra.mxu1 %v22747_v54 }
 0x6f8   : > { %14851 = vmatprep.subr.bf16.mxu1 %v22752_v46 }
 0x6fb   : > { %14852 = vmatpush1.bf16.msra.mxu1 %v22750_v20 }
 0x6fc   : > { %16672 = vmatprep.subr.bf16.mxu1 %v22758_v63 }
 0x6fe   : > { %14870 = vmatmul.mubr.bf16.vlgmr.msra.gmra.mrb[184].mxu1 %v27940_v2  ;;  %v22776_v2 = vld [vmem:[%s29246_s4 + $0x6c] ss:$16 sps:$4 sm:$0xff]  }
 0x6ff   : > { %14879 = vmatprep.mubr.bf16.mxu1 %v23201_v60  ;;  %16673 = vmatpush1.bf16.msra.mxu1 %v22756_v42  ;;  %v22774_v60 = vld [vmem:[%s29246_s4 + $0x68] ss:$16 sps:$4 sm:$0xff]  }
 0x700   : > { %16674 = vmatprep.subr.bf16.mxu1 %v22764_v61  ;;  %v22857_v61 = vld [vmem:[%s29246_s4 + $0x224] ss:$16 sps:$4 sm:$0xff]  }
 0x703   : > { %16675 = vmatpush1.bf16.msra.mxu1 %v22762_v30  ;;  %v22860_v30 = vld [vmem:[%s29246_s4 + $0x22c] ss:$16 sps:$4 sm:$0xff]  }
 0x704   : > { %16676 = vmatprep.subr.bf16.mxu1 %v22770_v40 }
 0x706   : > { %14880 = vmatmul.mubr.bf16.gmra.mrb[188].mxu1 %v14494_v25  ;;  %v22794_v25 = vld [vmem:[%s29246_s4 + $0xcc] ss:$16 sps:$4 sm:$0xff]  }
 0x707   : > { %16677 = vmatpush1.bf16.msra.mxu1 %v22768_v13 }
 0x708   : > { %16678 = vmatprep.subr.bf16.mxu1 %v22776_v2 }
 0x70b   : > { %16679 = vmatpush1.bf16.msra.mxu1 %v22774_v60 }
 0x70c   : > { %16680 = vmatprep.subr.bf16.mxu1 %v22782_v53  ;;  %v22855_v53 = vld [vmem:[%s29246_s4 + $0x220] ss:$16 sps:$4 sm:$0xff]  }
 0x70f   : > { %16681 = vmatpush1.bf16.msra.mxu1 %v22780_v24  ;;  %v22858_v24 = vld [vmem:[%s29246_s4 + $0x228] ss:$16 sps:$4 sm:$0xff]  }
 0x710   : > { %16682 = vmatprep.subr.bf16.mxu1 %v22788_v17 }
 0x713   : > { %16683 = vmatpush1.bf16.msra.mxu1 %v22786_v16  ;;  %v22863_v16 = vld [vmem:[%s29246_s4 + $0x244] ss:$16 sps:$4 sm:$0xff]  }
 0x714   : > { %16684 = vmatprep.subr.bf16.mxu1 %v22794_v25  ;;  %v22866_v25 = vld [vmem:[%s29246_s4 + $0x24c] ss:$16 sps:$4 sm:$0xff]  }
 0x717   : > { %16685 = vmatpush1.bf16.msra.mxu1 %v22792_v28  ;;  %v22861_v28 = vld [vmem:[%s29246_s4 + $0x240] ss:$16 sps:$4 sm:$0xff]  }
 0x718   : > { %16686 = vmatprep.subr.bf16.mxu1 %v22800_v0  ;;  %v22864_v0 = vld [vmem:[%s29246_s4 + $0x248] ss:$16 sps:$4 sm:$0xff]  }
 0x71b   : > { %16687 = vmatpush1.bf16.msra.mxu1 %v22798_v23  ;;  %v22869_v23 = vld [vmem:[%s29246_s4 + $0x264] ss:$16 sps:$4 sm:$0xff]  }
 0x71c   : > { %16688 = vmatprep.subr.bf16.mxu1 %v22806_v37  ;;  %v22872_v37 = vld [vmem:[%s29246_s4 + $0x26c] ss:$16 sps:$4 sm:$0xff]  }
 0x71f   : > { %16689 = vmatpush1.bf16.msra.mxu1 %v22804_v35  ;;  %v22867_v35 = vld [vmem:[%s29246_s4 + $0x260] ss:$16 sps:$4 sm:$0xff]  }
 0x720   : > { %16690 = vmatprep.subr.bf16.mxu1 %v22812_v8  ;;  %v22870_v8 = vld [vmem:[%s29246_s4 + $0x268] ss:$16 sps:$4 sm:$0xff]  }
 0x723   : > { %16691 = vmatpush1.bf16.msra.mxu1 %v22810_v10  ;;  %v22875_v10 = vld [vmem:[%s29246_s4 + $0x284] ss:$16 sps:$4 sm:$0xff]  }
 0x724   : > { %16692 = vmatprep.subr.bf16.mxu1 %v22818_v62  ;;  %v22878_v62 = vld [vmem:[%s29246_s4 + $0x28c] ss:$16 sps:$4 sm:$0xff]  }
 0x727   : > { %16693 = vmatpush1.bf16.msra.mxu1 %v22816_v27  ;;  %v22873_v27 = vld [vmem:[%s29246_s4 + $0x280] ss:$16 sps:$4 sm:$0xff]  }
 0x728   : > { %16694 = vmatprep.subr.bf16.mxu1 %v22824_v39  ;;  %v22876_v39 = vld [vmem:[%s29246_s4 + $0x288] ss:$16 sps:$4 sm:$0xff]  }
 0x72b   : > { %16695 = vmatpush1.bf16.msra.mxu1 %v22822_v52  ;;  %v22881_v52 = vld [vmem:[%s29246_s4 + $0x2a4] ss:$16 sps:$4 sm:$0xff]  }
 0x72c   : > { %16696 = vmatprep.subr.bf16.mxu1 %v22830_v26  ;;  %v22884_v26 = vld [vmem:[%s29246_s4 + $0x2ac] ss:$16 sps:$4 sm:$0xff]  }
 0x72f   : > { %16697 = vmatpush1.bf16.msra.mxu1 %v22828_v55  ;;  %v22879_v55 = vld [vmem:[%s29246_s4 + $0x2a0] ss:$16 sps:$4 sm:$0xff]  }
 0x730   : > { %16698 = vmatprep.subr.bf16.mxu1 %v22836_v41  ;;  %v22882_v41 = vld [vmem:[%s29246_s4 + $0x2a8] ss:$16 sps:$4 sm:$0xff]  }
 0x733   : > { %16699 = vmatpush1.bf16.msra.mxu1 %v22834_v5  ;;  %v22887_v5 = vld [vmem:[%s29246_s4 + $0x2c4] ss:$16 sps:$4 sm:$0xff]  }
 0x734   : > { %16700 = vmatprep.subr.bf16.mxu1 %v22842_v36  ;;  %v22893_v36 = vld [vmem:[%s29246_s4 + $0x2e4] ss:$16 sps:$4 sm:$0xff]  }
 0x737   : > { %16701 = vmatpush1.bf16.msra.mxu1 %v22840_v49  ;;  %v22888_v49 = vld [vmem:[%s29246_s4 + $0x2c8] ss:$16 sps:$4 sm:$0xff]  }
 0x738   : > { %16702 = vmatprep.subr.bf16.mxu1 %v22848_v34  ;;  %v22894_v34 = vld [vmem:[%s29246_s4 + $0x2e8] ss:$16 sps:$4 sm:$0xff]  }
 0x73b   : > { %16703 = vmatpush1.bf16.msra.mxu1 %v22846_v38  ;;  %v22899_v38 = vld [vmem:[%s29246_s4 + $0x304] ss:$16 sps:$4 sm:$0xff]  }
 0x73c   : > { %16713 = vmatprep.subr.bf16.mxu1 %v22854_v44  ;;  %v22897_v44 = vld [vmem:[%s29246_s4 + $0x300] ss:$16 sps:$4 sm:$0xff]  }
 0x7d1   : > { %v14871_v45 = vpop.f32.mrb[184].mxu1 }
 0x7d2   : > { %v14910_v56 = vadd.f32 %v14903_v11, %v14871_v45  ;;  %v14873_v15 = vpop.f32.mrb[185].mxu1  ;;  %v22903_v45 = vld [vmem:[%s29246_s4 + $0x320] ss:$16 sps:$4 sm:$0xff]  }
 0x7d3   : > { %v14911_v22 = vadd.f32 %v14907_v3, %v14873_v15  ;;  %v14875_v18 = vpop.f32.mrb[186].mxu1  ;;  %v22911_v15 = vld [vmem:[%s29246_s4 + $0x344] ss:$16 sps:$4 sm:$0xff]  }
 0x7d4   : > { %vm14918_vm12 = vcmp.ge.f32.partialorder %v14910_v56, 0.0  ;;  %v14926_v50 = vmul.f32 0.01, %v14910_v56  ;;  %v28593_v12 = vadd.f32 %v14903_v11, %v14875_v18  ;;  %v14877_v1 = vpop.f32.mrb[187].mxu1  ;;  %v22909_v18 = vld [vmem:[%s29246_s4 + $0x340] ss:$16 sps:$4 sm:$0xff]  }
 0x7d5   : > { %vm14919_vm13 = vcmp.ge.f32.partialorder %v14911_v22, 0.0  ;;  %v14927_v31 = vmul.f32 0.01, %v14911_v22  ;;  %v14913_v51 = vadd.f32 %v14907_v3, %v14877_v1  ;;  %v22917_v1 = vld [vmem:[%s29246_s4 + $0x364] ss:$16 sps:$4 sm:$0xff]  }
 0x7d6   : > { %v14934_v57 = vsel %vm14918_vm12, %v14910_v56, %v14926_v50  ;;  %v22906_v56 = vld [vmem:[%s29246_s4 + $0x328] ss:$16 sps:$4 sm:$0xff]   ;;  %vm14920_vm14 = vcmp.ge.f32.partialorder %v28593_v12, 0.0 }
 0x7d7   : > { %vm14921_vm0 = vcmp.ge.f32.partialorder %v14913_v51, 0.0  ;;  %v14929_v59 = vmul.f32 0.01, %v14913_v51  ;;  %v14935_v19 = vsel %vm14919_vm13, %v14911_v22, %v14927_v31  ;;  %v14942_v21 = vpack.c.bf16 %v14934_v57, %v14934_v57  ;;  %v22914_v22 = vld [vmem:[%s29246_s4 + $0x34c] ss:$16 sps:$4 sm:$0xff]  }
 0x7d8   : > { %v14943_v9 = vpack.c.bf16 %v14935_v19, %v14935_v19  ;;  %v22912_v50 = vld [vmem:[%s29246_s4 + $0x348] ss:$16 sps:$4 sm:$0xff]   ;;  %v22920_v31 = vld [vmem:[%s29246_s4 + $0x36c] ss:$16 sps:$4 sm:$0xff]  }
 0x7d9   : > { %v14881_v54 = vpop.f32.mrb[188].mxu1  ;;  %v14937_v46 = vsel %vm14921_vm0, %v14913_v51, %v14929_v59  ;;  %v22915_v51 = vld [vmem:[%s29246_s4 + $0x360] ss:$16 sps:$4 sm:$0xff]   ;;  %v22918_v57 = vld [vmem:[%s29246_s4 + $0x368] ss:$16 sps:$4 sm:$0xff]  }
 0x7da   : > { %v28601_v20 = vadd.f32 %v14903_v11, %v14881_v54  ;;  %v14883_v63 = vpop.f32.mrb[189].mxu1  ;;  %16540 = vmatprep.mubr.bf16.mxu0 %v14943_v9  ;;  %16704 = vmatprep.mubr.bf16.mxu1 %v14943_v9  ;;  %v14945_v42 = vpack.c.bf16 %v14937_v46, %v14937_v46  ;;  %v22923_v59 = vld [vmem:[%s29246_s4 + $0x384] ss:$16 sps:$4 sm:$0xff]   ;;  %v22926_v19 = vld [vmem:[%s29246_s4 + $0x38c] ss:$16 sps:$4 sm:$0xff]  }
 0x7db   : > { %v28609_v40 = vadd.f32 %v14907_v3, %v14883_v63  ;;  %v14885_v13 = vpop.f32.mrb[190].mxu1  ;;  %16541 = vmatmul.mubr.bf16.vlgmr.msra.gmra.mrb[100].mxu0 %v14942_v21  ;;  %16705 = vmatmul.mubr.bf16.vlgmr.msra.gmra.mrb[192].mxu1 %v14942_v21  ;;  %v22921_v9 = vld [vmem:[%s29246_s4 + $0x380] ss:$16 sps:$4 sm:$0xff]   ;;  %v22932_v21 = vld [vmem:[%s29246_s4 + $0x3ac] ss:$16 sps:$4 sm:$0xff]  }
 0x7dc   : > { %v28611_v2 = vadd.f32 %v14903_v11, %v14885_v13  ;;  %16550 = vmatpush1.bf16.msra.mxu0 %v22849_v47  ;;  %16714 = vmatpush1.bf16.msra.mxu1 %v22852_v43  ;;  %v14887_v60 = vpop.f32.mrb[191].mxu1  ;;  %v22905_v11 = vld [vmem:[%s29246_s4 + $0x324] ss:$16 sps:$4 sm:$0xff]   ;;  %v22924_v47 = vld [vmem:[%s29246_s4 + $0x388] ss:$16 sps:$4 sm:$0xff]   ;;  %vm14922_vm1 = vcmp.ge.f32.partialorder %v28601_v20, 0.0 }
 0x7dd   : > { %v28619_v17 = vadd.f32 %v14907_v3, %v14887_v60  ;;  %16581 = vmatprep.mubr.bf16.mxu0 %v14945_v42  ;;  %16745 = vmatprep.mubr.bf16.mxu1 %v14945_v42  ;;  %v22908_v3 = vld [vmem:[%s29246_s4 + $0x32c] ss:$16 sps:$4 sm:$0xff]   ;;  %v22929_v43 = vld [vmem:[%s29246_s4 + $0x3a4] ss:$16 sps:$4 sm:$0xff]   ;;  %v22927_v54 = vld [vmem:[%s29246_s4 + $0x3a0] ss:$16 sps:$4 sm:$0xff]  }
 0x7de   : > { %16551 = vmatprep.subr.bf16.mxu0 %v22857_v61  ;;  %16715 = vmatprep.subr.bf16.mxu1 %v22860_v30  ;;  %v22930_v46 = vld [vmem:[%s29246_s4 + $0x3a8] ss:$16 sps:$4 sm:$0xff]   ;;  %v22935_v63 = vld [vmem:[%s29246_s4 + $0x3c4] ss:$16 sps:$4 sm:$0xff]   ;;  %v22938_v42 = vld [vmem:[%s29246_s4 + $0x3cc] ss:$16 sps:$4 sm:$0xff]  }
 0x7df   : > { %v22933_v61 = vld [vmem:[%s29246_s4 + $0x3c0] ss:$16 sps:$4 sm:$0xff]   ;;  %v22936_v30 = vld [vmem:[%s29246_s4 + $0x3c8] ss:$16 sps:$4 sm:$0xff]   ;;  %v22941_v13 = vld [vmem:[%s29246_s4 + $0x3e4] ss:$16 sps:$4 sm:$0xff]  }
 0x7e0   : > { %16552 = vmatpush1.bf16.msra.mxu0 %v22855_v53  ;;  %16716 = vmatpush1.bf16.msra.mxu1 %v22858_v24  ;;  %v22944_v60 = vld [vmem:[%s29246_s4 + $0x3ec] ss:$16 sps:$4 sm:$0xff]   ;;  %v14928_v53 = vmul.f32 0.01, %v28593_v12  ;;  %v14931_v24 = vmul.f32 0.01, %v28609_v40 }
 0x7e1   : > { %16553 = vmatprep.subr.bf16.mxu0 %v22863_v16  ;;  %16717 = vmatprep.subr.bf16.mxu1 %v22866_v25  ;;  %vm14923_vm15 = vcmp.ge.f32.partialorder %v28609_v40, 0.0  ;;  %v22939_v16 = vld [vmem:[%s29246_s4 + $0x3e0] ss:$16 sps:$4 sm:$0xff]   ;;  %v22942_v25 = vld [vmem:[%s29246_s4 + $0x3e8] ss:$16 sps:$4 sm:$0xff]   ;;  %vm14925_vm2 = vcmp.ge.f32.partialorder %v28619_v17, 0.0 }
 0x7e2   : > { %vm14924_vm3 = vcmp.ge.f32.partialorder %v28611_v2, 0.0 }
 0x7e4   : > { %16554 = vmatpush1.bf16.msra.mxu0 %v22861_v28  ;;  %16718 = vmatpush1.bf16.msra.mxu1 %v22864_v0  ;;  %v22947_v28 = vld [vmem:[%s29246_s4 + $0x404] ss:$16 sps:$4 sm:$0xff]   ;;  %v22950_v0 = vld [vmem:[%s29246_s4 + $0x40c] ss:$16 sps:$4 sm:$0xff]  }
 0x7e5   : > { %16555 = vmatprep.subr.bf16.mxu0 %v22869_v23  ;;  %16719 = vmatprep.subr.bf16.mxu1 %v22872_v37  ;;  %v14936_v23 = vsel %vm14920_vm14, %v28593_v12, %v14928_v53  ;;  %v14939_v37 = vsel %vm14923_vm15, %v28609_v40, %v14931_v24  ;;  %v22953_v12 = vld [vmem:[%s29246_s4 + $0x424] ss:$16 sps:$4 sm:$0xff]   ;;  %v22956_v40 = vld [vmem:[%s29246_s4 + $0x42c] ss:$16 sps:$4 sm:$0xff]   ;;  %v23017_v53 = vld [vmem:[%s29246_s4 + $0x580] ss:$16 sps:$4 sm:$0xff]  }
 0x7e6   : > { %v23020_v24 = vld [vmem:[%s29246_s4 + $0x588] ss:$16 sps:$4 sm:$0xff]  }
 0x7e8   : > { %16556 = vmatpush1.bf16.msra.mxu0 %v22867_v35  ;;  %16720 = vmatpush1.bf16.msra.mxu1 %v22870_v8  ;;  %v22945_v35 = vld [vmem:[%s29246_s4 + $0x400] ss:$16 sps:$4 sm:$0xff]   ;;  %v14944_v8 = vpack.c.bf16 %v14936_v23, %v14936_v23  ;;  %v23031_v23 = vld [vmem:[%s29246_s4 + $0x5c4] ss:$16 sps:$4 sm:$0xff]  }
 0x7e9   : > { %16557 = vmatprep.subr.bf16.mxu0 %v22875_v10  ;;  %16721 = vmatprep.subr.bf16.mxu1 %v22878_v62  ;;  %v22948_v10 = vld [vmem:[%s29246_s4 + $0x408] ss:$16 sps:$4 sm:$0xff]   ;;  %v14947_v62 = vpack.c.bf16 %v14939_v37, %v14939_v37  ;;  %v23034_v37 = vld [vmem:[%s29246_s4 + $0x5cc] ss:$16 sps:$4 sm:$0xff]  }
 0x7ec   : > { %16558 = vmatpush1.bf16.msra.mxu0 %v22873_v27  ;;  %16722 = vmatpush1.bf16.msra.mxu1 %v22876_v39  ;;  %v22951_v27 = vld [vmem:[%s29246_s4 + $0x420] ss:$16 sps:$4 sm:$0xff]   ;;  %v22954_v39 = vld [vmem:[%s29246_s4 + $0x428] ss:$16 sps:$4 sm:$0xff]  }
 0x7ed   : > { %16559 = vmatprep.subr.bf16.mxu0 %v22881_v52  ;;  %16723 = vmatprep.subr.bf16.mxu1 %v22884_v26  ;;  %v22959_v52 = vld [vmem:[%s29246_s4 + $0x444] ss:$16 sps:$4 sm:$0xff]   ;;  %v22962_v26 = vld [vmem:[%s29246_s4 + $0x44c] ss:$16 sps:$4 sm:$0xff]  }
 0x7f0   : > { %16560 = vmatpush1.bf16.msra.mxu0 %v22879_v55  ;;  %16724 = vmatpush1.bf16.msra.mxu1 %v22882_v41  ;;  %v22957_v55 = vld [vmem:[%s29246_s4 + $0x440] ss:$16 sps:$4 sm:$0xff]   ;;  %v22960_v41 = vld [vmem:[%s29246_s4 + $0x448] ss:$16 sps:$4 sm:$0xff]  }
 0x7f1   : > { %16561 = vmatprep.subr.bf16.mxu0 %v22887_v5  ;;  %16725 = vmatprep.subr.bf16.mxu1 %v22890_v32  ;;  %v22965_v5 = vld [vmem:[%s29246_s4 + $0x464] ss:$16 sps:$4 sm:$0xff]   ;;  %v22968_v32 = vld [vmem:[%s29246_s4 + $0x46c] ss:$16 sps:$4 sm:$0xff]  }
 0x7f4   : > { %16562 = vmatpush1.bf16.msra.mxu0 %v22885_v29  ;;  %16726 = vmatpush1.bf16.msra.mxu1 %v22888_v49  ;;  %v22963_v29 = vld [vmem:[%s29246_s4 + $0x460] ss:$16 sps:$4 sm:$0xff]   ;;  %v22966_v49 = vld [vmem:[%s29246_s4 + $0x468] ss:$16 sps:$4 sm:$0xff]  }
 0x7f5   : > { %16563 = vmatprep.subr.bf16.mxu0 %v22893_v36  ;;  %16727 = vmatprep.subr.bf16.mxu1 %v22896_v14  ;;  %v22971_v36 = vld [vmem:[%s29246_s4 + $0x484] ss:$16 sps:$4 sm:$0xff]   ;;  %v22974_v14 = vld [vmem:[%s29246_s4 + $0x48c] ss:$16 sps:$4 sm:$0xff]  }
 0x7f8   : > { %16564 = vmatpush1.bf16.msra.mxu0 %v22891_v58  ;;  %16728 = vmatpush1.bf16.msra.mxu1 %v22894_v34  ;;  %v22969_v58 = vld [vmem:[%s29246_s4 + $0x480] ss:$16 sps:$4 sm:$0xff]   ;;  %v22972_v34 = vld [vmem:[%s29246_s4 + $0x488] ss:$16 sps:$4 sm:$0xff]  }
 0x7f9   : > { %16565 = vmatprep.subr.bf16.mxu0 %v22899_v38  ;;  %16729 = vmatprep.subr.bf16.mxu1 %v22902_v48  ;;  %v22977_v38 = vld [vmem:[%s29246_s4 + $0x4a4] ss:$16 sps:$4 sm:$0xff]   ;;  %v22980_v48 = vld [vmem:[%s29246_s4 + $0x4ac] ss:$16 sps:$4 sm:$0xff]  }
 0x7fc   : > { %16566 = vmatpush1.bf16.msra.mxu0 %v22897_v44  ;;  %16730 = vmatpush1.bf16.msra.mxu1 %v22900_v33  ;;  %v22975_v44 = vld [vmem:[%s29246_s4 + $0x4a0] ss:$16 sps:$4 sm:$0xff]   ;;  %v22978_v33 = vld [vmem:[%s29246_s4 + $0x4a8] ss:$16 sps:$4 sm:$0xff]  }
 0x7fd   : > { %16567 = vmatprep.subr.bf16.mxu0 %v22905_v11  ;;  %16731 = vmatprep.subr.bf16.mxu1 %v22908_v3  ;;  %v22983_v11 = vld [vmem:[%s29246_s4 + $0x4c4] ss:$16 sps:$4 sm:$0xff]   ;;  %v22986_v3 = vld [vmem:[%s29246_s4 + $0x4cc] ss:$16 sps:$4 sm:$0xff]  }
 0x800   : > { %16568 = vmatpush1.bf16.msra.mxu0 %v22903_v45  ;;  %16732 = vmatpush1.bf16.msra.mxu1 %v22906_v56  ;;  %v22981_v45 = vld [vmem:[%s29246_s4 + $0x4c0] ss:$16 sps:$4 sm:$0xff]   ;;  %v22984_v56 = vld [vmem:[%s29246_s4 + $0x4c8] ss:$16 sps:$4 sm:$0xff]  }
 0x801   : > { %16569 = vmatprep.subr.bf16.mxu0 %v22911_v15  ;;  %16733 = vmatprep.subr.bf16.mxu1 %v22914_v22  ;;  %v22989_v15 = vld [vmem:[%s29246_s4 + $0x4e4] ss:$16 sps:$4 sm:$0xff]   ;;  %v22992_v22 = vld [vmem:[%s29246_s4 + $0x4ec] ss:$16 sps:$4 sm:$0xff]  }
 0x804   : > { %16570 = vmatpush1.bf16.msra.mxu0 %v22909_v18  ;;  %16734 = vmatpush1.bf16.msra.mxu1 %v22912_v50  ;;  %v22987_v18 = vld [vmem:[%s29246_s4 + $0x4e0] ss:$16 sps:$4 sm:$0xff]   ;;  %v22990_v50 = vld [vmem:[%s29246_s4 + $0x4e8] ss:$16 sps:$4 sm:$0xff]  }
 0x805   : > { %16571 = vmatprep.subr.bf16.mxu0 %v22917_v1  ;;  %16735 = vmatprep.subr.bf16.mxu1 %v22920_v31  ;;  %v22995_v1 = vld [vmem:[%s29246_s4 + $0x504] ss:$16 sps:$4 sm:$0xff]   ;;  %v22998_v31 = vld [vmem:[%s29246_s4 + $0x50c] ss:$16 sps:$4 sm:$0xff]  }
 0x808   : > { %16572 = vmatpush1.bf16.msra.mxu0 %v22915_v51  ;;  %16736 = vmatpush1.bf16.msra.mxu1 %v22918_v57  ;;  %v22993_v51 = vld [vmem:[%s29246_s4 + $0x500] ss:$16 sps:$4 sm:$0xff]   ;;  %v22996_v57 = vld [vmem:[%s29246_s4 + $0x508] ss:$16 sps:$4 sm:$0xff]  }
 0x809   : > { %16573 = vmatprep.subr.bf16.mxu0 %v22923_v59  ;;  %16737 = vmatprep.subr.bf16.mxu1 %v22926_v19  ;;  %v23001_v59 = vld [vmem:[%s29246_s4 + $0x524] ss:$16 sps:$4 sm:$0xff]   ;;  %v23004_v19 = vld [vmem:[%s29246_s4 + $0x52c] ss:$16 sps:$4 sm:$0xff]  }
 0x80c   : > { %16574 = vmatpush1.bf16.msra.mxu0 %v22921_v9  ;;  %16738 = vmatpush1.bf16.msra.mxu1 %v22924_v47  ;;  %v22999_v9 = vld [vmem:[%s29246_s4 + $0x520] ss:$16 sps:$4 sm:$0xff]   ;;  %v23002_v47 = vld [vmem:[%s29246_s4 + $0x528] ss:$16 sps:$4 sm:$0xff]  }
 0x80d   : > { %16575 = vmatprep.subr.bf16.mxu0 %v22929_v43  ;;  %16739 = vmatprep.subr.bf16.mxu1 %v22932_v21  ;;  %v23007_v43 = vld [vmem:[%s29246_s4 + $0x544] ss:$16 sps:$4 sm:$0xff]   ;;  %v23010_v21 = vld [vmem:[%s29246_s4 + $0x54c] ss:$16 sps:$4 sm:$0xff]  }
 0x810   : > { %16576 = vmatpush1.bf16.msra.mxu0 %v22927_v54  ;;  %16740 = vmatpush1.bf16.msra.mxu1 %v22930_v46  ;;  %v23005_v54 = vld [vmem:[%s29246_s4 + $0x540] ss:$16 sps:$4 sm:$0xff]   ;;  %v23008_v46 = vld [vmem:[%s29246_s4 + $0x548] ss:$16 sps:$4 sm:$0xff]  }
 0x811   : > { %16577 = vmatprep.subr.bf16.mxu0 %v22935_v63  ;;  %16741 = vmatprep.subr.bf16.mxu1 %v22938_v42  ;;  %v23013_v63 = vld [vmem:[%s29246_s4 + $0x564] ss:$16 sps:$4 sm:$0xff]   ;;  %v23016_v42 = vld [vmem:[%s29246_s4 + $0x56c] ss:$16 sps:$4 sm:$0xff]  }
 0x814   : > { %16578 = vmatpush1.bf16.msra.mxu0 %v22933_v61  ;;  %16742 = vmatpush1.bf16.msra.mxu1 %v22936_v30  ;;  %v23011_v61 = vld [vmem:[%s29246_s4 + $0x560] ss:$16 sps:$4 sm:$0xff]   ;;  %v23014_v30 = vld [vmem:[%s29246_s4 + $0x568] ss:$16 sps:$4 sm:$0xff]  }
 0x815   : > { %16579 = vmatprep.subr.bf16.mxu0 %v22941_v13  ;;  %16743 = vmatprep.subr.bf16.mxu1 %v22944_v60  ;;  %v23019_v13 = vld [vmem:[%s29246_s4 + $0x584] ss:$16 sps:$4 sm:$0xff]   ;;  %v23022_v60 = vld [vmem:[%s29246_s4 + $0x58c] ss:$16 sps:$4 sm:$0xff]  }
 0x818   : > { %16580 = vmatpush1.bf16.msra.mxu0 %v22939_v16  ;;  %16744 = vmatpush1.bf16.msra.mxu1 %v22942_v25  ;;  %v23025_v16 = vld [vmem:[%s29246_s4 + $0x5a4] ss:$16 sps:$4 sm:$0xff]   ;;  %v23028_v25 = vld [vmem:[%s29246_s4 + $0x5ac] ss:$16 sps:$4 sm:$0xff]  }
 0x819   : > { %16590 = vmatprep.subr.bf16.mxu0 %v22947_v28  ;;  %16754 = vmatprep.subr.bf16.mxu1 %v22950_v0  ;;  %v23023_v28 = vld [vmem:[%s29246_s4 + $0x5a0] ss:$16 sps:$4 sm:$0xff]   ;;  %v23026_v0 = vld [vmem:[%s29246_s4 + $0x5a8] ss:$16 sps:$4 sm:$0xff]  }
 0x81b   : > { %16582 = vmatmul.mubr.bf16.vlgmr.msra.gmra.mrb[100].mxu0 %v14944_v8  ;;  %16746 = vmatmul.mubr.bf16.vlgmr.msra.gmra.mrb[192].mxu1 %v14944_v8  ;;  %v23032_v8 = vld [vmem:[%s29246_s4 + $0x5c8] ss:$16 sps:$4 sm:$0xff]  }
 0x81c   : > { %16591 = vmatpush1.bf16.msra.mxu0 %v22945_v35  ;;  %16622 = vmatprep.mubr.bf16.mxu0 %v14947_v62  ;;  %v23029_v35 = vld [vmem:[%s29246_s4 + $0x5c0] ss:$16 sps:$4 sm:$0xff]  }
 0x81d   : > { %16755 = vmatpush1.bf16.msra.mxu1 %v22948_v10  ;;  %16786 = vmatprep.mubr.bf16.mxu1 %v14947_v62  ;;  %v23037_v10 = vld [vmem:[%s29246_s4 + $0x5e4] ss:$16 sps:$4 sm:$0xff]   ;;  %v14930_v62 = vmul.f32 0.01, %v28601_v20 }
 0x81e   : > { %16592 = vmatprep.subr.bf16.mxu0 %v22953_v12  ;;  %16756 = vmatprep.subr.bf16.mxu1 %v22956_v40  ;;  %v23040_v12 = vld [vmem:[%s29246_s4 + $0x5ec] ss:$16 sps:$4 sm:$0xff]   ;;  %v14933_v40 = vmul.f32 0.01, %v28619_v17 }
 0x820   : > { %16593 = vmatpush1.bf16.msra.mxu0 %v22951_v27  ;;  %v23035_v27 = vld [vmem:[%s29246_s4 + $0x5e0] ss:$16 sps:$4 sm:$0xff]  }
 0x821   : > { %16757 = vmatpush1.bf16.msra.mxu1 %v22954_v39  ;;  %16594 = vmatprep.subr.bf16.mxu0 %v22959_v52  ;;  %v23038_v39 = vld [vmem:[%s29246_s4 + $0x5e8] ss:$16 sps:$4 sm:$0xff]   ;;  %v23043_v52 = vld [vmem:[%s29246_s4 + $0x604] ss:$16 sps:$4 sm:$0xff]  }
 0x822   : > { %16758 = vmatprep.subr.bf16.mxu1 %v22962_v26  ;;  %v14938_v26 = vsel %vm14922_vm1, %v28601_v20, %v14930_v62  ;;  %v23049_v20 = vld [vmem:[%s29246_s4 + $0x624] ss:$16 sps:$4 sm:$0xff]   ;;  %v23116_v62 = vld [vmem:[%s29246_s4 + $0x788] ss:$16 sps:$4 sm:$0xff]  }
 0x824   : > { %16595 = vmatpush1.bf16.msra.mxu0 %v22957_v55  ;;  %v23046_v55 = vld [vmem:[%s29246_s4 + $0x60c] ss:$16 sps:$4 sm:$0xff]  }
 0x825   : > { %16759 = vmatpush1.bf16.msra.mxu1 %v22960_v41  ;;  %16596 = vmatprep.subr.bf16.mxu0 %v22965_v5  ;;  %v23041_v41 = vld [vmem:[%s29246_s4 + $0x600] ss:$16 sps:$4 sm:$0xff]   ;;  %v14941_v5 = vsel %vm14925_vm2, %v28619_v17, %v14933_v40  ;;  %v23124_v40 = vld [vmem:[%s29246_s4 + $0x7ac] ss:$16 sps:$4 sm:$0xff]  }
 0x826   : > { %16760 = vmatprep.subr.bf16.mxu1 %v22968_v32  ;;  %v14946_v32 = vpack.c.bf16 %v14938_v26, %v14938_v26  ;;  %v23047_v17 = vld [vmem:[%s29246_s4 + $0x620] ss:$16 sps:$4 sm:$0xff]   ;;  %v23130_v26 = vld [vmem:[%s29246_s4 + $0x7cc] ss:$16 sps:$4 sm:$0xff]  }
 0x828   : > { %16597 = vmatpush1.bf16.msra.mxu0 %v22963_v29  ;;  %v23044_v29 = vld [vmem:[%s29246_s4 + $0x608] ss:$16 sps:$4 sm:$0xff]  }
 0x829   : > { %16761 = vmatpush1.bf16.msra.mxu1 %v22966_v49  ;;  %16598 = vmatprep.subr.bf16.mxu0 %v22971_v36  ;;  %v14949_v49 = vpack.c.bf16 %v14941_v5, %v14941_v5  ;;  %v23052_v36 = vld [vmem:[%s29246_s4 + $0x62c] ss:$16 sps:$4 sm:$0xff]   ;;  %v23133_v5 = vld [vmem:[%s29246_s4 + $0x7e4] ss:$16 sps:$4 sm:$0xff]  }
 0x82a   : > { %16762 = vmatprep.subr.bf16.mxu1 %v22974_v14  ;;  %v23050_v14 = vld [vmem:[%s29246_s4 + $0x628] ss:$16 sps:$4 sm:$0xff]  }
 0x82c   : > { %16599 = vmatpush1.bf16.msra.mxu0 %v22969_v58  ;;  %v23055_v58 = vld [vmem:[%s29246_s4 + $0x644] ss:$16 sps:$4 sm:$0xff]  }
 0x82d   : > { %16763 = vmatpush1.bf16.msra.mxu1 %v22972_v34  ;;  %16600 = vmatprep.subr.bf16.mxu0 %v22977_v38  ;;  %v23058_v34 = vld [vmem:[%s29246_s4 + $0x64c] ss:$16 sps:$4 sm:$0xff]   ;;  %v23053_v38 = vld [vmem:[%s29246_s4 + $0x640] ss:$16 sps:$4 sm:$0xff]  }
 0x82e   : > { %16764 = vmatprep.subr.bf16.mxu1 %v22980_v48  ;;  %v23056_v48 = vld [vmem:[%s29246_s4 + $0x648] ss:$16 sps:$4 sm:$0xff]  }
 0x830   : > { %16601 = vmatpush1.bf16.msra.mxu0 %v22975_v44  ;;  %v23061_v44 = vld [vmem:[%s29246_s4 + $0x664] ss:$16 sps:$4 sm:$0xff]  }
 0x831   : > { %16765 = vmatpush1.bf16.msra.mxu1 %v22978_v33  ;;  %16602 = vmatprep.subr.bf16.mxu0 %v22983_v11  ;;  %v23064_v33 = vld [vmem:[%s29246_s4 + $0x66c] ss:$16 sps:$4 sm:$0xff]   ;;  %v23059_v11 = vld [vmem:[%s29246_s4 + $0x660] ss:$16 sps:$4 sm:$0xff]  }
 0x832   : > { %16766 = vmatprep.subr.bf16.mxu1 %v22986_v3  ;;  %v23062_v3 = vld [vmem:[%s29246_s4 + $0x668] ss:$16 sps:$4 sm:$0xff]  }
 0x834   : > { %16603 = vmatpush1.bf16.msra.mxu0 %v22981_v45  ;;  %v23067_v45 = vld [vmem:[%s29246_s4 + $0x684] ss:$16 sps:$4 sm:$0xff]  }
 0x835   : > { %16767 = vmatpush1.bf16.msra.mxu1 %v22984_v56  ;;  %16604 = vmatprep.subr.bf16.mxu0 %v22989_v15  ;;  %v23070_v56 = vld [vmem:[%s29246_s4 + $0x68c] ss:$16 sps:$4 sm:$0xff]   ;;  %v23065_v15 = vld [vmem:[%s29246_s4 + $0x680] ss:$16 sps:$4 sm:$0xff]  }
 0x836   : > { %16768 = vmatprep.subr.bf16.mxu1 %v22992_v22  ;;  %v23068_v22 = vld [vmem:[%s29246_s4 + $0x688] ss:$16 sps:$4 sm:$0xff]  }
 0x838   : > { %16605 = vmatpush1.bf16.msra.mxu0 %v22987_v18  ;;  %v23073_v18 = vld [vmem:[%s29246_s4 + $0x6a4] ss:$16 sps:$4 sm:$0xff]  }
 0x839   : > { %16769 = vmatpush1.bf16.msra.mxu1 %v22990_v50  ;;  %16606 = vmatprep.subr.bf16.mxu0 %v22995_v1  ;;  %v23076_v50 = vld [vmem:[%s29246_s4 + $0x6ac] ss:$16 sps:$4 sm:$0xff]   ;;  %v23071_v1 = vld [vmem:[%s29246_s4 + $0x6a0] ss:$16 sps:$4 sm:$0xff]  }
 0x83a   : > { %16770 = vmatprep.subr.bf16.mxu1 %v22998_v31  ;;  %v23074_v31 = vld [vmem:[%s29246_s4 + $0x6a8] ss:$16 sps:$4 sm:$0xff]  }
 0x83c   : > { %16607 = vmatpush1.bf16.msra.mxu0 %v22993_v51  ;;  %v23079_v51 = vld [vmem:[%s29246_s4 + $0x6c4] ss:$16 sps:$4 sm:$0xff]  }
 0x83d   : > { %16771 = vmatpush1.bf16.msra.mxu1 %v22996_v57  ;;  %16608 = vmatprep.subr.bf16.mxu0 %v23001_v59  ;;  %v23082_v57 = vld [vmem:[%s29246_s4 + $0x6cc] ss:$16 sps:$4 sm:$0xff]   ;;  %v23077_v59 = vld [vmem:[%s29246_s4 + $0x6c0] ss:$16 sps:$4 sm:$0xff]  }
 0x83e   : > { %16772 = vmatprep.subr.bf16.mxu1 %v23004_v19  ;;  %v23080_v19 = vld [vmem:[%s29246_s4 + $0x6c8] ss:$16 sps:$4 sm:$0xff]  }
 0x840   : > { %16609 = vmatpush1.bf16.msra.mxu0 %v22999_v9  ;;  %v23085_v9 = vld [vmem:[%s29246_s4 + $0x6e4] ss:$16 sps:$4 sm:$0xff]  }
 0x841   : > { %16773 = vmatpush1.bf16.msra.mxu1 %v23002_v47  ;;  %16610 = vmatprep.subr.bf16.mxu0 %v23007_v43  ;;  %v23088_v47 = vld [vmem:[%s29246_s4 + $0x6ec] ss:$16 sps:$4 sm:$0xff]   ;;  %v23083_v43 = vld [vmem:[%s29246_s4 + $0x6e0] ss:$16 sps:$4 sm:$0xff]  }
 0x842   : > { %16774 = vmatprep.subr.bf16.mxu1 %v23010_v21  ;;  %v23086_v21 = vld [vmem:[%s29246_s4 + $0x6e8] ss:$16 sps:$4 sm:$0xff]  }
 0x844   : > { %16611 = vmatpush1.bf16.msra.mxu0 %v23005_v54  ;;  %v23091_v54 = vld [vmem:[%s29246_s4 + $0x704] ss:$16 sps:$4 sm:$0xff]  }
 0x845   : > { %16775 = vmatpush1.bf16.msra.mxu1 %v23008_v46  ;;  %16612 = vmatprep.subr.bf16.mxu0 %v23013_v63  ;;  %v23094_v46 = vld [vmem:[%s29246_s4 + $0x70c] ss:$16 sps:$4 sm:$0xff]   ;;  %v23089_v63 = vld [vmem:[%s29246_s4 + $0x700] ss:$16 sps:$4 sm:$0xff]  }
 0x846   : > { %16776 = vmatprep.subr.bf16.mxu1 %v23016_v42  ;;  %v23092_v42 = vld [vmem:[%s29246_s4 + $0x708] ss:$16 sps:$4 sm:$0xff]  }
 0x848   : > { %16613 = vmatpush1.bf16.msra.mxu0 %v23011_v61  ;;  %v23097_v61 = vld [vmem:[%s29246_s4 + $0x724] ss:$16 sps:$4 sm:$0xff]  }
 0x849   : > { %16777 = vmatpush1.bf16.msra.mxu1 %v23014_v30  ;;  %16614 = vmatprep.subr.bf16.mxu0 %v23019_v13  ;;  %v23100_v30 = vld [vmem:[%s29246_s4 + $0x72c] ss:$16 sps:$4 sm:$0xff]   ;;  %v23095_v13 = vld [vmem:[%s29246_s4 + $0x720] ss:$16 sps:$4 sm:$0xff]  }
 0x84a   : > { %16778 = vmatprep.subr.bf16.mxu1 %v23022_v60  ;;  %v23098_v60 = vld [vmem:[%s29246_s4 + $0x728] ss:$16 sps:$4 sm:$0xff]  }
 0x84c   : > { %16615 = vmatpush1.bf16.msra.mxu0 %v23017_v53  ;;  %v23103_v53 = vld [vmem:[%s29246_s4 + $0x744] ss:$16 sps:$4 sm:$0xff]  }
 0x84d   : > { %16779 = vmatpush1.bf16.msra.mxu1 %v23020_v24  ;;  %16616 = vmatprep.subr.bf16.mxu0 %v23025_v16  ;;  %v23106_v24 = vld [vmem:[%s29246_s4 + $0x74c] ss:$16 sps:$4 sm:$0xff]   ;;  %v23101_v16 = vld [vmem:[%s29246_s4 + $0x740] ss:$16 sps:$4 sm:$0xff]  }
 0x84e   : > { %16780 = vmatprep.subr.bf16.mxu1 %v23028_v25  ;;  %v23104_v25 = vld [vmem:[%s29246_s4 + $0x748] ss:$16 sps:$4 sm:$0xff]  }
 0x850   : > { %16617 = vmatpush1.bf16.msra.mxu0 %v23023_v28  ;;  %v23109_v28 = vld [vmem:[%s29246_s4 + $0x764] ss:$16 sps:$4 sm:$0xff]  }
 0x851   : > { %16781 = vmatpush1.bf16.msra.mxu1 %v23026_v0  ;;  %16618 = vmatprep.subr.bf16.mxu0 %v23031_v23  ;;  %v23112_v0 = vld [vmem:[%s29246_s4 + $0x76c] ss:$16 sps:$4 sm:$0xff]   ;;  %v23107_v23 = vld [vmem:[%s29246_s4 + $0x760] ss:$16 sps:$4 sm:$0xff]  }
 0x852   : > { %16782 = vmatprep.subr.bf16.mxu1 %v23034_v37  ;;  %v23110_v37 = vld [vmem:[%s29246_s4 + $0x768] ss:$16 sps:$4 sm:$0xff]  }
 0x854   : > { %16619 = vmatpush1.bf16.msra.mxu0 %v23029_v35  ;;  %v23115_v35 = vld [vmem:[%s29246_s4 + $0x784] ss:$16 sps:$4 sm:$0xff]  }
 0x855   : > { %16783 = vmatpush1.bf16.msra.mxu1 %v23032_v8  ;;  %16620 = vmatprep.subr.bf16.mxu0 %v23037_v10  ;;  %v23118_v8 = vld [vmem:[%s29246_s4 + $0x78c] ss:$16 sps:$4 sm:$0xff]   ;;  %v23113_v10 = vld [vmem:[%s29246_s4 + $0x780] ss:$16 sps:$4 sm:$0xff]  }
 0x856   : > { %16784 = vmatprep.subr.bf16.mxu1 %v23040_v12  ;;  %v23121_v12 = vld [vmem:[%s29246_s4 + $0x7a4] ss:$16 sps:$4 sm:$0xff]  }
 0x858   : > { %16621 = vmatpush1.bf16.msra.mxu0 %v23035_v27  ;;  %v23119_v27 = vld [vmem:[%s29246_s4 + $0x7a0] ss:$16 sps:$4 sm:$0xff]  }
 0x859   : > { %16785 = vmatpush1.bf16.msra.mxu1 %v23038_v39  ;;  %16631 = vmatprep.subr.bf16.mxu0 %v23043_v52  ;;  %v23122_v39 = vld [vmem:[%s29246_s4 + $0x7a8] ss:$16 sps:$4 sm:$0xff]   ;;  %v23127_v52 = vld [vmem:[%s29246_s4 + $0x7c4] ss:$16 sps:$4 sm:$0xff]  }
 0x85a   : > { %16795 = vmatprep.subr.bf16.mxu1 %v23046_v55  ;;  %v23125_v55 = vld [vmem:[%s29246_s4 + $0x7c0] ss:$16 sps:$4 sm:$0xff]  }
 0x85b   : > { %16623 = vmatmul.mubr.bf16.vlgmr.msra.gmra.mrb[100].mxu0 %v14946_v32 }
 0x85c   : > { %16787 = vmatmul.mubr.bf16.vlgmr.msra.gmra.mrb[192].mxu1 %v14946_v32  ;;  %16632 = vmatpush1.bf16.msra.mxu0 %v23041_v41  ;;  %v23128_v41 = vld [vmem:[%s29246_s4 + $0x7c8] ss:$16 sps:$4 sm:$0xff]   ;;  %v14932_v32 = vmul.f32 0.01, %v28611_v2 }
 0x85d   : > { %16663 = vmatprep.mubr.bf16.mxu0 %v14949_v49  ;;  %16796 = vmatpush1.bf16.msra.mxu1 %v23044_v29  ;;  %v23136_v29 = vld [vmem:[%s29246_s4 + $0x7ec] ss:$16 sps:$4 sm:$0xff]  }
 0x85e   : > { %16827 = vmatprep.mubr.bf16.mxu1 %v14949_v49  ;;  %16633 = vmatprep.subr.bf16.mxu0 %v23049_v20  ;;  %v23131_v20 = vld [vmem:[%s29246_s4 + $0x7e0] ss:$16 sps:$4 sm:$0xff]   ;;  %v23134_v49 = vld [vmem:[%s29246_s4 + $0x7e8] ss:$16 sps:$4 sm:$0xff]  }
 0x85f   : > { %16797 = vmatprep.subr.bf16.mxu1 %v23052_v36  ;;  %v14940_v36 = vsel %vm14924_vm3, %v28611_v2, %v14932_v32 }
 0x860   : > { %16634 = vmatpush1.bf16.msra.mxu0 %v23047_v17  ;;  %v14948_v17 = vpack.c.bf16 %v14940_v36, %v14940_v36 }
 0x861   : > { %16798 = vmatpush1.bf16.msra.mxu1 %v23050_v14  ;;  %16635 = vmatprep.subr.bf16.mxu0 %v23055_v58  ;;  %v15206_v14 = vld [vmem:[%s29250_s8] sm:$0xf] }
 0x862   : > { %16799 = vmatprep.subr.bf16.mxu1 %v23058_v34  ;;  %v15211_v58 = vrot.slane %v15206_v14, %v25355_v6  ;;  %v15219_v34 = vrot.slane %v15206_v14, %v25357_v7 }
 0x864   : > { %16636 = vmatpush1.bf16.msra.mxu0 %v23053_v38  ;;  %v15215_v38 = vrot.slane %v15206_v14, %v29259_v4 }
 0x865   : > { %16800 = vmatpush1.bf16.msra.mxu1 %v23056_v48  ;;  %16637 = vmatprep.subr.bf16.mxu0 %v23061_v44  ;;  %v29260_v48 = vld [vmem:[#allocation8_spill] sm:$0xff] }
 0x866   : > { %16801 = vmatprep.subr.bf16.mxu1 %v23064_v33  ;;  %v15223_v2 = vrot.slane %v15206_v14, %v29260_v48 }
 0x868   : > { %16638 = vmatpush1.bf16.msra.mxu0 %v23059_v11 }
 0x869   : > { %16802 = vmatpush1.bf16.msra.mxu1 %v23062_v3  ;;  %16639 = vmatprep.subr.bf16.mxu0 %v23067_v45 }
 0x86a   : > { %16803 = vmatprep.subr.bf16.mxu1 %v23070_v56 }
 0x86c   : > { %16640 = vmatpush1.bf16.msra.mxu0 %v23065_v15 }
 0x86d   : > { %16804 = vmatpush1.bf16.msra.mxu1 %v23068_v22  ;;  %16641 = vmatprep.subr.bf16.mxu0 %v23073_v18 }
 0x86e   : > { %16805 = vmatprep.subr.bf16.mxu1 %v23076_v50 }
 0x870   : > { %16642 = vmatpush1.bf16.msra.mxu0 %v23071_v1 }
 0x871   : > { %16806 = vmatpush1.bf16.msra.mxu1 %v23074_v31  ;;  %16643 = vmatprep.subr.bf16.mxu0 %v23079_v51 }
 0x872   : > { %16807 = vmatprep.subr.bf16.mxu1 %v23082_v57 }
 0x874   : > { %16644 = vmatpush1.bf16.msra.mxu0 %v23077_v59 }
 0x875   : > { %16808 = vmatpush1.bf16.msra.mxu1 %v23080_v19  ;;  %16645 = vmatprep.subr.bf16.mxu0 %v23085_v9 }
 0x876   : > { %16809 = vmatprep.subr.bf16.mxu1 %v23088_v47 }
 0x878   : > { %16646 = vmatpush1.bf16.msra.mxu0 %v23083_v43 }
 0x879   : > { %16810 = vmatpush1.bf16.msra.mxu1 %v23086_v21  ;;  %16647 = vmatprep.subr.bf16.mxu0 %v23091_v54 }
 0x87a   : > { %16811 = vmatprep.subr.bf16.mxu1 %v23094_v46 }
 0x87c   : > { %16648 = vmatpush1.bf16.msra.mxu0 %v23089_v63 }
 0x87d   : > { %16812 = vmatpush1.bf16.msra.mxu1 %v23092_v42  ;;  %16649 = vmatprep.subr.bf16.mxu0 %v23097_v61 }
 0x87e   : > { %16813 = vmatprep.subr.bf16.mxu1 %v23100_v30 }
 0x880   : > { %16650 = vmatpush1.bf16.msra.mxu0 %v23095_v13 }
 0x881   : > { %16814 = vmatpush1.bf16.msra.mxu1 %v23098_v60  ;;  %16651 = vmatprep.subr.bf16.mxu0 %v23103_v53 }
 0x882   : > { %16815 = vmatprep.subr.bf16.mxu1 %v23106_v24 }
 0x884   : > { %16652 = vmatpush1.bf16.msra.mxu0 %v23101_v16 }
 0x885   : > { %16816 = vmatpush1.bf16.msra.mxu1 %v23104_v25  ;;  %16653 = vmatprep.subr.bf16.mxu0 %v23109_v28 }
 0x886   : > { %16817 = vmatprep.subr.bf16.mxu1 %v23112_v0 }
 0x888   : > { %16654 = vmatpush1.bf16.msra.mxu0 %v23107_v23 }
 0x889   : > { %16818 = vmatpush1.bf16.msra.mxu1 %v23110_v37  ;;  %16655 = vmatprep.subr.bf16.mxu0 %v23115_v35 }
 0x88a   : > { %16819 = vmatprep.subr.bf16.mxu1 %v23118_v8 }
 0x88c   : > { %16656 = vmatpush1.bf16.msra.mxu0 %v23113_v10 }
 0x88d   : > { %16820 = vmatpush1.bf16.msra.mxu1 %v23116_v62  ;;  %16657 = vmatprep.subr.bf16.mxu0 %v23121_v12 }
 0x88e   : > { %16821 = vmatprep.subr.bf16.mxu1 %v23124_v40 }
 0x890   : > { %16658 = vmatpush1.bf16.msra.mxu0 %v23119_v27 }
 0x891   : > { %16822 = vmatpush1.bf16.msra.mxu1 %v23122_v39  ;;  %16659 = vmatprep.subr.bf16.mxu0 %v23127_v52 }
 0x892   : > { %16823 = vmatprep.subr.bf16.mxu1 %v23130_v26 }
 0x894   : > { %16660 = vmatpush1.bf16.msra.mxu0 %v23125_v55 }
 0x895   : > { %16824 = vmatpush1.bf16.msra.mxu1 %v23128_v41  ;;  %16661 = vmatprep.subr.bf16.mxu0 %v23133_v5 }
 0x896   : > { %16825 = vmatprep.subr.bf16.mxu1 %v23136_v29 }
 0x898   : > { %16662 = vmatpush1.bf16.msra.mxu0 %v23131_v20 }
 0x899   : > { %16826 = vmatpush1.bf16.msra.mxu1 %v23134_v49 }
 0x89b   : > { %16664 = vmatmul.mubr.bf16.vlgmr.msra.gmra.mrb[100].mxu0 %v14948_v17 }
 0x89c   : > { %16828 = vmatmul.mubr.bf16.vlgmr.msra.gmra.mrb[192].mxu1 %v14948_v17 }
 0x96e   : > { %v16665_v44 = vpop.f32.mrb[100].mxu0 }
 0x96f   : > { %v20161_v33 = vadd.f32 %v16665_v44, %v15211_v58  ;;  %v16829_v11 = vpop.f32.mrb[192].mxu1  ;;  %v16667_v3 = vpop.f32.mrb[101].mxu0 }
 0x970   : > { %v20163_v45 = vadd.f32 %v16829_v11, %v15219_v34  ;;  %v20162_v56 = vadd.f32 %v16667_v3, %v15215_v38  ;;  %v16831_v15 = vpop.f32.mrb[193].mxu1  ;;  %v16669_v22 = vpop.f32.mrb[102].mxu0 }
 0x971   : > { %16836 = vst [vmem:[%s328_s27] sm:$0xff] %v20161_v33  ;;  %v20164_v6 = vadd.f32 %v16831_v15, %v15223_v2  ;;  %v16833_v18 = vpop.f32.mrb[194].mxu1  ;;  %v16670_v7 = vpop.f32.mrb[103].mxu0 }
 0x972   : > { %16838 = vst [vmem:[%s328_s27 + $0x10] sm:$0xff] %v20163_v45  ;;  %16837 = vst [vmem:[%s328_s27 + $0x8] sm:$0xff] %v20162_v56  ;;  %v16834_v4 = vpop.f32.mrb[195].mxu1 }
 0x973   : > { %16839 = vst [vmem:[%s328_s27 + $0x18] sm:$0xff] %v20164_v6 }
 0x974   : > { %23150 = shalt.err (!%p23147_p3)
}
 0x975   : > { %s23151_s24 = scalar_lea.hbm %s29200_s21, 512  ;;  %s23155_s27 = scalar_lea.hbm %s29251_s9, 1024 }
 0x976   : > { %p23152_p4 = scmp.ne.s32.totalorder %s29200_s21, %s23151_s24  ;;  %p23156_p9 = scmp.lt.u32.totalorder %s29200_s21, %s29251_s9 }
 0x977   : > { %p23157_p10 = scmp.lt.u32.totalorder %s23155_s27, %s23151_s24  ;;  %p23159_p12 = scmp.lt.u32.totalorder %s23151_s24, %s29200_s21 }
 0x978   : > { %p23153_p7 = pnand %p23152_p4, %p23291_p5 }
 0x979   : > { %p23158_p11 = por %p23157_p10, %p23156_p9 }
 0x97a   : > { %p23154_p8 = pneg %p23153_p7 }
 0x97b   : > { %p23160_p13 = por %p23159_p12, %p23158_p11 }
 0x97d   : > { %p23161_p0 = pnand %p23160_p13, %p23154_p8 }
 0x97f   : > { %23164 = shalt.err (!%p23161_p0)
}
 0x980   : > { %20649 = dma.vmem_to_hbm [thread:$0]  (%p23291_p5), %s29202_s16, 512, %s29200_s21, %s16841_s13  }
 0x981 PF: > { %p20655_p1 = scmp.ge.s32.totalorder %s23199_s12, 2  ;;  %s16867_s22 = sand.u32 1, %s23187_s30  }
 0x982   : > { %s16868_s23 = scalar_lea.sflag [#allocation5], %s16867_s22 }
 0x983   : > { %p20652_p2 = pnand %p20655_p1, %p23295_p6 }
 0x985   : > { %23182 = dma.done.wait (!%p20652_p2), %s16868_s23, 512  }
 0x986   : > { %23184 = vsyncadd (!%p20652_p2), %s16868_s23, 4294966784  ;;  %p19_p3 = scmp.ge.s32.totalorder %s23278_s15, 4   ;;  %s29261_s30 = smov %s23191_s10 }
 0x987   : > { %s29262_s10 = smov %s23195_s11  ;;  %s29263_s11 = smov %s23289_s18 }
 0x988   : > { %s29264_s12 = smov %s23278_s15  ;;  %21 = sbr.rel (!%p19_p3) target bundleno = 3 (0x3), region = 103 }
 0x98f   :  { %16873 = vsyncpa [#allocation5], 1 }
 0x990   :  { %16875 = vsyncpa [#allocation5 + $0x1], 1 }

</bundles_post_ra>
